<compile_context>
chip_gen: v7x
topology: tpu7x:2x2x1
jax: 0.10.0
libtpu: 0.0.40
codegen_flags: <defaults>
</compile_context>

<pallas_src>
import functools

import jax
import jax.numpy as jnp
from jax.experimental import pallas as pl
from jax.experimental.pallas import tpu as pltpu


def _im2col3x3(x_hwc, H, W):
    """Patch matrix for a 3x3 / stride-1 / pad-1 conv.

    x_hwc: (H, W, C) value already resident on-chip.
    Returns (H*W, 9*C); columns ordered tap-major ((ky*3+kx)*C + c), matching
    weights laid out as (3, 3, C, Cout).reshape(9*C, Cout).
    """
    C = x_hwc.shape[-1]
    dt = x_hwc.dtype
    zrow = jnp.zeros((1, W, C), dt)
    xp = jnp.concatenate([zrow, x_hwc, zrow], axis=0)        # (H+2, W,   C)
    zcol = jnp.zeros((H + 2, 1, C), dt)
    xp = jnp.concatenate([zcol, xp, zcol], axis=1)           # (H+2, W+2, C)
    taps = [xp[ky:ky + H, kx:kx + W, :]
            for ky in range(3) for kx in range(3)]
    return jnp.concatenate(taps, axis=-1).reshape(H * W, 9 * C)


def _ae_fused_kernel(x_ref,
                     we1_ref, be1_ref, we2_ref, be2_ref,
                     wri_ref, bri_ref,
                     wro_t_ref, bro_t_ref,
                     wsa_t_ref, wsb_t_ref, bs_t_ref,
                     rec_ref, seg_ref, *, H, W):
    f32 = jnp.float32

    def conv_relu(patches, w_ref, b_ref):
        # One fused MXU matmul: (H*W, 9*Cin) @ (9*Cin, Cout), f32 accumulate.
        y = jnp.dot(patches, w_ref[...], preferred_element_type=f32)
        return jnp.maximum(y + b_ref[...], 0.0)              # (H*W, Cout)

    def conv_out_t(patches, wt_ref):
        # NT matmul: (Cout, 9*Cin) x (H*W, 9*Cin)^T -> (Cout, H*W)
        # so the store's last (lane) dim is H*W -> unmasked, lane-dense.
        return jax.lax.dot_general(
            wt_ref[...], patches, (((1,), (1,)), ((), ())),
            preferred_element_type=f32)

    cin = x_ref.shape[-1]
    x = x_ref[0].reshape(H, W, cin).astype(f32)              # (H, W, Cin)

    # Encoder
    h = conv_relu(_im2col3x3(x, H, W), we1_ref, be1_ref)
    f = conv_relu(_im2col3x3(h.reshape(H, W, -1), H, W), we2_ref, be2_ref)

    # Reconstructor inner conv + segmentor contribution from f.
    # pf is shared by rec_inner and seg (no concat feature map needed) and is
    # consumed immediately to keep its live range short.
    pf = _im2col3x3(f.reshape(H, W, -1), H, W)
    f_inner = conv_relu(pf, wri_ref, bri_ref)
    seg_t = conv_out_t(pf, wsa_t_ref)                        # (nclass, H*W)

    # Reconstructor output + segmentor contribution from f_inner.
    pfi = _im2col3x3(f_inner.reshape(H, W, -1), H, W)
    rec_t = conv_out_t(pfi, wro_t_ref) + bro_t_ref[...]      # (Cin, H*W)
    seg_t = seg_t + conv_out_t(pfi, wsb_t_ref) + bs_t_ref[...]

    rec_ref[0] = rec_t.astype(rec_ref.dtype)
    seg_ref[0] = seg_t.astype(seg_ref.dtype)


def init_params(key, in_ch, feat_ch, nclass):
    """Deterministic synthetic parameters (no checkpoint load)."""
    def conv_param(k, cin, cout):
        kw, kb = jax.random.split(k)
        w = jax.random.normal(kw, (3, 3, cin, cout), jnp.float32) * 0.1
        b = jax.random.normal(kb, (cout,), jnp.float32) * 0.01
        return w, b

    keys = jax.random.split(key, 5)
    return {
        # Encoder: two conv+ReLU layers, in_ch -> feat_ch -> feat_ch
        "enc1": conv_param(keys[0], in_ch, feat_ch),
        "enc2": conv_param(keys[1], feat_ch, feat_ch),
        # Reconstructor: inner feature conv (+ReLU), then rec conv (linear)
        "rec_inner": conv_param(keys[2], feat_ch, feat_ch),
        "rec_out": conv_param(keys[3], feat_ch, in_ch),
        # Segmentor: conv over concat(f, f_inner) -> nclass logits
        "seg": conv_param(keys[4], 2 * feat_ch, nclass),
    }


def autoencoder_forward(params, x_nchw):
    """Matches Autoencoder.forward: returns (rec, seg) in NCHW."""
    N, Cin, H, W = x_nchw.shape
    HW = H * W

    w_e1, b_e1 = params["enc1"]
    w_e2, b_e2 = params["enc2"]
    w_ri, b_ri = params["rec_inner"]
    w_ro, b_ro = params["rec_out"]
    w_s, b_s = params["seg"]
    feat = w_e1.shape[-1]
    nclass = w_s.shape[-1]

    def mm(w):            # (3,3,ci,co) -> (9*ci, co)   [im2col weight]
        return w.reshape(9 * w.shape[2], w.shape[3])

    def mm_t(w):          # (3,3,ci,co) -> (co, 9*ci)   [transposed-output conv]
        return mm(w).T

    args = (
        # Input: (N, H*W, Cin); free reshape + one tiny transpose of x only.
        jnp.transpose(x_nchw, (0, 2, 3, 1)).reshape(N, HW, Cin),
        mm(w_e1), b_e1.reshape(1, feat),
        mm(w_e2), b_e2.reshape(1, feat),
        mm(w_ri), b_ri.reshape(1, feat),
        mm_t(w_ro), b_ro.reshape(Cin, 1),
        # Segmentor weight split along Cin of the virtual concat [f, f_inner].
        mm_t(w_s[:, :, :feat, :]), mm_t(w_s[:, :, feat:, :]),
        b_s.reshape(nclass, 1),
    )

    def full_spec(a):
        nd = a.ndim
        return pl.BlockSpec(a.shape, lambda n, _nd=nd: (0,) * _nd)

    in_specs = [pl.BlockSpec((1, HW, Cin), lambda n: (n, 0, 0))] + \
               [full_spec(a) for a in args[1:]]

    rec, seg = pl.pallas_call(
        functools.partial(_ae_fused_kernel, H=H, W=W),
        out_shape=(jax.ShapeDtypeStruct((N, Cin, HW), x_nchw.dtype),
                   jax.ShapeDtypeStruct((N, nclass, HW), x_nchw.dtype)),
        grid_spec=pltpu.PrefetchScalarGridSpec(
            num_scalar_prefetch=0,
            grid=(N,),
            in_specs=in_specs,
            out_specs=(pl.BlockSpec((1, Cin, HW), lambda n: (n, 0, 0)),
                       pl.BlockSpec((1, nclass, HW), lambda n: (n, 0, 0))),
        ),
        compiler_params=pltpu.CompilerParams(
            dimension_semantics=("parallel",)),
    )(*args)

    # Outputs are already channel-major -> NCHW via free reshape.
    return rec.reshape(N, Cin, H, W), seg.reshape(N, nclass, H, W)


if __name__ == "__main__":
    key = jax.random.PRNGKey(0)
    k_param, k_x = jax.random.split(key)

    N, C, H, W = 2, 4, 16, 16
    FEAT = 16
    NCLASS = 3

    params = init_params(k_param, C, FEAT, NCLASS)
    x = jax.random.normal(k_x, (N, C, H, W), jnp.float32)

    fwd = jax.jit(autoencoder_forward)
    rec, seg = fwd(params, x)
    jax.block_until_ready((rec, seg))

    assert rec.shape == (N, C, H, W), rec.shape
    assert seg.shape == (N, NCLASS, H, W), seg.shape
    print("KERNEL_OK")
</pallas_src>

<mosaic_0001>
module attributes {stable_mosaic.version = 11 : i64} {
  func.func @_ae_fused_kernel(%arg0: i32, %arg1: memref<1x256x4xf32, #tpu.memory_space<vmem>>, %arg2: memref<36x16xf32, #tpu.memory_space<vmem>>, %arg3: memref<1x16xf32, #tpu.memory_space<vmem>>, %arg4: memref<144x16xf32, #tpu.memory_space<vmem>>, %arg5: memref<1x16xf32, #tpu.memory_space<vmem>>, %arg6: memref<144x16xf32, #tpu.memory_space<vmem>>, %arg7: memref<1x16xf32, #tpu.memory_space<vmem>>, %arg8: memref<4x144xf32, #tpu.memory_space<vmem>>, %arg9: memref<4x1xf32, #tpu.memory_space<vmem>>, %arg10: memref<3x144xf32, #tpu.memory_space<vmem>>, %arg11: memref<3x144xf32, #tpu.memory_space<vmem>>, %arg12: memref<3x1xf32, #tpu.memory_space<vmem>>, %arg13: memref<1x4x256xf32, #tpu.memory_space<vmem>>, %arg14: memref<1x3x256xf32, #tpu.memory_space<vmem>>) attributes {dimension_semantics = [#tpu.dimension_semantics<parallel>], iteration_bounds = array<i64: 2>, scalar_prefetch = 0 : i64, scratch_operands = 0 : i64, tpu.core_type = #tpu.core_type<tc>, window_params = [{transform_indices = @transform_0, window_bounds = array<i64: 1, 256, 4>}, {pipeline_mode = #tpu.pipeline_mode<synchronous>, transform_indices = @transform_1, window_bounds = array<i64: 36, 16>}, {pipeline_mode = #tpu.pipeline_mode<synchronous>, transform_indices = @transform_2, window_bounds = array<i64: 1, 16>}, {pipeline_mode = #tpu.pipeline_mode<synchronous>, transform_indices = @transform_3, window_bounds = array<i64: 144, 16>}, {pipeline_mode = #tpu.pipeline_mode<synchronous>, transform_indices = @transform_4, window_bounds = array<i64: 1, 16>}, {pipeline_mode = #tpu.pipeline_mode<synchronous>, transform_indices = @transform_5, window_bounds = array<i64: 144, 16>}, {pipeline_mode = #tpu.pipeline_mode<synchronous>, transform_indices = @transform_6, window_bounds = array<i64: 1, 16>}, {pipeline_mode = #tpu.pipeline_mode<synchronous>, transform_indices = @transform_7, window_bounds = array<i64: 4, 144>}, {pipeline_mode = #tpu.pipeline_mode<synchronous>, transform_indices = @transform_8, window_bounds = array<i64: 4, 1>}, {pipeline_mode = #tpu.pipeline_mode<synchronous>, transform_indices = @transform_9, window_bounds = array<i64: 3, 144>}, {pipeline_mode = #tpu.pipeline_mode<synchronous>, transform_indices = @transform_10, window_bounds = array<i64: 3, 144>}, {pipeline_mode = #tpu.pipeline_mode<synchronous>, transform_indices = @transform_11, window_bounds = array<i64: 3, 1>}, {transform_indices = @transform_12, window_bounds = array<i64: 1, 4, 256>}, {transform_indices = @transform_13, window_bounds = array<i64: 1, 3, 256>}]} {
    %c0 = arith.constant 0 : index
    %c0_0 = arith.constant 0 : index
    %c0_1 = arith.constant 0 : index
    %0 = vector.load %arg1[%c0, %c0_0, %c0_1] : memref<1x256x4xf32, #tpu.memory_space<vmem>>, vector<1x256x4xf32>
    %1 = vector.shape_cast %0 : vector<1x256x4xf32> to vector<256x4xf32>
    %2 = vector.shape_cast %1 : vector<256x4xf32> to vector<16x16x4xf32>
    %cst = arith.constant 0.000000e+00 : f32
    %3 = vector.broadcast %cst : f32 to vector<1x16x4xf32>
    %4 = tpu.concatenate %3, %2, %3 in 0 : vector<1x16x4xf32>, vector<16x16x4xf32>, vector<1x16x4xf32> -> vector<18x16x4xf32>
    %cst_2 = arith.constant 0.000000e+00 : f32
    %5 = vector.broadcast %cst_2 : f32 to vector<18x1x4xf32>
    %6 = tpu.concatenate %5, %4, %5 in 1 : vector<18x1x4xf32>, vector<18x16x4xf32>, vector<18x1x4xf32> -> vector<18x18x4xf32>
    %7 = vector.extract_strided_slice %6 {offsets = [0, 0, 0], sizes = [16, 16, 4], strides = [1, 1, 1]} : vector<18x18x4xf32> to vector<16x16x4xf32>
    %8 = vector.extract_strided_slice %6 {offsets = [0, 1, 0], sizes = [16, 16, 4], strides = [1, 1, 1]} : vector<18x18x4xf32> to vector<16x16x4xf32>
    %9 = vector.extract_strided_slice %6 {offsets = [0, 2, 0], sizes = [16, 16, 4], strides = [1, 1, 1]} : vector<18x18x4xf32> to vector<16x16x4xf32>
    %10 = vector.extract_strided_slice %6 {offsets = [1, 0, 0], sizes = [16, 16, 4], strides = [1, 1, 1]} : vector<18x18x4xf32> to vector<16x16x4xf32>
    %11 = vector.extract_strided_slice %6 {offsets = [1, 1, 0], sizes = [16, 16, 4], strides = [1, 1, 1]} : vector<18x18x4xf32> to vector<16x16x4xf32>
    %12 = vector.extract_strided_slice %6 {offsets = [1, 2, 0], sizes = [16, 16, 4], strides = [1, 1, 1]} : vector<18x18x4xf32> to vector<16x16x4xf32>
    %13 = vector.extract_strided_slice %6 {offsets = [2, 0, 0], sizes = [16, 16, 4], strides = [1, 1, 1]} : vector<18x18x4xf32> to vector<16x16x4xf32>
    %14 = vector.extract_strided_slice %6 {offsets = [2, 1, 0], sizes = [16, 16, 4], strides = [1, 1, 1]} : vector<18x18x4xf32> to vector<16x16x4xf32>
    %15 = vector.extract_strided_slice %6 {offsets = [2, 2, 0], sizes = [16, 16, 4], strides = [1, 1, 1]} : vector<18x18x4xf32> to vector<16x16x4xf32>
    %16 = tpu.concatenate %7, %8, %9, %10, %11, %12, %13, %14, %15 in 2 : vector<16x16x4xf32>, vector<16x16x4xf32>, vector<16x16x4xf32>, vector<16x16x4xf32>, vector<16x16x4xf32>, vector<16x16x4xf32>, vector<16x16x4xf32>, vector<16x16x4xf32>, vector<16x16x4xf32> -> vector<16x16x36xf32>
    %17 = vector.shape_cast %16 : vector<16x16x36xf32> to vector<256x36xf32>
    %c0_3 = arith.constant 0 : index
    %c0_4 = arith.constant 0 : index
    %18 = vector.load %arg2[%c0_3, %c0_4] : memref<36x16xf32, #tpu.memory_space<vmem>>, vector<36x16xf32>
    %cst_5 = arith.constant dense<0.000000e+00> : vector<256x16xf32>
    %19 = tpu.matmul %17, %18, %cst_5 {dimension_numbers = #tpu.dot_dimension_numbers<[1], [0], [0], [1], [0, 0, 1, 1], [], []>} : vector<256x36xf32>, vector<36x16xf32>, vector<256x16xf32> -> vector<256x16xf32>
    %c0_6 = arith.constant 0 : index
    %c0_7 = arith.constant 0 : index
    %20 = vector.load %arg3[%c0_6, %c0_7] : memref<1x16xf32, #tpu.memory_space<vmem>>, vector<1x16xf32>
    %21 = vector.broadcast %20 : vector<1x16xf32> to vector<256x16xf32>
    %22 = arith.addf %19, %21 : vector<256x16xf32>
    %cst_8 = arith.constant 0.000000e+00 : f32
    %23 = vector.broadcast %cst_8 : f32 to vector<256x16xf32>
    %24 = arith.maximumf %22, %23 : vector<256x16xf32>
    %25 = vector.shape_cast %24 : vector<256x16xf32> to vector<16x16x16xf32>
    %cst_9 = arith.constant 0.000000e+00 : f32
    %26 = vector.broadcast %cst_9 : f32 to vector<1x16x16xf32>
    %27 = tpu.concatenate %26, %25, %26 in 0 : vector<1x16x16xf32>, vector<16x16x16xf32>, vector<1x16x16xf32> -> vector<18x16x16xf32>
    %cst_10 = arith.constant 0.000000e+00 : f32
    %28 = vector.broadcast %cst_10 : f32 to vector<18x1x16xf32>
    %29 = tpu.concatenate %28, %27, %28 in 1 : vector<18x1x16xf32>, vector<18x16x16xf32>, vector<18x1x16xf32> -> vector<18x18x16xf32>
    %30 = vector.extract_strided_slice %29 {offsets = [0, 0, 0], sizes = [16, 16, 16], strides = [1, 1, 1]} : vector<18x18x16xf32> to vector<16x16x16xf32>
    %31 = vector.extract_strided_slice %29 {offsets = [0, 1, 0], sizes = [16, 16, 16], strides = [1, 1, 1]} : vector<18x18x16xf32> to vector<16x16x16xf32>
    %32 = vector.extract_strided_slice %29 {offsets = [0, 2, 0], sizes = [16, 16, 16], strides = [1, 1, 1]} : vector<18x18x16xf32> to vector<16x16x16xf32>
    %33 = vector.extract_strided_slice %29 {offsets = [1, 0, 0], sizes = [16, 16, 16], strides = [1, 1, 1]} : vector<18x18x16xf32> to vector<16x16x16xf32>
    %34 = vector.extract_strided_slice %29 {offsets = [1, 1, 0], sizes = [16, 16, 16], strides = [1, 1, 1]} : vector<18x18x16xf32> to vector<16x16x16xf32>
    %35 = vector.extract_strided_slice %29 {offsets = [1, 2, 0], sizes = [16, 16, 16], strides = [1, 1, 1]} : vector<18x18x16xf32> to vector<16x16x16xf32>
    %36 = vector.extract_strided_slice %29 {offsets = [2, 0, 0], sizes = [16, 16, 16], strides = [1, 1, 1]} : vector<18x18x16xf32> to vector<16x16x16xf32>
    %37 = vector.extract_strided_slice %29 {offsets = [2, 1, 0], sizes = [16, 16, 16], strides = [1, 1, 1]} : vector<18x18x16xf32> to vector<16x16x16xf32>
    %38 = vector.extract_strided_slice %29 {offsets = [2, 2, 0], sizes = [16, 16, 16], strides = [1, 1, 1]} : vector<18x18x16xf32> to vector<16x16x16xf32>
    %39 = tpu.concatenate %30, %31, %32, %33, %34, %35, %36, %37, %38 in 2 : vector<16x16x16xf32>, vector<16x16x16xf32>, vector<16x16x16xf32>, vector<16x16x16xf32>, vector<16x16x16xf32>, vector<16x16x16xf32>, vector<16x16x16xf32>, vector<16x16x16xf32>, vector<16x16x16xf32> -> vector<16x16x144xf32>
    %40 = vector.shape_cast %39 : vector<16x16x144xf32> to vector<256x144xf32>
    %c0_11 = arith.constant 0 : index
    %c0_12 = arith.constant 0 : index
    %41 = vector.load %arg4[%c0_11, %c0_12] : memref<144x16xf32, #tpu.memory_space<vmem>>, vector<144x16xf32>
    %cst_13 = arith.constant dense<0.000000e+00> : vector<256x16xf32>
    %42 = tpu.matmul %40, %41, %cst_13 {dimension_numbers = #tpu.dot_dimension_numbers<[1], [0], [0], [1], [0, 0, 1, 1], [], []>} : vector<256x144xf32>, vector<144x16xf32>, vector<256x16xf32> -> vector<256x16xf32>
    %c0_14 = arith.constant 0 : index
    %c0_15 = arith.constant 0 : index
    %43 = vector.load %arg5[%c0_14, %c0_15] : memref<1x16xf32, #tpu.memory_space<vmem>>, vector<1x16xf32>
    %44 = vector.broadcast %43 : vector<1x16xf32> to vector<256x16xf32>
    %45 = arith.addf %42, %44 : vector<256x16xf32>
    %cst_16 = arith.constant 0.000000e+00 : f32
    %46 = vector.broadcast %cst_16 : f32 to vector<256x16xf32>
    %47 = arith.maximumf %45, %46 : vector<256x16xf32>
    %48 = vector.shape_cast %47 : vector<256x16xf32> to vector<16x16x16xf32>
    %cst_17 = arith.constant 0.000000e+00 : f32
    %49 = vector.broadcast %cst_17 : f32 to vector<1x16x16xf32>
    %50 = tpu.concatenate %49, %48, %49 in 0 : vector<1x16x16xf32>, vector<16x16x16xf32>, vector<1x16x16xf32> -> vector<18x16x16xf32>
    %cst_18 = arith.constant 0.000000e+00 : f32
    %51 = vector.broadcast %cst_18 : f32 to vector<18x1x16xf32>
    %52 = tpu.concatenate %51, %50, %51 in 1 : vector<18x1x16xf32>, vector<18x16x16xf32>, vector<18x1x16xf32> -> vector<18x18x16xf32>
    %53 = vector.extract_strided_slice %52 {offsets = [0, 0, 0], sizes = [16, 16, 16], strides = [1, 1, 1]} : vector<18x18x16xf32> to vector<16x16x16xf32>
    %54 = vector.extract_strided_slice %52 {offsets = [0, 1, 0], sizes = [16, 16, 16], strides = [1, 1, 1]} : vector<18x18x16xf32> to vector<16x16x16xf32>
    %55 = vector.extract_strided_slice %52 {offsets = [0, 2, 0], sizes = [16, 16, 16], strides = [1, 1, 1]} : vector<18x18x16xf32> to vector<16x16x16xf32>
    %56 = vector.extract_strided_slice %52 {offsets = [1, 0, 0], sizes = [16, 16, 16], strides = [1, 1, 1]} : vector<18x18x16xf32> to vector<16x16x16xf32>
    %57 = vector.extract_strided_slice %52 {offsets = [1, 1, 0], sizes = [16, 16, 16], strides = [1, 1, 1]} : vector<18x18x16xf32> to vector<16x16x16xf32>
    %58 = vector.extract_strided_slice %52 {offsets = [1, 2, 0], sizes = [16, 16, 16], strides = [1, 1, 1]} : vector<18x18x16xf32> to vector<16x16x16xf32>
    %59 = vector.extract_strided_slice %52 {offsets = [2, 0, 0], sizes = [16, 16, 16], strides = [1, 1, 1]} : vector<18x18x16xf32> to vector<16x16x16xf32>
    %60 = vector.extract_strided_slice %52 {offsets = [2, 1, 0], sizes = [16, 16, 16], strides = [1, 1, 1]} : vector<18x18x16xf32> to vector<16x16x16xf32>
    %61 = vector.extract_strided_slice %52 {offsets = [2, 2, 0], sizes = [16, 16, 16], strides = [1, 1, 1]} : vector<18x18x16xf32> to vector<16x16x16xf32>
    %62 = tpu.concatenate %53, %54, %55, %56, %57, %58, %59, %60, %61 in 2 : vector<16x16x16xf32>, vector<16x16x16xf32>, vector<16x16x16xf32>, vector<16x16x16xf32>, vector<16x16x16xf32>, vector<16x16x16xf32>, vector<16x16x16xf32>, vector<16x16x16xf32>, vector<16x16x16xf32> -> vector<16x16x144xf32>
    %63 = vector.shape_cast %62 : vector<16x16x144xf32> to vector<256x144xf32>
    %c0_19 = arith.constant 0 : index
    %c0_20 = arith.constant 0 : index
    %64 = vector.load %arg6[%c0_19, %c0_20] : memref<144x16xf32, #tpu.memory_space<vmem>>, vector<144x16xf32>
    %cst_21 = arith.constant dense<0.000000e+00> : vector<256x16xf32>
    %65 = tpu.matmul %63, %64, %cst_21 {dimension_numbers = #tpu.dot_dimension_numbers<[1], [0], [0], [1], [0, 0, 1, 1], [], []>} : vector<256x144xf32>, vector<144x16xf32>, vector<256x16xf32> -> vector<256x16xf32>
    %c0_22 = arith.constant 0 : index
    %c0_23 = arith.constant 0 : index
    %66 = vector.load %arg7[%c0_22, %c0_23] : memref<1x16xf32, #tpu.memory_space<vmem>>, vector<1x16xf32>
    %67 = vector.broadcast %66 : vector<1x16xf32> to vector<256x16xf32>
    %68 = arith.addf %65, %67 : vector<256x16xf32>
    %cst_24 = arith.constant 0.000000e+00 : f32
    %69 = vector.broadcast %cst_24 : f32 to vector<256x16xf32>
    %70 = arith.maximumf %68, %69 : vector<256x16xf32>
    %c0_25 = arith.constant 0 : index
    %c0_26 = arith.constant 0 : index
    %71 = vector.load %arg10[%c0_25, %c0_26] : memref<3x144xf32, #tpu.memory_space<vmem>>, vector<3x144xf32>
    %cst_27 = arith.constant dense<0.000000e+00> : vector<3x256xf32>
    %72 = tpu.matmul %71, %63, %cst_27 {dimension_numbers = #tpu.dot_dimension_numbers<[1], [1], [0], [0], [0, 0, 1, 0], [], []>} : vector<3x144xf32>, vector<256x144xf32>, vector<3x256xf32> -> vector<3x256xf32>
    %73 = vector.shape_cast %70 : vector<256x16xf32> to vector<16x16x16xf32>
    %cst_28 = arith.constant 0.000000e+00 : f32
    %74 = vector.broadcast %cst_28 : f32 to vector<1x16x16xf32>
    %75 = tpu.concatenate %74, %73, %74 in 0 : vector<1x16x16xf32>, vector<16x16x16xf32>, vector<1x16x16xf32> -> vector<18x16x16xf32>
    %cst_29 = arith.constant 0.000000e+00 : f32
    %76 = vector.broadcast %cst_29 : f32 to vector<18x1x16xf32>
    %77 = tpu.concatenate %76, %75, %76 in 1 : vector<18x1x16xf32>, vector<18x16x16xf32>, vector<18x1x16xf32> -> vector<18x18x16xf32>
    %78 = vector.extract_strided_slice %77 {offsets = [0, 0, 0], sizes = [16, 16, 16], strides = [1, 1, 1]} : vector<18x18x16xf32> to vector<16x16x16xf32>
    %79 = vector.extract_strided_slice %77 {offsets = [0, 1, 0], sizes = [16, 16, 16], strides = [1, 1, 1]} : vector<18x18x16xf32> to vector<16x16x16xf32>
    %80 = vector.extract_strided_slice %77 {offsets = [0, 2, 0], sizes = [16, 16, 16], strides = [1, 1, 1]} : vector<18x18x16xf32> to vector<16x16x16xf32>
    %81 = vector.extract_strided_slice %77 {offsets = [1, 0, 0], sizes = [16, 16, 16], strides = [1, 1, 1]} : vector<18x18x16xf32> to vector<16x16x16xf32>
    %82 = vector.extract_strided_slice %77 {offsets = [1, 1, 0], sizes = [16, 16, 16], strides = [1, 1, 1]} : vector<18x18x16xf32> to vector<16x16x16xf32>
    %83 = vector.extract_strided_slice %77 {offsets = [1, 2, 0], sizes = [16, 16, 16], strides = [1, 1, 1]} : vector<18x18x16xf32> to vector<16x16x16xf32>
    %84 = vector.extract_strided_slice %77 {offsets = [2, 0, 0], sizes = [16, 16, 16], strides = [1, 1, 1]} : vector<18x18x16xf32> to vector<16x16x16xf32>
    %85 = vector.extract_strided_slice %77 {offsets = [2, 1, 0], sizes = [16, 16, 16], strides = [1, 1, 1]} : vector<18x18x16xf32> to vector<16x16x16xf32>
    %86 = vector.extract_strided_slice %77 {offsets = [2, 2, 0], sizes = [16, 16, 16], strides = [1, 1, 1]} : vector<18x18x16xf32> to vector<16x16x16xf32>
    %87 = tpu.concatenate %78, %79, %80, %81, %82, %83, %84, %85, %86 in 2 : vector<16x16x16xf32>, vector<16x16x16xf32>, vector<16x16x16xf32>, vector<16x16x16xf32>, vector<16x16x16xf32>, vector<16x16x16xf32>, vector<16x16x16xf32>, vector<16x16x16xf32>, vector<16x16x16xf32> -> vector<16x16x144xf32>
    %88 = vector.shape_cast %87 : vector<16x16x144xf32> to vector<256x144xf32>
    %c0_30 = arith.constant 0 : index
    %c0_31 = arith.constant 0 : index
    %89 = vector.load %arg8[%c0_30, %c0_31] : memref<4x144xf32, #tpu.memory_space<vmem>>, vector<4x144xf32>
    %cst_32 = arith.constant dense<0.000000e+00> : vector<4x256xf32>
    %90 = tpu.matmul %89, %88, %cst_32 {dimension_numbers = #tpu.dot_dimension_numbers<[1], [1], [0], [0], [0, 0, 1, 0], [], []>} : vector<4x144xf32>, vector<256x144xf32>, vector<4x256xf32> -> vector<4x256xf32>
    %c0_33 = arith.constant 0 : index
    %c0_34 = arith.constant 0 : index
    %91 = vector.load %arg9[%c0_33, %c0_34] : memref<4x1xf32, #tpu.memory_space<vmem>>, vector<4x1xf32>
    %92 = vector.broadcast %91 : vector<4x1xf32> to vector<4x256xf32>
    %93 = arith.addf %90, %92 : vector<4x256xf32>
    %c0_35 = arith.constant 0 : index
    %c0_36 = arith.constant 0 : index
    %94 = vector.load %arg11[%c0_35, %c0_36] : memref<3x144xf32, #tpu.memory_space<vmem>>, vector<3x144xf32>
    %cst_37 = arith.constant dense<0.000000e+00> : vector<3x256xf32>
    %95 = tpu.matmul %94, %88, %cst_37 {dimension_numbers = #tpu.dot_dimension_numbers<[1], [1], [0], [0], [0, 0, 1, 0], [], []>} : vector<3x144xf32>, vector<256x144xf32>, vector<3x256xf32> -> vector<3x256xf32>
    %96 = arith.addf %72, %95 : vector<3x256xf32>
    %c0_38 = arith.constant 0 : index
    %c0_39 = arith.constant 0 : index
    %97 = vector.load %arg12[%c0_38, %c0_39] : memref<3x1xf32, #tpu.memory_space<vmem>>, vector<3x1xf32>
    %98 = vector.broadcast %97 : vector<3x1xf32> to vector<3x256xf32>
    %99 = arith.addf %96, %98 : vector<3x256xf32>
    %c0_40 = arith.constant 0 : index
    %c0_41 = arith.constant 0 : index
    %c0_42 = arith.constant 0 : index
    %100 = vector.load %arg13[%c0_40, %c0_41, %c0_42] : memref<1x4x256xf32, #tpu.memory_space<vmem>>, vector<1x4x256xf32>
    %101 = vector.shape_cast %100 : vector<1x4x256xf32> to vector<4x256xf32>
    %102 = vector.shape_cast %93 : vector<4x256xf32> to vector<1x4x256xf32>
    tpu.vector_store %arg13[%c0_40, %c0_41, %c0_42], %102 {strides = array<i32>} : memref<1x4x256xf32, #tpu.memory_space<vmem>>, vector<1x4x256xf32>,
    %c0_43 = arith.constant 0 : index
    %c0_44 = arith.constant 0 : index
    %c0_45 = arith.constant 0 : index
    %103 = vector.load %arg14[%c0_43, %c0_44, %c0_45] : memref<1x3x256xf32, #tpu.memory_space<vmem>>, vector<1x3x256xf32>
    %104 = vector.shape_cast %103 : vector<1x3x256xf32> to vector<3x256xf32>
    %105 = vector.shape_cast %99 : vector<3x256xf32> to vector<1x3x256xf32>
    tpu.vector_store %arg14[%c0_43, %c0_44, %c0_45], %105 {strides = array<i32>} : memref<1x3x256xf32, #tpu.memory_space<vmem>>, vector<1x3x256xf32>,
    return
  }
  func.func @transform_0(%arg0: i32) -> (i32, i32, i32) {
    %c0_i32 = arith.constant 0 : i32
    %c0_i32_0 = arith.constant 0 : i32
    %c0_i32_1 = arith.constant 0 : i32
    return %arg0, %c0_i32, %c0_i32_0 : i32, i32, i32
  }
  func.func @transform_1(%arg0: i32) -> (i32, i32) {
    %c0_i32 = arith.constant 0 : i32
    %c0_i32_0 = arith.constant 0 : i32
    %c0_i32_1 = arith.constant 0 : i32
    return %c0_i32, %c0_i32_0 : i32, i32
  }
  func.func @transform_2(%arg0: i32) -> (i32, i32) {
    %c0_i32 = arith.constant 0 : i32
    %c0_i32_0 = arith.constant 0 : i32
    %c0_i32_1 = arith.constant 0 : i32
    return %c0_i32, %c0_i32_0 : i32, i32
  }
  func.func @transform_3(%arg0: i32) -> (i32, i32) {
    %c0_i32 = arith.constant 0 : i32
    %c0_i32_0 = arith.constant 0 : i32
    %c0_i32_1 = arith.constant 0 : i32
    return %c0_i32, %c0_i32_0 : i32, i32
  }
  func.func @transform_4(%arg0: i32) -> (i32, i32) {
    %c0_i32 = arith.constant 0 : i32
    %c0_i32_0 = arith.constant 0 : i32
    %c0_i32_1 = arith.constant 0 : i32
    return %c0_i32, %c0_i32_0 : i32, i32
  }
  func.func @transform_5(%arg0: i32) -> (i32, i32) {
    %c0_i32 = arith.constant 0 : i32
    %c0_i32_0 = arith.constant 0 : i32
    %c0_i32_1 = arith.constant 0 : i32
    return %c0_i32, %c0_i32_0 : i32, i32
  }
  func.func @transform_6(%arg0: i32) -> (i32, i32) {
    %c0_i32 = arith.constant 0 : i32
    %c0_i32_0 = arith.constant 0 : i32
    %c0_i32_1 = arith.constant 0 : i32
    return %c0_i32, %c0_i32_0 : i32, i32
  }
  func.func @transform_7(%arg0: i32) -> (i32, i32) {
    %c0_i32 = arith.constant 0 : i32
    %c0_i32_0 = arith.constant 0 : i32
    %c0_i32_1 = arith.constant 0 : i32
    return %c0_i32, %c0_i32_0 : i32, i32
  }
  func.func @transform_8(%arg0: i32) -> (i32, i32) {
    %c0_i32 = arith.constant 0 : i32
    %c0_i32_0 = arith.constant 0 : i32
    %c0_i32_1 = arith.constant 0 : i32
    return %c0_i32, %c0_i32_0 : i32, i32
  }
  func.func @transform_9(%arg0: i32) -> (i32, i32) {
    %c0_i32 = arith.constant 0 : i32
    %c0_i32_0 = arith.constant 0 : i32
    %c0_i32_1 = arith.constant 0 : i32
    return %c0_i32, %c0_i32_0 : i32, i32
  }
  func.func @transform_10(%arg0: i32) -> (i32, i32) {
    %c0_i32 = arith.constant 0 : i32
    %c0_i32_0 = arith.constant 0 : i32
    %c0_i32_1 = arith.constant 0 : i32
    return %c0_i32, %c0_i32_0 : i32, i32
  }
  func.func @transform_11(%arg0: i32) -> (i32, i32) {
    %c0_i32 = arith.constant 0 : i32
    %c0_i32_0 = arith.constant 0 : i32
    %c0_i32_1 = arith.constant 0 : i32
    return %c0_i32, %c0_i32_0 : i32, i32
  }
  func.func @transform_12(%arg0: i32) -> (i32, i32, i32) {
    %c0_i32 = arith.constant 0 : i32
    %c0_i32_0 = arith.constant 0 : i32
    %c0_i32_1 = arith.constant 0 : i32
    return %arg0, %c0_i32, %c0_i32_0 : i32, i32, i32
  }
  func.func @transform_13(%arg0: i32) -> (i32, i32, i32) {
    %c0_i32 = arith.constant 0 : i32
    %c0_i32_0 = arith.constant 0 : i32
    %c0_i32_1 = arith.constant 0 : i32
    return %arg0, %c0_i32, %c0_i32_0 : i32, i32, i32
  }
}

</mosaic_0001>

<bundles_post_ra>
// kernel: autoencoder_forward.1
= control target key start
LH: loop header
LB: loop body
LE: loop exit
PB: predicated region body
PF: predicated region fallthrough
CT: control target
= control target key end

     0   :  { %s9431_s25 = smov 0   ;;  %s15085_s0 = inlined_call_operand.vmem [shape: f32[2,256,4], index: 0, kind: input, shape index: {}]   ;;  %s15086_s1 = inlined_call_operand.vmem [shape: f32[36,16], index: 1, kind: input, shape index: {}]   ;;  %s15087_s2 = inlined_call_operand.vmem [shape: f32[1,16], index: 2, kind: input, shape index: {}]   ;;  %s15088_s3 = inlined_call_operand.vmem [shape: f32[144,16], index: 3, kind: input, shape index: {}]   ;;  %s15089_s4 = inlined_call_operand.vmem [shape: f32[1,16], index: 4, kind: input, shape index: {}]   ;;  %s15090_s5 = inlined_call_operand.vmem [shape: f32[144,16], index: 5, kind: input, shape index: {}]   ;;  %s15091_s6 = inlined_call_operand.vmem [shape: f32[1,16], index: 6, kind: input, shape index: {}]   ;;  %s15092_s7 = inlined_call_operand.vmem [shape: f32[4,144], index: 7, kind: input, shape index: {}]   ;;  %s15093_s8 = inlined_call_operand.vmem [shape: f32[4,1], index: 8, kind: input, shape index: {}]   ;;  %s15094_s9 = inlined_call_operand.vmem [shape: f32[3,144], index: 9, kind: input, shape index: {}]   ;;  %s15095_s10 = inlined_call_operand.vmem [shape: f32[3,144], index: 10, kind: input, shape index: {}]   ;;  %s15096_s11 = inlined_call_operand.vmem [shape: f32[3,1], index: 11, kind: input, shape index: {}]   ;;  %s15097_s12 = inlined_call_operand.vmem [shape: f32[2,4,256], index: 12, kind: output, shape index: {0}]   ;;  %s15098_s13 = inlined_call_operand.vmem [shape: f32[2,3,256], index: 13, kind: output, shape index: {1}]  }
   0x1 LB: > { %s7033_s26 = sadd.s32 4294967295, %s9343_s25   ;;  %p7037_p0 = scmp.ge.s32.totalorder %s9343_s25, 1  ;;  %s9343_s25 = sphi %s9431_s25, %s24_s25  }
   0x2   : > { %p390_p1 = scmp.lt.s32.totalorder %s9343_s25, 3 }
   0x4   : > { %p391_p2 = pnand %p7037_p0, %p390_p1 }
   0x6   : > { %394 = sbr.rel (%p391_p2) target bundleno = 2370 (0x942), region = 68 }
   0xd   : > { %vm519_vm0 = vcmask 1040384   ;;  %p439_p3 = scmp.lt.s32.totalorder %s7033_s26, 1  ;;  %v9345_v0 = vmov 0.0   ;;  %vm685_vm1 = vcmask 1046528   ;;  %s9346_s14 = smov 4   ;;  %vm862_vm2 = vcmask 1045504  }
   0xe   : > { %v9439_v1 = vrot.slane %v9345_v0, 7  ;;  %s9347_s15 = smov 8   ;;  %s9348_s16 = smov 12   ;;  %vm1627_vm3 = vcmask 31744   ;;  %vm1660_vm4 = vcmask 64512   ;;  %vm1693_vm5 = vcmask 97280  }
   0xf   : > { %s16200_s26 = smov (!%p439_p3, %s7033_s26), 1  ;;  %s9349_s17 = smov 16   ;;  %vm2000_vm6 = vcmask 1043456   ;;  %vm1726_vm7 = vcmask 130048   ;;  %vm1759_vm8 = vcmask 162816   ;;  %vm1792_vm9 = vcmask 195584  }
  0x10   : > { %15440 = vst [vmem:[#allocation2_spill] sm:$0xff] %v9439_v1  ;;  %v9445_v2 = vsel %vm519_vm0, 0.0, %v9439_v1  ;;  %v9449_v3 = vsel %vm519_vm0, %v9439_v1, 0.0  ;;  %v687_v4 = vrot.slane %v9439_v1, 1  ;;  %s7245_s27 = sshll.u32 %s16200_s26, 8  ;;  %s9350_s18 = smov 20  }
  0x11   : > { %15441 = vst [vmem:[#allocation3_spill] sm:$0xff] %v9445_v2  ;;  %v686_v5 = vrot.slane %v9445_v2, 1  ;;  %v689_v6 = vrot.slane %v9449_v3, 1  ;;  %s9458_s30 = scalar_lea.vmem %s15085_s0, %s7245_s27  ;;  %s9351_s19 = smov 24   ;;  %vm1825_vm10 = vcmask 228352   ;;  %vm1858_vm11 = vcmask 261120  }
  0x12   : > { %v454_v9 = vld [vmem:[%s9458_s30] sm:$0xff]  ;;  %v455_v10 = vld [vmem:[%s9458_s30 + $0x8] sm:$0xff]  ;;  %v456_v11 = vld [vmem:[%s9458_s30 + $0x10] sm:$0xff]  ;;  %s9352_s20 = smov 28   ;;  %vm1903_vm12 = vcmask 293888   ;;  %s9355_s29 = smov 48  }
  0x13   : > { %v688_v7 = vsel %vm685_vm1, %v686_v5, %v687_v4  ;;  %v690_v8 = vsel %vm685_vm1, %v687_v4, %v689_v6  ;;  %v522_v13 = vrot.slane %v454_v9, 7  ;;  %v523_v14 = vrot.slane %v455_v10, 7  ;;  %v457_v15 = vld [vmem:[%s9458_s30 + $0x18] sm:$0xff]  ;;  %v458_v17 = vld [vmem:[%s9458_s30 + $0x20] sm:$0xff]  ;;  %v459_v18 = vld [vmem:[%s9458_s30 + $0x28] sm:$0xff]  ;;  %s9358_s21 = smov 96  }
  0x14   : > { %v9465_v12 = vpack.i.bf16 %v690_v8, %v688_v7  ;;  %v525_v16 = vrot.slane %v456_v11, 7  ;;  %v526_v19 = vrot.slane %v457_v15, 7  ;;  %v528_v20 = vrot.slane %v458_v17, 7  ;;  %v460_v34 = vld [vmem:[%s9458_s30 + $0x30] sm:$0xff]  ;;  %v461_v35 = vld [vmem:[%s9458_s30 + $0x38] sm:$0xff]  ;;  %v462_v40 = vld [vmem:[%s9458_s30 + $0x40] sm:$0xff] }
  0x15   : > { %v529_v21 = vrot.slane %v459_v18, 7  ;;  %v9473_v22 = vsel %vm519_vm0, %v522_v13, %v523_v14  ;;  %v9476_v23 = vsel %vm519_vm0, %v523_v14, 0.0  ;;  %v9479_v24 = vsel %vm519_vm0, 0.0, %v522_v13  ;;  %v463_v41 = vld [vmem:[%s9458_s30 + $0x48] sm:$0xff]  ;;  %v464_v50 = vld [vmem:[%s9458_s30 + $0x50] sm:$0xff]  ;;  %v465_v57 = vld [vmem:[%s9458_s30 + $0x58] sm:$0xff] }
  0x16   : > { %15442 = vst [vmem:[#allocation4_spill] sm:$0xff] %v9465_v12  ;;  %7672 = vrot.lane.b32.xlu0 %v9465_v12, %s9346_s14  ;;  %15443 = vst [vmem:[#allocation5_spill] sm:$0xff] %v9473_v22  ;;  %v9482_v25 = vsel %vm519_vm0, 0.0, %v525_v16  ;;  %v692_v26 = vrot.slane %v9473_v22, 1  ;;  %v694_v27 = vrot.slane %v9476_v23, 1  ;;  %v691_v28 = vrot.slane %v9479_v24, 1 }
  0x17   : > { %15444 = vst [vmem:[#allocation6_spill] sm:$0xff] %v9479_v24  ;;  %15445 = vst [vmem:[#allocation7_spill] sm:$0xff] %v9482_v25  ;;  %v9488_v29 = vsel %vm519_vm0, %v525_v16, %v526_v19  ;;  %v696_v30 = vrot.slane %v9482_v25, 1  ;;  %v9493_v32 = vsel %vm519_vm0, %v526_v19, 0.0  ;;  %v9496_v33 = vsel %vm519_vm0, %v528_v20, %v529_v21  ;;  %v466_v5 = vld [vmem:[%s9458_s30 + $0x60] sm:$0xff]  ;;  %v467_v7 = vld [vmem:[%s9458_s30 + $0x68] sm:$0xff] }
  0x18   : > { %15446 = vst [vmem:[#allocation8_spill] sm:$0xff] %v9488_v29  ;;  %v697_v31 = vrot.slane %v9488_v29, 1  ;;  %15447 = vst [vmem:[#allocation9_spill] sm:$0xff] %v9496_v33  ;;  %v9501_v36 = vsel %vm685_vm1, %v692_v26, %v694_v27  ;;  %v9504_v37 = vsel %vm685_vm1, %v691_v28, %v692_v26  ;;  %v699_v38 = vrot.slane %v9493_v32, 1  ;;  %v468_v13 = vld [vmem:[%s9458_s30 + $0x70] sm:$0xff]  ;;  %v469_v18 = vld [vmem:[%s9458_s30 + $0x78] sm:$0xff] }
  0x19   : > { %v9508_v39 = vsel %vm519_vm0, 0.0, %v528_v20  ;;  %772 = vrot.lane.b32.xlu1 %v9501_v36, %s9346_s14  ;;  %v702_v44 = vrot.slane %v9496_v33, 1  ;;  %v9522_v45 = vsel %vm519_vm0, %v529_v21, 0.0  ;;  %v531_v48 = vrot.slane %v460_v34, 7  ;;  %v470_v34 = vld [vmem:[%s9458_s30 + $0x80] sm:$0xff]  ;;  %s9359_s22 = smov 112  }
  0x1a   : > { %15448 = vst [vmem:[#allocation10_spill] sm:$0xff] %v9508_v39  ;;  %770 = vrot.lane.b32.xlu0 %v9504_v37, %s9346_s14  ;;  %v9517_v42 = vsel %vm685_vm1, %v696_v30, %v697_v31  ;;  %v701_v43 = vrot.slane %v9508_v39, 1  ;;  %v9525_v46 = vsel %vm685_vm1, %v697_v31, %v699_v38  ;;  %v704_v47 = vrot.slane %v9522_v45, 1 }
  0x1b   : > { %15449 = vst [vmem:[#allocation11_spill] sm:$0xff] %v9525_v46  ;;  %v532_v49 = vrot.slane %v461_v35, 7  ;;  %v534_v51 = vrot.slane %v462_v40, 7  ;;  %v535_v52 = vrot.slane %v463_v41, 7  ;;  %v9536_v55 = vsel %vm519_vm0, 0.0, %v531_v48 }
  0x1c   : > { %v9530_v53 = vsel %vm685_vm1, %v701_v43, %v702_v44  ;;  %15452 = vst [vmem:[#allocation14_spill] sm:$0xff] %v9536_v55  ;;  %v9547_v58 = vsel %vm685_vm1, %v702_v44, %v704_v47  ;;  %v706_v59 = vrot.slane %v9536_v55, 1  ;;  %v537_v61 = vrot.slane %v464_v50, 7  ;;  %v471_v43 = vld [vmem:[%s9458_s30 + $0x88] sm:$0xff] }
  0x1d   : > { %15450 = vst [vmem:[#allocation12_spill] sm:$0xff] %v9530_v53  ;;  %v9533_v54 = vsel %vm519_vm0, %v531_v48, %v532_v49  ;;  %v9539_v56 = vsel %vm519_vm0, %v532_v49, 0.0  ;;  %774 = vrot.lane.b32.xlu1 %v9517_v42, %s9346_s14  ;;  %15453 = vst [vmem:[#allocation15_spill] sm:$0xff] %v9547_v58  ;;  %v9551_v60 = vsel %vm519_vm0, %v534_v51, %v535_v52  ;;  %v9556_v0 = vsel %vm519_vm0, 0.0, %v534_v51 }
  0x1e   : > { %15451 = vst [vmem:[#allocation13_spill] sm:$0xff] %v9533_v54  ;;  %776 = vrot.lane.b32.xlu0 %v9525_v46, %s9346_s14  ;;  %15454 = vst [vmem:[#allocation16_spill] sm:$0xff] %v9551_v60  ;;  %v707_v62 = vrot.slane %v9533_v54, 1  ;;  %v709_v63 = vrot.slane %v9539_v56, 1  ;;  %v9559_v4 = vsel %vm519_vm0, %v535_v52, 0.0  ;;  %v538_v6 = vrot.slane %v465_v57, 7 }
  0x1f   : > { %15455 = vst [vmem:[#allocation17_spill] sm:$0xff] %v9556_v0  ;;  %v711_v8 = vrot.slane %v9556_v0, 1  ;;  %v712_v9 = vrot.slane %v9551_v60, 1  ;;  %v714_v10 = vrot.slane %v9559_v4, 1  ;;  %v540_v11 = vrot.slane %v466_v5, 7 }
  0x20   : > { %v9572_v14 = vsel %vm685_vm1, %v706_v59, %v707_v62  ;;  %v9575_v15 = vsel %vm685_vm1, %v707_v62, %v709_v63  ;;  %v9578_v16 = vsel %vm519_vm0, 0.0, %v537_v61  ;;  %v541_v17 = vrot.slane %v467_v7, 7  ;;  %v472_v62 = vld [vmem:[%s9458_s30 + $0x90] sm:$0xff]  ;;  %v473_v63 = vld [vmem:[%s9458_s30 + $0x98] sm:$0xff] }
  0x21   : > { %778 = vrot.lane.b32.xlu1 %v9530_v53, %s9346_s14  ;;  %15456 = vst [vmem:[#allocation18_spill] sm:$0xff] %v9572_v14  ;;  %15457 = vst [vmem:[#allocation19_spill] sm:$0xff] %v9575_v15  ;;  %v9582_v19 = vsel %vm519_vm0, %v537_v61, %v538_v6  ;;  %v9585_v20 = vsel %vm519_vm0, %v538_v6, 0.0  ;;  %v9588_v21 = vsel %vm685_vm1, %v711_v8, %v712_v9  ;;  %v543_v26 = vrot.slane %v468_v13, 7 }
  0x22   : > { %780 = vrot.lane.b32.xlu0 %v9547_v58, %s9346_s14  ;;  %15458 = vst [vmem:[#allocation20_spill] sm:$0xff] %v9578_v16  ;;  %15459 = vst [vmem:[#allocation21_spill] sm:$0xff] %v9582_v19  ;;  %v9595_v27 = vsel %vm685_vm1, %v712_v9, %v714_v10  ;;  %v716_v28 = vrot.slane %v9578_v16, 1  ;;  %v9599_v30 = vsel %vm519_vm0, 0.0, %v540_v11  ;;  %v544_v31 = vrot.slane %v469_v18, 7 }
  0x23   : > { %15460 = vst [vmem:[#allocation22_spill] sm:$0xff] %v9588_v21  ;;  %15461 = vst [vmem:[#allocation23_spill] sm:$0xff] %v9595_v27  ;;  %v717_v35 = vrot.slane %v9582_v19, 1  ;;  %v719_v38 = vrot.slane %v9585_v20, 1  ;;  %v9605_v40 = vsel %vm519_vm0, %v540_v11, %v541_v17  ;;  %v9608_v41 = vsel %vm519_vm0, %v541_v17, 0.0 }
  0x24   : > { %15462 = vst [vmem:[#allocation24_spill] sm:$0xff] %v9599_v30  ;;  %15463 = vst [vmem:[#allocation25_spill] sm:$0xff] %v9605_v40  ;;  %v721_v44 = vrot.slane %v9599_v30, 1  ;;  %v9613_v47 = vsel %vm519_vm0, 0.0, %v543_v26  ;;  %v546_v48 = vrot.slane %v470_v34, 7  ;;  %v722_v49 = vrot.slane %v9605_v40, 1 }
  0x25   : > { %782 = vrot.lane.b32.xlu1 %v9572_v14, %s9346_s14  ;;  %15464 = vst [vmem:[#allocation26_spill] sm:$0xff] %v9613_v47  ;;  %v724_v50 = vrot.slane %v9608_v41, 1  ;;  %v9622_v51 = vsel %vm519_vm0, %v543_v26, %v544_v31  ;;  %v547_v52 = vrot.slane %v471_v43, 7  ;;  %v9625_v57 = vsel %vm685_vm1, %v716_v28, %v717_v35  ;;  %v474_v26 = vld [vmem:[%s9458_s30 + $0xa0] sm:$0xff]  ;;  %v475_v28 = vld [vmem:[%s9458_s30 + $0xa8] sm:$0xff] }
  0x26   : > { %784 = vrot.lane.b32.xlu0 %v9575_v15, %s9346_s14  ;;  %15465 = vst [vmem:[#allocation27_spill] sm:$0xff] %v9622_v51  ;;  %15466 = vst [vmem:[#allocation28_spill] sm:$0xff] %v9625_v57  ;;  %v9628_v59 = vsel %vm685_vm1, %v717_v35, %v719_v38  ;;  %v9631_v61 = vsel %vm519_vm0, %v544_v31, 0.0  ;;  %v726_v5 = vrot.slane %v9613_v47, 1  ;;  %v727_v6 = vrot.slane %v9622_v51, 1  ;;  %v483_v15 = vld [vmem:[%s9458_s30 + $0xe8] sm:$0xff] }
  0x27   : > { %15467 = vst [vmem:[#allocation29_spill] sm:$0xff] %v9628_v59  ;;  %v9642_v7 = vsel %vm685_vm1, %v721_v44, %v722_v49  ;;  %v9645_v8 = vsel %vm685_vm1, %v722_v49, %v724_v50  ;;  %v9648_v9 = vsel %vm519_vm0, %v546_v48, %v547_v52  ;;  %v9651_v10 = vsel %vm519_vm0, 0.0, %v546_v48  ;;  %v476_v44 = vld [vmem:[%s9458_s30 + $0xb0] sm:$0xff] }
  0x28   : > { %15468 = vst [vmem:[#allocation30_spill] sm:$0xff] %v9642_v7  ;;  %15469 = vst [vmem:[#allocation31_spill] sm:$0xff] %v9645_v8  ;;  %v729_v11 = vrot.slane %v9631_v61, 1  ;;  %v9655_v13 = vsel %vm519_vm0, %v547_v52, 0.0  ;;  %v549_v17 = vrot.slane %v472_v62, 7  ;;  %v550_v18 = vrot.slane %v473_v63, 7 }
  0x29   : > { %786 = vrot.lane.b32.xlu1 %v9588_v21, %s9346_s14  ;;  %15470 = vst [vmem:[#allocation32_spill] sm:$0xff] %v9651_v10  ;;  %v731_v31 = vrot.slane %v9651_v10, 1  ;;  %v732_v34 = vrot.slane %v9648_v9, 1  ;;  %v9666_v35 = vsel %vm685_vm1, %v726_v5, %v727_v6  ;;  %v734_v38 = vrot.slane %v9655_v13, 1  ;;  %v477_v63 = vld [vmem:[%s9458_s30 + $0xb8] sm:$0xff] }
  0x2a   : > { %788 = vrot.lane.b32.xlu0 %v9595_v27, %s9346_s14  ;;  %15471 = vst [vmem:[#allocation33_spill] sm:$0xff] %v9666_v35  ;;  %v552_v43 = vrot.slane %v474_v26, 7  ;;  %v9671_v48 = vsel %vm685_vm1, %v727_v6, %v729_v11  ;;  %v9674_v49 = vsel %vm519_vm0, %v549_v17, %v550_v18  ;;  %v9677_v50 = vsel %vm519_vm0, 0.0, %v549_v17 }
  0x2b   : > { %15472 = vst [vmem:[#allocation34_spill] sm:$0xff] %v9671_v48  ;;  %v553_v52 = vrot.slane %v475_v28, 7  ;;  %v9680_v62 = vsel %vm519_vm0, %v550_v18, 0.0  ;;  %v9684_v5 = vsel %vm685_vm1, %v731_v31, %v732_v34  ;;  %v555_v26 = vrot.slane %v476_v44, 7 }
  0x2c   : > { %15473 = vst [vmem:[#allocation35_spill] sm:$0xff] %v9684_v5  ;;  %v9691_v6 = vsel %vm685_vm1, %v732_v34, %v734_v38  ;;  %v736_v11 = vrot.slane %v9677_v50, 1  ;;  %v737_v17 = vrot.slane %v9674_v49, 1  ;;  %v9696_v18 = vsel %vm519_vm0, 0.0, %v552_v43  ;;  %v478_v34 = vld [vmem:[%s9458_s30 + $0xc0] sm:$0xff] }
  0x2d   : > { %790 = vrot.lane.b32.xlu1 %v9625_v57, %s9346_s14  ;;  %15474 = vst [vmem:[#allocation36_spill] sm:$0xff] %v9691_v6  ;;  %v739_v28 = vrot.slane %v9680_v62, 1  ;;  %v9700_v31 = vsel %vm519_vm0, %v552_v43, %v553_v52  ;;  %v9703_v44 = vsel %vm519_vm0, %v553_v52, 0.0  ;;  %v556_v12 = vrot.slane %v477_v63, 7  ;;  %v481_v57 = vld [vmem:[%s9458_s30 + $0xd8] sm:$0xff] }
  0x2e   : > { %792 = vrot.lane.b32.xlu0 %v9628_v59, %s9346_s14  ;;  %v741_v38 = vrot.slane %v9696_v18, 1  ;;  %v742_v43 = vrot.slane %v9700_v31, 1  ;;  %v744_v52 = vrot.slane %v9703_v44, 1  ;;  %v9718_v63 = vsel %vm519_vm0, 0.0, %v555_v26  ;;  %v480_v59 = vld [vmem:[%s9458_s30 + $0xd0] sm:$0xff] }
  0x2f   : > { %v561_v27 = vrot.slane %v480_v59, 7  ;;  %v565_v14 = vrot.slane %v483_v15, 7  ;;  %vm3342_vm13 = vcmask 392192   ;;  %vm3375_vm14 = vcmask 523264  }
  0x30   : > { %vm3408_vm15 = vcmask 654336  }
  0x31   : > { %794 = vrot.lane.b32.xlu1 %v9642_v7, %s9346_s14  ;;  %v9724_v7 = vsel %vm519_vm0, %v555_v26, %v556_v12  ;;  %v746_v26 = vrot.slane %v9718_v63, 1 }
  0x32   : > { %796 = vrot.lane.b32.xlu0 %v9645_v8, %s9346_s14  ;;  %v9721_v8 = vsel %vm685_vm1, %v737_v17, %v739_v28 }
  0x33   : > { %15476 = vst [vmem:[#allocation38_spill] sm:$0xff] %v9721_v8 }
  0x35   : > { %798 = vrot.lane.b32.xlu1 %v9666_v35, %s9346_s14  ;;  %v9713_v35 = vsel %vm685_vm1, %v736_v11, %v737_v17  ;;  %v9736_v17 = vsel %vm685_vm1, %v741_v38, %v742_v43 }
  0x36   : > { %800 = vrot.lane.b32.xlu0 %v9671_v48, %s9346_s14  ;;  %v479_v48 = vld [vmem:[%s9458_s30 + $0xc8] sm:$0xff]  ;;  %15475 = vst [vmem:[#allocation37_spill] sm:$0xff] %v9713_v35  ;;  %15477 = vst [vmem:[#allocation39_spill] sm:$0xff] %v9736_v17 }
  0x37   : > { %v559_v11 = vrot.slane %v479_v48, 7  ;;  %v9742_v48 = vsel %vm685_vm1, %v742_v43, %v744_v52 }
  0x38   : > { %15478 = vst [vmem:[#allocation40_spill] sm:$0xff] %v9742_v48 }
  0x39   : > { %802 = vrot.lane.b32.xlu1 %v9684_v5, %s9346_s14  ;;  %v9727_v5 = vsel %vm519_vm0, %v556_v12, 0.0  ;;  %v747_v12 = vrot.slane %v9724_v7, 1  ;;  %v9751_v38 = vsel %vm519_vm0, %v559_v11, 0.0 }
  0x3a   : > { %804 = vrot.lane.b32.xlu0 %v9691_v6, %s9346_s14  ;;  %v558_v6 = vrot.slane %v478_v34, 7  ;;  %v749_v28 = vrot.slane %v9727_v5, 1  ;;  %v754_v52 = vrot.slane %v9751_v38, 1 }
  0x3b   : > { %v9760_v43 = vsel %vm685_vm1, %v746_v26, %v747_v12 }
  0x3c   : > { %v9745_v34 = vsel %vm519_vm0, 0.0, %v558_v6  ;;  %v9748_v21 = vsel %vm519_vm0, %v558_v6, %v559_v11  ;;  %15479 = vst [vmem:[#allocation41_spill] sm:$0xff] %v9760_v43  ;;  %v9763_v59 = vsel %vm685_vm1, %v747_v12, %v749_v28 }
  0x3d   : > { %806 = vrot.lane.b32.xlu1 %v9713_v35, %s9346_s14  ;;  %v562_v35 = vrot.slane %v481_v57, 7  ;;  %15480 = vst [vmem:[#allocation42_spill] sm:$0xff] %v9763_v59  ;;  %v751_v57 = vrot.slane %v9745_v34, 1  ;;  %v752_v6 = vrot.slane %v9748_v21, 1 }
  0x3e   : > { %808 = vrot.lane.b32.xlu0 %v9721_v8, %s9346_s14  ;;  %v482_v8 = vld [vmem:[%s9458_s30 + $0xe0] sm:$0xff] }
  0x3f   : > { %v9769_v11 = vsel %vm519_vm0, %v561_v27, %v562_v35  ;;  %v564_v26 = vrot.slane %v482_v8, 7  ;;  %v9784_v58 = vsel %vm685_vm1, %v751_v57, %v752_v6 }
  0x40   : > { %v757_v28 = vrot.slane %v9769_v11, 1  ;;  %15481 = vst [vmem:[#allocation43_spill] sm:$0xff] %v9784_v58 }
  0x41   : > { %810 = vrot.lane.b32.xlu1 %v9736_v17, %s9346_s14  ;;  %v9772_v17 = vsel %vm519_vm0, 0.0, %v561_v27  ;;  %v9787_v27 = vsel %vm685_vm1, %v752_v6, %v754_v52  ;;  %v9791_v15 = vsel %vm519_vm0, %v564_v26, %v565_v14  ;;  %v9794_v8 = vsel %vm519_vm0, 0.0, %v564_v26 }
  0x42   : > { %812 = vrot.lane.b32.xlu0 %v9742_v48, %s9346_s14  ;;  %v9775_v48 = vsel %vm519_vm0, %v562_v35, 0.0  ;;  %v756_v12 = vrot.slane %v9772_v17, 1  ;;  %15482 = vst [vmem:[#allocation44_spill] sm:$0xff] %v9787_v27  ;;  %v863_v6 = vrot.slane %v9445_v2, 2  ;;  %v864_v52 = vrot.slane %v9439_v1, 2 }
  0x43   : > { %v759_v35 = vrot.slane %v9775_v48, 1  ;;  %v868_v2 = vrot.slane %v9479_v24, 2 }
  0x44   : > { %v9805_v57 = vsel %vm685_vm1, %v756_v12, %v757_v28  ;;  %v9820_v12 = vsel %vm862_vm2, %v863_v6, %v864_v52  ;;  %v871_v6 = vrot.slane %v9476_v23, 2  ;;  %v878_v23 = vrot.slane %v9508_v39, 2 }
  0x45   : > { %814 = vrot.lane.b32.xlu1 %v9760_v43, %s9346_s14  ;;  %v866_v43 = vrot.slane %v9449_v3, 2  ;;  %15483 = vst [vmem:[#allocation45_spill] sm:$0xff] %v9805_v57  ;;  %v9810_v26 = vsel %vm685_vm1, %v757_v28, %v759_v35  ;;  %v762_v3 = vrot.slane %v9791_v15, 1  ;;  %15484 = vst [vmem:[#allocation46_spill] sm:$0xff] %v9820_v12 }
  0x46   : > { %816 = vrot.lane.b32.xlu0 %v9763_v59, %s9346_s14  ;;  %v9797_v59 = vsel %vm519_vm0, %v565_v14, 0.0  ;;  %v761_v14 = vrot.slane %v9794_v8, 1 }
  0x47   : > { %v764_v53 = vrot.slane %v9797_v59, 1  ;;  %v9823_v1 = vsel %vm862_vm2, %v864_v52, %v866_v43 }
  0x48   : > { %15485 = vst [vmem:[#allocation47_spill] sm:$0xff] %v9823_v1  ;;  %v9826_v28 = vsel %vm685_vm1, %v761_v14, %v762_v3  ;;  %v9839_v43 = vpack.i.bf16 %v9823_v1, %v9820_v12  ;;  %v874_v14 = vrot.slane %v9488_v29, 2  ;;  %v879_v12 = vrot.slane %v9496_v33, 2 }
  0x49   : > { %818 = vrot.lane.b32.xlu1 %v9784_v58, %s9346_s14  ;;  %15486 = vst [vmem:[#allocation48_spill] sm:$0xff] %v9826_v28  ;;  %v9829_v35 = vsel %vm685_vm1, %v762_v3, %v764_v53  ;;  %v873_v53 = vrot.slane %v9482_v25, 2 }
  0x4a   : > { %820 = vrot.lane.b32.xlu0 %v9787_v27, %s9346_s14  ;;  %15487 = vst [vmem:[#allocation49_spill] sm:$0xff] %v9829_v35  ;;  %v869_v27 = vrot.slane %v9473_v22, 2  ;;  %15488 = vst [vmem:[#allocation50_spill] sm:$0xff] %v9839_v43 }
  0x4b   : > { %v9855_v1 = vsel %vm862_vm2, %v873_v53, %v874_v14  ;;  %v884_v53 = vrot.slane %v9533_v54, 2 }
  0x4c   : > { %v9843_v52 = vsel %vm862_vm2, %v868_v2, %v869_v27  ;;  %v9852_v3 = vsel %vm862_vm2, %v869_v27, %v871_v6  ;;  %15489 = vst [vmem:[#allocation51_spill] sm:$0xff] %v9855_v1  ;;  %v876_v2 = vrot.slane %v9493_v32, 2  ;;  %v9869_v6 = vsel %vm862_vm2, %v878_v23, %v879_v12 }
  0x4d   : > { %822 = vrot.lane.b32.xlu1 %v9805_v57, %s9346_s14  ;;  %15490 = vst [vmem:[#allocation52_spill] sm:$0xff] %v9869_v6  ;;  %v883_v32 = vrot.slane %v9536_v55, 2  ;;  %v889_v23 = vrot.slane %v9551_v60, 2 }
  0x4e   : > { %824 = vrot.lane.b32.xlu0 %v9810_v26, %s9346_s14  ;;  %v9866_v27 = vsel %vm862_vm2, %v874_v14, %v876_v2  ;;  %v886_v14 = vrot.slane %v9539_v56, 2  ;;  %v888_v2 = vrot.slane %v9556_v0, 2  ;;  %v893_v56 = vrot.slane %v9578_v16, 2 }
  0x51   : > { %826 = vrot.lane.b32.xlu1 %v9826_v28, %s9346_s14 }
  0x52   : > { %828 = vrot.lane.b32.xlu0 %v9829_v35, %s9346_s14  ;;  %s7246_s14 = sshll.u32 %s16200_s26, 3 }
  0x53   : > { %s448_s23 = scalar_lea.vmem %s15097_s12, %s7246_s14 }
  0x55   : > { %7677 = vrot.lane.b32.xlu1 %v9839_v43, %s9347_s15  ;;  %v881_v43 = vrot.slane %v9522_v45, 2  ;;  %v9881_v45 = vsel %vm862_vm2, %v883_v32, %v884_v53  ;;  %v894_v32 = vrot.slane %v9582_v19, 2 }
  0x56   : > { %947 = vrot.lane.b32.xlu0 %v9843_v52, %s9347_s15  ;;  %15491 = vst [vmem:[#allocation53_spill] sm:$0xff] %v9881_v45 }
  0x59   : > { %949 = vrot.lane.b32.xlu1 %v9852_v3, %s9347_s15 }
  0x5a   : > { %951 = vrot.lane.b32.xlu0 %v9855_v1, %s9347_s15  ;;  %v9878_v1 = vsel %vm862_vm2, %v879_v12, %v881_v43  ;;  %v9892_v12 = vsel %vm862_vm2, %v884_v53, %v886_v14  ;;  %v9895_v43 = vsel %vm862_vm2, %v888_v2, %v889_v23  ;;  %v9908_v53 = vsel %vm862_vm2, %v893_v56, %v894_v32 }
  0x5b   : > { %15492 = vst [vmem:[#allocation54_spill] sm:$0xff] %v9895_v43  ;;  %15493 = vst [vmem:[#allocation55_spill] sm:$0xff] %v9908_v53  ;;  %v898_v14 = vrot.slane %v9599_v30, 2  ;;  %v899_v2 = vrot.slane %v9605_v40, 2  ;;  %v904_v56 = vrot.slane %v9622_v51, 2 }
  0x5d   : > { %953 = vrot.lane.b32.xlu1 %v9866_v27, %s9347_s15 }
  0x5e   : > { %955 = vrot.lane.b32.xlu0 %v9869_v6, %s9347_s15  ;;  %v891_v6 = vrot.slane %v9559_v4, 2 }
  0x60   : > { %v9905_v4 = vsel %vm862_vm2, %v889_v23, %v891_v6  ;;  %v9921_v6 = vsel %vm862_vm2, %v898_v14, %v899_v2  ;;  %v903_v23 = vrot.slane %v9613_v47, 2  ;;  %v909_v14 = vrot.slane %v9648_v9, 2 }
  0x61   : > { %957 = vrot.lane.b32.xlu1 %v9878_v1, %s9347_s15  ;;  %15494 = vst [vmem:[#allocation56_spill] sm:$0xff] %v9921_v6 }
  0x62   : > { %959 = vrot.lane.b32.xlu0 %v9881_v45, %s9347_s15  ;;  %v896_v45 = vrot.slane %v9585_v20, 2 }
  0x64   : > { %v9918_v20 = vsel %vm862_vm2, %v894_v32, %v896_v45  ;;  %v9934_v45 = vsel %vm862_vm2, %v903_v23, %v904_v56  ;;  %v908_v32 = vrot.slane %v9651_v10, 2  ;;  %v914_v23 = vrot.slane %v9674_v49, 2 }
  0x65   : > { %961 = vrot.lane.b32.xlu1 %v9892_v12, %s9347_s15  ;;  %15495 = vst [vmem:[#allocation57_spill] sm:$0xff] %v9934_v45 }
  0x66   : > { %963 = vrot.lane.b32.xlu0 %v9895_v43, %s9347_s15  ;;  %v901_v43 = vrot.slane %v9608_v41, 2 }
  0x68   : > { %v9931_v41 = vsel %vm862_vm2, %v899_v2, %v901_v43  ;;  %v911_v43 = vrot.slane %v9655_v13, 2  ;;  %v913_v2 = vrot.slane %v9677_v50, 2  ;;  %v918_v13 = vrot.slane %v9696_v18, 2 }
  0x69   : > { %965 = vrot.lane.b32.xlu1 %v9905_v4, %s9347_s15 }
  0x6a   : > { %967 = vrot.lane.b32.xlu0 %v9908_v53, %s9347_s15  ;;  %v906_v53 = vrot.slane %v9631_v61, 2  ;;  %v9946_v61 = vsel %vm862_vm2, %v908_v32, %v909_v14  ;;  %v919_v32 = vrot.slane %v9700_v31, 2 }
  0x6b   : > { %15496 = vst [vmem:[#allocation58_spill] sm:$0xff] %v9946_v61 }
  0x6d   : > { %969 = vrot.lane.b32.xlu1 %v9918_v20, %s9347_s15 }
  0x6e   : > { %971 = vrot.lane.b32.xlu0 %v9921_v6, %s9347_s15  ;;  %v9943_v6 = vsel %vm862_vm2, %v904_v56, %v906_v53  ;;  %v9957_v53 = vsel %vm862_vm2, %v909_v14, %v911_v43  ;;  %v9960_v56 = vsel %vm862_vm2, %v913_v2, %v914_v23  ;;  %v9973_v14 = vsel %vm862_vm2, %v918_v13, %v919_v32 }
  0x6f   : > { %15497 = vst [vmem:[#allocation59_spill] sm:$0xff] %v9960_v56  ;;  %15499 = vst [vmem:[#allocation61_spill] sm:$0xff] %v9973_v14  ;;  %v923_v43 = vrot.slane %v9718_v63, 2  ;;  %v924_v2 = vrot.slane %v9724_v7, 2  ;;  %v929_v13 = vrot.slane %v9748_v21, 2 }
  0x71   : > { %973 = vrot.lane.b32.xlu1 %v9931_v41, %s9347_s15 }
  0x72   : > { %975 = vrot.lane.b32.xlu0 %v9934_v45, %s9347_s15  ;;  %v916_v45 = vrot.slane %v9680_v62, 2 }
  0x74   : > { %v9970_v62 = vsel %vm862_vm2, %v914_v23, %v916_v45  ;;  %v9986_v45 = vsel %vm862_vm2, %v923_v43, %v924_v2  ;;  %v928_v23 = vrot.slane %v9745_v34, 2  ;;  %v934_v43 = vrot.slane %v9769_v11, 2 }
  0x75   : > { %977 = vrot.lane.b32.xlu1 %v9943_v6, %s9347_s15  ;;  %15498 = vst [vmem:[#allocation60_spill] sm:$0xff] %v9970_v62  ;;  %15501 = vst [vmem:[#allocation63_spill] sm:$0xff] %v9986_v45 }
  0x76   : > { %979 = vrot.lane.b32.xlu0 %v9946_v61, %s9347_s15  ;;  %v921_v61 = vrot.slane %v9703_v44, 2 }
  0x78   : > { %v9983_v44 = vsel %vm862_vm2, %v919_v32, %v921_v61  ;;  %v931_v61 = vrot.slane %v9751_v38, 2  ;;  %v933_v32 = vrot.slane %v9772_v17, 2  ;;  %v938_v38 = vrot.slane %v9794_v8, 2 }
  0x79   : > { %981 = vrot.lane.b32.xlu1 %v9957_v53, %s9347_s15  ;;  %15500 = vst [vmem:[#allocation62_spill] sm:$0xff] %v9983_v44 }
  0x7a   : > { %983 = vrot.lane.b32.xlu0 %v9960_v56, %s9347_s15  ;;  %v926_v56 = vrot.slane %v9727_v5, 2  ;;  %v9998_v5 = vsel %vm862_vm2, %v928_v23, %v929_v13  ;;  %v939_v23 = vrot.slane %v9791_v15, 2 }
  0x7b   : > { %15502 = vst [vmem:[#allocation64_spill] sm:$0xff] %v9998_v5 }
  0x7d   : > { %985 = vrot.lane.b32.xlu1 %v9970_v62, %s9347_s15 }
  0x7e   : > { %987 = vrot.lane.b32.xlu0 %v9973_v14, %s9347_s15  ;;  %v9995_v14 = vsel %vm862_vm2, %v924_v2, %v926_v56  ;;  %v10009_v56 = vsel %vm862_vm2, %v929_v13, %v931_v61  ;;  %v10012_v2 = vsel %vm862_vm2, %v933_v32, %v934_v43  ;;  %v10026_v13 = vsel %vm862_vm2, %v938_v38, %v939_v23 }
  0x7f   : > { %15503 = vst [vmem:[#allocation65_spill] sm:$0xff] %v10012_v2  ;;  %15505 = vst [vmem:[#allocation67_spill] sm:$0xff] %v10026_v13  ;;  %v941_v61 = vrot.slane %v9797_v59, 2 }
  0x81   : > { %989 = vrot.lane.b32.xlu1 %v9983_v44, %s9347_s15 }
  0x82   : > { %991 = vrot.lane.b32.xlu0 %v9986_v45, %s9347_s15  ;;  %v936_v45 = vrot.slane %v9775_v48, 2 }
  0x84   : > { %v10023_v48 = vsel %vm862_vm2, %v934_v43, %v936_v45 }
  0x85   : > { %993 = vrot.lane.b32.xlu1 %v9995_v14, %s9347_s15 }
  0x86   : > { %995 = vrot.lane.b32.xlu0 %v9998_v5, %s9347_s15 }
  0x88   : > { %v10016_v44 = vpop.permute.xlu0 %7672 }
  0x89   : > { %15504 = vst [vmem:[#allocation66_spill] sm:$0xff] %v10016_v44  ;;  %997 = vrot.lane.b32.xlu1 %v10009_v56, %s9347_s15  ;;  %v10038_v44 = vsel %vm862_vm2, %v939_v23, %v941_v61 }
  0x8a   : > { %999 = vrot.lane.b32.xlu0 %v10012_v2, %s9347_s15 }
  0x8b   : > { %v10029_v32 = vpop.permute.xlu1 %772 }
  0x8c   : > { %15506 = vst [vmem:[#allocation68_spill] sm:$0xff] %v10029_v32  ;;  %v10031_v5 = vpop.permute.xlu0 %770 }
  0x8d   : > { %15507 = vst [vmem:[#allocation69_spill] sm:$0xff] %v10031_v5  ;;  %1001 = vrot.lane.b32.xlu1 %v10023_v48, %s9347_s15 }
  0x8e   : > { %1003 = vrot.lane.b32.xlu0 %v10026_v13, %s9347_s15 }
  0x8f   : > { %v10040_v45 = vpop.permute.xlu1 %774 }
  0x90   : > { %15508 = vst [vmem:[#allocation70_spill] sm:$0xff] %v10040_v45  ;;  %v10042_v43 = vpop.permute.xlu0 %776 }
  0x91   : > { %15509 = vst [vmem:[#allocation71_spill] sm:$0xff] %v10042_v43  ;;  %1005 = vrot.lane.b32.xlu1 %v10038_v44, %s9347_s15 }
  0x92   : > { %1040 = vrot.lane.b32.xlu0 %v9479_v24, %s9348_s16 }
  0x93   : > { %v10048_v59 = vpop.permute.xlu1 %778 }
  0x94   : > { %15510 = vst [vmem:[#allocation72_spill] sm:$0xff] %v10048_v59  ;;  %v10050_v38 = vpop.permute.xlu0 %780 }
  0x95   : > { %15511 = vst [vmem:[#allocation73_spill] sm:$0xff] %v10050_v38  ;;  %1042 = vrot.lane.b32.xlu1 %v9473_v22, %s9348_s16 }
  0x96   : > { %1044 = vrot.lane.b32.xlu0 %v9482_v25, %s9348_s16 }
  0x97   : > { %v10056_v23 = vpop.permute.xlu1 %782 }
  0x98   : > { %15512 = vst [vmem:[#allocation74_spill] sm:$0xff] %v10056_v23  ;;  %v10058_v61 = vpop.permute.xlu0 %784 }
  0x99   : > { %15513 = vst [vmem:[#allocation75_spill] sm:$0xff] %v10058_v61  ;;  %1046 = vrot.lane.b32.xlu1 %v9488_v29, %s9348_s16 }
  0x9a   : > { %1048 = vrot.lane.b32.xlu0 %v9508_v39, %s9348_s16 }
  0x9b   : > { %v10064_v43 = vpop.permute.xlu1 %786 }
  0x9c   : > { %15514 = vst [vmem:[#allocation76_spill] sm:$0xff] %v10064_v43  ;;  %v10066_v59 = vpop.permute.xlu0 %788 }
  0x9d   : > { %15515 = vst [vmem:[#allocation77_spill] sm:$0xff] %v10066_v59  ;;  %1050 = vrot.lane.b32.xlu1 %v9496_v33, %s9348_s16 }
  0x9e   : > { %1052 = vrot.lane.b32.xlu0 %v9536_v55, %s9348_s16 }
  0x9f   : > { %v10072_v38 = vpop.permute.xlu1 %790 }
  0xa0   : > { %15516 = vst [vmem:[#allocation78_spill] sm:$0xff] %v10072_v38  ;;  %v10074_v23 = vpop.permute.xlu0 %792 }
  0xa1   : > { %15517 = vst [vmem:[#allocation79_spill] sm:$0xff] %v10074_v23  ;;  %1054 = vrot.lane.b32.xlu1 %v9533_v54, %s9348_s16 }
  0xa2   : > { %1056 = vrot.lane.b32.xlu0 %v9556_v0, %s9348_s16 }
  0xa3   : > { %v10080_v61 = vpop.permute.xlu1 %794 }
  0xa4   : > { %15518 = vst [vmem:[#allocation80_spill] sm:$0xff] %v10080_v61  ;;  %v10082_v43 = vpop.permute.xlu0 %796 }
  0xa5   : > { %15519 = vst [vmem:[#allocation81_spill] sm:$0xff] %v10082_v43  ;;  %1058 = vrot.lane.b32.xlu1 %v9551_v60, %s9348_s16  ;;  %v10158_v60 = vld [vmem:[%s9458_s30 + $0xf8] sm:$0xff] }
  0xa6   : > { %1060 = vrot.lane.b32.xlu0 %v9578_v16, %s9348_s16  ;;  %v15206_v54 = vrot.slane %v10158_v60, 7 }
  0xa7   : > { %v10088_v59 = vpop.permute.xlu1 %798 }
  0xa8   : > { %15520 = vst [vmem:[#allocation82_spill] sm:$0xff] %v10088_v59  ;;  %v10090_v38 = vpop.permute.xlu0 %800 }
  0xa9   : > { %15521 = vst [vmem:[#allocation83_spill] sm:$0xff] %v10090_v38  ;;  %1062 = vrot.lane.b32.xlu1 %v9582_v19, %s9348_s16 }
  0xaa   : > { %1064 = vrot.lane.b32.xlu0 %v9599_v30, %s9348_s16 }
  0xab   : > { %v10096_v23 = vpop.permute.xlu1 %802 }
  0xac   : > { %15522 = vst [vmem:[#allocation84_spill] sm:$0xff] %v10096_v23  ;;  %v10098_v61 = vpop.permute.xlu0 %804 }
  0xad   : > { %1066 = vrot.lane.b32.xlu1 %v9605_v40, %s9348_s16  ;;  %v484_v40 = vld [vmem:[%s9458_s30 + $0xf0] sm:$0xff] }
  0xae   : > { %1068 = vrot.lane.b32.xlu0 %v9613_v47, %s9348_s16  ;;  %v567_v30 = vrot.slane %v484_v40, 7 }
  0xaf   : > { %v10104_v43 = vpop.permute.xlu1 %806 }
  0xb0   : > { %v10106_v59 = vpop.permute.xlu0 %808  ;;  %v10165_v0 = vsel %vm519_vm0, 0.0, %v567_v30 }
  0xb1   : > { %1070 = vrot.lane.b32.xlu1 %v9622_v51, %s9348_s16 }
  0xb2   : > { %1072 = vrot.lane.b32.xlu0 %v9651_v10, %s9348_s16 }
  0xb3   : > { %v10112_v38 = vpop.permute.xlu1 %810 }
  0xb4   : > { %v10114_v23 = vpop.permute.xlu0 %812 }
  0xb5   : > { %1074 = vrot.lane.b32.xlu1 %v9648_v9, %s9348_s16 }
  0xb6   : > { %1076 = vrot.lane.b32.xlu0 %v9677_v50, %s9348_s16 }
  0xb7   : > { %v10120_v45 = vpop.permute.xlu1 %814 }
  0xb8   : > { %v10122_v22 = vpop.permute.xlu0 %816 }
  0xb9   : > { %1078 = vrot.lane.b32.xlu1 %v9674_v49, %s9348_s16 }
  0xba   : > { %1080 = vrot.lane.b32.xlu0 %v9696_v18, %s9348_s16 }
  0xbb   : > { %v10128_v32 = vpop.permute.xlu1 %818 }
  0xbc   : > { %v10130_v24 = vpop.permute.xlu0 %820 }
  0xbd   : > { %1082 = vrot.lane.b32.xlu1 %v9700_v31, %s9348_s16 }
  0xbe   : > { %1084 = vrot.lane.b32.xlu0 %v9718_v63, %s9348_s16 }
  0xbf   : > { %v10136_v5 = vpop.permute.xlu1 %822 }
  0xc0   : > { %v10138_v10 = vpop.permute.xlu0 %824 }
  0xc1   : > { %1086 = vrot.lane.b32.xlu1 %v9724_v7, %s9348_s16 }
  0xc2   : > { %1088 = vrot.lane.b32.xlu0 %v9745_v34, %s9348_s16 }
  0xc3   : > { %v10144_v51 = vpop.permute.xlu1 %826 }
  0xc4   : > { %v10146_v47 = vpop.permute.xlu0 %828 }
  0xc5   : > { %1090 = vrot.lane.b32.xlu1 %v9748_v21, %s9348_s16 }
  0xc6   : > { %1092 = vrot.lane.b32.xlu0 %v9772_v17, %s9348_s16 }
  0xc7   : > { %v10153_v19 = vpop.permute.xlu1 %7677 }
  0xc8   : > { %15523 = vst [vmem:[#allocation85_spill] sm:$0xff] %v10153_v19  ;;  %v10155_v16 = vpop.permute.xlu0 %947 }
  0xc9   : > { %15524 = vst [vmem:[#allocation86_spill] sm:$0xff] %v10155_v16  ;;  %1094 = vrot.lane.b32.xlu1 %v9769_v11, %s9348_s16  ;;  %v10179_v16 = vsel %vm519_vm0, %v567_v30, %v15206_v54 }
  0xca   : > { %1096 = vrot.lane.b32.xlu0 %v9794_v8, %s9348_s16 }
  0xcb   : > { %v10168_v55 = vpop.permute.xlu1 %949 }
  0xcc   : > { %15525 = vst [vmem:[#allocation87_spill] sm:$0xff] %v10168_v55  ;;  %v10170_v40 = vpop.permute.xlu0 %951 }
  0xcd   : > { %15526 = vst [vmem:[#allocation88_spill] sm:$0xff] %v10170_v40  ;;  %1098 = vrot.lane.b32.xlu1 %v9791_v15, %s9348_s16 }
  0xce   : > { %1100 = vrot.lane.b32.xlu0 %v10165_v0, %s9348_s16 }
  0xcf   : > { %v10181_v19 = vpop.permute.xlu1 %953 }
  0xd0   : > { %15527 = vst [vmem:[#allocation89_spill] sm:$0xff] %v10181_v19  ;;  %v10183_v33 = vpop.permute.xlu0 %955 }
  0xd1   : > { %15528 = vst [vmem:[#allocation90_spill] sm:$0xff] %v10183_v33  ;;  %1102 = vrot.lane.b32.xlu1 %v10179_v16, %s9348_s16  ;;  %v15533_v33 = vld [vmem:[#allocation12_spill] sm:$0xff]  ;;  %s9353_s16 = smov 32  }
  0xd2   : > { %1142 = vrot.lane.b32.xlu0 %v9504_v37, %s9349_s17 }
  0xd3   : > { %v10189_v40 = vpop.permute.xlu1 %957 }
  0xd4   : > { %15529 = vst [vmem:[#allocation91_spill] sm:$0xff] %v10189_v40  ;;  %v10191_v55 = vpop.permute.xlu0 %959 }
  0xd5   : > { %15530 = vst [vmem:[#allocation92_spill] sm:$0xff] %v10191_v55  ;;  %1144 = vrot.lane.b32.xlu1 %v9501_v36, %s9349_s17  ;;  %v15536_v55 = vld [vmem:[#allocation15_spill] sm:$0xff]  ;;  %v15537_v36 = vld [vmem:[#allocation18_spill] sm:$0xff] }
  0xd6   : > { %1146 = vrot.lane.b32.xlu0 %v9517_v42, %s9349_s17 }
  0xd7   : > { %v10197_v30 = vpop.permute.xlu1 %961 }
  0xd8   : > { %15531 = vst [vmem:[#allocation93_spill] sm:$0xff] %v10197_v30  ;;  %v10199_v54 = vpop.permute.xlu0 %963 }
  0xd9   : > { %15532 = vst [vmem:[#allocation94_spill] sm:$0xff] %v10199_v54  ;;  %1148 = vrot.lane.b32.xlu1 %v9525_v46, %s9349_s17  ;;  %v15540_v54 = vld [vmem:[#allocation19_spill] sm:$0xff]  ;;  %v15541_v46 = vld [vmem:[#allocation22_spill] sm:$0xff] }
  0xda   : > { %1150 = vrot.lane.b32.xlu0 %v15533_v33, %s9349_s17 }
  0xdb   : > { %v10205_v37 = vpop.permute.xlu1 %965 }
  0xdc   : > { %15534 = vst [vmem:[#allocation95_spill] sm:$0xff] %v10205_v37  ;;  %v10207_v40 = vpop.permute.xlu0 %967 }
  0xdd   : > { %15535 = vst [vmem:[#allocation96_spill] sm:$0xff] %v10207_v40  ;;  %1152 = vrot.lane.b32.xlu1 %v15536_v55, %s9349_s17  ;;  %v15544_v40 = vld [vmem:[#allocation23_spill] sm:$0xff]  ;;  %v15545_v55 = vld [vmem:[#allocation28_spill] sm:$0xff] }
  0xde   : > { %1154 = vrot.lane.b32.xlu0 %v15537_v36, %s9349_s17 }
  0xdf   : > { %v10213_v19 = vpop.permute.xlu1 %969 }
  0xe0   : > { %15538 = vst [vmem:[#allocation97_spill] sm:$0xff] %v10213_v19  ;;  %v10215_v30 = vpop.permute.xlu0 %971 }
  0xe1   : > { %15539 = vst [vmem:[#allocation98_spill] sm:$0xff] %v10215_v30  ;;  %1156 = vrot.lane.b32.xlu1 %v15540_v54, %s9349_s17  ;;  %v15548_v30 = vld [vmem:[#allocation29_spill] sm:$0xff]  ;;  %v15549_v54 = vld [vmem:[#allocation30_spill] sm:$0xff] }
  0xe2   : > { %1158 = vrot.lane.b32.xlu0 %v15541_v46, %s9349_s17 }
  0xe3   : > { %v10221_v33 = vpop.permute.xlu1 %973 }
  0xe4   : > { %15542 = vst [vmem:[#allocation99_spill] sm:$0xff] %v10221_v33  ;;  %v10223_v37 = vpop.permute.xlu0 %975  ;;  %v1648_v33 = vsel %vm1627_vm3, %v9677_v50, %v10104_v43  ;;  %v1650_v43 = vsel %vm1627_vm3, %v9696_v18, %v10112_v38  ;;  %v1652_v38 = vsel %vm1627_vm3, %v9718_v63, %v10120_v45  ;;  %v1654_v45 = vsel %vm1627_vm3, %v9745_v34, %v10128_v32 }
  0xe5   : > { %15543 = vst [vmem:[#allocation100_spill] sm:$0xff] %v10223_v37  ;;  %1160 = vrot.lane.b32.xlu1 %v15544_v40, %s9349_s17  ;;  %v1647_v37 = vsel %vm1627_vm3, %v9648_v9, %v10098_v61  ;;  %v15551_v40 = vld [vmem:[#allocation33_spill] sm:$0xff]  ;;  %v1649_v61 = vsel %vm1627_vm3, %v9674_v49, %v10106_v59  ;;  %v1651_v59 = vsel %vm1627_vm3, %v9700_v31, %v10114_v23 }
  0xe6   : > { %1162 = vrot.lane.b32.xlu0 %v15545_v55, %s9349_s17  ;;  %v1653_v23 = vsel %vm1627_vm3, %v9724_v7, %v10122_v22  ;;  %v1655_v22 = vsel %vm1627_vm3, %v9748_v21, %v10130_v24  ;;  %v1656_v32 = vsel %vm1627_vm3, %v9772_v17, %v10136_v5  ;;  %v1657_v24 = vsel %vm1627_vm3, %v9769_v11, %v10138_v10 }
  0xe7   : > { %v10229_v36 = vpop.permute.xlu1 %977  ;;  %v1658_v5 = vsel %vm1627_vm3, %v9794_v8, %v10144_v51  ;;  %v1659_v10 = vsel %vm1627_vm3, %v9791_v15, %v10146_v47  ;;  %v15565_v47 = vrot.slane %v10158_v60, 7 }
  0xe8   : > { %15546 = vst [vmem:[#allocation101_spill] sm:$0xff] %v10229_v36  ;;  %v10231_v19 = vpop.permute.xlu0 %979 }
  0xe9   : > { %15547 = vst [vmem:[#allocation102_spill] sm:$0xff] %v10231_v19  ;;  %1164 = vrot.lane.b32.xlu1 %v15548_v30, %s9349_s17 }
  0xea   : > { %1166 = vrot.lane.b32.xlu0 %v15549_v54, %s9349_s17  ;;  %v15550_v54 = vld [vmem:[#allocation31_spill] sm:$0xff] }
  0xeb   : > { %v982_v55 = vpop.permute.xlu1 %981 }
  0xec   : > { %v984_v36 = vpop.permute.xlu0 %983  ;;  %v10244_v19 = vsel %vm1660_vm4, %v1647_v37, %v982_v55 }
  0xed   : > { %v10247_v30 = vsel %vm1660_vm4, %v1648_v33, %v984_v36  ;;  %1168 = vrot.lane.b32.xlu1 %v15550_v54, %s9349_s17  ;;  %v15552_v36 = vld [vmem:[#allocation34_spill] sm:$0xff] }
  0xee   : > { %1170 = vrot.lane.b32.xlu0 %v15551_v40, %s9349_s17  ;;  %v15553_v40 = vld [vmem:[#allocation35_spill] sm:$0xff] }
  0xef   : > { %v986_v46 = vpop.permute.xlu1 %985 }
  0xf0   : > { %v988_v55 = vpop.permute.xlu0 %987  ;;  %v10260_v37 = vsel %vm1660_vm4, %v1649_v61, %v986_v46 }
  0xf1   : > { %v10263_v33 = vsel %vm1660_vm4, %v1650_v43, %v988_v55  ;;  %1172 = vrot.lane.b32.xlu1 %v15552_v36, %s9349_s17  ;;  %v15554_v55 = vld [vmem:[#allocation36_spill] sm:$0xff] }
  0xf2   : > { %1174 = vrot.lane.b32.xlu0 %v15553_v40, %s9349_s17  ;;  %v15555_v40 = vld [vmem:[#allocation37_spill] sm:$0xff] }
  0xf3   : > { %v990_v54 = vpop.permute.xlu1 %989 }
  0xf4   : > { %v992_v46 = vpop.permute.xlu0 %991  ;;  %v10276_v61 = vsel %vm1660_vm4, %v1651_v59, %v990_v54 }
  0xf5   : > { %v10279_v43 = vsel %vm1660_vm4, %v1652_v38, %v992_v46  ;;  %1176 = vrot.lane.b32.xlu1 %v15554_v55, %s9349_s17  ;;  %v15556_v46 = vld [vmem:[#allocation38_spill] sm:$0xff] }
  0xf6   : > { %1178 = vrot.lane.b32.xlu0 %v15555_v40, %s9349_s17  ;;  %v15557_v40 = vld [vmem:[#allocation39_spill] sm:$0xff] }
  0xf7   : > { %v994_v36 = vpop.permute.xlu1 %993 }
  0xf8   : > { %v996_v54 = vpop.permute.xlu0 %995  ;;  %v10292_v59 = vsel %vm1660_vm4, %v1653_v23, %v994_v36 }
  0xf9   : > { %v10295_v38 = vsel %vm1660_vm4, %v1654_v45, %v996_v54  ;;  %1180 = vrot.lane.b32.xlu1 %v15556_v46, %s9349_s17  ;;  %v15558_v54 = vld [vmem:[#allocation40_spill] sm:$0xff] }
  0xfa   : > { %1182 = vrot.lane.b32.xlu0 %v15557_v40, %s9349_s17  ;;  %v15559_v40 = vld [vmem:[#allocation41_spill] sm:$0xff] }
  0xfb   : > { %v998_v55 = vpop.permute.xlu1 %997 }
  0xfc   : > { %v1000_v36 = vpop.permute.xlu0 %999  ;;  %v10308_v23 = vsel %vm1660_vm4, %v1655_v22, %v998_v55 }
  0xfd   : > { %v10311_v45 = vsel %vm1660_vm4, %v1656_v32, %v1000_v36  ;;  %1184 = vrot.lane.b32.xlu1 %v15558_v54, %s9349_s17  ;;  %v15560_v36 = vld [vmem:[#allocation42_spill] sm:$0xff] }
  0xfe   : > { %1186 = vrot.lane.b32.xlu0 %v15559_v40, %s9349_s17 }
  0xff   : > { %v1002_v46 = vpop.permute.xlu1 %1001 }
 0x100   : > { %v1004_v55 = vpop.permute.xlu0 %1003  ;;  %v10324_v22 = vsel %vm1660_vm4, %v1657_v24, %v1002_v46  ;;  %v15562_v46 = vld [vmem:[#allocation44_spill] sm:$0xff]  ;;  %v1137_v24 = vrot.slane %v10165_v0, 1 }
 0x101   : > { %v10327_v32 = vsel %vm1660_vm4, %v1658_v5, %v1004_v55  ;;  %1188 = vrot.lane.b32.xlu1 %v15560_v36, %s9349_s17  ;;  %v1138_v5 = vrot.slane %v10179_v16, 1 }
 0x102   : > { %1190 = vrot.lane.b32.xlu0 %v9784_v58, %s9349_s17 }
 0x103   : > { %v1006_v40 = vpop.permute.xlu1 %1005 }
 0x104   : > { %v10336_v51 = vpop.permute.xlu0 %1040  ;;  %v10339_v54 = vsel %vm1660_vm4, %v1659_v10, %v1006_v40  ;;  %v10361_v40 = vsel %vm685_vm1, %v1137_v24, %v1138_v5 }
 0x105   : > { %15561 = vst [vmem:[#allocation42_spill] sm:$0xff] %v10336_v51  ;;  %1192 = vrot.lane.b32.xlu1 %v15562_v46, %s9349_s17  ;;  %v10354_v51 = vsel %vm519_vm0, %v15565_v47, 0.0  ;;  %15566 = vst [vmem:[#allocation104_spill] sm:$0xff] %v10361_v40 }
 0x106   : > { %1194 = vrot.lane.b32.xlu0 %v9805_v57, %s9349_s17  ;;  %v1140_v10 = vrot.slane %v10354_v51, 1 }
 0x107   : > { %v10347_v55 = vpop.permute.xlu1 %1042 }
 0x108   : > { %15563 = vst [vmem:[#allocation44_spill] sm:$0xff] %v10347_v55  ;;  %v10349_v58 = vpop.permute.xlu0 %1044  ;;  %v10373_v60 = vsel %vm685_vm1, %v1138_v5, %v1140_v10  ;;  %v15574_v5 = vld [vmem:[#allocation51_spill] sm:$0xff] }
 0x109   : > { %15564 = vst [vmem:[#allocation103_spill] sm:$0xff] %v10349_v58  ;;  %1196 = vrot.lane.b32.xlu1 %v9810_v26, %s9349_s17  ;;  %15569 = vst [vmem:[#allocation107_spill] sm:$0xff] %v10373_v60 }
 0x10a   : > { %1198 = vrot.lane.b32.xlu0 %v9826_v28, %s9349_s17 }
 0x10b   : > { %v10364_v57 = vpop.permute.xlu1 %1046 }
 0x10c   : > { %15567 = vst [vmem:[#allocation105_spill] sm:$0xff] %v10364_v57  ;;  %v10366_v55 = vpop.permute.xlu0 %1048 }
 0x10d   : > { %15568 = vst [vmem:[#allocation106_spill] sm:$0xff] %v10366_v55  ;;  %1200 = vrot.lane.b32.xlu1 %v9829_v35, %s9349_s17 }
 0x10e   : > { %1202 = vrot.lane.b32.xlu0 %v10361_v40, %s9349_s17 }
 0x10f   : > { %v10375_v47 = vpop.permute.xlu1 %1050 }
 0x110   : > { %15570 = vst [vmem:[#allocation108_spill] sm:$0xff] %v10375_v47  ;;  %v10377_v58 = vpop.permute.xlu0 %1052  ;;  %v15577_v47 = vld [vmem:[#allocation52_spill] sm:$0xff] }
 0x111   : > { %15571 = vst [vmem:[#allocation109_spill] sm:$0xff] %v10377_v58  ;;  %1204 = vrot.lane.b32.xlu1 %v10373_v60, %s9349_s17 }
 0x112   : > { %1243 = vrot.lane.b32.xlu0 %v9843_v52, %s9350_s18 }
 0x113   : > { %v10383_v24 = vpop.permute.xlu1 %1054 }
 0x114   : > { %15572 = vst [vmem:[#allocation110_spill] sm:$0xff] %v10383_v24  ;;  %v10385_v55 = vpop.permute.xlu0 %1056 }
 0x115   : > { %15573 = vst [vmem:[#allocation111_spill] sm:$0xff] %v10385_v55  ;;  %1245 = vrot.lane.b32.xlu1 %v9852_v3, %s9350_s18  ;;  %v15580_v3 = vld [vmem:[#allocation53_spill] sm:$0xff] }
 0x116   : > { %1247 = vrot.lane.b32.xlu0 %v15574_v5, %s9350_s18 }
 0x117   : > { %v10391_v10 = vpop.permute.xlu1 %1058 }
 0x118   : > { %15575 = vst [vmem:[#allocation51_spill] sm:$0xff] %v10391_v10  ;;  %v10393_v58 = vpop.permute.xlu0 %1060 }
 0x119   : > { %15576 = vst [vmem:[#allocation112_spill] sm:$0xff] %v10393_v58  ;;  %1249 = vrot.lane.b32.xlu1 %v9866_v27, %s9350_s18  ;;  %v15583_v58 = vld [vmem:[#allocation54_spill] sm:$0xff] }
 0x11a   : > { %1251 = vrot.lane.b32.xlu0 %v15577_v47, %s9350_s18 }
 0x11b   : > { %v10399_v52 = vpop.permute.xlu1 %1062 }
 0x11c   : > { %15578 = vst [vmem:[#allocation52_spill] sm:$0xff] %v10399_v52  ;;  %v10401_v24 = vpop.permute.xlu0 %1064 }
 0x11d   : > { %15579 = vst [vmem:[#allocation113_spill] sm:$0xff] %v10401_v24  ;;  %1253 = vrot.lane.b32.xlu1 %v9878_v1, %s9350_s18  ;;  %v15586_v24 = vld [vmem:[#allocation55_spill] sm:$0xff] }
 0x11e   : > { %1255 = vrot.lane.b32.xlu0 %v15580_v3, %s9350_s18 }
 0x11f   : > { %v10407_v55 = vpop.permute.xlu1 %1066 }
 0x120   : > { %15581 = vst [vmem:[#allocation53_spill] sm:$0xff] %v10407_v55  ;;  %v10409_v10 = vpop.permute.xlu0 %1068 }
 0x121   : > { %15582 = vst [vmem:[#allocation114_spill] sm:$0xff] %v10409_v10  ;;  %1257 = vrot.lane.b32.xlu1 %v9892_v12, %s9350_s18  ;;  %v15589_v10 = vld [vmem:[#allocation56_spill] sm:$0xff] }
 0x122   : > { %1259 = vrot.lane.b32.xlu0 %v15583_v58, %s9350_s18 }
 0x123   : > { %v10415_v57 = vpop.permute.xlu1 %1070 }
 0x124   : > { %15584 = vst [vmem:[#allocation54_spill] sm:$0xff] %v10415_v57  ;;  %v10417_v52 = vpop.permute.xlu0 %1072 }
 0x125   : > { %15585 = vst [vmem:[#allocation115_spill] sm:$0xff] %v10417_v52  ;;  %1261 = vrot.lane.b32.xlu1 %v9905_v4, %s9350_s18 }
 0x126   : > { %1263 = vrot.lane.b32.xlu0 %v15586_v24, %s9350_s18 }
 0x127   : > { %v10423_v60 = vpop.permute.xlu1 %1074 }
 0x128   : > { %15587 = vst [vmem:[#allocation55_spill] sm:$0xff] %v10423_v60  ;;  %v10425_v55 = vpop.permute.xlu0 %1076 }
 0x129   : > { %15588 = vst [vmem:[#allocation116_spill] sm:$0xff] %v10425_v55  ;;  %1265 = vrot.lane.b32.xlu1 %v9918_v20, %s9350_s18  ;;  %v15590_v55 = vld [vmem:[#allocation57_spill] sm:$0xff] }
 0x12a   : > { %1267 = vrot.lane.b32.xlu0 %v15589_v10, %s9350_s18 }
 0x12b   : > { %v1079_v57 = vpop.permute.xlu1 %1078 }
 0x12c   : > { %v1081_v40 = vpop.permute.xlu0 %1080  ;;  %v10433_v52 = vsel %vm1693_vm5, %v10244_v19, %v1079_v57  ;;  %v15591_v57 = vld [vmem:[#allocation58_spill] sm:$0xff] }
 0x12d   : > { %v10437_v35 = vsel %vm1693_vm5, %v10247_v30, %v1081_v40  ;;  %1269 = vrot.lane.b32.xlu1 %v9931_v41, %s9350_s18 }
 0x12e   : > { %1271 = vrot.lane.b32.xlu0 %v15590_v55, %s9350_s18 }
 0x12f   : > { %v1083_v60 = vpop.permute.xlu1 %1082 }
 0x130   : > { %v1085_v28 = vpop.permute.xlu0 %1084  ;;  %v10445_v10 = vsel %vm1693_vm5, %v10260_v37, %v1083_v60 }
 0x131   : > { %v10449_v19 = vsel %vm1693_vm5, %v10263_v33, %v1085_v28  ;;  %1273 = vrot.lane.b32.xlu1 %v9943_v6, %s9350_s18  ;;  %v15592_v28 = vld [vmem:[#allocation59_spill] sm:$0xff] }
 0x132   : > { %1275 = vrot.lane.b32.xlu0 %v15591_v57, %s9350_s18 }
 0x133   : > { %v1087_v30 = vpop.permute.xlu1 %1086 }
 0x134   : > { %v1089_v40 = vpop.permute.xlu0 %1088  ;;  %v10457_v55 = vsel %vm1693_vm5, %v10276_v61, %v1087_v30 }
 0x135   : > { %v10461_v37 = vsel %vm1693_vm5, %v10279_v43, %v1089_v40  ;;  %1277 = vrot.lane.b32.xlu1 %v9957_v53, %s9350_s18  ;;  %v15593_v43 = vld [vmem:[#allocation61_spill] sm:$0xff] }
 0x136   : > { %1279 = vrot.lane.b32.xlu0 %v15592_v28, %s9350_s18 }
 0x137   : > { %v1091_v33 = vpop.permute.xlu1 %1090 }
 0x138   : > { %v1093_v60 = vpop.permute.xlu0 %1092  ;;  %v10469_v57 = vsel %vm1693_vm5, %v10292_v59, %v1091_v33  ;;  %v15594_v33 = vld [vmem:[#allocation62_spill] sm:$0xff] }
 0x139   : > { %v10473_v61 = vsel %vm1693_vm5, %v10295_v38, %v1093_v60  ;;  %1281 = vrot.lane.b32.xlu1 %v9970_v62, %s9350_s18  ;;  %v15595_v38 = vld [vmem:[#allocation63_spill] sm:$0xff] }
 0x13a   : > { %1283 = vrot.lane.b32.xlu0 %v15593_v43, %s9350_s18 }
 0x13b   : > { %v1095_v30 = vpop.permute.xlu1 %1094 }
 0x13c   : > { %v1097_v40 = vpop.permute.xlu0 %1096  ;;  %v10481_v28 = vsel %vm1693_vm5, %v10308_v23, %v1095_v30 }
 0x13d   : > { %v10485_v59 = vsel %vm1693_vm5, %v10311_v45, %v1097_v40  ;;  %1285 = vrot.lane.b32.xlu1 %v15594_v33, %s9350_s18  ;;  %v15596_v45 = vld [vmem:[#allocation64_spill] sm:$0xff] }
 0x13e   : > { %1287 = vrot.lane.b32.xlu0 %v15595_v38, %s9350_s18 }
 0x13f   : > { %v1099_v60 = vpop.permute.xlu1 %1098 }
 0x140   : > { %v1101_v62 = vpop.permute.xlu0 %1100  ;;  %v10493_v43 = vsel %vm1693_vm5, %v10324_v22, %v1099_v60  ;;  %v1239_v22 = vrot.slane %v10179_v16, 2 }
 0x141   : > { %v10497_v23 = vsel %vm1693_vm5, %v10327_v32, %v1101_v62  ;;  %1289 = vrot.lane.b32.xlu1 %v9995_v14, %s9350_s18  ;;  %v1238_v62 = vrot.slane %v10165_v0, 2 }
 0x142   : > { %1291 = vrot.lane.b32.xlu0 %v15596_v45, %s9350_s18 }
 0x143   : > { %v1103_v30 = vpop.permute.xlu1 %1102 }
 0x144   : > { %v10503_v40 = vpop.permute.xlu0 %1142  ;;  %v10507_v38 = vsel %vm1693_vm5, %v10339_v54, %v1103_v30  ;;  %v10524_v54 = vsel %vm862_vm2, %v1238_v62, %v1239_v22  ;;  %v1241_v30 = vrot.slane %v10354_v51, 2 }
 0x145   : > { %15597 = vst [vmem:[#allocation62_spill] sm:$0xff] %v10503_v40  ;;  %1293 = vrot.lane.b32.xlu1 %v10009_v56, %s9350_s18 }
 0x146   : > { %1295 = vrot.lane.b32.xlu0 %v10012_v2, %s9350_s18 }
 0x147   : > { %v10515_v32 = vpop.permute.xlu1 %1144 }
 0x148   : > { %15598 = vst [vmem:[#allocation64_spill] sm:$0xff] %v10515_v32  ;;  %v10517_v60 = vpop.permute.xlu0 %1146 }
 0x149   : > { %15599 = vst [vmem:[#allocation117_spill] sm:$0xff] %v10517_v60  ;;  %1297 = vrot.lane.b32.xlu1 %v10023_v48, %s9350_s18  ;;  %v10536_v60 = vsel %vm862_vm2, %v1239_v22, %v1241_v30 }
 0x14a   : > { %1299 = vrot.lane.b32.xlu0 %v10026_v13, %s9350_s18 }
 0x14b   : > { %v10527_v40 = vpop.permute.xlu1 %1148 }
 0x14c   : > { %15600 = vst [vmem:[#allocation118_spill] sm:$0xff] %v10527_v40  ;;  %v10529_v2 = vpop.permute.xlu0 %1150  ;;  %v15642_v40 = vld [vmem:[#allocation18_spill] sm:$0xff] }
 0x14d   : > { %15601 = vst [vmem:[#allocation119_spill] sm:$0xff] %v10529_v2  ;;  %1301 = vrot.lane.b32.xlu1 %v10038_v44, %s9350_s18 }
 0x14e   : > { %1303 = vrot.lane.b32.xlu0 %v10524_v54, %s9350_s18 }
 0x14f   : > { %v10538_v32 = vpop.permute.xlu1 %1152 }
 0x150   : > { %15602 = vst [vmem:[#allocation120_spill] sm:$0xff] %v10538_v32  ;;  %v10540_v13 = vpop.permute.xlu0 %1154  ;;  %v15609_v32 = vld [vmem:[#allocation14_spill] sm:$0xff] }
 0x151   : > { %15603 = vst [vmem:[#allocation121_spill] sm:$0xff] %v10540_v13  ;;  %1305 = vrot.lane.b32.xlu1 %v10536_v60, %s9350_s18  ;;  %v15608_v13 = vld [vmem:[#allocation9_spill] sm:$0xff] }
 0x152   : > { %1339 = vrot.lane.b32.xlu0 %v9482_v25, %s9351_s19 }
 0x153   : > { %v10546_v51 = vpop.permute.xlu1 %1156 }
 0x154   : > { %15604 = vst [vmem:[#allocation122_spill] sm:$0xff] %v10546_v51  ;;  %v10548_v62 = vpop.permute.xlu0 %1158 }
 0x155   : > { %15605 = vst [vmem:[#allocation123_spill] sm:$0xff] %v10548_v62  ;;  %1341 = vrot.lane.b32.xlu1 %v9488_v29, %s9351_s19  ;;  %v15612_v62 = vld [vmem:[#allocation13_spill] sm:$0xff] }
 0x156   : > { %1343 = vrot.lane.b32.xlu0 %v9508_v39, %s9351_s19  ;;  %v15613_v29 = vld [vmem:[#allocation17_spill] sm:$0xff] }
 0x157   : > { %v10554_v22 = vpop.permute.xlu1 %1160 }
 0x158   : > { %15606 = vst [vmem:[#allocation124_spill] sm:$0xff] %v10554_v22  ;;  %v10556_v30 = vpop.permute.xlu0 %1162 }
 0x159   : > { %15607 = vst [vmem:[#allocation125_spill] sm:$0xff] %v10556_v30  ;;  %1345 = vrot.lane.b32.xlu1 %v15608_v13, %s9351_s19  ;;  %v15616_v30 = vld [vmem:[#allocation16_spill] sm:$0xff] }
 0x15a   : > { %1347 = vrot.lane.b32.xlu0 %v15609_v32, %s9351_s19  ;;  %v15617_v13 = vld [vmem:[#allocation20_spill] sm:$0xff] }
 0x15b   : > { %v10562_v2 = vpop.permute.xlu1 %1164 }
 0x15c   : > { %15610 = vst [vmem:[#allocation126_spill] sm:$0xff] %v10562_v2  ;;  %v10564_v51 = vpop.permute.xlu0 %1166 }
 0x15d   : > { %15611 = vst [vmem:[#allocation127_spill] sm:$0xff] %v10564_v51  ;;  %1349 = vrot.lane.b32.xlu1 %v15612_v62, %s9351_s19  ;;  %v15620_v51 = vld [vmem:[#allocation21_spill] sm:$0xff]  ;;  %v15621_v62 = vld [vmem:[#allocation24_spill] sm:$0xff] }
 0x15e   : > { %1351 = vrot.lane.b32.xlu0 %v15613_v29, %s9351_s19 }
 0x15f   : > { %v10570_v39 = vpop.permute.xlu1 %1168 }
 0x160   : > { %15614 = vst [vmem:[#allocation128_spill] sm:$0xff] %v10570_v39  ;;  %v10572_v22 = vpop.permute.xlu0 %1170 }
 0x161   : > { %15615 = vst [vmem:[#allocation129_spill] sm:$0xff] %v10572_v22  ;;  %1353 = vrot.lane.b32.xlu1 %v15616_v30, %s9351_s19  ;;  %v15624_v22 = vld [vmem:[#allocation25_spill] sm:$0xff]  ;;  %v15625_v30 = vld [vmem:[#allocation26_spill] sm:$0xff] }
 0x162   : > { %1355 = vrot.lane.b32.xlu0 %v15617_v13, %s9351_s19 }
 0x163   : > { %v10578_v32 = vpop.permute.xlu1 %1172 }
 0x164   : > { %15618 = vst [vmem:[#allocation130_spill] sm:$0xff] %v10578_v32  ;;  %v10580_v2 = vpop.permute.xlu0 %1174 }
 0x165   : > { %15619 = vst [vmem:[#allocation131_spill] sm:$0xff] %v10580_v2  ;;  %1357 = vrot.lane.b32.xlu1 %v15620_v51, %s9351_s19  ;;  %v15626_v2 = vld [vmem:[#allocation27_spill] sm:$0xff]  ;;  %v15627_v51 = vld [vmem:[#allocation32_spill] sm:$0xff] }
 0x166   : > { %1359 = vrot.lane.b32.xlu0 %v15621_v62, %s9351_s19 }
 0x167   : > { %v10586_v29 = vpop.permute.xlu1 %1176 }
 0x168   : > { %15622 = vst [vmem:[#allocation132_spill] sm:$0xff] %v10586_v29  ;;  %v10588_v39 = vpop.permute.xlu0 %1178 }
 0x169   : > { %15623 = vst [vmem:[#allocation133_spill] sm:$0xff] %v10588_v39  ;;  %1361 = vrot.lane.b32.xlu1 %v15624_v22, %s9351_s19 }
 0x16a   : > { %1363 = vrot.lane.b32.xlu0 %v15625_v30, %s9351_s19 }
 0x16b   : > { %v10594_v13 = vpop.permute.xlu1 %1180 }
 0x16c   : > { %v10596_v32 = vpop.permute.xlu0 %1182 }
 0x16d   : > { %1365 = vrot.lane.b32.xlu1 %v15626_v2, %s9351_s19 }
 0x16e   : > { %1367 = vrot.lane.b32.xlu0 %v15627_v51, %s9351_s19 }
 0x16f   : > { %v10602_v62 = vpop.permute.xlu1 %1184 }
 0x170   : > { %v10604_v29 = vpop.permute.xlu0 %1186 }
 0x171   : > { %1369 = vrot.lane.b32.xlu1 %v9648_v9, %s9351_s19 }
 0x172   : > { %1371 = vrot.lane.b32.xlu0 %v9677_v50, %s9351_s19 }
 0x173   : > { %v10610_v39 = vpop.permute.xlu1 %1188 }
 0x174   : > { %v10612_v30 = vpop.permute.xlu0 %1190 }
 0x175   : > { %1373 = vrot.lane.b32.xlu1 %v9674_v49, %s9351_s19 }
 0x176   : > { %1375 = vrot.lane.b32.xlu0 %v9696_v18, %s9351_s19 }
 0x177   : > { %v10618_v51 = vpop.permute.xlu1 %1192 }
 0x178   : > { %v10620_v2 = vpop.permute.xlu0 %1194 }
 0x179   : > { %1377 = vrot.lane.b32.xlu1 %v9700_v31, %s9351_s19 }
 0x17a   : > { %1379 = vrot.lane.b32.xlu0 %v9718_v63, %s9351_s19 }
 0x17b   : > { %v10626_v9 = vpop.permute.xlu1 %1196 }
 0x17c   : > { %v10628_v50 = vpop.permute.xlu0 %1198 }
 0x17d   : > { %1381 = vrot.lane.b32.xlu1 %v9724_v7, %s9351_s19 }
 0x17e   : > { %1383 = vrot.lane.b32.xlu0 %v9745_v34, %s9351_s19 }
 0x17f   : > { %v10634_v49 = vpop.permute.xlu1 %1200 }
 0x180   : > { %v10636_v18 = vpop.permute.xlu0 %1202 }
 0x181   : > { %1385 = vrot.lane.b32.xlu1 %v9748_v21, %s9351_s19  ;;  %v15628_v21 = vld [vmem:[#allocation3_spill] sm:$0xff] }
 0x182   : > { %1387 = vrot.lane.b32.xlu0 %v9772_v17, %s9351_s19  ;;  %v15629_v17 = vld [vmem:[#allocation2_spill] sm:$0xff] }
 0x183   : > { %v10642_v31 = vpop.permute.xlu1 %1204  ;;  %v10660_v22 = vpack.i.bf16 %v15629_v17, %v15628_v21 }
 0x184   : > { %v10644_v63 = vpop.permute.xlu0 %1243 }
 0x185   : > { %1389 = vrot.lane.b32.xlu1 %v9769_v11, %s9351_s19  ;;  %15630 = vst [vmem:[#allocation134_spill] sm:$0xff] %v10660_v22 }
 0x186   : > { %1391 = vrot.lane.b32.xlu0 %v9794_v8, %s9351_s19 }
 0x187   : > { %v10650_v7 = vpop.permute.xlu1 %1245 }
 0x188   : > { %v10652_v34 = vpop.permute.xlu0 %1247 }
 0x189   : > { %1393 = vrot.lane.b32.xlu1 %v9791_v15, %s9351_s19 }
 0x18a   : > { %1395 = vrot.lane.b32.xlu0 %v10165_v0, %s9351_s19  ;;  %v15635_v0 = vld [vmem:[#allocation11_spill] sm:$0xff] }
 0x18b   : > { %v10662_v25 = vpop.permute.xlu1 %1249 }
 0x18c   : > { %15631 = vst [vmem:[#allocation135_spill] sm:$0xff] %v10662_v25  ;;  %v10664_v11 = vpop.permute.xlu0 %1251 }
 0x18d   : > { %15632 = vst [vmem:[#allocation136_spill] sm:$0xff] %v10664_v11  ;;  %1397 = vrot.lane.b32.xlu1 %v10179_v16, %s9351_s19  ;;  %v15638_v16 = vld [vmem:[#allocation12_spill] sm:$0xff] }
 0x18e   : > { %7682 = vrot.lane.b32.xlu0 %v10660_v22, %s9351_s19  ;;  %v15639_v22 = vld [vmem:[#allocation15_spill] sm:$0xff]  ;;  %s9356_s19 = smov 64  }
 0x18f   : > { %v10670_v8 = vpop.permute.xlu1 %1253 }
 0x190   : > { %15633 = vst [vmem:[#allocation137_spill] sm:$0xff] %v10670_v8  ;;  %v10672_v15 = vpop.permute.xlu0 %1255 }
 0x191   : > { %15634 = vst [vmem:[#allocation138_spill] sm:$0xff] %v10672_v15  ;;  %1435 = vrot.lane.b32.xlu1 %v9517_v42, %s9352_s20  ;;  %v15643_v42 = vld [vmem:[#allocation19_spill] sm:$0xff] }
 0x192   : > { %1437 = vrot.lane.b32.xlu0 %v15635_v0, %s9352_s20 }
 0x193   : > { %v10678_v25 = vpop.permute.xlu1 %1257 }
 0x194   : > { %15636 = vst [vmem:[#allocation11_spill] sm:$0xff] %v10678_v25  ;;  %v10680_v11 = vpop.permute.xlu0 %1259 }
 0x195   : > { %15637 = vst [vmem:[#allocation139_spill] sm:$0xff] %v10680_v11  ;;  %1439 = vrot.lane.b32.xlu1 %v15638_v16, %s9352_s20  ;;  %v15646_v11 = vld [vmem:[#allocation22_spill] sm:$0xff]  ;;  %v15647_v16 = vld [vmem:[#allocation23_spill] sm:$0xff] }
 0x196   : > { %1441 = vrot.lane.b32.xlu0 %v15639_v22, %s9352_s20 }
 0x197   : > { %v10686_v8 = vpop.permute.xlu1 %1261 }
 0x198   : > { %15640 = vst [vmem:[#allocation12_spill] sm:$0xff] %v10686_v8  ;;  %v10688_v15 = vpop.permute.xlu0 %1263 }
 0x199   : > { %15641 = vst [vmem:[#allocation15_spill] sm:$0xff] %v10688_v15  ;;  %1443 = vrot.lane.b32.xlu1 %v15642_v40, %s9352_s20  ;;  %v1891_v40 = vld [vmem:[%s15086_s1] sm:$0xff]  ;;  %v1894_v15 = vld [vmem:[%s15086_s1 + $0x18] sm:$0xff] }
 0x19a   : > { %1445 = vrot.lane.b32.xlu0 %v15643_v42, %s9352_s20  ;;  %v1892_v42 = vld [vmem:[%s15086_s1 + $0x8] sm:$0xff] }
 0x19b   : > { %v10694_v0 = vpop.permute.xlu1 %1265 }
 0x19c   : > { %15644 = vst [vmem:[#allocation18_spill] sm:$0xff] %v10694_v0  ;;  %v10696_v25 = vpop.permute.xlu0 %1267  ;;  %v7343_v0 = vpack.c.bf16 %v1892_v42, %v1891_v40 }
 0x19d   : > { %15645 = vst [vmem:[#allocation19_spill] sm:$0xff] %v10696_v25  ;;  %1447 = vrot.lane.b32.xlu1 %v15646_v11, %s9352_s20  ;;  %v15650_v25 = vld [vmem:[#allocation28_spill] sm:$0xff]  ;;  %v15651_v11 = vld [vmem:[#allocation29_spill] sm:$0xff] }
 0x19e   : > { %1449 = vrot.lane.b32.xlu0 %v15647_v16, %s9352_s20  ;;  %7344 = vmatprep.subr.bf16.mxu1 %v7343_v0 }
 0x19f   : > { %v10702_v22 = vpop.permute.xlu1 %1269  ;;  %7346 = vmatpush3.bf16.msra.mxu1 %v7343_v0  ;;  %v15658_v0 = vld [vmem:[#allocation33_spill] sm:$0xff] }
 0x1a0   : > { %15648 = vst [vmem:[#allocation22_spill] sm:$0xff] %v10702_v22  ;;  %v10704_v8 = vpop.permute.xlu0 %1271 }
 0x1a1   : > { %15649 = vst [vmem:[#allocation23_spill] sm:$0xff] %v10704_v8  ;;  %1451 = vrot.lane.b32.xlu1 %v15650_v25, %s9352_s20  ;;  %v1893_v8 = vld [vmem:[%s15086_s1 + $0x10] sm:$0xff]  ;;  %v15654_v25 = vld [vmem:[#allocation30_spill] sm:$0xff] }
 0x1a2   : > { %1453 = vrot.lane.b32.xlu0 %v15651_v11, %s9352_s20  ;;  %v15655_v11 = vld [vmem:[#allocation31_spill] sm:$0xff]  ;;  %v7347_v40 = vpack.c.bf16 %v1894_v15, %v1893_v8  ;;  %v1746_v8 = vsel %vm1726_vm7, %v10433_v52, %v10594_v13  ;;  %v1747_v15 = vsel %vm1726_vm7, %v10437_v35, %v10596_v32  ;;  %v1748_v35 = vsel %vm1726_vm7, %v10445_v10, %v10602_v62 }
 0x1a3   : > { %v10716_v16 = vpop.permute.xlu1 %1273  ;;  %v1749_v13 = vsel %vm1726_vm7, %v10449_v19, %v10604_v29  ;;  %v1750_v10 = vsel %vm1726_vm7, %v10457_v55, %v10610_v39  ;;  %v1751_v29 = vsel %vm1726_vm7, %v10461_v37, %v10612_v30  ;;  %v1752_v39 = vsel %vm1726_vm7, %v10469_v57, %v10618_v51 }
 0x1a4   : > { %15652 = vst [vmem:[#allocation28_spill] sm:$0xff] %v10716_v16  ;;  %v10718_v22 = vpop.permute.xlu0 %1275  ;;  %7348 = vmatprep.subr.bf16.mxu1 %v7347_v40  ;;  %v15659_v16 = vld [vmem:[#allocation34_spill] sm:$0xff]  ;;  %v1753_v55 = vsel %vm1726_vm7, %v10473_v61, %v10620_v2  ;;  %v1755_v2 = vsel %vm1726_vm7, %v10485_v59, %v10628_v50 }
 0x1a5   : > { %15653 = vst [vmem:[#allocation29_spill] sm:$0xff] %v10718_v22  ;;  %1455 = vrot.lane.b32.xlu1 %v15654_v25, %s9352_s20  ;;  %7350 = vmatpush3.bf16.msra.mxu1 %v7347_v40  ;;  %v1895_v25 = vld [vmem:[%s15086_s1 + $0x20] sm:$0xf] }
 0x1a6   : > { %1457 = vrot.lane.b32.xlu0 %v15655_v11, %s9352_s20  ;;  %7293 = vmatprep.subr.msk.mxu1 %vm2000_vm6, %v1895_v25 }
 0x1a7   : > { %v10730_v42 = vpop.permute.xlu1 %1277 }
 0x1a8   : > { %15656 = vst [vmem:[#allocation30_spill] sm:$0xff] %v10730_v42  ;;  %v10732_v22 = vpop.permute.xlu0 %1279  ;;  %v15661_v42 = vld [vmem:[#allocation36_spill] sm:$0xff] }
 0x1a9   : > { %15657 = vst [vmem:[#allocation31_spill] sm:$0xff] %v10732_v22  ;;  %1459 = vrot.lane.b32.xlu1 %v15658_v0, %s9352_s20  ;;  %7294 = vmatpush3.msk.msra.mxu1 %vm2000_vm6, %v1895_v25  ;;  %v15660_v22 = vld [vmem:[#allocation35_spill] sm:$0xff] }
 0x1aa   : > { %1461 = vrot.lane.b32.xlu0 %v15659_v16, %s9352_s20 }
 0x1ab   : > { %v1282_v11 = vpop.permute.xlu1 %1281 }
 0x1ac   : > { %v1284_v40 = vpop.permute.xlu0 %1283  ;;  %v10748_v16 = vsel %vm1759_vm8, %v1746_v8, %v1282_v11 }
 0x1ad   : > { %v10751_v0 = vsel %vm1759_vm8, %v1747_v15, %v1284_v40  ;;  %1463 = vrot.lane.b32.xlu1 %v15660_v22, %s9352_s20  ;;  %v15662_v22 = vld [vmem:[#allocation37_spill] sm:$0xff]  ;;  %v15664_v40 = vld [vmem:[#allocation39_spill] sm:$0xff] }
 0x1ae   : > { %1465 = vrot.lane.b32.xlu0 %v15661_v42, %s9352_s20  ;;  %v15663_v42 = vld [vmem:[#allocation38_spill] sm:$0xff] }
 0x1af   : > { %v1286_v52 = vpop.permute.xlu1 %1285 }
 0x1b0   : > { %v1288_v32 = vpop.permute.xlu0 %1287  ;;  %v10764_v8 = vsel %vm1759_vm8, %v1748_v35, %v1286_v52 }
 0x1b1   : > { %v10767_v25 = vsel %vm1759_vm8, %v1749_v13, %v1288_v32  ;;  %1467 = vrot.lane.b32.xlu1 %v15662_v22, %s9352_s20 }
 0x1b2   : > { %1469 = vrot.lane.b32.xlu0 %v15663_v42, %s9352_s20 }
 0x1b3   : > { %v1290_v19 = vpop.permute.xlu1 %1289 }
 0x1b4   : > { %v1292_v62 = vpop.permute.xlu0 %1291  ;;  %v10780_v15 = vsel %vm1759_vm8, %v1750_v10, %v1290_v19  ;;  %v15668_v10 = vld [vmem:[#allocation45_spill] sm:$0xff]  ;;  %v15669_v19 = vld [vmem:[#allocation48_spill] sm:$0xff] }
 0x1b5   : > { %v10783_v11 = vsel %vm1759_vm8, %v1751_v29, %v1292_v62  ;;  %1471 = vrot.lane.b32.xlu1 %v15664_v40, %s9352_s20  ;;  %v15670_v62 = vld [vmem:[#allocation56_spill] sm:$0xff] }
 0x1b6   : > { %1531 = vrot.lane.b32.xlu0 %v15574_v5, %s9353_s16  ;;  %v1754_v5 = vsel %vm1726_vm7, %v10481_v28, %v10626_v9  ;;  %v1757_v28 = vsel %vm1726_vm7, %v10497_v23, %v10636_v18 }
 0x1b7   : > { %v1294_v37 = vpop.permute.xlu1 %1293 }
 0x1b8   : > { %v1296_v30 = vpop.permute.xlu0 %1295  ;;  %v10796_v35 = vsel %vm1759_vm8, %v1752_v39, %v1294_v37  ;;  %v15673_v37 = vld [vmem:[#allocation57_spill] sm:$0xff] }
 0x1b9   : > { %v10799_v13 = vsel %vm1759_vm8, %v1753_v55, %v1296_v30  ;;  %1533 = vrot.lane.b32.xlu1 %v9866_v27, %s9353_s16  ;;  %v15665_v27 = vld [vmem:[#allocation40_spill] sm:$0xff] }
 0x1ba   : > { %1535 = vrot.lane.b32.xlu0 %v15577_v47, %s9353_s16  ;;  %v1756_v47 = vsel %vm1726_vm7, %v10493_v43, %v10634_v49  ;;  %v1758_v43 = vsel %vm1726_vm7, %v10507_v38, %v10642_v31  ;;  %v15672_v55 = vld [vmem:[#allocation104_spill] sm:$0xff] }
 0x1bb   : > { %v1298_v57 = vpop.permute.xlu1 %1297 }
 0x1bc   : > { %v1300_v61 = vpop.permute.xlu0 %1299  ;;  %v10812_v51 = vsel %vm1759_vm8, %v1754_v5, %v1298_v57 }
 0x1bd   : > { %v10815_v52 = vsel %vm1759_vm8, %v1755_v2, %v1300_v61  ;;  %1537 = vrot.lane.b32.xlu1 %v9878_v1, %s9353_s16  ;;  %v15666_v1 = vld [vmem:[#allocation41_spill] sm:$0xff]  ;;  %v15675_v61 = vld [vmem:[#allocation4_spill] sm:$0xff] }
 0x1be   : > { %1473 = vrot.lane.b32.xlu0 %v15665_v27, %s9352_s20  ;;  %v15676_v27 = vld [vmem:[#allocation58_spill] sm:$0xff] }
 0x1bf   : > { %v1302_v59 = vpop.permute.xlu1 %1301 }
 0x1c0   : > { %v1304_v9 = vpop.permute.xlu0 %1303  ;;  %v10828_v50 = vsel %vm1759_vm8, %v1756_v47, %v1302_v59 }
 0x1c1   : > { %v10831_v32 = vsel %vm1759_vm8, %v1757_v28, %v1304_v9  ;;  %1475 = vrot.lane.b32.xlu1 %v15666_v1, %s9352_s20  ;;  %v15677_v9 = vld [vmem:[#allocation59_spill] sm:$0xff] }
 0x1c2   : > { %1539 = vrot.lane.b32.xlu0 %v15580_v3, %s9353_s16  ;;  %v15667_v3 = vld [vmem:[#allocation43_spill] sm:$0xff] }
 0x1c3   : > { %v1306_v49 = vpop.permute.xlu1 %1305 }
 0x1c4   : > { %v10840_v23 = vpop.permute.xlu0 %1339  ;;  %v10843_v18 = vsel %vm1759_vm8, %v1758_v43, %v1306_v49 }
 0x1c5   : > { %1541 = vrot.lane.b32.xlu1 %v9892_v12, %s9353_s16 }
 0x1c6   : > { %1477 = vrot.lane.b32.xlu0 %v15560_v36, %s9352_s20 }
 0x1c7   : > { %v10849_v22 = vpop.permute.xlu1 %1341 }
 0x1c8   : > { %v10851_v42 = vpop.permute.xlu0 %1343 }
 0x1c9   : > { %1479 = vrot.lane.b32.xlu1 %v15667_v3, %s9352_s20  ;;  %v15678_v3 = vld [vmem:[#allocation60_spill] sm:$0xff] }
 0x1ca   : > { %1543 = vrot.lane.b32.xlu0 %v15583_v58, %s9353_s16 }
 0x1cb   : > { %v10857_v38 = vpop.permute.xlu1 %1345 }
 0x1cc   : > { %v10859_v31 = vpop.permute.xlu0 %1347 }
 0x1cd   : > { %1545 = vrot.lane.b32.xlu1 %v9905_v4, %s9353_s16 }
 0x1ce   : > { %1481 = vrot.lane.b32.xlu0 %v15562_v46, %s9352_s20 }
 0x1cf   : > { %v10865_v12 = vpop.permute.xlu1 %1349 }
 0x1d0   : > { %v10867_v36 = vpop.permute.xlu0 %1351 }
 0x1d1   : > { %1483 = vrot.lane.b32.xlu1 %v15668_v10, %s9352_s20 }
 0x1d2   : > { %1547 = vrot.lane.b32.xlu0 %v15586_v24, %s9353_s16 }
 0x1d3   : > { %v10873_v58 = vpop.permute.xlu1 %1353 }
 0x1d4   : > { %v10875_v29 = vpop.permute.xlu0 %1355 }
 0x1d5   : > { %1549 = vrot.lane.b32.xlu1 %v9918_v20, %s9353_s16  ;;  %v15671_v20 = vld [vmem:[#allocation49_spill] sm:$0xff] }
 0x1d6   : > { %1485 = vrot.lane.b32.xlu0 %v9810_v26, %s9352_s20 }
 0x1d7   : > { %v10881_v4 = vpop.permute.xlu1 %1357 }
 0x1d8   : > { %v10883_v46 = vpop.permute.xlu0 %1359 }
 0x1d9   : > { %1487 = vrot.lane.b32.xlu1 %v15669_v19, %s9352_s20 }
 0x1da   : > { %1551 = vrot.lane.b32.xlu0 %v15670_v62, %s9353_s16 }
 0x1db   : > { %v10889_v24 = vpop.permute.xlu1 %1361 }
 0x1dc   : > { %v10891_v40 = vpop.permute.xlu0 %1363 }
 0x1dd   : > { %1553 = vrot.lane.b32.xlu1 %v9931_v41, %s9353_s16  ;;  %v15674_v41 = vld [vmem:[#allocation107_spill] sm:$0xff] }
 0x1de   : > { %1489 = vrot.lane.b32.xlu0 %v15671_v20, %s9352_s20 }
 0x1df   : > { %v10897_v26 = vpop.permute.xlu1 %1365 }
 0x1e0   : > { %v10899_v39 = vpop.permute.xlu0 %1367 }
 0x1e1   : > { %1491 = vrot.lane.b32.xlu1 %v15672_v55, %s9352_s20 }
 0x1e2   : > { %1555 = vrot.lane.b32.xlu0 %v15673_v37, %s9353_s16 }
 0x1e3   : > { %v10905_v30 = vpop.permute.xlu1 %1369 }
 0x1e4   : > { %v10907_v5 = vpop.permute.xlu0 %1371 }
 0x1e5   : > { %1557 = vrot.lane.b32.xlu1 %v9943_v6, %s9353_s16 }
 0x1e6   : > { %1493 = vrot.lane.b32.xlu0 %v15674_v41, %s9352_s20 }
 0x1e7   : > { %v10913_v2 = vpop.permute.xlu1 %1373 }
 0x1e8   : > { %v10915_v57 = vpop.permute.xlu0 %1375 }
 0x1e9   : > { %7687 = vrot.lane.b32.xlu1 %v15675_v61, %s9352_s20  ;;  %s9357_s20 = smov 80  }
 0x1ea   : > { %1559 = vrot.lane.b32.xlu0 %v15676_v27, %s9353_s16 }
 0x1eb   : > { %v1378_v47 = vpop.permute.xlu1 %1377 }
 0x1ec   : > { %v1380_v28 = vpop.permute.xlu0 %1379  ;;  %v10923_v59 = vsel %vm1792_vm9, %v10748_v16, %v1378_v47 }
 0x1ed   : > { %v10927_v6 = vsel %vm1792_vm9, %v10751_v0, %v1380_v28  ;;  %1561 = vrot.lane.b32.xlu1 %v9957_v53, %s9353_s16  ;;  %v15679_v0 = vld [vmem:[#allocation61_spill] sm:$0xff] }
 0x1ee   : > { %1563 = vrot.lane.b32.xlu0 %v15677_v9, %s9353_s16 }
 0x1ef   : > { %v1382_v1 = vpop.permute.xlu1 %1381 }
 0x1f0   : > { %v1384_v43 = vpop.permute.xlu0 %1383  ;;  %v10935_v49 = vsel %vm1792_vm9, %v10764_v8, %v1382_v1 }
 0x1f1   : > { %v10939_v16 = vsel %vm1792_vm9, %v10767_v25, %v1384_v43  ;;  %1565 = vrot.lane.b32.xlu1 %v15678_v3, %s9353_s16  ;;  %v15680_v25 = vld [vmem:[#allocation63_spill] sm:$0xff] }
 0x1f2   : > { %1567 = vrot.lane.b32.xlu0 %v15679_v0, %s9353_s16 }
 0x1f3   : > { %v1386_v53 = vpop.permute.xlu1 %1385 }
 0x1f4   : > { %v1388_v10 = vpop.permute.xlu0 %1387  ;;  %v10947_v19 = vsel %vm1792_vm9, %v10780_v15, %v1386_v53 }
 0x1f5   : > { %v10951_v8 = vsel %vm1792_vm9, %v10783_v11, %v1388_v10  ;;  %1569 = vrot.lane.b32.xlu1 %v15594_v33, %s9353_s16 }
 0x1f6   : > { %1571 = vrot.lane.b32.xlu0 %v15680_v25, %s9353_s16  ;;  %v15689_v25 = vld [vmem:[#allocation66_spill] sm:$0xff] }
 0x1f7   : > { %v1390_v62 = vpop.permute.xlu1 %1389 }
 0x1f8   : > { %v1392_v20 = vpop.permute.xlu0 %1391  ;;  %v10959_v55 = vsel %vm1792_vm9, %v10796_v35, %v1390_v62  ;;  %v7674_v62 = vunpack.i.l.bf16 %v15689_v25 }
 0x1f9   : > { %v10963_v15 = vsel %vm1792_vm9, %v10799_v13, %v1392_v20  ;;  %1573 = vrot.lane.b32.xlu1 %v9995_v14, %s9353_s16  ;;  %v15683_v13 = vld [vmem:[#allocation65_spill] sm:$0xff] }
 0x1fa   : > { %1575 = vrot.lane.b32.xlu0 %v15596_v45, %s9353_s16  ;;  %v15690_v20 = vld [vmem:[#allocation85_spill] sm:$0xff] }
 0x1fb   : > { %v1394_v33 = vpop.permute.xlu1 %1393 }
 0x1fc   : > { %v1396_v11 = vpop.permute.xlu0 %1395  ;;  %v10971_v37 = vsel %vm1792_vm9, %v10812_v51, %v1394_v33  ;;  %v15685_v51 = vld [vmem:[#allocation67_spill] sm:$0xff]  ;;  %v7679_v33 = vunpack.i.l.bf16 %v15690_v20 }
 0x1fd   : > { %15681 = vst [vmem:[#allocation33_spill] sm:$0xff] %v10971_v37  ;;  %v10975_v35 = vsel %vm1792_vm9, %v10815_v52, %v1396_v11  ;;  %1577 = vrot.lane.b32.xlu1 %v10009_v56, %s9353_s16 }
 0x1fe   : > { %15682 = vst [vmem:[#allocation34_spill] sm:$0xff] %v10975_v35  ;;  %1579 = vrot.lane.b32.xlu0 %v15683_v13, %s9353_s16  ;;  %v15693_v35 = vld [vmem:[#allocation69_spill] sm:$0xff] }
 0x1ff   : > { %v1398_v14 = vpop.permute.xlu1 %1397 }
 0x200   : > { %v7683_v41 = vpop.permute.xlu0 %7682  ;;  %v10983_v45 = vsel %vm1792_vm9, %v10828_v50, %v1398_v14  ;;  %v7675_v14 = vunpack.i.h.bf16 %v15689_v25  ;;  %v15694_v25 = vld [vmem:[#allocation6_spill] sm:$0xff] }
 0x201   : > { %15684 = vst [vmem:[#allocation35_spill] sm:$0xff] %v10983_v45  ;;  %v7685_v27 = vunpack.i.h.bf16 %v7683_v41  ;;  %v7684_v47 = vunpack.i.l.bf16 %v7683_v41  ;;  %1581 = vrot.lane.b32.xlu1 %v10023_v48, %s9353_s16  ;;  %v1628_v41 = vsel %vm1627_vm3, %v15628_v21, %v7674_v62  ;;  %v1630_v37 = vsel %vm1627_vm3, %v15694_v25, %v15693_v35  ;;  %v15697_v35 = vld [vmem:[#allocation103_spill] sm:$0xff] }
 0x202   : > { %1583 = vrot.lane.b32.xlu0 %v15685_v51, %s9353_s16  ;;  %v15691_v51 = vld [vmem:[#allocation42_spill] sm:$0xff]  ;;  %v1629_v62 = vsel %vm1627_vm3, %v15629_v17, %v7675_v14 }
 0x203   : > { %v10991_v56 = vsel %vm1792_vm9, %v10831_v32, %v7684_v47  ;;  %v10995_v52 = vsel %vm1792_vm9, %v10843_v18, %v7685_v27  ;;  %v1436_v28 = vpop.permute.xlu1 %1435  ;;  %v15688_v32 = vld [vmem:[#allocation50_spill] sm:$0xff]  ;;  %v7680_v27 = vunpack.i.h.bf16 %v15690_v20  ;;  %v1661_v47 = vsel %vm1660_vm4, %v1628_v41, %v7679_v33 }
 0x204   : > { %15686 = vst [vmem:[#allocation36_spill] sm:$0xff] %v10991_v56  ;;  %15687 = vst [vmem:[#allocation37_spill] sm:$0xff] %v10995_v52  ;;  %v1438_v9 = vpop.permute.xlu0 %1437  ;;  %v15692_v56 = vld [vmem:[#allocation62_spill] sm:$0xff] }
 0x205   : > { %1585 = vrot.lane.b32.xlu1 %v10038_v44, %s9353_s16  ;;  %v15695_v33 = vld [vmem:[#allocation86_spill] sm:$0xff] }
 0x206   : > { %1587 = vrot.lane.b32.xlu0 %v10524_v54, %s9353_s16  ;;  %v1663_v41 = vsel %vm1660_vm4, %v1630_v37, %v15695_v33  ;;  %v15699_v33 = vld [vmem:[#allocation117_spill] sm:$0xff] }
 0x207   : > { %v1440_v48 = vpop.permute.xlu1 %1439  ;;  %v1696_v25 = vsel %vm1693_vm5, %v1663_v41, %v15697_v35 }
 0x208   : > { %v11001_v50 = vpop.permute.xlu0 %1441 }
 0x209   : > { %1589 = vrot.lane.b32.xlu1 %v10536_v60, %s9353_s16 }
 0x20a   : > { %7692 = vrot.lane.b32.xlu0 %v15688_v32, %s9353_s16  ;;  %v1694_v32 = vsel %vm1693_vm5, %v1661_v47, %v15691_v51  ;;  %v1662_v47 = vsel %vm1660_vm4, %v1629_v62, %v7680_v27  ;;  %v15696_v51 = vld [vmem:[#allocation44_spill] sm:$0xff]  ;;  %v1729_v27 = vsel %vm1726_vm7, %v1696_v25, %v15699_v33  ;;  %v15703_v25 = vld [vmem:[#allocation105_spill] sm:$0xff] }
 0x20b   : > { %v11007_v1 = vpop.permute.xlu1 %1443  ;;  %v1727_v45 = vsel %vm1726_vm7, %v1694_v32, %v15692_v56  ;;  %v1695_v32 = vsel %vm1693_vm5, %v1662_v47, %v15696_v51  ;;  %v15700_v62 = vld [vmem:[#allocation68_spill] sm:$0xff] }
 0x20c   : > { %v11009_v18 = vpop.permute.xlu0 %1445  ;;  %v1760_v20 = vsel %vm1759_vm8, %v1727_v45, %v10644_v63  ;;  %v15698_v45 = vld [vmem:[#allocation64_spill] sm:$0xff] }
 0x20d   : > { %7697 = vrot.lane.b32.xlu1 %v15675_v61, %s9349_s17  ;;  %v1793_v56 = vsel %vm1792_vm9, %v1760_v20, %v10840_v23  ;;  %v1728_v37 = vsel %vm1726_vm7, %v1695_v32, %v15698_v45  ;;  %v15701_v20 = vld [vmem:[#allocation5_spill] sm:$0xff] }
 0x20e   : > { %v1826_v14 = vsel %vm1825_vm10, %v1793_v56, %v1436_v28  ;;  %v1631_v47 = vsel %vm1627_vm3, %v15701_v20, %v15700_v62  ;;  %v1761_v41 = vsel %vm1759_vm8, %v1728_v37, %v10650_v7  ;;  %v1762_v28 = vsel %vm1759_vm8, %v1729_v27, %v10652_v34  ;;  %v15702_v56 = vld [vmem:[#allocation87_spill] sm:$0xff]  ;;  %v15704_v37 = vld [vmem:[#allocation118_spill] sm:$0xff] }
 0x20f   : > { %v11013_v44 = vpop.permute.xlu1 %1447  ;;  %v1664_v51 = vsel %vm1660_vm4, %v1631_v47, %v15702_v56  ;;  %v1794_v32 = vsel %vm1792_vm9, %v1761_v41, %v10849_v22  ;;  %v1795_v35 = vsel %vm1792_vm9, %v1762_v28, %v10851_v42  ;;  %v15705_v22 = vld [vmem:[#allocation70_spill] sm:$0xff]  ;;  %v15706_v62 = vld [vmem:[#allocation7_spill] sm:$0xff] }
 0x210   : > { %v11015_v43 = vpop.permute.xlu0 %1449  ;;  %v1828_v7 = vsel %vm1825_vm10, %v1795_v35, %v1440_v48  ;;  %v1632_v42 = vsel %vm1627_vm3, %v15706_v62, %v15705_v22  ;;  %v15707_v20 = vld [vmem:[#allocation135_spill] sm:$0xff]  ;;  %v15709_v28 = vld [vmem:[#allocation106_spill] sm:$0xff] }
 0x213   : > { %v11017_v54 = vpop.permute.xlu1 %1451 }
 0x214   : > { %v11019_v3 = vpop.permute.xlu0 %1453 }
 0x217   : > { %v11021_v0 = vpop.permute.xlu1 %1455 }
 0x218   : > { %v11023_v60 = vpop.permute.xlu0 %1457 }
 0x21b   : > { %v11025_v53 = vpop.permute.xlu1 %1459 }
 0x21c   : > { %v11027_v10 = vpop.permute.xlu0 %1461 }
 0x21f   : > { %v11031_v11 = vpop.permute.xlu1 %1463 }
 0x220   : > { %v11033_v13 = vpop.permute.xlu0 %1465 }
 0x223   : > { %v11042_v61 = vpop.permute.xlu1 %1467 }
 0x224   : > { %v11044_v52 = vpop.permute.xlu0 %1469 }
 0x227   : > { %v11065_v17 = vpop.permute.xlu1 %1471 }
 0x228   : > { %v1532_v63 = vpop.permute.xlu0 %1531 }
 0x229   : > { %v1859_v23 = vsel %vm1858_vm11, %v1826_v14, %v1532_v63  ;;  %v1697_v14 = vsel %vm1693_vm5, %v1664_v51, %v15703_v25  ;;  %v1827_v63 = vsel %vm1825_vm10, %v1794_v32, %v1438_v9  ;;  %v15708_v9 = vld [vmem:[#allocation88_spill] sm:$0xff]  ;;  %v15710_v25 = vld [vmem:[#allocation119_spill] sm:$0xff] }
 0x22a   : > { %7295 = vmatprep.mubr.msk.f32.mxu1 %vm1903_vm12, %v1859_v23  ;;  %v1730_v33 = vsel %vm1726_vm7, %v1697_v14, %v15704_v37  ;;  %v1665_v48 = vsel %vm1660_vm4, %v1632_v42, %v15708_v9 }
 0x22b   : > { %v1534_v45 = vpop.permute.xlu1 %1533  ;;  %v1763_v47 = vsel %vm1759_vm8, %v1730_v33, %v15707_v20  ;;  %v1698_v56 = vsel %vm1693_vm5, %v1665_v48, %v15709_v28  ;;  %v15714_v33 = vld [vmem:[#allocation89_spill] sm:$0xff]  ;;  %v15718_v28 = vld [vmem:[#allocation10_spill] sm:$0xff] }
 0x22c   : > { %v1536_v34 = vpop.permute.xlu0 %1535  ;;  %v1860_v27 = vsel %vm1858_vm11, %v1827_v63, %v1534_v45  ;;  %v1796_v41 = vsel %vm1792_vm9, %v1763_v47, %v10857_v38  ;;  %v1731_v14 = vsel %vm1726_vm7, %v1698_v56, %v15710_v25  ;;  %v15712_v45 = vld [vmem:[#allocation8_spill] sm:$0xff] }
 0x22d   : > { %v1861_v23 = vsel %vm1858_vm11, %v1828_v7, %v1536_v34  ;;  %7296 = vmatmul.mubr.msk.f32.vlgmr.msra.gmra.mrb[0].mxu1 %vm1903_vm12, %v1860_v27  ;;  %v1829_v51 = vsel %vm1825_vm10, %v1796_v41, %v11001_v50  ;;  %v15711_v7 = vld [vmem:[#allocation71_spill] sm:$0xff]  ;;  %v15713_v34 = vld [vmem:[#allocation136_spill] sm:$0xff] }
 0x22e   : > { %7298 = vmatprep.mubr.msk.f32.mxu1 %vm1903_vm12, %v1861_v23  ;;  %v1633_v38 = vsel %vm1627_vm3, %v15712_v45, %v15711_v7  ;;  %v1764_v37 = vsel %vm1759_vm8, %v1731_v14, %v15713_v34  ;;  %v15715_v23 = vld [vmem:[#allocation108_spill] sm:$0xff]  ;;  %v15721_v14 = vld [vmem:[#allocation109_spill] sm:$0xff] }
 0x22f   : > { %v1538_v32 = vpop.permute.xlu1 %1537  ;;  %v1666_v50 = vsel %vm1660_vm4, %v1633_v38, %v15714_v33  ;;  %v1797_v27 = vsel %vm1792_vm9, %v1764_v37, %v10859_v31  ;;  %v15716_v47 = vld [vmem:[#allocation120_spill] sm:$0xff]  ;;  %v15722_v34 = vld [vmem:[#allocation121_spill] sm:$0xff] }
 0x230   : > { %v11109_v35 = vpop.permute.xlu0 %1473  ;;  %v1862_v63 = vsel %vm1858_vm11, %v1829_v51, %v1538_v32  ;;  %v1699_v22 = vsel %vm1693_vm5, %v1666_v50, %v15715_v23  ;;  %v1830_v62 = vsel %vm1825_vm10, %v1797_v27, %v11007_v1  ;;  %v15717_v41 = vld [vmem:[#allocation72_spill] sm:$0xff]  ;;  %v15719_v51 = vld [vmem:[#allocation137_spill] sm:$0xff]  ;;  %v15720_v32 = vld [vmem:[#allocation90_spill] sm:$0xff] }
 0x231   : > { %7299 = vmatmul.mubr.msk.f32.gmra.mrb[2].mxu1 %vm1903_vm12, %v1862_v63  ;;  %v1732_v9 = vsel %vm1726_vm7, %v1699_v22, %v15716_v47  ;;  %v1634_v56 = vsel %vm1627_vm3, %v15718_v28, %v15717_v41  ;;  %v15723_v50 = vld [vmem:[#allocation73_spill] sm:$0xff]  ;;  %v15725_v22 = vld [vmem:[#allocation138_spill] sm:$0xff] }
 0x232   : > { %v1765_v31 = vsel %vm1759_vm8, %v1732_v9, %v15719_v51  ;;  %v1667_v1 = vsel %vm1660_vm4, %v1634_v56, %v15720_v32  ;;  %v15724_v27 = vld [vmem:[#allocation9_spill] sm:$0xff]  ;;  %v15727_v47 = vld [vmem:[#allocation110_spill] sm:$0xff] }
 0x233   : > { %v11128_v42 = vpop.permute.xlu1 %1475  ;;  %v1798_v25 = vsel %vm1792_vm9, %v1765_v31, %v10865_v12  ;;  %v1700_v63 = vsel %vm1693_vm5, %v1667_v1, %v15721_v14  ;;  %v1635_v23 = vsel %vm1627_vm3, %v15724_v27, %v15723_v50  ;;  %v15728_v56 = vld [vmem:[#allocation122_spill] sm:$0xff]  ;;  %v15731_v14 = vld [vmem:[#allocation11_spill] sm:$0xff] }
 0x234   : > { %v1540_v20 = vpop.permute.xlu0 %1539  ;;  %v1831_v7 = vsel %vm1825_vm10, %v1798_v25, %v11009_v18  ;;  %v1733_v37 = vsel %vm1726_vm7, %v1700_v63, %v15722_v34  ;;  %v15729_v32 = vld [vmem:[#allocation74_spill] sm:$0xff]  ;;  %v15732_v63 = vld [vmem:[#allocation92_spill] sm:$0xff]  ;;  %v15734_v27 = vld [vmem:[#allocation123_spill] sm:$0xff] }
 0x235   : > { %v1863_v48 = vsel %vm1858_vm11, %v1830_v62, %v1540_v20  ;;  %v1766_v12 = vsel %vm1759_vm8, %v1733_v37, %v15725_v22  ;;  %v15726_v62 = vld [vmem:[#allocation91_spill] sm:$0xff]  ;;  %v15730_v1 = vld [vmem:[#allocation14_spill] sm:$0xff] }
 0x236   : > { %7301 = vmatprep.mubr.msk.f32.mxu1 %vm1903_vm12, %v1863_v48  ;;  %v1668_v18 = vsel %vm1660_vm4, %v1635_v23, %v15726_v62  ;;  %v1799_v20 = vsel %vm1792_vm9, %v1766_v12, %v10867_v36  ;;  %v1636_v25 = vsel %vm1627_vm3, %v15730_v1, %v15729_v32  ;;  %v15735_v12 = vld [vmem:[#allocation75_spill] sm:$0xff]  ;;  %v15736_v62 = vld [vmem:[#allocation13_spill] sm:$0xff]  ;;  %v15740_v32 = vld [vmem:[#allocation124_spill] sm:$0xff] }
 0x237   : > { %v1542_v45 = vpop.permute.xlu1 %1541  ;;  %v1701_v9 = vsel %vm1693_vm5, %v1668_v18, %v15727_v47  ;;  %v1832_v48 = vsel %vm1825_vm10, %v1799_v20, %v11013_v44  ;;  %v1669_v44 = vsel %vm1660_vm4, %v1636_v25, %v15732_v63  ;;  %v1637_v18 = vsel %vm1627_vm3, %v15736_v62, %v15735_v12  ;;  %v15737_v20 = vld [vmem:[#allocation139_spill] sm:$0xff]  ;;  %v15738_v47 = vld [vmem:[#allocation93_spill] sm:$0xff] }
 0x238   : > { %v11147_v38 = vpop.permute.xlu0 %1477  ;;  %v1864_v33 = vsel %vm1858_vm11, %v1831_v7, %v1542_v45  ;;  %v1734_v51 = vsel %vm1726_vm7, %v1701_v9, %v15728_v56  ;;  %v15733_v45 = vld [vmem:[#allocation111_spill] sm:$0xff] }
 0x239   : > { %7302 = vmatmul.mubr.msk.f32.gmra.mrb[4].mxu1 %vm1903_vm12, %v1864_v33  ;;  %v1767_v36 = vsel %vm1759_vm8, %v1734_v51, %v15731_v14  ;;  %v1702_v34 = vsel %vm1693_vm5, %v1669_v44, %v15733_v45  ;;  %v15741_v14 = vld [vmem:[#allocation76_spill] sm:$0xff] }
 0x23a   : > { %v1800_v7 = vsel %vm1792_vm9, %v1767_v36, %v10873_v58  ;;  %v1735_v23 = vsel %vm1726_vm7, %v1702_v34, %v15734_v27  ;;  %v15742_v36 = vld [vmem:[#allocation17_spill] sm:$0xff]  ;;  %v15743_v44 = vld [vmem:[#allocation12_spill] sm:$0xff] }
 0x23b   : > { %v11166_v41 = vpop.permute.xlu1 %1479  ;;  %v1833_v37 = vsel %vm1825_vm10, %v1800_v7, %v11015_v43  ;;  %v1768_v58 = vsel %vm1759_vm8, %v1735_v23, %v15737_v20  ;;  %v1670_v43 = vsel %vm1660_vm4, %v1637_v18, %v15738_v47  ;;  %v1638_v63 = vsel %vm1627_vm3, %v15742_v36, %v15741_v14  ;;  %v15744_v7 = vld [vmem:[#allocation94_spill] sm:$0xff]  ;;  %v15745_v34 = vld [vmem:[#allocation112_spill] sm:$0xff]  ;;  %v15747_v18 = vld [vmem:[#allocation77_spill] sm:$0xff] }
 0x23c   : > { %v1544_v28 = vpop.permute.xlu0 %1543  ;;  %v1801_v9 = vsel %vm1792_vm9, %v1768_v58, %v10875_v29  ;;  %v15748_v20 = vld [vmem:[#allocation16_spill] sm:$0xff]  ;;  %v15749_v47 = vld [vmem:[#allocation15_spill] sm:$0xff]  ;;  %v15753_v36 = vld [vmem:[#allocation78_spill] sm:$0xff] }
 0x23d   : > { %v1865_v31 = vsel %vm1858_vm11, %v1832_v48, %v1544_v28  ;;  %v15739_v48 = vld [vmem:[#allocation51_spill] sm:$0xff]  ;;  %v1834_v56 = vsel %vm1825_vm10, %v1801_v9, %v11017_v54  ;;  %v1671_v54 = vsel %vm1660_vm4, %v1638_v63, %v15744_v7  ;;  %v1639_v58 = vsel %vm1627_vm3, %v15748_v20, %v15747_v18  ;;  %v15754_v63 = vld [vmem:[#allocation20_spill] sm:$0xff]  ;;  %v15760_v20 = vld [vmem:[#allocation21_spill] sm:$0xff] }
 0x23e   : > { %7304 = vmatprep.mubr.msk.f32.mxu1 %vm1903_vm12, %v1865_v31  ;;  %v1703_v28 = vsel %vm1693_vm5, %v1670_v43, %v15739_v48  ;;  %v15750_v43 = vld [vmem:[#allocation95_spill] sm:$0xff]  ;;  %v15751_v48 = vld [vmem:[#allocation52_spill] sm:$0xff] }
 0x23f   : > { %v1546_v33 = vpop.permute.xlu1 %1545  ;;  %v1736_v1 = vsel %vm1726_vm7, %v1703_v28, %v15740_v32  ;;  %v15756_v7 = vld [vmem:[#allocation96_spill] sm:$0xff]  ;;  %v15759_v18 = vld [vmem:[#allocation79_spill] sm:$0xff] }
 0x240   : > { %v11185_v50 = vpop.permute.xlu0 %1481  ;;  %v1866_v22 = vsel %vm1858_vm11, %v1833_v37, %v1546_v33  ;;  %v1769_v29 = vsel %vm1759_vm8, %v1736_v1, %v15743_v44  ;;  %v1704_v37 = vsel %vm1693_vm5, %v1671_v54, %v15745_v34  ;;  %v15752_v1 = vld [vmem:[#allocation126_spill] sm:$0xff]  ;;  %v1640_v44 = vsel %vm1627_vm3, %v15754_v63, %v15753_v36  ;;  %v15766_v36 = vld [vmem:[#allocation24_spill] sm:$0xff] }
 0x241   : > { %7305 = vmatmul.mubr.msk.f32.gmra.mrb[6].mxu1 %vm1903_vm12, %v1866_v22  ;;  %v1802_v45 = vsel %vm1792_vm9, %v1769_v29, %v10881_v4  ;;  %v15746_v22 = vld [vmem:[#allocation125_spill] sm:$0xff]  ;;  %v15755_v29 = vld [vmem:[#allocation18_spill] sm:$0xff] }
 0x242   : > { %v1835_v33 = vsel %vm1825_vm10, %v1802_v45, %v11019_v3  ;;  %v1737_v12 = vsel %vm1726_vm7, %v1704_v37, %v15746_v22  ;;  %v1672_v3 = vsel %vm1660_vm4, %v1639_v58, %v15750_v43  ;;  %v15757_v45 = vld [vmem:[#allocation113_spill] sm:$0xff]  ;;  %v15758_v22 = vld [vmem:[#allocation127_spill] sm:$0xff]  ;;  %v1641_v58 = vsel %vm1627_vm3, %v15760_v20, %v15759_v18  ;;  %v15773_v20 = vld [vmem:[#allocation82_spill] sm:$0xff] }
 0x243   : > { %v11204_v51 = vpop.permute.xlu1 %1483  ;;  %v1770_v4 = vsel %vm1759_vm8, %v1737_v12, %v15749_v47  ;;  %v1705_v28 = vsel %vm1693_vm5, %v1672_v3, %v15751_v48  ;;  %v15761_v47 = vld [vmem:[#allocation19_spill] sm:$0xff]  ;;  %v15763_v3 = vld [vmem:[#allocation53_spill] sm:$0xff] }
 0x244   : > { %v1548_v31 = vpop.permute.xlu0 %1547  ;;  %v1803_v9 = vsel %vm1792_vm9, %v1770_v4, %v10883_v46  ;;  %v15762_v4 = vld [vmem:[#allocation97_spill] sm:$0xff] }
 0x245   : > { %v1867_v25 = vsel %vm1858_vm11, %v1834_v56, %v1548_v31  ;;  %v1836_v56 = vsel %vm1825_vm10, %v1803_v9, %v11021_v0  ;;  %v1673_v0 = vsel %vm1660_vm4, %v1640_v44, %v15756_v7  ;;  %v15767_v44 = vld [vmem:[#allocation22_spill] sm:$0xff] }
 0x246   : > { %7307 = vmatprep.mubr.msk.f32.mxu1 %vm1903_vm12, %v1867_v25  ;;  %v1738_v25 = vsel %vm1726_vm7, %v1705_v28, %v15752_v1  ;;  %v1706_v34 = vsel %vm1693_vm5, %v1673_v0, %v15757_v45  ;;  %v15769_v7 = vld [vmem:[#allocation114_spill] sm:$0xff] }
 0x247   : > { %v1550_v27 = vpop.permute.xlu1 %1549  ;;  %v1771_v46 = vsel %vm1759_vm8, %v1738_v25, %v15755_v29  ;;  %v1739_v12 = vsel %vm1726_vm7, %v1706_v34, %v15758_v22  ;;  %v15768_v29 = vld [vmem:[#allocation98_spill] sm:$0xff] }
 0x248   : > { %v11223_v23 = vpop.permute.xlu0 %1485  ;;  %v1868_v62 = vsel %vm1858_vm11, %v1835_v33, %v1550_v27  ;;  %v1804_v54 = vsel %vm1792_vm9, %v1771_v46, %v10889_v24  ;;  %v1772_v24 = vsel %vm1759_vm8, %v1739_v12, %v15761_v47  ;;  %v15771_v12 = vld [vmem:[#allocation81_spill] sm:$0xff]  ;;  %v15775_v47 = vld [vmem:[#allocation23_spill] sm:$0xff] }
 0x249   : > { %7308 = vmatmul.mubr.msk.f32.gmra.mrb[8].mxu1 %vm1903_vm12, %v1868_v62  ;;  %v1837_v37 = vsel %vm1825_vm10, %v1804_v54, %v11023_v60  ;;  %v1674_v60 = vsel %vm1660_vm4, %v1641_v58, %v15762_v4  ;;  %v1805_v43 = vsel %vm1792_vm9, %v1772_v24, %v10891_v40 }
 0x24a   : > { %v1707_v9 = vsel %vm1693_vm5, %v1674_v60, %v15763_v3  ;;  %v1838_v48 = vsel %vm1825_vm10, %v1805_v43, %v11025_v53  ;;  %v15777_v60 = vld [vmem:[#allocation100_spill] sm:$0xff] }
 0x24b   : > { %v11242_v31 = vpop.permute.xlu1 %1487 }
 0x24c   : > { %v1552_v32 = vpop.permute.xlu0 %1551 }
 0x24d   : > { %v1869_v14 = vsel %vm1858_vm11, %v1836_v56, %v1552_v32  ;;  %v15764_v32 = vld [vmem:[#allocation128_spill] sm:$0xff] }
 0x24e   : > { %7310 = vmatprep.mubr.msk.f32.mxu1 %vm1903_vm12, %v1869_v14  ;;  %v1740_v1 = vsel %vm1726_vm7, %v1707_v9, %v15764_v32  ;;  %v15765_v14 = vld [vmem:[#allocation80_spill] sm:$0xff]  ;;  %v15778_v9 = vld [vmem:[#allocation54_spill] sm:$0xff] }
 0x24f   : > { %v1554_v33 = vpop.permute.xlu1 %1553  ;;  %v1642_v63 = vsel %vm1627_vm3, %v15766_v36, %v15765_v14  ;;  %v1773_v40 = vsel %vm1759_vm8, %v1740_v1, %v15767_v44  ;;  %v15780_v36 = vld [vmem:[#allocation130_spill] sm:$0xff]  ;;  %v15781_v44 = vld [vmem:[#allocation131_spill] sm:$0xff] }
 0x250   : > { %v11261_v27 = vpop.permute.xlu0 %1489  ;;  %v1870_v62 = vsel %vm1858_vm11, %v1837_v37, %v1554_v33  ;;  %v1675_v53 = vsel %vm1660_vm4, %v1642_v63, %v15768_v29  ;;  %v1806_v46 = vsel %vm1792_vm9, %v1773_v40, %v10897_v26  ;;  %v15770_v37 = vld [vmem:[#allocation129_spill] sm:$0xff]  ;;  %v15774_v26 = vld [vmem:[#allocation26_spill] sm:$0xff]  ;;  %v15782_v29 = vld [vmem:[#allocation83_spill] sm:$0xff] }
 0x251   : > { %7311 = vmatmul.mubr.msk.f32.gmra.mrb[10].mxu1 %vm1903_vm12, %v1870_v62  ;;  %v1708_v0 = vsel %vm1693_vm5, %v1675_v53, %v15769_v7  ;;  %v1839_v54 = vsel %vm1825_vm10, %v1806_v46, %v11027_v10  ;;  %v15772_v62 = vld [vmem:[#allocation25_spill] sm:$0xff]  ;;  %v1644_v58 = vsel %vm1627_vm3, %v15774_v26, %v15773_v20  ;;  %v15776_v10 = vld [vmem:[#allocation99_spill] sm:$0xff]  ;;  %v15784_v7 = vld [vmem:[#allocation84_spill] sm:$0xff] }
 0x252   : > { %v1741_v33 = vsel %vm1726_vm7, %v1708_v0, %v15770_v37  ;;  %v1643_v18 = vsel %vm1627_vm3, %v15772_v62, %v15771_v12  ;;  %v1677_v43 = vsel %vm1660_vm4, %v1644_v58, %v15777_v60  ;;  %v15783_v53 = vld [vmem:[#allocation27_spill] sm:$0xff]  ;;  %v15785_v0 = vld [vmem:[#allocation32_spill] sm:$0xff]  ;;  %v15787_v37 = vld [vmem:[#allocation29_spill] sm:$0xff] }
 0x253   : > { %v11280_v28 = vpop.permute.xlu1 %1491  ;;  %v1774_v24 = vsel %vm1759_vm8, %v1741_v33, %v15775_v47  ;;  %v1676_v4 = vsel %vm1660_vm4, %v1643_v18, %v15776_v10  ;;  %v1645_v46 = vsel %vm1627_vm3, %v15783_v53, %v15782_v29  ;;  %v15789_v62 = vld [vmem:[#allocation102_spill] sm:$0xff]  ;;  %v15790_v58 = vld [vmem:[#allocation55_spill] sm:$0xff] }
 0x254   : > { %v1556_v56 = vpop.permute.xlu0 %1555  ;;  %v1807_v3 = vsel %vm1792_vm9, %v1774_v24, %v10899_v39  ;;  %v15791_v24 = vld [vmem:[#allocation116_spill] sm:$0xff] }
 0x255   : > { %v1871_v25 = vsel %vm1858_vm11, %v1838_v48, %v1556_v56  ;;  %v1709_v48 = vsel %vm1693_vm5, %v1676_v4, %v15778_v9  ;;  %v15779_v56 = vld [vmem:[#allocation115_spill] sm:$0xff]  ;;  %v1840_v1 = vsel %vm1825_vm10, %v1807_v3, %v11031_v11  ;;  %v15786_v11 = vld [vmem:[#allocation28_spill] sm:$0xff] }
 0x256   : > { %7313 = vmatprep.mubr.msk.f32.mxu1 %vm1903_vm12, %v1871_v25  ;;  %v1710_v32 = vsel %vm1693_vm5, %v1677_v43, %v15779_v56  ;;  %v1742_v63 = vsel %vm1726_vm7, %v1709_v48, %v15780_v36  ;;  %v15792_v9 = vld [vmem:[#allocation132_spill] sm:$0xff]  ;;  %v15793_v48 = vld [vmem:[#allocation133_spill] sm:$0xff]  ;;  %v15795_v36 = vld [vmem:[#allocation31_spill] sm:$0xff] }
 0x257   : > { %v1558_v45 = vpop.permute.xlu1 %1557  ;;  %v1743_v40 = vsel %vm1726_vm7, %v1710_v32, %v15781_v44 }
 0x258   : > { %v11299_v34 = vpop.permute.xlu0 %1493  ;;  %v1872_v22 = vsel %vm1858_vm11, %v1839_v54, %v1558_v45  ;;  %v1646_v54 = vsel %vm1627_vm3, %v15785_v0, %v15784_v7  ;;  %v1775_v45 = vsel %vm1759_vm8, %v1742_v63, %v15786_v11  ;;  %v1776_v33 = vsel %vm1759_vm8, %v1743_v40, %v15787_v37 }
 0x259   : > { %7314 = vmatmul.mubr.msk.f32.gmra.mrb[12].mxu1 %vm1903_vm12, %v1872_v22  ;;  %v15788_v22 = vld [vmem:[#allocation101_spill] sm:$0xff]  ;;  %v1679_v18 = vsel %vm1660_vm4, %v1646_v54, %v15789_v62  ;;  %v1808_v20 = vsel %vm1792_vm9, %v1775_v45, %v10905_v30  ;;  %v1809_v26 = vsel %vm1792_vm9, %v1776_v33, %v10907_v5  ;;  %v1847_v54 = vsel %vm1825_vm10, %v10935_v49, %v11147_v38 }
 0x25a   : > { %v1678_v12 = vsel %vm1660_vm4, %v1645_v46, %v15788_v22  ;;  %v1712_v10 = vsel %vm1693_vm5, %v1679_v18, %v15791_v24  ;;  %v1841_v4 = vsel %vm1825_vm10, %v1808_v20, %v11033_v13  ;;  %v1842_v60 = vsel %vm1825_vm10, %v1809_v26, %v11042_v61 }
 0x25b   : > { %v11325_v25 = vpop.permute.xlu1 %7687  ;;  %v1711_v47 = vsel %vm1693_vm5, %v1678_v12, %v15790_v58  ;;  %v1745_v5 = vsel %vm1726_vm7, %v1712_v10, %v15793_v48  ;;  %v1849_v45 = vsel %vm1825_vm10, %v10947_v19, %v11185_v50  ;;  %v1850_v49 = vsel %vm1825_vm10, %v10951_v8, %v11204_v51  ;;  %v15796_v12 = vld [vmem:[#allocation33_spill] sm:$0xff]  ;;  %v15798_v58 = vld [vmem:[#allocation35_spill] sm:$0xff]  ;;  %v11459_v48 = vld [vmem:[%s15087_s2] ss:$0 sm:$0xff] }
 0x25c   : > { %v1560_v14 = vpop.permute.xlu0 %1559  ;;  %v1744_v30 = vsel %vm1726_vm7, %v1711_v47, %v15792_v9  ;;  %v1778_v13 = vsel %vm1759_vm8, %v1745_v5, %v15795_v36  ;;  %v1851_v33 = vsel %vm1825_vm10, %v10959_v55, %v11223_v23  ;;  %v1852_v19 = vsel %vm1825_vm10, %v10963_v15, %v11242_v31  ;;  %v15797_v55 = vld [vmem:[#allocation34_spill] sm:$0xff]  ;;  %vm14078_vm5 = vmpackc.low %vm1726_vm7, %vm1726_vm7 }
 0x25d   : > { %v1873_v39 = vsel %vm1858_vm11, %v1840_v1, %v1560_v14  ;;  %v15794_v1 = vld [vmem:[#allocation30_spill] sm:$0xff]  ;;  %v1811_v63 = vsel %vm1792_vm9, %v1778_v13, %v10915_v57  ;;  %v1846_v57 = vsel %vm1825_vm10, %v10927_v6, %v11128_v42  ;;  %v1853_v62 = vsel %vm1825_vm10, %v15796_v12, %v11261_v27 }
 0x25e   : > { %7316 = vmatprep.mubr.msk.f32.mxu1 %vm1903_vm12, %v1873_v39  ;;  %v1777_v14 = vsel %vm1759_vm8, %v1744_v30, %v15794_v1  ;;  %v1844_v40 = vsel %vm1825_vm10, %v1811_v63, %v11065_v17  ;;  %v1854_v23 = vsel %vm1825_vm10, %v15797_v55, %v11280_v28  ;;  %v7689_v26 = vunpack.i.l.bf16 %v11325_v25 }
 0x25f   : > { %v1562_v43 = vpop.permute.xlu1 %1561  ;;  %v1810_v61 = vsel %vm1792_vm9, %v1777_v14, %v10913_v2  ;;  %v1845_v2 = vsel %vm1825_vm10, %v10923_v59, %v11109_v35  ;;  %v1848_v59 = vsel %vm1825_vm10, %v10939_v16, %v11166_v41  ;;  %v1855_v27 = vsel %vm1825_vm10, %v15798_v58, %v11299_v34 }
 0x260   : > { %v1564_v3 = vpop.permute.xlu0 %1563  ;;  %v1874_v56 = vsel %vm1858_vm11, %v1841_v4, %v1562_v43  ;;  %v1843_v44 = vsel %vm1825_vm10, %v1810_v61, %v11044_v52  ;;  %v7690_v47 = vunpack.i.h.bf16 %v11325_v25  ;;  %v15800_v43 = vld [vmem:[#allocation36_spill] sm:$0xff]  ;;  %v15801_v25 = vld [vmem:[#allocation37_spill] sm:$0xff]  ;;  %vm3441_vm3 = vcmask 785408  }
 0x261   : > { %v1875_v32 = vsel %vm1858_vm11, %v1842_v60, %v1564_v3  ;;  %7317 = vmatmul.mubr.msk.f32.gmra.mrb[14].mxu1 %vm1903_vm12, %v1874_v56  ;;  %v1856_v3 = vsel %vm1825_vm10, %v15800_v43, %v7689_v26  ;;  %vm3474_vm4 = vcmask 916480  }
 0x262   : > { %7319 = vmatprep.mubr.msk.f32.mxu1 %vm1903_vm12, %v1875_v32  ;;  %v1857_v9 = vsel %vm1825_vm10, %v15801_v25, %v7690_v47 }
 0x263   : > { %v1566_v39 = vpop.permute.xlu1 %1565 }
 0x264   : > { %v1568_v29 = vpop.permute.xlu0 %1567  ;;  %v1876_v53 = vsel %vm1858_vm11, %v1843_v44, %v1566_v39 }
 0x265   : > { %v1877_v46 = vsel %vm1858_vm11, %v1844_v40, %v1568_v29  ;;  %7320 = vmatmul.mubr.msk.f32.gmra.mrb[16].mxu1 %vm1903_vm12, %v1876_v53 }
 0x266   : > { %7322 = vmatprep.mubr.msk.f32.mxu1 %vm1903_vm12, %v1877_v46 }
 0x267   : > { %v1570_v52 = vpop.permute.xlu1 %1569 }
 0x268   : > { %v1572_v17 = vpop.permute.xlu0 %1571  ;;  %v1878_v7 = vsel %vm1858_vm11, %v1845_v2, %v1570_v52 }
 0x269   : > { %v1879_v0 = vsel %vm1858_vm11, %v1846_v57, %v1572_v17  ;;  %7323 = vmatmul.mubr.msk.f32.gmra.mrb[18].mxu1 %vm1903_vm12, %v1878_v7 }
 0x26a   : > { %7325 = vmatprep.mubr.msk.f32.mxu1 %vm1903_vm12, %v1879_v0 }
 0x26b   : > { %v1574_v35 = vpop.permute.xlu1 %1573 }
 0x26c   : > { %v1576_v6 = vpop.permute.xlu0 %1575  ;;  %v1880_v42 = vsel %vm1858_vm11, %v1847_v54, %v1574_v35 }
 0x26d   : > { %v1881_v11 = vsel %vm1858_vm11, %v1848_v59, %v1576_v6  ;;  %7326 = vmatmul.mubr.msk.f32.gmra.mrb[20].mxu1 %vm1903_vm12, %v1880_v42 }
 0x26e   : > { %7328 = vmatprep.mubr.msk.f32.mxu1 %vm1903_vm12, %v1881_v11 }
 0x26f   : > { %v1578_v38 = vpop.permute.xlu1 %1577 }
 0x270   : > { %v1580_v16 = vpop.permute.xlu0 %1579  ;;  %v1882_v41 = vsel %vm1858_vm11, %v1849_v45, %v1578_v38 }
 0x271   : > { %v1883_v37 = vsel %vm1858_vm11, %v1850_v49, %v1580_v16  ;;  %7329 = vmatmul.mubr.msk.f32.gmra.mrb[22].mxu1 %vm1903_vm12, %v1882_v41 }
 0x272   : > { %7331 = vmatprep.mubr.msk.f32.mxu1 %vm1903_vm12, %v1883_v37 }
 0x273   : > { %v1582_v50 = vpop.permute.xlu1 %1581 }
 0x274   : > { %v1584_v8 = vpop.permute.xlu0 %1583  ;;  %v1884_v51 = vsel %vm1858_vm11, %v1851_v33, %v1582_v50 }
 0x275   : > { %v1885_v22 = vsel %vm1858_vm11, %v1852_v19, %v1584_v8  ;;  %7332 = vmatmul.mubr.msk.f32.gmra.mrb[24].mxu1 %vm1903_vm12, %v1884_v51 }
 0x276   : > { %7334 = vmatprep.mubr.msk.f32.mxu1 %vm1903_vm12, %v1885_v22 }
 0x277   : > { %v1586_v18 = vpop.permute.xlu1 %1585 }
 0x278   : > { %v1588_v15 = vpop.permute.xlu0 %1587  ;;  %v1886_v31 = vsel %vm1858_vm11, %v1853_v62, %v1586_v18 }
 0x279   : > { %v1887_v20 = vsel %vm1858_vm11, %v1854_v23, %v1588_v15  ;;  %7335 = vmatmul.mubr.msk.f32.gmra.mrb[26].mxu1 %vm1903_vm12, %v1886_v31 }
 0x27a   : > { %7337 = vmatprep.mubr.msk.f32.mxu1 %vm1903_vm12, %v1887_v20 }
 0x27b   : > { %v1590_v24 = vpop.permute.xlu1 %1589 }
 0x27c   : > { %v11438_v28 = vpop.permute.xlu0 %7692  ;;  %v1888_v10 = vsel %vm1858_vm11, %v1855_v27, %v1590_v24 }
 0x27d   : > { %15799 = vst [vmem:[#allocation38_spill] sm:$0xff] %v11438_v28  ;;  %v15223_v4 = vunpack.i.h.bf16 %v11438_v28  ;;  %v15224_v60 = vunpack.i.l.bf16 %v11438_v28  ;;  %7338 = vmatmul.mubr.msk.f32.gmra.mrb[28].mxu1 %vm1903_vm12, %v1888_v10 }
 0x27f   : > { %v1889_v34 = vsel %vm1858_vm11, %v1856_v3, %v15224_v60  ;;  %v1890_v30 = vsel %vm1858_vm11, %v1857_v9, %v15223_v4 }
 0x280   : > { %7340 = vmatprep.mubr.msk.f32.mxu1 %vm1903_vm12, %v1889_v34 }
 0x281   : > { %7341 = vmatmul.mubr.msk.f32.gmra.mrb[30].mxu1 %vm1903_vm12, %v1890_v30 }
 0x300   : > { %v7297_v5 = vpop.f32.mrb[0].mxu1 }
 0x301   : > { %v2076_v56 = vadd.f32 %v7297_v5, %v11459_v48  ;;  %v2070_v32 = vpop.f32.mrb[1].mxu1 }
 0x302   : > { %v2071_v1 = vadd.f32 %v11459_v48, %v2070_v32 }
 0x303   : > { %v2230_v14 = vmax.f32 %v2076_v56, 0.0 }
 0x304   : > { %v2229_v36 = vmax.f32 %v2071_v1, 0.0  ;;  %v7300_v13 = vpop.f32.mrb[2].mxu1 }
 0x305   : > { %v2294_v61 = vrot.slane %v2230_v14, 7  ;;  %v2086_v63 = vadd.f32 %v7300_v13, %v11459_v48  ;;  %v2080_v44 = vpop.f32.mrb[3].mxu1 }
 0x306   : > { %v2293_v40 = vrot.slane %v2229_v36, 7  ;;  %v2081_v39 = vadd.f32 %v11459_v48, %v2080_v44 }
 0x307   : > { %v2404_v29 = vsel %vm519_vm0, %v2294_v61, 0.0  ;;  %v2232_v53 = vmax.f32 %v2086_v63, 0.0 }
 0x308   : > { %v2453_v46 = vrot.slane %v2404_v29, 1  ;;  %v2624_v2 = vrot.slane %v2404_v29, 2  ;;  %v11467_v57 = vsel %vm519_vm0, %v2293_v40, %v2294_v61  ;;  %v11470_v52 = vsel %vm519_vm0, 0.0, %v2293_v40 }
 0x309   : > { %15802 = vst [vmem:[#allocation39_spill] sm:$0xff] %v11467_v57  ;;  %15803 = vst [vmem:[#allocation40_spill] sm:$0xff] %v11470_v52  ;;  %v2450_v17 = vrot.slane %v11470_v52, 1  ;;  %v2451_v7 = vrot.slane %v11467_v57, 1  ;;  %v2621_v0 = vrot.slane %v11470_v52, 2  ;;  %v2622_v54 = vrot.slane %v11467_v57, 2 }
 0x30a   : > { %v2297_v59 = vrot.slane %v2232_v53, 7  ;;  %v2231_v35 = vmax.f32 %v2081_v39, 0.0 }
 0x30b   : > { %v2452_v6 = vsel %vm685_vm1, %v2450_v17, %v2451_v7  ;;  %v2454_v42 = vsel %vm685_vm1, %v2451_v7, %v2453_v46  ;;  %v2623_v11 = vsel %vm862_vm2, %v2621_v0, %v2622_v54  ;;  %v2625_v45 = vsel %vm862_vm2, %v2622_v54, %v2624_v2 }
 0x30c   : > { %v2405_v49 = vsel %vm519_vm0, %v2297_v59, 0.0  ;;  %v2296_v38 = vrot.slane %v2231_v35, 7  ;;  %v7303_v16 = vpop.f32.mrb[4].mxu1  ;;  %v11481_v41 = vpack.i.bf16 %v2454_v42, %v2452_v6  ;;  %v11493_v12 = vpack.i.bf16 %v2625_v45, %v2623_v11 }
 0x30d   : > { %v2458_v37 = vrot.slane %v2405_v49, 1  ;;  %v2629_v33 = vrot.slane %v2405_v49, 2  ;;  %v2096_v19 = vadd.f32 %v7303_v16, %v11459_v48  ;;  %v2090_v50 = vpop.f32.mrb[5].mxu1 }
 0x30e   : > { %15804 = vst [vmem:[#allocation41_spill] sm:$0xff] %v11481_v41  ;;  %v11485_v8 = vsel %vm519_vm0, %v2296_v38, %v2297_v59  ;;  %v11488_v51 = vsel %vm519_vm0, 0.0, %v2296_v38  ;;  %v2091_v22 = vadd.f32 %v11459_v48, %v2090_v50  ;;  %7702 = vrot.lane.b32.xlu0 %v11481_v41, %s9349_s17 }
 0x30f   : > { %v2455_v62 = vrot.slane %v11488_v51, 1  ;;  %v2456_v55 = vrot.slane %v11485_v8, 1  ;;  %v2234_v23 = vmax.f32 %v2096_v19, 0.0  ;;  %v2626_v18 = vrot.slane %v11488_v51, 2 }
 0x310   : > { %v2233_v15 = vmax.f32 %v2091_v22, 0.0  ;;  %v2627_v31 = vrot.slane %v11485_v8, 2 }
 0x311   : > { %v2300_v20 = vrot.slane %v2234_v23, 7  ;;  %v2457_v26 = vsel %vm685_vm1, %v2455_v62, %v2456_v55  ;;  %v2459_v58 = vsel %vm685_vm1, %v2456_v55, %v2458_v37 }
 0x312   : > { %v2299_v27 = vrot.slane %v2233_v15, 7  ;;  %v11502_v47 = vsel %vm862_vm2, %v2626_v18, %v2627_v31  ;;  %v11505_v24 = vsel %vm862_vm2, %v2627_v31, %v2629_v33  ;;  %v11507_v10 = vpack.i.bf16 %v2459_v58, %v2457_v26 }
 0x313   : > { %15805 = vst [vmem:[#allocation43_spill] sm:$0xff] %v11505_v24  ;;  %v11510_v43 = vsel %vm519_vm0, %v2300_v20, 0.0  ;;  %7079 = vmatprep.mubr.msk.f32.mxu1 %vm1726_vm7, %v11502_v47 }
 0x314   : > { %15806 = vst [vmem:[#allocation45_spill] sm:$0xff] %v11507_v10  ;;  %v2463_v3 = vrot.slane %v11510_v43, 1  ;;  %v11516_v34 = vsel %vm519_vm0, %v2299_v27, %v2300_v20  ;;  %v11519_v25 = vsel %vm519_vm0, 0.0, %v2299_v27  ;;  %7707 = vrot.lane.b32.xlu1 %v11507_v10, %s9349_s17  ;;  %v7306_v9 = vpop.f32.mrb[6].mxu1  ;;  %v15844_v52 = vrot.slane %v11510_v43, 2 }
 0x315   : > { %15807 = vst [vmem:[#allocation48_spill] sm:$0xff] %v11519_v25  ;;  %v2460_v30 = vrot.slane %v11519_v25, 1  ;;  %v2461_v5 = vrot.slane %v11516_v34, 1  ;;  %v2100_v56 = vpop.f32.mrb[7].mxu1  ;;  %v2106_v32 = vadd.f32 %v7306_v9, %v11459_v48 }
 0x316   : > { %v2101_v1 = vadd.f32 %v11459_v48, %v2100_v56 }
 0x317   : > { %v2462_v14 = vsel %vm685_vm1, %v2460_v30, %v2461_v5  ;;  %v2464_v36 = vsel %vm685_vm1, %v2461_v5, %v2463_v3  ;;  %v2236_v13 = vmax.f32 %v2106_v32, 0.0 }
 0x318   : > { %v2235_v61 = vmax.f32 %v2101_v1, 0.0  ;;  %v11529_v63 = vpack.i.bf16 %v2464_v36, %v2462_v14 }
 0x319   : > { %v2303_v44 = vrot.slane %v2236_v13, 7 }
 0x31a   : > { %15808 = vst [vmem:[#allocation56_spill] sm:$0xff] %v11529_v63  ;;  %v2302_v40 = vrot.slane %v2235_v61, 7  ;;  %7712 = vrot.lane.b32.xlu0 %v11529_v63, %s9349_s17 }
 0x31b   : > { %v11534_v39 = vsel %vm519_vm0, %v2303_v44, 0.0 }
 0x31c   : > { %v11537_v29 = vsel %vm519_vm0, %v2302_v40, %v2303_v44  ;;  %v11540_v53 = vsel %vm519_vm0, 0.0, %v2302_v40  ;;  %v7309_v46 = vpop.f32.mrb[8].mxu1  ;;  %v2468_v2 = vrot.slane %v11534_v39, 1 }
 0x31d   : > { %15809 = vst [vmem:[#allocation49_spill] sm:$0xff] %v11537_v29  ;;  %15810 = vst [vmem:[#allocation104_spill] sm:$0xff] %v11540_v53  ;;  %v2465_v17 = vrot.slane %v11540_v53, 1  ;;  %v2466_v7 = vrot.slane %v11537_v29, 1  ;;  %v2110_v0 = vpop.f32.mrb[9].mxu1  ;;  %v2116_v54 = vadd.f32 %v7309_v46, %v11459_v48 }
 0x31e   : > { %v2111_v59 = vadd.f32 %v11459_v48, %v2110_v0 }
 0x31f   : > { %v2467_v35 = vsel %vm685_vm1, %v2465_v17, %v2466_v7  ;;  %v2469_v6 = vsel %vm685_vm1, %v2466_v7, %v2468_v2  ;;  %v2238_v42 = vmax.f32 %v2116_v54, 0.0 }
 0x320   : > { %v2237_v11 = vmax.f32 %v2111_v59, 0.0  ;;  %v11549_v45 = vpack.i.bf16 %v2469_v6, %v2467_v35 }
 0x321   : > { %v2306_v49 = vrot.slane %v2238_v42, 7 }
 0x322   : > { %15811 = vst [vmem:[#allocation57_spill] sm:$0xff] %v11549_v45  ;;  %v2305_v38 = vrot.slane %v2237_v11, 7  ;;  %7717 = vrot.lane.b32.xlu1 %v11549_v45, %s9349_s17 }
 0x323   : > { %v11554_v16 = vsel %vm519_vm0, %v2306_v49, 0.0 }
 0x324   : > { %v11557_v37 = vsel %vm519_vm0, %v2305_v38, %v2306_v49  ;;  %v11560_v33 = vsel %vm519_vm0, 0.0, %v2305_v38  ;;  %v7312_v19 = vpop.f32.mrb[10].mxu1  ;;  %v2473_v50 = vrot.slane %v11554_v16, 1 }
 0x325   : > { %15812 = vst [vmem:[#allocation107_spill] sm:$0xff] %v11557_v37  ;;  %15813 = vst [vmem:[#allocation58_spill] sm:$0xff] %v11560_v33  ;;  %v2470_v22 = vrot.slane %v11560_v33, 1  ;;  %v2471_v62 = vrot.slane %v11557_v37, 1  ;;  %v2120_v55 = vpop.f32.mrb[11].mxu1  ;;  %v2126_v23 = vadd.f32 %v7312_v19, %v11459_v48 }
 0x326   : > { %v2121_v18 = vadd.f32 %v11459_v48, %v2120_v55 }
 0x327   : > { %v2472_v15 = vsel %vm685_vm1, %v2470_v22, %v2471_v62  ;;  %v2474_v31 = vsel %vm685_vm1, %v2471_v62, %v2473_v50  ;;  %v2240_v20 = vmax.f32 %v2126_v23, 0.0 }
 0x328   : > { %v2239_v26 = vmax.f32 %v2121_v18, 0.0  ;;  %v11569_v58 = vpack.i.bf16 %v2474_v31, %v2472_v15 }
 0x329   : > { %v2309_v27 = vrot.slane %v2240_v20, 7 }
 0x32a   : > { %15814 = vst [vmem:[#allocation59_spill] sm:$0xff] %v11569_v58  ;;  %v2308_v3 = vrot.slane %v2239_v26, 7  ;;  %7722 = vrot.lane.b32.xlu0 %v11569_v58, %s9349_s17 }
 0x32b   : > { %v11574_v9 = vsel %vm519_vm0, %v2309_v27, 0.0 }
 0x32c   : > { %v11577_v30 = vsel %vm519_vm0, %v2308_v3, %v2309_v27  ;;  %v11580_v5 = vsel %vm519_vm0, 0.0, %v2308_v3  ;;  %v7315_v56 = vpop.f32.mrb[12].mxu1  ;;  %v2478_v32 = vrot.slane %v11574_v9, 1 }
 0x32d   : > { %15815 = vst [vmem:[#allocation60_spill] sm:$0xff] %v11577_v30  ;;  %15816 = vst [vmem:[#allocation61_spill] sm:$0xff] %v11580_v5  ;;  %v2475_v1 = vrot.slane %v11580_v5, 1  ;;  %v2476_v14 = vrot.slane %v11577_v30, 1  ;;  %v2130_v36 = vpop.f32.mrb[13].mxu1  ;;  %v2136_v13 = vadd.f32 %v7315_v56, %v11459_v48 }
 0x32e   : > { %v2131_v61 = vadd.f32 %v11459_v48, %v2130_v36 }
 0x32f   : > { %v2477_v44 = vsel %vm685_vm1, %v2475_v1, %v2476_v14  ;;  %v2479_v40 = vsel %vm685_vm1, %v2476_v14, %v2478_v32  ;;  %v2242_v46 = vmax.f32 %v2136_v13, 0.0 }
 0x330   : > { %v2241_v2 = vmax.f32 %v2131_v61, 0.0  ;;  %v11589_v17 = vpack.i.bf16 %v2479_v40, %v2477_v44 }
 0x331   : > { %v2312_v7 = vrot.slane %v2242_v46, 7 }
 0x332   : > { %15817 = vst [vmem:[#allocation63_spill] sm:$0xff] %v11589_v17  ;;  %v2311_v0 = vrot.slane %v2241_v2, 7  ;;  %7727 = vrot.lane.b32.xlu1 %v11589_v17, %s9349_s17 }
 0x333   : > { %v11594_v54 = vsel %vm519_vm0, %v2312_v7, 0.0 }
 0x334   : > { %v11597_v59 = vsel %vm519_vm0, %v2311_v0, %v2312_v7  ;;  %v11600_v35 = vsel %vm519_vm0, 0.0, %v2311_v0  ;;  %v7318_v6 = vpop.f32.mrb[14].mxu1  ;;  %v2483_v42 = vrot.slane %v11594_v54, 1 }
 0x335   : > { %v2480_v11 = vrot.slane %v11600_v35, 1  ;;  %v2481_v49 = vrot.slane %v11597_v59, 1  ;;  %v2140_v38 = vpop.f32.mrb[15].mxu1  ;;  %v2146_v19 = vadd.f32 %v7318_v6, %v11459_v48 }
 0x336   : > { %v2141_v50 = vadd.f32 %v11459_v48, %v2140_v38 }
 0x337   : > { %v2482_v22 = vsel %vm685_vm1, %v2480_v11, %v2481_v49  ;;  %v2484_v62 = vsel %vm685_vm1, %v2481_v49, %v2483_v42  ;;  %v2244_v55 = vmax.f32 %v2146_v19, 0.0 }
 0x338   : > { %v2243_v23 = vmax.f32 %v2141_v50, 0.0  ;;  %v7321_v18 = vpop.f32.mrb[16].mxu1  ;;  %v11609_v15 = vpack.i.bf16 %v2484_v62, %v2482_v22 }
 0x339   : > { %v2156_v31 = vadd.f32 %v7321_v18, %v11459_v48  ;;  %v2150_v20 = vpop.f32.mrb[17].mxu1  ;;  %v2315_v26 = vrot.slane %v2244_v55, 7 }
 0x33a   : > { %15818 = vst [vmem:[#allocation65_spill] sm:$0xff] %v11609_v15  ;;  %v2314_v27 = vrot.slane %v2243_v23, 7  ;;  %v2151_v3 = vadd.f32 %v11459_v48, %v2150_v20  ;;  %7732 = vrot.lane.b32.xlu0 %v11609_v15, %s9349_s17 }
 0x33b   : > { %v2246_v56 = vmax.f32 %v2156_v31, 0.0  ;;  %v11616_v32 = vsel %vm519_vm0, %v2315_v26, 0.0 }
 0x33c   : > { %v11619_v1 = vsel %vm519_vm0, %v2314_v27, %v2315_v26  ;;  %v11622_v14 = vsel %vm519_vm0, 0.0, %v2314_v27  ;;  %v2245_v36 = vmax.f32 %v2151_v3, 0.0  ;;  %v7324_v13 = vpop.f32.mrb[18].mxu1  ;;  %v2488_v61 = vrot.slane %v11616_v32, 1 }
 0x33d   : > { %15819 = vst [vmem:[#allocation67_spill] sm:$0xff] %v11619_v1  ;;  %15820 = vst [vmem:[#allocation50_spill] sm:$0xff] %v11622_v14  ;;  %v2485_v44 = vrot.slane %v11622_v14, 1  ;;  %v2486_v40 = vrot.slane %v11619_v1, 1  ;;  %v2160_v46 = vpop.f32.mrb[19].mxu1  ;;  %v2318_v2 = vrot.slane %v2246_v56, 7  ;;  %v2166_v0 = vadd.f32 %v7324_v13, %v11459_v48 }
 0x33e   : > { %v2317_v7 = vrot.slane %v2245_v36, 7  ;;  %v2161_v6 = vadd.f32 %v11459_v48, %v2160_v46 }
 0x33f   : > { %v2487_v42 = vsel %vm685_vm1, %v2485_v44, %v2486_v40  ;;  %v2489_v11 = vsel %vm685_vm1, %v2486_v40, %v2488_v61  ;;  %v11632_v49 = vsel %vm519_vm0, %v2318_v2, 0.0  ;;  %v2248_v31 = vmax.f32 %v2166_v0, 0.0 }
 0x340   : > { %v11635_v38 = vsel %vm519_vm0, %v2317_v7, %v2318_v2  ;;  %v11638_v19 = vsel %vm519_vm0, 0.0, %v2317_v7  ;;  %v7327_v50 = vpop.f32.mrb[20].mxu1  ;;  %v11640_v22 = vpack.i.bf16 %v2489_v11, %v2487_v42  ;;  %v2493_v62 = vrot.slane %v11632_v49, 1 }
 0x341   : > { %15821 = vst [vmem:[#allocation66_spill] sm:$0xff] %v11635_v38  ;;  %15822 = vst [vmem:[#allocation85_spill] sm:$0xff] %v11638_v19  ;;  %v2490_v55 = vrot.slane %v11638_v19, 1  ;;  %v2491_v23 = vrot.slane %v11635_v38, 1  ;;  %v2170_v18 = vpop.f32.mrb[21].mxu1  ;;  %v2247_v20 = vmax.f32 %v2161_v6, 0.0  ;;  %v2176_v26 = vadd.f32 %v7327_v50, %v11459_v48 }
 0x342   : > { %15823 = vst [vmem:[#allocation42_spill] sm:$0xff] %v11640_v22  ;;  %7737 = vrot.lane.b32.xlu1 %v11640_v22, %s9349_s17  ;;  %v2171_v27 = vadd.f32 %v11459_v48, %v2170_v18  ;;  %v2321_v36 = vrot.slane %v2248_v31, 7 }
 0x343   : > { %v2492_v3 = vsel %vm685_vm1, %v2490_v55, %v2491_v23  ;;  %v2494_v56 = vsel %vm685_vm1, %v2491_v23, %v2493_v62  ;;  %v2320_v13 = vrot.slane %v2247_v20, 7  ;;  %v2250_v40 = vmax.f32 %v2176_v26, 0.0 }
 0x344   : > { %v7330_v61 = vpop.f32.mrb[22].mxu1  ;;  %v11651_v44 = vpack.i.bf16 %v2494_v56, %v2492_v3  ;;  %v2249_v46 = vmax.f32 %v2171_v27, 0.0  ;;  %v11655_v0 = vsel %vm519_vm0, %v2321_v36, 0.0 }
 0x345   : > { %v2186_v2 = vadd.f32 %v7330_v61, %v11459_v48  ;;  %v2180_v7 = vpop.f32.mrb[23].mxu1  ;;  %v11658_v6 = vsel %vm519_vm0, %v2320_v13, %v2321_v36  ;;  %v11661_v42 = vsel %vm519_vm0, 0.0, %v2320_v13  ;;  %v2324_v55 = vrot.slane %v2250_v40, 7 }
 0x346   : > { %15824 = vst [vmem:[#allocation62_spill] sm:$0xff] %v11651_v44  ;;  %15825 = vst [vmem:[#allocation69_spill] sm:$0xff] %v11658_v6  ;;  %v2181_v11 = vadd.f32 %v11459_v48, %v2180_v7  ;;  %7742 = vrot.lane.b32.xlu0 %v11651_v44, %s9349_s17  ;;  %v2495_v50 = vrot.slane %v11661_v42, 1  ;;  %v2496_v62 = vrot.slane %v11658_v6, 1  ;;  %v2323_v23 = vrot.slane %v2249_v46, 7 }
 0x347   : > { %15826 = vst [vmem:[#allocation6_spill] sm:$0xff] %v11661_v42  ;;  %v2498_v31 = vrot.slane %v11655_v0, 1  ;;  %v2252_v20 = vmax.f32 %v2186_v2, 0.0  ;;  %v11671_v56 = vsel %vm519_vm0, %v2324_v55, 0.0  ;;  %v2631_v40 = vrot.slane %v11519_v25, 2 }
 0x348   : > { %v7333_v18 = vpop.f32.mrb[24].mxu1  ;;  %v2251_v26 = vmax.f32 %v2181_v11, 0.0  ;;  %v11674_v36 = vsel %vm519_vm0, %v2323_v23, %v2324_v55  ;;  %v11677_v13 = vsel %vm519_vm0, 0.0, %v2323_v23  ;;  %v2503_v2 = vrot.slane %v11671_v56, 1 }
 0x349   : > { %v2196_v27 = vadd.f32 %v7333_v18, %v11459_v48  ;;  %v2190_v3 = vpop.f32.mrb[25].mxu1  ;;  %15827 = vst [vmem:[#allocation86_spill] sm:$0xff] %v11674_v36  ;;  %15828 = vst [vmem:[#allocation44_spill] sm:$0xff] %v11677_v13  ;;  %v2497_v7 = vsel %vm685_vm1, %v2495_v50, %v2496_v62  ;;  %v2500_v11 = vrot.slane %v11677_v13, 1  ;;  %v2501_v18 = vrot.slane %v11674_v36, 1 }
 0x34a   : > { %v2191_v61 = vadd.f32 %v11459_v48, %v2190_v3  ;;  %v2327_v4 = vrot.slane %v2252_v20, 7  ;;  %v2326_v55 = vrot.slane %v2251_v26, 7  ;;  %v2499_v21 = vsel %vm685_vm1, %v2496_v62, %v2498_v31 }
 0x34b   : > { %v2254_v28 = vmax.f32 %v2196_v27, 0.0  ;;  %v11697_v15 = vpack.i.bf16 %v2499_v21, %v2497_v7  ;;  %v15832_v62 = vrot.slane %v11516_v34, 2  ;;  %v2502_v20 = vsel %vm685_vm1, %v2500_v11, %v2501_v18 }
 0x34c   : > { %v7336_v60 = vpop.f32.mrb[26].mxu1  ;;  %v2253_v23 = vmax.f32 %v2191_v61, 0.0  ;;  %v11689_v46 = vsel %vm519_vm0, %v2327_v4, 0.0  ;;  %v11692_v22 = vsel %vm519_vm0, %v2326_v55, %v2327_v4  ;;  %v11695_v50 = vsel %vm519_vm0, 0.0, %v2326_v55 }
 0x34d   : > { %v2206_v3 = vadd.f32 %v7336_v60, %v11459_v48  ;;  %v2200_v44 = vpop.f32.mrb[27].mxu1  ;;  %15829 = vst [vmem:[#allocation103_spill] sm:$0xff] %v11692_v22  ;;  %15830 = vst [vmem:[#allocation64_spill] sm:$0xff] %v11695_v50  ;;  %v2508_v26 = vrot.slane %v11689_v46, 1  ;;  %v11704_v60 = vsel %vm862_vm2, %v2631_v40, %v15832_v62  ;;  %v2505_v31 = vrot.slane %v11695_v50, 1  ;;  %7747 = vrot.lane.b32.xlu1 %v11697_v15, %s9349_s17 }
 0x34e   : > { %15831 = vst [vmem:[#allocation117_spill] sm:$0xff] %v11697_v15  ;;  %15833 = vst [vmem:[#allocation68_spill] sm:$0xff] %v11704_v60  ;;  %v2506_v27 = vrot.slane %v11692_v22, 1  ;;  %v2330_v4 = vrot.slane %v2254_v28, 7  ;;  %v2329_v61 = vrot.slane %v2253_v23, 7  ;;  %v2201_v55 = vadd.f32 %v11459_v48, %v2200_v44 }
 0x34f   : > { %v2256_v7 = vmax.f32 %v2206_v3, 0.0  ;;  %v2504_v17 = vsel %vm685_vm1, %v2501_v18, %v2503_v2  ;;  %v2636_v15 = vrot.slane %v11540_v53, 2  ;;  %v2637_v3 = vrot.slane %v11537_v29, 2 }
 0x350   : > { %v7339_v21 = vpop.f32.mrb[28].mxu1  ;;  %v11715_v62 = vsel %vm519_vm0, %v2330_v4, 0.0  ;;  %v11718_v28 = vsel %vm519_vm0, %v2329_v61, %v2330_v4  ;;  %v11720_v23 = vpack.i.bf16 %v2504_v17, %v2502_v20  ;;  %v2641_v11 = vrot.slane %v11560_v33, 2 }
 0x351   : > { %v2210_v58 = vpop.f32.mrb[29].mxu1  ;;  %15834 = vst [vmem:[#allocation5_spill] sm:$0xff] %v11718_v28  ;;  %v2513_v2 = vrot.slane %v11715_v62, 1  ;;  %v11728_v18 = vsel %vm519_vm0, 0.0, %v2329_v61  ;;  %v2333_v40 = vrot.slane %v2256_v7, 7  ;;  %v2255_v45 = vmax.f32 %v2201_v55, 0.0 }
 0x352   : > { %15835 = vst [vmem:[#allocation87_spill] sm:$0xff] %v11720_v23  ;;  %15836 = vst [vmem:[#allocation105_spill] sm:$0xff] %v11728_v18  ;;  %7752 = vrot.lane.b32.xlu0 %v11720_v23, %s9349_s17  ;;  %v2216_v20 = vadd.f32 %v7339_v21, %v11459_v48  ;;  %v2211_v4 = vadd.f32 %v11459_v48, %v2210_v58  ;;  %v2507_v63 = vsel %vm685_vm1, %v2505_v31, %v2506_v27 }
 0x353   : > { %v2509_v44 = vsel %vm685_vm1, %v2506_v27, %v2508_v26  ;;  %v11737_v41 = vsel %vm519_vm0, %v2333_v40, 0.0  ;;  %v2332_v61 = vrot.slane %v2255_v45, 7  ;;  %v2510_v55 = vrot.slane %v11728_v18, 1 }
 0x354   : > { %v7342_v17 = vpop.f32.mrb[30].mxu1  ;;  %v11739_v33 = vpack.i.bf16 %v2509_v44, %v2507_v63  ;;  %v2511_v23 = vrot.slane %v11718_v28, 1  ;;  %v2258_v21 = vmax.f32 %v2216_v20, 0.0  ;;  %v2257_v25 = vmax.f32 %v2211_v4, 0.0 }
 0x355   : > { %v2220_v10 = vpop.f32.mrb[31].mxu1  ;;  %v2226_v7 = vadd.f32 %v7342_v17, %v11459_v48  ;;  %v2518_v58 = vrot.slane %v11737_v41, 1  ;;  %v11746_v31 = vsel %vm519_vm0, %v2332_v61, %v2333_v40  ;;  %v11749_v26 = vsel %vm519_vm0, 0.0, %v2332_v61 }
 0x356   : > { %15837 = vst [vmem:[#allocation118_spill] sm:$0xff] %v11739_v33  ;;  %15838 = vst [vmem:[#allocation70_spill] sm:$0xff] %v11746_v31  ;;  %7757 = vrot.lane.b32.xlu1 %v11739_v33, %s9349_s17  ;;  %v2221_v63 = vadd.f32 %v11459_v48, %v2220_v10  ;;  %v2642_v45 = vrot.slane %v11557_v37, 2  ;;  %v2515_v27 = vrot.slane %v11749_v26, 1  ;;  %v2516_v44 = vrot.slane %v11746_v31, 1 }
 0x357   : > { %15839 = vst [vmem:[#allocation7_spill] sm:$0xff] %v11749_v26  ;;  %v2260_v17 = vmax.f32 %v2226_v7, 0.0  ;;  %v2649_v20 = vrot.slane %v11574_v9, 2  ;;  %v2646_v40 = vrot.slane %v11580_v5, 2  ;;  %v2336_v4 = vrot.slane %v2258_v21, 7 }
 0x358   : > { %v2335_v29 = vrot.slane %v2257_v25, 7  ;;  %v2259_v61 = vmax.f32 %v2221_v63, 0.0  ;;  %v2512_v53 = vsel %vm685_vm1, %v2510_v55, %v2511_v23  ;;  %v2514_v33 = vsel %vm685_vm1, %v2511_v23, %v2513_v2 }
 0x359   : > { %v2517_v48 = vsel %vm685_vm1, %v2515_v27, %v2516_v44  ;;  %v11763_v10 = vsel %vm519_vm0, %v2336_v4, 0.0  ;;  %v2519_v9 = vsel %vm685_vm1, %v2516_v44, %v2518_v58  ;;  %v2339_v23 = vrot.slane %v2260_v17, 7 }
 0x35a   : > { %v11766_v37 = vsel %vm519_vm0, %v2335_v29, %v2336_v4  ;;  %v11769_v7 = vsel %vm519_vm0, 0.0, %v2335_v29  ;;  %v2523_v25 = vrot.slane %v11763_v10, 1  ;;  %v2647_v2 = vrot.slane %v11577_v30, 2 }
 0x35b   : > { %15840 = vst [vmem:[#allocation135_spill] sm:$0xff] %v11766_v37  ;;  %15841 = vst [vmem:[#allocation88_spill] sm:$0xff] %v11769_v7  ;;  %v2520_v21 = vrot.slane %v11769_v7, 1  ;;  %v2521_v55 = vrot.slane %v11766_v37, 1  ;;  %v2654_v63 = vrot.slane %v11594_v54, 2  ;;  %v2651_v27 = vrot.slane %v11600_v35, 2 }
 0x35c   : > { %v2652_v4 = vrot.slane %v11597_v59, 2  ;;  %v2338_v5 = vrot.slane %v2259_v61, 7  ;;  %v11779_v29 = vpack.i.bf16 %v2514_v33, %v2512_v53  ;;  %v11781_v57 = vpack.i.bf16 %v2519_v9, %v2517_v48 }
 0x35d   : > { %v2522_v58 = vsel %vm685_vm1, %v2520_v21, %v2521_v55  ;;  %v2524_v44 = vsel %vm685_vm1, %v2521_v55, %v2523_v25  ;;  %v15845_v17 = vrot.slane %v11516_v34, 2  ;;  %v11793_v54 = vsel %vm862_vm2, %v2636_v15, %v2637_v3 }
 0x35e   : > { %15842 = vst [vmem:[#allocation106_spill] sm:$0xff] %v11779_v29  ;;  %15843 = vst [vmem:[#allocation119_spill] sm:$0xff] %v11781_v57  ;;  %v15848_v61 = vrot.slane %v11534_v39, 2  ;;  %v11801_v33 = vsel %vm519_vm0, %v2338_v5, %v2339_v23  ;;  %7762 = vrot.lane.b32.xlu0 %v11779_v29, %s9349_s17  ;;  %7767 = vrot.lane.b32.xlu1 %v11781_v57, %s9349_s17  ;;  %v11807_v43 = vpack.i.bf16 %v2524_v44, %v2522_v58 }
 0x35f   : > { %v11790_v30 = vsel %vm862_vm2, %v15845_v17, %v15844_v52  ;;  %15847 = vst [vmem:[#allocation8_spill] sm:$0xff] %v11793_v54  ;;  %v11810_v52 = vsel %vm862_vm2, %v2641_v11, %v2642_v45  ;;  %v15852_v15 = vrot.slane %v11554_v16, 2  ;;  %v11821_v48 = vsel %vm862_vm2, %v2646_v40, %v2647_v2 }
 0x360   : > { %15846 = vst [vmem:[#allocation71_spill] sm:$0xff] %v11790_v30  ;;  %v11798_v53 = vsel %vm862_vm2, %v2637_v3, %v15848_v61  ;;  %15850 = vst [vmem:[#allocation89_spill] sm:$0xff] %v11807_v43  ;;  %v11818_v3 = vsel %vm862_vm2, %v2651_v27, %v2652_v4  ;;  %v11824_v9 = vsel %vm862_vm2, %v2647_v2, %v2649_v20  ;;  %v2664_v25 = vrot.slane %v11632_v49, 2 }
 0x361   : > { %15849 = vst [vmem:[#allocation136_spill] sm:$0xff] %v11798_v53  ;;  %15851 = vst [vmem:[#allocation108_spill] sm:$0xff] %v11810_v52  ;;  %v11815_v39 = vsel %vm862_vm2, %v2642_v45, %v15852_v15  ;;  %v2661_v21 = vrot.slane %v11638_v19, 2  ;;  %v2662_v11 = vrot.slane %v11635_v38, 2  ;;  %v11830_v16 = vsel %vm862_vm2, %v2652_v4, %v2654_v63 }
 0x362   : > { %15853 = vst [vmem:[#allocation120_spill] sm:$0xff] %v11815_v39  ;;  %15854 = vst [vmem:[#allocation72_spill] sm:$0xff] %v11818_v3  ;;  %v11834_v45 = vpack.i.bf16 %v11505_v24, %v11502_v47  ;;  %7777 = vrot.lane.b32.xlu1 %v11493_v12, %s9353_s16  ;;  %7772 = vrot.lane.b32.xlu0 %v11807_v43, %s9349_s17  ;;  %v11842_v49 = vpack.i.bf16 %v11790_v30, %v11704_v60  ;;  %v2659_v47 = vrot.slane %v11616_v32, 2  ;;  %v15270_v27 = vmov 0.0|0.0  }
 0x363   : > { %15855 = vst [vmem:[#allocation10_spill] sm:$0xff] %v11821_v48  ;;  %15856 = vst [vmem:[#allocation137_spill] sm:$0xff] %v11824_v9  ;;  %v11846_v20 = vpack.i.bf16 %v11815_v39, %v11810_v52  ;;  %v11850_v40 = vpack.i.bf16 %v11798_v53, %v11793_v54  ;;  %v2656_v55 = vrot.slane %v11622_v14, 2  ;;  %v11856_v2 = vpack.i.bf16 %v11830_v16, %v11818_v3 }
 0x364   : > { %15857 = vst [vmem:[#allocation90_spill] sm:$0xff] %v11830_v16  ;;  %v11860_v63 = vpack.i.bf16 %v11824_v9, %v11821_v48  ;;  %7351 = vmatprep.subr.bf16.mxu1 %v15270_v27  ;;  %v2657_v4 = vrot.slane %v11619_v1, 2  ;;  %v2403_v58 = vsel %vm519_vm0, 0.0, %v2338_v5  ;;  %v11866_v44 = vsel %vm862_vm2, %v2661_v21, %v2662_v11  ;;  %7378 = vmatprep.subr.bf16.mxu0 %v15270_v27  ;;  %v3507_v5 = vld [vmem:[%s15088_s3] sm:$0xff]  ;;  %v3508_v21 = vld [vmem:[%s15088_s3 + $0x8] sm:$0xff] }
 0x365   : > { %15858 = vst [vmem:[#allocation109_spill] sm:$0xff] %v11866_v44  ;;  %v11869_v32 = vsel %vm862_vm2, %v2662_v11, %v2664_v25  ;;  %v2669_v17 = vrot.slane %v11655_v0, 2  ;;  %v2666_v61 = vrot.slane %v11661_v42, 2  ;;  %v2667_v15 = vrot.slane %v11658_v6, 2 }
 0x366   : > { %15859 = vst [vmem:[#allocation121_spill] sm:$0xff] %v11869_v32  ;;  %v2674_v16 = vrot.slane %v11671_v56, 2  ;;  %v2671_v25 = vrot.slane %v11677_v13, 2  ;;  %v2672_v11 = vrot.slane %v11674_v36, 2  ;;  %v2679_v0 = vrot.slane %v11689_v46, 2  ;;  %7787 = vrot.lane.b32.xlu1 %v11842_v49, %s9353_s16  ;;  %7782 = vrot.lane.b32.xlu0 %v11834_v45, %s9353_s16  ;;  %v3509_v46 = vld [vmem:[%s15088_s3 + $0x10] sm:$0xff] }
 0x367   : > { %v2419_v27 = vsel %vm519_vm0, %v2339_v23, 0.0  ;;  %v2676_v56 = vrot.slane %v11695_v50, 2  ;;  %v11892_v3 = vpack.i.bf16 %v11801_v33, %v2403_v58  ;;  %v2677_v9 = vrot.slane %v11692_v22, 2  ;;  %v3510_v23 = vld [vmem:[%s15088_s3 + $0x18] sm:$0xff] }
 0x368   : > { %v2684_v48 = vrot.slane %v11715_v62, 2  ;;  %v7352_v39 = vpack.c.bf16 %v3508_v21, %v3507_v5  ;;  %v2681_v52 = vrot.slane %v11728_v18, 2  ;;  %v2887_v53 = vrot.slane %v2419_v27, 1 }
 0x369   : > { %v2988_v54 = vrot.slane %v2419_v27, 2  ;;  %v11909_v62 = vpack.i.bf16 %v11869_v32, %v11866_v44  ;;  %v11912_v5 = vsel %vm862_vm2, %v2656_v55, %v2657_v4  ;;  %v11915_v21 = vsel %vm862_vm2, %v2657_v4, %v2659_v47  ;;  %v3512_v4 = vld [vmem:[%s15088_s3 + $0x28] sm:$0xff] }
 0x36a   : > { %7797 = vrot.lane.b32.xlu1 %v11846_v20, %s9353_s16  ;;  %7792 = vrot.lane.b32.xlu0 %v11850_v40, %s9353_s16  ;;  %v7355_v30 = vpack.c.bf16 %v3510_v23, %v3509_v46  ;;  %v2884_v60 = vrot.slane %v2403_v58, 1  ;;  %v2885_v27 = vrot.slane %v11801_v33, 1  ;;  %v15860_v24 = vmov 0.0|0.0  }
 0x36b   : > { %7353 = vmatpush1.bf16.msra.mxu1 %v7352_v39  ;;  %v2985_v43 = vrot.slane %v2403_v58, 2  ;;  %v2986_v57 = vrot.slane %v11801_v33, 2  ;;  %v2682_v29 = vrot.slane %v11718_v28, 2  ;;  %v11927_v39 = vpack.i.bf16 %v11915_v21, %v11912_v5  ;;  %v3511_v33 = vld [vmem:[%s15088_s3 + $0x20] sm:$0xff] }
 0x36c   : > { %7354 = vmatprep.subr.bf16.mxu1 %v15860_v24  ;;  %v11930_v47 = vsel %vm862_vm2, %v2671_v25, %v2672_v11  ;;  %v11933_v55 = vsel %vm862_vm2, %v2672_v11, %v2674_v16  ;;  %v11942_v58 = vsel %vm862_vm2, %v2666_v61, %v2667_v15  ;;  %v7358_v46 = vpack.c.bf16 %v3512_v4, %v3511_v33 }
 0x36d   : > { %15861 = vst [vmem:[#allocation73_spill] sm:$0xff] %v11930_v47  ;;  %15862 = vst [vmem:[#allocation9_spill] sm:$0xff] %v11933_v55  ;;  %v2886_v25 = vsel %vm685_vm1, %v2884_v60, %v2885_v27  ;;  %v11947_v16 = vsel %vm862_vm2, %v2667_v15, %v2669_v17  ;;  %v11951_v11 = vsel %vm862_vm2, %v2985_v43, %v2986_v57  ;;  %v2689_v60 = vrot.slane %v11737_v41, 2 }
 0x36e   : > { %7807 = vrot.lane.b32.xlu1 %v11856_v2, %s9353_s16  ;;  %7802 = vrot.lane.b32.xlu0 %v11860_v63, %s9353_s16  ;;  %15863 = vst [vmem:[#allocation138_spill] sm:$0xff] %v11942_v58  ;;  %15864 = vst [vmem:[#allocation91_spill] sm:$0xff] %v11947_v16  ;;  %v11954_v23 = vsel %vm862_vm2, %v2986_v57, %v2988_v54  ;;  %v2686_v17 = vrot.slane %v11749_v26, 2  ;;  %v2694_v43 = vrot.slane %v11763_v10, 2  ;;  %v2691_v57 = vrot.slane %v11769_v7, 2 }
 0x36f   : > { %7356 = vmatpush1.bf16.msra.mxu1 %v7355_v30  ;;  %v2888_v30 = vsel %vm685_vm1, %v2885_v27, %v2887_v53  ;;  %15865 = vst [vmem:[#allocation110_spill] sm:$0xff] %v11951_v11  ;;  %15866 = vst [vmem:[#allocation122_spill] sm:$0xff] %v11954_v23  ;;  %v2687_v53 = vrot.slane %v11746_v31, 2  ;;  %v2692_v54 = vrot.slane %v11766_v37, 2  ;;  %v11970_v15 = vpack.i.bf16 %v11933_v55, %v11930_v47  ;;  %v15883_v55 = vld [vmem:[#allocation107_spill] sm:$0xff] }
 0x370   : > { %7357 = vmatprep.subr.bf16.mxu1 %v15860_v24  ;;  %v11960_v61 = vpack.i.bf16 %v2888_v30, %v2886_v25  ;;  %v11974_v27 = vpack.i.bf16 %v11947_v16, %v11942_v58  ;;  %v11978_v41 = vsel %vm862_vm2, %v2681_v52, %v2682_v29  ;;  %v11981_v10 = vsel %vm862_vm2, %v2682_v29, %v2684_v48  ;;  %v3513_v52 = vld [vmem:[%s15088_s3 + $0x30] sm:$0xff]  ;;  %v3514_v29 = vld [vmem:[%s15088_s3 + $0x38] sm:$0xff] }
 0x371   : > { %15867 = vst [vmem:[#allocation74_spill] sm:$0xff] %v11978_v41  ;;  %15868 = vst [vmem:[#allocation14_spill] sm:$0xff] %v11981_v10  ;;  %v11984_v33 = vsel %vm862_vm2, %v2676_v56, %v2677_v9  ;;  %v11987_v4 = vsel %vm862_vm2, %v2677_v9, %v2679_v0  ;;  %v12001_v48 = vpack.i.bf16 %v11981_v10, %v11978_v41  ;;  %v15879_v41 = vld [vmem:[#allocation48_spill] sm:$0xff] }
 0x372   : > { %7817 = vrot.lane.b32.xlu1 %v11909_v62, %s9353_s16  ;;  %7812 = vrot.lane.b32.xlu0 %v11927_v39, %s9353_s16  ;;  %15869 = vst [vmem:[#allocation11_spill] sm:$0xff] %v11984_v33  ;;  %15870 = vst [vmem:[#allocation92_spill] sm:$0xff] %v11987_v4  ;;  %v12005_v9 = vpack.i.bf16 %v11987_v4, %v11984_v33  ;;  %v7361_v0 = vpack.c.bf16 %v3514_v29, %v3513_v52  ;;  %v15876_v52 = vld [vmem:[#allocation39_spill] sm:$0xff]  ;;  %v15882_v33 = vld [vmem:[#allocation58_spill] sm:$0xff] }
 0x373   : > { %7359 = vmatpush1.bf16.msra.mxu1 %v7358_v46  ;;  %v12008_v56 = vsel %vm862_vm2, %v2691_v57, %v2692_v54  ;;  %v12011_v46 = vsel %vm862_vm2, %v2692_v54, %v2694_v43  ;;  %v12014_v25 = vsel %vm862_vm2, %v2686_v17, %v2687_v53  ;;  %v12017_v30 = vsel %vm862_vm2, %v2687_v53, %v2689_v60  ;;  %v3515_v60 = vld [vmem:[%s15088_s3 + $0x40] sm:$0xff]  ;;  %v3516_v17 = vld [vmem:[%s15088_s3 + $0x48] sm:$0xff]  ;;  %v15875_v54 = vld [vmem:[#allocation40_spill] sm:$0xff] }
 0x374   : > { %7360 = vmatprep.subr.bf16.mxu1 %v15860_v24  ;;  %15871 = vst [vmem:[#allocation111_spill] sm:$0xff] %v12008_v56  ;;  %15872 = vst [vmem:[#allocation123_spill] sm:$0xff] %v12011_v46  ;;  %v12025_v57 = vpack.i.bf16 %v12011_v46, %v12008_v56  ;;  %v12029_v43 = vpack.i.bf16 %v12017_v30, %v12014_v25  ;;  %v7856_v53 = vpack.i.bf16 %v11485_v8, %v11488_v51  ;;  %v3517_v46 = vld [vmem:[%s15088_s3 + $0x50] sm:$0xff]  ;;  %v3518_v56 = vld [vmem:[%s15088_s3 + $0x58] sm:$0xff] }
 0x375   : > { %15873 = vst [vmem:[#allocation75_spill] sm:$0xff] %v12014_v25  ;;  %15874 = vst [vmem:[#allocation13_spill] sm:$0xff] %v12017_v30  ;;  %v7851_v29 = vpack.i.bf16 %v15876_v52, %v15875_v54  ;;  %v15877_v30 = vld [vmem:[#allocation104_spill] sm:$0xff]  ;;  %v15878_v25 = vld [vmem:[#allocation49_spill] sm:$0xff]  ;;  %v7871_v47 = vpack.i.bf16 %v15883_v55, %v15882_v33  ;;  %v12083_v16 = vpack.i.bf16 %v11597_v59, %v11600_v35 }
 0x376   : > { %7827 = vrot.lane.b32.xlu1 %v11970_v15, %s9353_s16  ;;  %7822 = vrot.lane.b32.xlu0 %v11974_v27, %s9353_s16  ;;  %v7866_v10 = vpack.i.bf16 %v15878_v25, %v15877_v30  ;;  %v12091_v32 = vpack.i.bf16 %v11658_v6, %v11661_v42  ;;  %v12114_v6 = vpack.i.bf16 %v11674_v36, %v11677_v13 }
 0x377   : > { %7362 = vmatpush1.bf16.msra.mxu1 %v7361_v0  ;;  %v7364_v0 = vpack.c.bf16 %v3516_v17, %v3515_v60  ;;  %v7861_v60 = vpack.i.bf16 %v11516_v34, %v15879_v41  ;;  %v7367_v17 = vpack.c.bf16 %v3518_v56, %v3517_v46  ;;  %v3519_v56 = vld [vmem:[%s15088_s3 + $0x60] sm:$0xff]  ;;  %v3520_v46 = vld [vmem:[%s15088_s3 + $0x68] sm:$0xff] }
 0x378   : > { %7363 = vmatprep.subr.bf16.mxu1 %v15860_v24  ;;  %v7370_v58 = vpack.c.bf16 %v3520_v46, %v3519_v56  ;;  %v3522_v56 = vld [vmem:[%s15088_s3 + $0x78] sm:$0xff]  ;;  %v12110_v46 = vpack.i.bf16 %v11692_v22, %v11695_v50  ;;  %v12126_v22 = vpack.i.bf16 %v11718_v28, %v11728_v18 }
 0x37a   : > { %7837 = vrot.lane.b32.xlu1 %v12001_v48, %s9353_s16  ;;  %7832 = vrot.lane.b32.xlu0 %v12005_v9, %s9353_s16 }
 0x37b   : > { %7365 = vmatpush1.bf16.msra.mxu1 %v7364_v0  ;;  %v15881_v0 = vld [vmem:[#allocation60_spill] sm:$0xff] }
 0x37c   : > { %7366 = vmatprep.subr.bf16.mxu1 %v15860_v24 }
 0x37e   : > { %7847 = vrot.lane.b32.xlu1 %v12025_v57, %s9353_s16  ;;  %7842 = vrot.lane.b32.xlu0 %v12029_v43, %s9353_s16 }
 0x37f   : > { %7368 = vmatpush1.bf16.msra.mxu1 %v7367_v17  ;;  %v12079_v17 = vpack.i.bf16 %v11619_v1, %v11622_v14  ;;  %v12095_v1 = vpack.i.bf16 %v11635_v38, %v11638_v19  ;;  %v12122_v38 = vpack.i.bf16 %v11746_v31, %v11749_v26  ;;  %v15885_v26 = vld [vmem:[#allocation45_spill] sm:$0xff] }
 0x380   : > { %7369 = vmatprep.subr.bf16.mxu1 %v15860_v24 }
 0x382   : > { %7857 = vrot.lane.b32.xlu1 %v7856_v53, %s9355_s29  ;;  %7852 = vrot.lane.b32.xlu0 %v7851_v29, %s9355_s29  ;;  %v15880_v29 = vld [vmem:[#allocation61_spill] sm:$0xff] }
 0x383   : > { %v12063_v4 = vpack.i.bf16 %v15881_v0, %v15880_v29  ;;  %7371 = vmatpush1.bf16.msra.mxu1 %v7370_v58  ;;  %v3521_v58 = vld [vmem:[%s15088_s3 + $0x70] sm:$0xff] }
 0x384   : > { %7372 = vmatprep.subr.bf16.mxu1 %v15860_v24  ;;  %v7373_v42 = vpack.c.bf16 %v3522_v56, %v3521_v58  ;;  %v3524_v58 = vld [vmem:[%s15088_s3 + $0x88] sm:$0xff]  ;;  %v12141_v56 = vpack.i.bf16 %v11766_v37, %v11769_v7 }
 0x386   : > { %7867 = vrot.lane.b32.xlu1 %v7866_v10, %s9355_s29  ;;  %7862 = vrot.lane.b32.xlu0 %v7861_v60, %s9355_s29 }
 0x387   : > { %7374 = vmatpush1.bf16.msra.mxu1 %v7373_v42  ;;  %v3523_v42 = vld [vmem:[%s15088_s3 + $0x80] sm:$0xff] }
 0x388   : > { %7375 = vmatprep.subr.bf16.mxu1 %v15860_v24  ;;  %v7376_v31 = vpack.c.bf16 %v3524_v58, %v3523_v42  ;;  %v15884_v24 = vld [vmem:[#allocation41_spill] sm:$0xff] }
 0x38a   : > { %7877 = vrot.lane.b32.xlu1 %v12063_v4, %s9355_s29  ;;  %7872 = vrot.lane.b32.xlu0 %v7871_v47, %s9355_s29 }
 0x38b   : > { %7377 = vmatpush1.bf16.msra.mxu1 %v7376_v31  ;;  %v15887_v31 = vld [vmem:[#allocation57_spill] sm:$0xff] }
 0x38e   : > { %7887 = vrot.lane.b32.xlu1 %v12079_v17, %s9355_s29  ;;  %7882 = vrot.lane.b32.xlu0 %v12083_v16, %s9355_s29 }
 0x392   : > { %7897 = vrot.lane.b32.xlu1 %v12091_v32, %s9355_s29  ;;  %7892 = vrot.lane.b32.xlu0 %v12095_v1, %s9355_s29 }
 0x396   : > { %7907 = vrot.lane.b32.xlu1 %v12110_v46, %s9355_s29  ;;  %7902 = vrot.lane.b32.xlu0 %v12114_v6, %s9355_s29 }
 0x39a   : > { %7917 = vrot.lane.b32.xlu1 %v12122_v38, %s9355_s29  ;;  %7912 = vrot.lane.b32.xlu0 %v12126_v22, %s9355_s29 }
 0x39e   : > { %7922 = vrot.lane.b32.xlu0 %v12141_v56, %s9355_s29  ;;  %7927 = vrot.lane.b32.xlu1 %v11892_v3, %s9355_s29 }
 0x3a2   : > { %7932 = vrot.lane.b32.xlu0 %v15884_v24, %s9356_s19  ;;  %7937 = vrot.lane.b32.xlu1 %v15885_v26, %s9356_s19  ;;  %v15886_v24 = vld [vmem:[#allocation56_spill] sm:$0xff] }
 0x3a6   : > { %7942 = vrot.lane.b32.xlu0 %v11493_v12, %s9357_s20  ;;  %7947 = vrot.lane.b32.xlu1 %v7856_v53, %s9358_s21  ;;  %v12165_v12 = vpop.permute.xlu1 %7697 }
 0x3aa   : > { %7952 = vrot.lane.b32.xlu0 %v15885_v26, %s9359_s22  ;;  %7957 = vrot.lane.b32.xlu1 %v11834_v45, %s9357_s20  ;;  %v12170_v26 = vpop.permute.xlu0 %7702  ;;  %v12172_v45 = vpop.permute.xlu1 %7707 }
 0x3ae   : > { %7962 = vrot.lane.b32.xlu0 %v7861_v60, %s9358_s21  ;;  %7967 = vrot.lane.b32.xlu1 %v15886_v24, %s9359_s22  ;;  %v12178_v53 = vpop.permute.xlu0 %7712 }
 0x3b2   : > { %7972 = vrot.lane.b32.xlu0 %v15886_v24, %s9356_s19  ;;  %7977 = vrot.lane.b32.xlu1 %v11842_v49, %s9357_s20  ;;  %v12180_v49 = vpop.permute.xlu1 %7717  ;;  %v12185_v60 = vpop.permute.xlu0 %7722 }
 0x3b6   : > { %7982 = vrot.lane.b32.xlu0 %v7866_v10, %s9358_s21  ;;  %7987 = vrot.lane.b32.xlu1 %v15887_v31, %s9359_s22  ;;  %v15888_v10 = vld [vmem:[#allocation59_spill] sm:$0xff]  ;;  %v12187_v42 = vpop.permute.xlu1 %7727 }
 0x3ba   : > { %7992 = vrot.lane.b32.xlu0 %v15887_v31, %s9356_s19  ;;  %7997 = vrot.lane.b32.xlu1 %v11850_v40, %s9357_s20  ;;  %v12193_v40 = vpop.permute.xlu0 %7732  ;;  %v12195_v58 = vpop.permute.xlu1 %7737 }
 0x3be   : > { %8002 = vrot.lane.b32.xlu0 %v7871_v47, %s9358_s21  ;;  %8007 = vrot.lane.b32.xlu1 %v15888_v10, %s9359_s22  ;;  %v15889_v47 = vld [vmem:[#allocation63_spill] sm:$0xff]  ;;  %v12201_v24 = vpop.permute.xlu0 %7742 }
 0x3bf   : > { %15890 = vst [vmem:[#allocation139_spill] sm:$0xff] %v12201_v24  ;;  %v12203_v31 = vpop.permute.xlu1 %7747 }
 0x3c0   : > { %15891 = vst [vmem:[#allocation93_spill] sm:$0xff] %v12203_v31  ;;  %v7704_v31 = vunpack.i.l.bf16 %v12170_v26 }
 0x3c2   : > { %8012 = vrot.lane.b32.xlu0 %v15888_v10, %s9356_s19  ;;  %8017 = vrot.lane.b32.xlu1 %v11846_v20, %s9357_s20 }
 0x3c4   : > { %v12209_v20 = vpop.permute.xlu0 %7752 }
 0x3c5   : > { %15892 = vst [vmem:[#allocation51_spill] sm:$0xff] %v12209_v20 }
 0x3c6   : > { %8022 = vrot.lane.b32.xlu0 %v12063_v4, %s9358_s21  ;;  %8027 = vrot.lane.b32.xlu1 %v15889_v47, %s9359_s22  ;;  %v15894_v4 = vld [vmem:[#allocation65_spill] sm:$0xff] }
 0x3c8   : > { %v12211_v10 = vpop.permute.xlu1 %7757 }
 0x3c9   : > { %15893 = vst [vmem:[#allocation124_spill] sm:$0xff] %v12211_v10 }
 0x3ca   : > { %8032 = vrot.lane.b32.xlu0 %v15889_v47, %s9356_s19  ;;  %8037 = vrot.lane.b32.xlu1 %v11860_v63, %s9357_s20 }
 0x3ce   : > { %8042 = vrot.lane.b32.xlu0 %v12083_v16, %s9358_s21  ;;  %8047 = vrot.lane.b32.xlu1 %v15894_v4, %s9359_s22  ;;  %v15898_v16 = vld [vmem:[#allocation42_spill] sm:$0xff] }
 0x3d0   : > { %v12217_v37 = vpop.permute.xlu0 %7762  ;;  %v12219_v7 = vpop.permute.xlu1 %7767 }
 0x3d1   : > { %15895 = vst [vmem:[#allocation76_spill] sm:$0xff] %v12217_v37  ;;  %15896 = vst [vmem:[#allocation17_spill] sm:$0xff] %v12219_v7 }
 0x3d2   : > { %8052 = vrot.lane.b32.xlu0 %v15894_v4, %s9356_s19  ;;  %8057 = vrot.lane.b32.xlu1 %v11856_v2, %s9357_s20 }
 0x3d4   : > { %v12225_v63 = vpop.permute.xlu1 %7777  ;;  %v12227_v47 = vpop.permute.xlu0 %7772 }
 0x3d5   : > { %15897 = vst [vmem:[#allocation12_spill] sm:$0xff] %v12227_v47 }
 0x3d6   : > { %8062 = vrot.lane.b32.xlu0 %v12079_v17, %s9358_s21  ;;  %8067 = vrot.lane.b32.xlu1 %v15898_v16, %s9359_s22  ;;  %v15899_v17 = vld [vmem:[#allocation62_spill] sm:$0xff] }
 0x3d8   : > { %v12233_v28 = vpop.permute.xlu1 %7787  ;;  %v12235_v18 = vpop.permute.xlu0 %7782 }
 0x3da   : > { %8072 = vrot.lane.b32.xlu0 %v15898_v16, %s9356_s19  ;;  %8077 = vrot.lane.b32.xlu1 %v11927_v39, %s9357_s20 }
 0x3dc   : > { %v12241_v2 = vpop.permute.xlu1 %7797  ;;  %v12243_v4 = vpop.permute.xlu0 %7792 }
 0x3de   : > { %8082 = vrot.lane.b32.xlu0 %v12095_v1, %s9358_s21  ;;  %8087 = vrot.lane.b32.xlu1 %v15899_v17, %s9359_s22  ;;  %v15901_v1 = vld [vmem:[#allocation117_spill] sm:$0xff] }
 0x3e0   : > { %v12249_v47 = vpop.permute.xlu1 %7807  ;;  %v12251_v7 = vpop.permute.xlu0 %7802 }
 0x3e2   : > { %8092 = vrot.lane.b32.xlu0 %v15899_v17, %s9356_s19  ;;  %8097 = vrot.lane.b32.xlu1 %v11909_v62, %s9357_s20 }
 0x3e4   : > { %v12257_v39 = vpop.permute.xlu1 %7817  ;;  %v12259_v16 = vpop.permute.xlu0 %7812 }
 0x3e5   : > { %15900 = vst [vmem:[#allocation94_spill] sm:$0xff] %v12257_v39 }
 0x3e6   : > { %8102 = vrot.lane.b32.xlu0 %v12091_v32, %s9358_s21  ;;  %8107 = vrot.lane.b32.xlu1 %v15901_v1, %s9359_s22  ;;  %v15906_v32 = vld [vmem:[#allocation87_spill] sm:$0xff] }
 0x3e8   : > { %v12265_v37 = vpop.permute.xlu1 %7827  ;;  %v12267_v50 = vpop.permute.xlu0 %7822 }
 0x3e9   : > { %15902 = vst [vmem:[#allocation112_spill] sm:$0xff] %v12265_v37  ;;  %15903 = vst [vmem:[#allocation125_spill] sm:$0xff] %v12267_v50 }
 0x3ea   : > { %8112 = vrot.lane.b32.xlu0 %v15901_v1, %s9356_s19  ;;  %8117 = vrot.lane.b32.xlu1 %v11974_v27, %s9357_s20 }
 0x3ec   : > { %v12273_v62 = vpop.permute.xlu1 %7837  ;;  %v12275_v17 = vpop.permute.xlu0 %7832 }
 0x3ed   : > { %15904 = vst [vmem:[#allocation77_spill] sm:$0xff] %v12273_v62  ;;  %15905 = vst [vmem:[#allocation16_spill] sm:$0xff] %v12275_v17 }
 0x3ee   : > { %8122 = vrot.lane.b32.xlu0 %v12114_v6, %s9358_s21  ;;  %8127 = vrot.lane.b32.xlu1 %v15906_v32, %s9359_s22  ;;  %v15909_v6 = vld [vmem:[#allocation118_spill] sm:$0xff] }
 0x3f0   : > { %v12281_v10 = vpop.permute.xlu1 %7847  ;;  %v12283_v36 = vpop.permute.xlu0 %7842 }
 0x3f1   : > { %15907 = vst [vmem:[#allocation15_spill] sm:$0xff] %v12281_v10  ;;  %15908 = vst [vmem:[#allocation95_spill] sm:$0xff] %v12283_v36 }
 0x3f2   : > { %8132 = vrot.lane.b32.xlu0 %v15906_v32, %s9356_s19  ;;  %8137 = vrot.lane.b32.xlu1 %v11970_v15, %s9357_s20 }
 0x3f4   : > { %v12289_v27 = vpop.permute.xlu1 %7857  ;;  %v12291_v1 = vpop.permute.xlu0 %7852 }
 0x3f5   : > { %v7854_v50 = vunpack.i.l.bf16 %v12291_v1  ;;  %v7855_v39 = vunpack.i.h.bf16 %v12291_v1 }
 0x3f6   : > { %8142 = vrot.lane.b32.xlu0 %v12110_v46, %s9358_s21  ;;  %8147 = vrot.lane.b32.xlu1 %v15909_v6, %s9359_s22  ;;  %v15910_v46 = vld [vmem:[#allocation106_spill] sm:$0xff] }
 0x3f8   : > { %v12297_v62 = vpop.permute.xlu1 %7867  ;;  %v12299_v10 = vpop.permute.xlu0 %7862 }
 0x3fa   : > { %8152 = vrot.lane.b32.xlu0 %v15909_v6, %s9356_s19  ;;  %8157 = vrot.lane.b32.xlu1 %v12005_v9, %s9357_s20 }
 0x3fc   : > { %v12305_v15 = vpop.permute.xlu1 %7877  ;;  %v12307_v32 = vpop.permute.xlu0 %7872 }
 0x3fe   : > { %8162 = vrot.lane.b32.xlu0 %v12126_v22, %s9358_s21  ;;  %8167 = vrot.lane.b32.xlu1 %v15910_v46, %s9359_s22  ;;  %v15912_v22 = vld [vmem:[#allocation119_spill] sm:$0xff] }
 0x400   : > { %v12313_v36 = vpop.permute.xlu1 %7887  ;;  %v12315_v17 = vpop.permute.xlu0 %7882 }
 0x402   : > { %8172 = vrot.lane.b32.xlu0 %v15910_v46, %s9356_s19  ;;  %8177 = vrot.lane.b32.xlu1 %v12001_v48, %s9357_s20 }
 0x404   : > { %v12321_v9 = vpop.permute.xlu1 %7897  ;;  %v12323_v6 = vpop.permute.xlu0 %7892 }
 0x405   : > { %15911 = vst [vmem:[#allocation52_spill] sm:$0xff] %v12321_v9 }
 0x406   : > { %8182 = vrot.lane.b32.xlu0 %v12122_v38, %s9358_s21  ;;  %8187 = vrot.lane.b32.xlu1 %v15912_v22, %s9359_s22  ;;  %v15917_v38 = vld [vmem:[#allocation89_spill] sm:$0xff] }
 0x408   : > { %v12329_v13 = vpop.permute.xlu1 %7907  ;;  %v12331_v37 = vpop.permute.xlu0 %7902 }
 0x409   : > { %15913 = vst [vmem:[#allocation126_spill] sm:$0xff] %v12329_v13  ;;  %15914 = vst [vmem:[#allocation78_spill] sm:$0xff] %v12331_v37  ;;  %v7699_v13 = vunpack.i.l.bf16 %v12165_v12 }
 0x40a   : > { %8192 = vrot.lane.b32.xlu0 %v15912_v22, %s9356_s19  ;;  %8197 = vrot.lane.b32.xlu1 %v12029_v43, %s9357_s20  ;;  %v7700_v43 = vunpack.i.h.bf16 %v12165_v12  ;;  %v15920_v22 = vld [vmem:[#allocation3_spill] sm:$0xff]  ;;  %v15922_v12 = vld [vmem:[#allocation38_spill] sm:$0xff] }
 0x40c   : > { %v12337_v48 = vpop.permute.xlu1 %7917  ;;  %v12339_v46 = vpop.permute.xlu0 %7912 }
 0x40d   : > { %15915 = vst [vmem:[#allocation20_spill] sm:$0xff] %v12337_v48  ;;  %15916 = vst [vmem:[#allocation18_spill] sm:$0xff] %v12339_v46 }
 0x40e   : > { %8202 = vrot.lane.b32.xlu0 %v12141_v56, %s9358_s21  ;;  %8207 = vrot.lane.b32.xlu1 %v15917_v38, %s9359_s22  ;;  %v3278_v56 = vsel %vm1726_vm7, %v15920_v22, %v7699_v13  ;;  %v7705_v22 = vunpack.i.h.bf16 %v12170_v26 }
 0x410   : > { %v12346_v20 = vpop.permute.xlu0 %7922  ;;  %v12348_v37 = vpop.permute.xlu1 %7927  ;;  %v3281_v1 = vsel %vm1726_vm7, %v15876_v52, %v7705_v22 }
 0x411   : > { %15918 = vst [vmem:[#allocation96_spill] sm:$0xff] %v12346_v20  ;;  %15919 = vst [vmem:[#allocation113_spill] sm:$0xff] %v12348_v37  ;;  %v15923_v37 = vunpack.i.l.bf16 %v15922_v12 }
 0x412   : > { %8212 = vrot.lane.b32.xlu0 %v15917_v38, %s9356_s19  ;;  %8217 = vrot.lane.b32.xlu1 %v12025_v57, %s9357_s20  ;;  %v15921_v38 = vld [vmem:[#allocation2_spill] sm:$0xff] }
 0x413   : > { %v3279_v57 = vsel %vm1726_vm7, %v15921_v38, %v7700_v43  ;;  %v12369_v13 = vsel %vm1858_vm11, %v3278_v56, %v15923_v37 }
 0x414   : > { %v7933_v48 = vpop.permute.xlu0 %7932  ;;  %v12357_v46 = vpop.permute.xlu1 %7937  ;;  %15924 = vst [vmem:[#allocation127_spill] sm:$0xff] %v12369_v13  ;;  %v3343_v43 = vsel %vm3342_vm13, %v12369_v13, %v7854_v50  ;;  %v15925_v50 = vunpack.i.h.bf16 %v15922_v12 }
 0x415   : > { %v7934_v20 = vunpack.i.l.bf16 %v7933_v48  ;;  %v7935_v24 = vunpack.i.h.bf16 %v7933_v48  ;;  %v7939_v22 = vunpack.i.l.bf16 %v12357_v46 }
 0x416   : > { %8222 = vrot.lane.b32.xlu0 %v11892_v3, %s9358_s21  ;;  %8227 = vrot.lane.b32.xlu1 %v11960_v61, %s9359_s22  ;;  %v8236_v3 = vpack.i.bf16 %v11954_v23, %v11951_v11  ;;  %v7779_v23 = vunpack.i.l.bf16 %v12225_v63  ;;  %v12389_v48 = vsel %vm1858_vm11, %v3279_v57, %v15925_v50  ;;  %v15927_v57 = vld [vmem:[#allocation134_spill] sm:$0xff] }
 0x417   : > { %v3376_v37 = vsel %vm3375_vm14, %v3343_v43, %v7934_v20  ;;  %15926 = vst [vmem:[#allocation79_spill] sm:$0xff] %v12389_v48 }
 0x418   : > { %v7943_v19 = vpop.permute.xlu0 %7942  ;;  %v7948_v9 = vpop.permute.xlu1 %7947 }
 0x419   : > { %v7944_v38 = vunpack.i.l.bf16 %v7943_v19  ;;  %v7949_v56 = vunpack.i.l.bf16 %v7948_v9  ;;  %v7945_v26 = vunpack.i.h.bf16 %v7943_v19  ;;  %v7859_v19 = vunpack.i.l.bf16 %v12289_v27 }
 0x41a   : > { %8232 = vrot.lane.b32.xlu0 %v11960_v61, %s9356_s19  ;;  %8237 = vrot.lane.b32.xlu1 %v8236_v3, %s9357_s20  ;;  %v3280_v61 = vsel %vm1726_vm7, %v15875_v54, %v7704_v31  ;;  %v3344_v3 = vsel %vm3342_vm13, %v12389_v48, %v7855_v39  ;;  %v7950_v12 = vunpack.i.h.bf16 %v7948_v9  ;;  %v7710_v48 = vunpack.i.h.bf16 %v12172_v45 }
 0x41b   : > { %v3409_v44 = vsel %vm3408_vm15, %v3376_v37, %v7944_v38  ;;  %v3377_v52 = vsel %vm3375_vm14, %v3344_v3, %v7935_v24  ;;  %v15928_v37 = vld [vmem:[#allocation4_spill] sm:$0xff]  ;;  %v7709_v24 = vunpack.i.l.bf16 %v12172_v45  ;;  %v7780_v9 = vunpack.i.h.bf16 %v12225_v63 }
 0x41c   : > { %v7953_v20 = vpop.permute.xlu0 %7952  ;;  %v7958_v43 = vpop.permute.xlu1 %7957  ;;  %v3442_v50 = vsel %vm3441_vm3, %v3409_v44, %v7949_v56  ;;  %v3410_v39 = vsel %vm3408_vm15, %v3377_v52, %v7945_v26  ;;  %v3312_v3 = vsel %vm1858_vm11, %v3280_v61, %v7779_v23  ;;  %v7860_v44 = vunpack.i.h.bf16 %v12289_v27 }
 0x41d   : > { %v7954_v38 = vunpack.i.l.bf16 %v7953_v20  ;;  %v7955_v54 = vunpack.i.h.bf16 %v7953_v20  ;;  %v7959_v31 = vunpack.i.l.bf16 %v7958_v43  ;;  %v3345_v56 = vsel %vm3342_vm13, %v3312_v3, %v7859_v19 }
 0x41e   : > { %8242 = vrot.lane.b32.xlu0 %v15927_v57, %s9358_s21  ;;  %8247 = vrot.lane.b32.xlu1 %v15928_v37, %s9359_s22  ;;  %v7784_v37 = vunpack.i.l.bf16 %v12235_v18  ;;  %v7864_v26 = vunpack.i.l.bf16 %v12299_v10  ;;  %v7940_v45 = vunpack.i.h.bf16 %v12357_v46  ;;  %v3378_v63 = vsel %vm3375_vm14, %v3345_v56, %v7939_v22 }
 0x41f   : > { %v3475_v13 = vsel %vm3474_vm4, %v3442_v50, %v7954_v38  ;;  %v15929_v38 = vld [vmem:[#allocation43_spill] sm:$0xff]  ;;  %v3443_v23 = vsel %vm3441_vm3, %v3410_v39, %v7950_v12  ;;  %v7960_v61 = vunpack.i.h.bf16 %v7958_v43  ;;  %v3411_v27 = vsel %vm3408_vm15, %v3378_v63, %v7959_v31  ;;  %v15930_v39 = vld [vmem:[#allocation68_spill] sm:$0xff] }
 0x420   : > { %v7963_v57 = vpop.permute.xlu0 %7962  ;;  %v7968_v11 = vpop.permute.xlu1 %7967  ;;  %3661 = vmatmul.mubr.f32.vlgmr.msra.gmra.mrb[32].mxu1 %v3475_v13  ;;  %v3476_v52 = vsel %vm3474_vm4, %v3443_v23, %v7955_v54  ;;  %v3282_v19 = vsel %vm1726_vm7, %v11488_v51, %v7709_v24  ;;  %v3313_v50 = vsel %vm1858_vm11, %v3281_v1, %v7780_v9  ;;  %v7785_v22 = vunpack.i.h.bf16 %v12235_v18 }
 0x421   : > { %v7964_v20 = vunpack.i.l.bf16 %v7963_v57  ;;  %7080 = vmatprep.mubr.msk.f32.mxu1 %vm1726_vm7, %v15929_v38  ;;  %v7969_v13 = vunpack.i.l.bf16 %v7968_v11  ;;  %v7965_v3 = vunpack.i.h.bf16 %v7963_v57  ;;  %v3314_v43 = vsel %vm1858_vm11, %v3282_v19, %v7784_v37 }
 0x422   : > { %v3346_v12 = vsel %vm3342_vm13, %v3313_v50, %v7860_v44  ;;  %v3283_v51 = vsel %vm1726_vm7, %v11485_v8, %v7710_v48  ;;  %v7865_v1 = vunpack.i.h.bf16 %v12299_v10  ;;  %v3347_v31 = vsel %vm3342_vm13, %v3314_v43, %v7864_v26  ;;  %v15931_v26 = vld [vmem:[#allocation71_spill] sm:$0xff] }
 0x423   : > { %v3444_v46 = vsel %vm3441_vm3, %v3411_v27, %v7964_v20  ;;  %v3379_v24 = vsel %vm3375_vm14, %v3346_v12, %v7940_v45  ;;  %v7970_v9 = vunpack.i.h.bf16 %v7968_v11  ;;  %v7714_v44 = vunpack.i.l.bf16 %v12178_v53 }
 0x424   : > { %v7973_v38 = vpop.permute.xlu0 %7972  ;;  %v7978_v14 = vpop.permute.xlu1 %7977  ;;  %3666 = vmatmul.mubr.f32.gmra.mrb[34].mxu1 %v3476_v52  ;;  %v3477_v18 = vsel %vm3474_vm4, %v3444_v46, %v7969_v13  ;;  %v3412_v37 = vsel %vm3408_vm15, %v3379_v24, %v7960_v61  ;;  %v7789_v10 = vunpack.i.l.bf16 %v12233_v28  ;;  %v3315_v48 = vsel %vm1858_vm11, %v3283_v51, %v7785_v22 }
 0x425   : > { %v7974_v54 = vunpack.i.l.bf16 %v7973_v38  ;;  %7081 = vmatprep.mubr.msk.f32.mxu1 %vm1726_vm7, %v15930_v39  ;;  %v7979_v57 = vunpack.i.l.bf16 %v7978_v14  ;;  %v7975_v56 = vunpack.i.h.bf16 %v7973_v38  ;;  %v3445_v8 = vsel %vm3441_vm3, %v3412_v37, %v7965_v3  ;;  %v15932_v39 = vld [vmem:[#allocation8_spill] sm:$0xff] }
 0x426   : > { %v7715_v45 = vunpack.i.h.bf16 %v12178_v53  ;;  %v7869_v61 = vunpack.i.l.bf16 %v12297_v62  ;;  %v3348_v13 = vsel %vm3342_vm13, %v3315_v48, %v7865_v1  ;;  %v7980_v52 = vunpack.i.h.bf16 %v7978_v14 }
 0x427   : > { %v3380_v20 = vsel %vm3375_vm14, %v3347_v31, %v7974_v54  ;;  %v3478_v19 = vsel %vm3474_vm4, %v3445_v8, %v7970_v9  ;;  %v3284_v3 = vsel %vm1726_vm7, %v15879_v41, %v7714_v44  ;;  %v3381_v38 = vsel %vm3375_vm14, %v3348_v13, %v7975_v56 }
 0x428   : > { %v7983_v63 = vpop.permute.xlu0 %7982  ;;  %v7988_v23 = vpop.permute.xlu1 %7987  ;;  %3671 = vmatmul.mubr.f32.gmra.mrb[36].mxu1 %v3477_v18  ;;  %v3413_v50 = vsel %vm3408_vm15, %v3380_v20, %v7979_v57  ;;  %v7790_v12 = vunpack.i.h.bf16 %v12233_v28  ;;  %v3316_v14 = vsel %vm1858_vm11, %v3284_v3, %v7789_v10  ;;  %v3285_v51 = vsel %vm1726_vm7, %v11516_v34, %v7715_v45 }
 0x429   : > { %v7984_v11 = vunpack.i.l.bf16 %v7983_v63  ;;  %7082 = vmatprep.mubr.msk.f32.mxu1 %vm1726_vm7, %v15931_v26  ;;  %v7989_v27 = vunpack.i.l.bf16 %v7988_v23  ;;  %v7985_v46 = vunpack.i.h.bf16 %v7983_v63  ;;  %v7870_v41 = vunpack.i.h.bf16 %v12297_v62 }
 0x42a   : > { %v3349_v1 = vsel %vm3342_vm13, %v3316_v14, %v7869_v61  ;;  %v7990_v31 = vunpack.i.h.bf16 %v7988_v23  ;;  %v3414_v57 = vsel %vm3408_vm15, %v3381_v38, %v7980_v52  ;;  %v7719_v28 = vunpack.i.l.bf16 %v12180_v49  ;;  %v15933_v23 = vld [vmem:[#allocation136_spill] sm:$0xff] }
 0x42b   : > { %v3446_v53 = vsel %vm3441_vm3, %v3413_v50, %v7984_v11  ;;  %v3447_v34 = vsel %vm3441_vm3, %v3414_v57, %v7985_v46  ;;  %v3317_v62 = vsel %vm1858_vm11, %v3285_v51, %v7790_v12  ;;  %v7794_v20 = vunpack.i.l.bf16 %v12243_v4  ;;  %v15935_v57 = vld [vmem:[#allocation120_spill] sm:$0xff] }
 0x42c   : > { %v7993_v22 = vpop.permute.xlu0 %7992  ;;  %v7998_v43 = vpop.permute.xlu1 %7997  ;;  %3676 = vmatmul.mubr.f32.gmra.mrb[38].mxu1 %v3478_v19  ;;  %v3479_v9 = vsel %vm3474_vm4, %v3446_v53, %v7989_v27  ;;  %v7720_v8 = vunpack.i.h.bf16 %v12180_v49  ;;  %v3350_v10 = vsel %vm3342_vm13, %v3317_v62, %v7870_v41  ;;  %v7874_v48 = vunpack.i.l.bf16 %v12307_v32 }
 0x42d   : > { %v7994_v54 = vunpack.i.l.bf16 %v7993_v22  ;;  %7083 = vmatprep.mubr.msk.f32.mxu1 %vm1726_vm7, %v15932_v39  ;;  %v7999_v24 = vunpack.i.l.bf16 %v7998_v43  ;;  %v7995_v18 = vunpack.i.h.bf16 %v7993_v22  ;;  %v8000_v11 = vunpack.i.h.bf16 %v7998_v43  ;;  %v15934_v22 = vld [vmem:[#allocation108_spill] sm:$0xff] }
 0x42e   : > { %v3480_v45 = vsel %vm3474_vm4, %v3447_v34, %v7990_v31  ;;  %v3286_v13 = vsel %vm1726_vm7, %v15877_v30, %v7719_v28  ;;  %v7795_v3 = vunpack.i.h.bf16 %v12243_v4  ;;  %v3287_v43 = vsel %vm1726_vm7, %v15878_v25, %v7720_v8 }
 0x42f   : > { %v3382_v37 = vsel %vm3375_vm14, %v3349_v1, %v7994_v54  ;;  %v3383_v52 = vsel %vm3375_vm14, %v3350_v10, %v7995_v18  ;;  %v3318_v38 = vsel %vm1858_vm11, %v3286_v13, %v7794_v20  ;;  %v7875_v30 = vunpack.i.h.bf16 %v12307_v32 }
 0x430   : > { %v8003_v44 = vpop.permute.xlu0 %8002  ;;  %v8008_v56 = vpop.permute.xlu1 %8007  ;;  %3681 = vmatmul.mubr.f32.gmra.mrb[40].mxu1 %v3479_v9  ;;  %v3415_v61 = vsel %vm3408_vm15, %v3382_v37, %v7999_v24  ;;  %v3351_v53 = vsel %vm3342_vm13, %v3318_v38, %v7874_v48  ;;  %v3416_v39 = vsel %vm3408_vm15, %v3383_v52, %v8000_v11  ;;  %v7724_v4 = vunpack.i.l.bf16 %v12185_v60 }
 0x431   : > { %v8004_v63 = vunpack.i.l.bf16 %v8003_v44  ;;  %7084 = vmatprep.mubr.msk.f32.mxu1 %vm1726_vm7, %v15933_v23  ;;  %v8009_v26 = vunpack.i.l.bf16 %v8008_v56  ;;  %v8005_v27 = vunpack.i.h.bf16 %v8003_v44  ;;  %v8010_v12 = vunpack.i.h.bf16 %v8008_v56 }
 0x432   : > { %v7799_v32 = vunpack.i.l.bf16 %v12241_v2  ;;  %v3319_v24 = vsel %vm1858_vm11, %v3287_v43, %v7795_v3  ;;  %v7725_v28 = vunpack.i.h.bf16 %v12185_v60  ;;  %v7879_v18 = vunpack.i.l.bf16 %v12305_v15 }
 0x433   : > { %v3448_v49 = vsel %vm3441_vm3, %v3415_v61, %v8004_v63  ;;  %v3449_v25 = vsel %vm3441_vm3, %v3416_v39, %v8005_v27  ;;  %v3352_v37 = vsel %vm3342_vm13, %v3319_v24, %v7875_v30  ;;  %v3288_v20 = vsel %vm1726_vm7, %v15882_v33, %v7724_v4  ;;  %v15937_v30 = vld [vmem:[#allocation137_spill] sm:$0xff] }
 0x434   : > { %v8013_v19 = vpop.permute.xlu0 %8012  ;;  %v8018_v50 = vpop.permute.xlu1 %8017  ;;  %3686 = vmatmul.mubr.f32.gmra.mrb[42].mxu1 %v3480_v45  ;;  %v3481_v54 = vsel %vm3474_vm4, %v3448_v49, %v8009_v26  ;;  %v3482_v34 = vsel %vm3474_vm4, %v3449_v25, %v8010_v12  ;;  %v7800_v48 = vunpack.i.h.bf16 %v12241_v2  ;;  %v3320_v11 = vsel %vm1858_vm11, %v3288_v20, %v7799_v32  ;;  %v15936_v45 = vld [vmem:[#allocation10_spill] sm:$0xff] }
 0x435   : > { %v8014_v46 = vunpack.i.l.bf16 %v8013_v19  ;;  %7085 = vmatprep.mubr.msk.f32.mxu1 %vm1726_vm7, %v15934_v22  ;;  %v8019_v14 = vunpack.i.l.bf16 %v8018_v50  ;;  %v8015_v51 = vunpack.i.h.bf16 %v8013_v19  ;;  %v8020_v44 = vunpack.i.h.bf16 %v8018_v50 }
 0x436   : > { %v3289_v61 = vsel %vm1726_vm7, %v15883_v55, %v7725_v28  ;;  %v7880_v33 = vunpack.i.h.bf16 %v12305_v15  ;;  %v3353_v13 = vsel %vm3342_vm13, %v3320_v11, %v7879_v18  ;;  %v7729_v2 = vunpack.i.l.bf16 %v12187_v42  ;;  %v15938_v28 = vld [vmem:[#allocation72_spill] sm:$0xff] }
 0x437   : > { %v3384_v41 = vsel %vm3375_vm14, %v3351_v53, %v8014_v46  ;;  %v3385_v63 = vsel %vm3375_vm14, %v3352_v37, %v8015_v51  ;;  %v3321_v15 = vsel %vm1858_vm11, %v3289_v61, %v7800_v48  ;;  %v7804_v22 = vunpack.i.l.bf16 %v12251_v7  ;;  %v15939_v48 = vld [vmem:[#allocation90_spill] sm:$0xff] }
 0x438   : > { %v8023_v1 = vpop.permute.xlu0 %8022  ;;  %v8028_v31 = vpop.permute.xlu1 %8027  ;;  %3691 = vmatmul.mubr.f32.gmra.mrb[44].mxu1 %v3481_v54  ;;  %v3417_v62 = vsel %vm3408_vm15, %v3384_v41, %v8019_v14  ;;  %v3418_v50 = vsel %vm3408_vm15, %v3385_v63, %v8020_v44  ;;  %v7730_v53 = vunpack.i.h.bf16 %v12187_v42  ;;  %v3354_v12 = vsel %vm3342_vm13, %v3321_v15, %v7880_v33 }
 0x439   : > { %v8024_v9 = vunpack.i.l.bf16 %v8023_v1  ;;  %7086 = vmatprep.mubr.msk.f32.mxu1 %vm1726_vm7, %v15935_v57  ;;  %v8029_v56 = vunpack.i.l.bf16 %v8028_v31  ;;  %v8025_v23 = vunpack.i.h.bf16 %v8023_v1  ;;  %v8030_v52 = vunpack.i.h.bf16 %v8028_v31 }
 0x43a   : > { %v7884_v14 = vunpack.i.l.bf16 %v12315_v17  ;;  %v3290_v41 = vsel %vm1726_vm7, %v15880_v29, %v7729_v2  ;;  %v7805_v24 = vunpack.i.h.bf16 %v12251_v7  ;;  %v3291_v18 = vsel %vm1726_vm7, %v15881_v0, %v7730_v53 }
 0x43b   : > { %v3450_v60 = vsel %vm3441_vm3, %v3417_v62, %v8024_v9  ;;  %v3451_v55 = vsel %vm3441_vm3, %v3418_v50, %v8025_v23  ;;  %v3322_v9 = vsel %vm1858_vm11, %v3290_v41, %v7804_v22  ;;  %v7885_v29 = vunpack.i.h.bf16 %v12315_v17 }
 0x43c   : > { %v8033_v8 = vpop.permute.xlu0 %8032  ;;  %v8038_v10 = vpop.permute.xlu1 %8037  ;;  %3696 = vmatmul.mubr.f32.gmra.mrb[46].mxu1 %v3482_v34  ;;  %v3483_v19 = vsel %vm3474_vm4, %v3450_v60, %v8029_v56  ;;  %v3484_v4 = vsel %vm3474_vm4, %v3451_v55, %v8030_v52  ;;  %v3355_v37 = vsel %vm3342_vm13, %v3322_v9, %v7884_v14  ;;  %v7734_v7 = vunpack.i.l.bf16 %v12193_v40 }
 0x43d   : > { %v8034_v26 = vunpack.i.l.bf16 %v8033_v8  ;;  %7087 = vmatprep.mubr.msk.f32.mxu1 %vm1726_vm7, %v15936_v45  ;;  %v8039_v27 = vunpack.i.l.bf16 %v8038_v10  ;;  %v8035_v49 = vunpack.i.h.bf16 %v8033_v8  ;;  %v8040_v54 = vunpack.i.h.bf16 %v8038_v10 }
 0x43e   : > { %v7809_v17 = vunpack.i.l.bf16 %v12249_v47  ;;  %v3323_v10 = vsel %vm1858_vm11, %v3291_v18, %v7805_v24  ;;  %v7735_v11 = vunpack.i.h.bf16 %v12193_v40  ;;  %v15940_v24 = vld [vmem:[#allocation50_spill] sm:$0xff] }
 0x43f   : > { %v3386_v3 = vsel %vm3375_vm14, %v3353_v13, %v8034_v26  ;;  %v3387_v1 = vsel %vm3375_vm14, %v3354_v12, %v8035_v49  ;;  %v7889_v26 = vunpack.i.l.bf16 %v12313_v36  ;;  %v3356_v45 = vsel %vm3342_vm13, %v3323_v10, %v7885_v29 }
 0x440   : > { %v8043_v38 = vpop.permute.xlu0 %8042  ;;  %v8048_v46 = vpop.permute.xlu1 %8047  ;;  %3701 = vmatmul.mubr.f32.gmra.mrb[48].mxu1 %v3483_v19  ;;  %v3419_v51 = vsel %vm3408_vm15, %v3386_v3, %v8039_v27  ;;  %v3420_v62 = vsel %vm3408_vm15, %v3387_v1, %v8040_v54  ;;  %v3292_v27 = vsel %vm1726_vm7, %v11600_v35, %v7734_v7  ;;  %v7810_v3 = vunpack.i.h.bf16 %v12249_v47 }
 0x441   : > { %v8044_v43 = vunpack.i.l.bf16 %v8043_v38  ;;  %7088 = vmatprep.mubr.msk.f32.mxu1 %vm1726_vm7, %v15937_v30  ;;  %v8049_v39 = vunpack.i.l.bf16 %v8048_v46  ;;  %v8045_v31 = vunpack.i.h.bf16 %v8043_v38  ;;  %v8050_v44 = vunpack.i.h.bf16 %v8048_v46 }
 0x442   : > { %v3324_v38 = vsel %vm1858_vm11, %v3292_v27, %v7809_v17  ;;  %v3293_v55 = vsel %vm1726_vm7, %v11597_v59, %v7735_v11  ;;  %v7890_v35 = vunpack.i.h.bf16 %v12313_v36  ;;  %v7739_v47 = vunpack.i.l.bf16 %v12195_v58  ;;  %v15946_v27 = vld [vmem:[#allocation52_spill] sm:$0xff] }
 0x443   : > { %v3452_v42 = vsel %vm3441_vm3, %v3419_v51, %v8044_v43  ;;  %v3453_v0 = vsel %vm3441_vm3, %v3420_v62, %v8045_v31  ;;  %v3357_v15 = vsel %vm3342_vm13, %v3324_v38, %v7889_v26  ;;  %v3325_v36 = vsel %vm1858_vm11, %v3293_v55, %v7810_v3  ;;  %v15947_v38 = vld [vmem:[#allocation85_spill] sm:$0xff] }
 0x444   : > { %v8053_v25 = vpop.permute.xlu0 %8052  ;;  %v8058_v32 = vpop.permute.xlu1 %8057  ;;  %3706 = vmatmul.mubr.f32.gmra.mrb[50].mxu1 %v3484_v4  ;;  %v3485_v34 = vsel %vm3474_vm4, %v3452_v42, %v8049_v39  ;;  %v3486_v13 = vsel %vm3474_vm4, %v3453_v0, %v8050_v44  ;;  %v7814_v39 = vunpack.i.l.bf16 %v12259_v16  ;;  %v7740_v51 = vunpack.i.h.bf16 %v12195_v58 }
 0x445   : > { %v8054_v57 = vunpack.i.l.bf16 %v8053_v25  ;;  %7089 = vmatprep.mubr.msk.f32.mxu1 %vm1726_vm7, %v15938_v28  ;;  %v8059_v56 = vunpack.i.l.bf16 %v8058_v32  ;;  %v8055_v20 = vunpack.i.h.bf16 %v8053_v25  ;;  %v8060_v61 = vunpack.i.h.bf16 %v8058_v32 }
 0x446   : > { %v3358_v41 = vsel %vm3342_vm13, %v3325_v36, %v7890_v35  ;;  %v7894_v1 = vunpack.i.l.bf16 %v12323_v6  ;;  %v3294_v9 = vsel %vm1726_vm7, %v15940_v24, %v7739_v47  ;;  %v7815_v29 = vunpack.i.h.bf16 %v12259_v16  ;;  %v15943_v16 = vld [vmem:[#allocation139_spill] sm:$0xff] }
 0x447   : > { %v3388_v63 = vsel %vm3375_vm14, %v3355_v37, %v8054_v57  ;;  %v3389_v19 = vsel %vm3375_vm14, %v3356_v45, %v8055_v20  ;;  %v3326_v37 = vsel %vm1858_vm11, %v3294_v9, %v7814_v39  ;;  %v7895_v7 = vunpack.i.h.bf16 %v12323_v6  ;;  %v15944_v45 = vld [vmem:[#allocation94_spill] sm:$0xff] }
 0x448   : > { %v8063_v23 = vpop.permute.xlu0 %8062  ;;  %v8068_v8 = vpop.permute.xlu1 %8067  ;;  %3711 = vmatmul.mubr.f32.gmra.mrb[52].mxu1 %v3485_v34  ;;  %v3421_v52 = vsel %vm3408_vm15, %v3388_v63, %v8059_v56  ;;  %v3422_v53 = vsel %vm3408_vm15, %v3389_v19, %v8060_v61  ;;  %v15941_v56 = vld [vmem:[#allocation109_spill] sm:$0xff]  ;;  %v15942_v34 = vld [vmem:[#allocation67_spill] sm:$0xff]  ;;  %v3359_v20 = vsel %vm3342_vm13, %v3326_v37, %v7894_v1  ;;  %v7744_v17 = vunpack.i.l.bf16 %v15943_v16  ;;  %v15953_v37 = vld [vmem:[#allocation78_spill] sm:$0xff] }
 0x449   : > { %v8064_v60 = vunpack.i.l.bf16 %v8063_v23  ;;  %7090 = vmatprep.mubr.msk.f32.mxu1 %vm1726_vm7, %v15939_v48  ;;  %v8069_v33 = vunpack.i.l.bf16 %v8068_v8  ;;  %v8065_v50 = vunpack.i.h.bf16 %v8063_v23  ;;  %v8070_v22 = vunpack.i.h.bf16 %v8068_v8 }
 0x44a   : > { %v3295_v62 = vsel %vm1726_vm7, %v15942_v34, %v7740_v51  ;;  %v7819_v6 = vunpack.i.l.bf16 %v15944_v45  ;;  %v7899_v19 = vunpack.i.l.bf16 %v15946_v27 }
 0x44b   : > { %v3454_v40 = vsel %vm3441_vm3, %v3421_v52, %v8064_v60  ;;  %v3455_v59 = vsel %vm3441_vm3, %v3422_v53, %v8065_v50  ;;  %v3327_v61 = vsel %vm1858_vm11, %v3295_v62, %v7815_v29  ;;  %v7745_v52 = vunpack.i.h.bf16 %v15943_v16 }
 0x44c   : > { %v8073_v2 = vpop.permute.xlu0 %8072  ;;  %v8078_v49 = vpop.permute.xlu1 %8077  ;;  %3716 = vmatmul.mubr.f32.gmra.mrb[54].mxu1 %v3486_v13  ;;  %v3487_v30 = vsel %vm3474_vm4, %v3454_v40, %v8069_v33  ;;  %v3488_v32 = vsel %vm3474_vm4, %v3455_v59, %v8070_v22  ;;  %v15945_v13 = vld [vmem:[#allocation121_spill] sm:$0xff]  ;;  %v3360_v50 = vsel %vm3342_vm13, %v3327_v61, %v7895_v7 }
 0x44d   : > { %v8074_v46 = vunpack.i.l.bf16 %v8073_v2  ;;  %7091 = vmatprep.mubr.msk.f32.mxu1 %vm1726_vm7, %v11912_v5  ;;  %v8079_v43 = vunpack.i.l.bf16 %v8078_v49  ;;  %v8075_v12 = vunpack.i.h.bf16 %v8073_v2  ;;  %v8080_v31 = vunpack.i.h.bf16 %v8078_v49 }
 0x44f   : > { %v3390_v14 = vsel %vm3375_vm14, %v3357_v15, %v8074_v46  ;;  %v3391_v57 = vsel %vm3375_vm14, %v3358_v41, %v8075_v12  ;;  %v3296_v46 = vsel %vm1726_vm7, %v15947_v38, %v7744_v17  ;;  %v15948_v12 = vld [vmem:[#allocation138_spill] sm:$0xff]  ;;  %v15950_v41 = vld [vmem:[#allocation93_spill] sm:$0xff] }
 0x450   : > { %v8083_v54 = vpop.permute.xlu0 %8082  ;;  %v8088_v5 = vpop.permute.xlu1 %8087  ;;  %3721 = vmatmul.mubr.f32.gmra.mrb[56].mxu1 %v3487_v30  ;;  %v3423_v42 = vsel %vm3408_vm15, %v3390_v14, %v8079_v43  ;;  %v3424_v0 = vsel %vm3408_vm15, %v3391_v57, %v8080_v31  ;;  %v7820_v30 = vunpack.i.h.bf16 %v15944_v45  ;;  %v3328_v53 = vsel %vm1858_vm11, %v3296_v46, %v7819_v6  ;;  %v15949_v14 = vld [vmem:[#allocation66_spill] sm:$0xff]  ;;  %v15951_v57 = vld [vmem:[#allocation125_spill] sm:$0xff]  ;;  %v15958_v46 = vld [vmem:[#allocation112_spill] sm:$0xff] }
 0x451   : > { %v8084_v4 = vunpack.i.l.bf16 %v8083_v54  ;;  %7092 = vmatprep.mubr.msk.f32.mxu1 %vm1726_vm7, %v11915_v21  ;;  %v8089_v25 = vunpack.i.l.bf16 %v8088_v5  ;;  %v8085_v28 = vunpack.i.h.bf16 %v8083_v54  ;;  %v8090_v63 = vunpack.i.h.bf16 %v8088_v5 }
 0x452   : > { %v3297_v54 = vsel %vm1726_vm7, %v15949_v14, %v7745_v52  ;;  %v7900_v5 = vunpack.i.h.bf16 %v15946_v27  ;;  %v3361_v59 = vsel %vm3342_vm13, %v3328_v53, %v7899_v19  ;;  %v7749_v1 = vunpack.i.l.bf16 %v15950_v41  ;;  %v15957_v19 = vld [vmem:[#allocation51_spill] sm:$0xff] }
 0x453   : > { %v3456_v58 = vsel %vm3441_vm3, %v3423_v42, %v8084_v4  ;;  %v3457_v26 = vsel %vm3441_vm3, %v3424_v0, %v8085_v28  ;;  %v3329_v9 = vsel %vm1858_vm11, %v3297_v54, %v7820_v30  ;;  %v7824_v28 = vunpack.i.l.bf16 %v15951_v57  ;;  %v15960_v30 = vld [vmem:[#allocation126_spill] sm:$0xff] }
 0x454   : > { %v8093_v18 = vpop.permute.xlu0 %8092  ;;  %v8098_v21 = vpop.permute.xlu1 %8097  ;;  %3726 = vmatmul.mubr.f32.gmra.mrb[58].mxu1 %v3488_v32  ;;  %v3489_v8 = vsel %vm3474_vm4, %v3456_v58, %v8089_v25  ;;  %v3490_v40 = vsel %vm3474_vm4, %v3457_v26, %v8090_v63  ;;  %v7750_v58 = vunpack.i.h.bf16 %v15950_v41  ;;  %v3362_v29 = vsel %vm3342_vm13, %v3329_v9, %v7900_v5  ;;  %v15956_v26 = vld [vmem:[#allocation69_spill] sm:$0xff] }
 0x455   : > { %v8094_v44 = vunpack.i.l.bf16 %v8093_v18  ;;  %7093 = vmatprep.mubr.msk.f32.mxu1 %vm1726_vm7, %v15941_v56  ;;  %v8099_v23 = vunpack.i.l.bf16 %v8098_v21  ;;  %v8095_v10 = vunpack.i.h.bf16 %v8093_v18  ;;  %v8100_v2 = vunpack.i.h.bf16 %v8098_v21  ;;  %v15952_v21 = vld [vmem:[#allocation91_spill] sm:$0xff] }
 0x456   : > { %v3299_v45 = vsel %vm1726_vm7, %v15956_v26, %v7750_v58  ;;  %v7905_v6 = vunpack.i.h.bf16 %v15953_v37  ;;  %v7909_v53 = vunpack.i.l.bf16 %v15960_v30 }
 0x457   : > { %v3392_v60 = vsel %vm3375_vm14, %v3359_v20, %v8094_v44  ;;  %v3393_v55 = vsel %vm3375_vm14, %v3360_v50, %v8095_v10  ;;  %v7904_v44 = vunpack.i.l.bf16 %v15953_v37  ;;  %v15954_v20 = vld [vmem:[#allocation6_spill] sm:$0xff]  ;;  %v7825_v10 = vunpack.i.h.bf16 %v15951_v57  ;;  %v15964_v37 = vld [vmem:[#allocation124_spill] sm:$0xff] }
 0x458   : > { %v8103_v48 = vpop.permute.xlu0 %8102  ;;  %v8108_v11 = vpop.permute.xlu1 %8107  ;;  %3731 = vmatmul.mubr.f32.gmra.mrb[60].mxu1 %v3489_v8  ;;  %v3425_v3 = vsel %vm3408_vm15, %v3392_v60, %v8099_v23  ;;  %v3426_v51 = vsel %vm3408_vm15, %v3393_v55, %v8100_v2  ;;  %v3298_v63 = vsel %vm1726_vm7, %v15954_v20, %v7749_v1  ;;  %v7754_v50 = vunpack.i.l.bf16 %v15957_v19 }
 0x459   : > { %v8104_v33 = vunpack.i.l.bf16 %v8103_v48  ;;  %7094 = vmatprep.mubr.msk.f32.mxu1 %vm1726_vm7, %v15945_v13  ;;  %v8109_v49 = vunpack.i.l.bf16 %v8108_v11  ;;  %v8105_v35 = vunpack.i.h.bf16 %v8103_v48  ;;  %v8110_v36 = vunpack.i.h.bf16 %v8108_v11  ;;  %v15955_v11 = vld [vmem:[#allocation73_spill] sm:$0xff] }
 0x45a   : > { %v3330_v60 = vsel %vm1858_vm11, %v3298_v63, %v7824_v28  ;;  %v7829_v55 = vunpack.i.l.bf16 %v15958_v46  ;;  %v7910_v57 = vunpack.i.h.bf16 %v15960_v30 }
 0x45b   : > { %v3458_v43 = vsel %vm3441_vm3, %v3425_v3, %v8104_v33  ;;  %v3459_v24 = vsel %vm3441_vm3, %v3426_v51, %v8105_v35  ;;  %v3363_v61 = vsel %vm3342_vm13, %v3330_v60, %v7904_v44  ;;  %v3331_v35 = vsel %vm1858_vm11, %v3299_v45, %v7825_v10  ;;  %v15967_v60 = vld [vmem:[#allocation18_spill] sm:$0xff] }
 0x45c   : > { %v8113_v15 = vpop.permute.xlu0 %8112  ;;  %v8118_v22 = vpop.permute.xlu1 %8117  ;;  %3736 = vmatmul.mubr.f32.gmra.mrb[62].mxu1 %v3490_v40  ;;  %v3491_v4 = vsel %vm3474_vm4, %v3458_v43, %v8109_v49  ;;  %v3492_v62 = vsel %vm3474_vm4, %v3459_v24, %v8110_v36  ;;  %v7755_v43 = vunpack.i.h.bf16 %v15957_v19  ;;  %v15963_v24 = vld [vmem:[#allocation86_spill] sm:$0xff]  ;;  %v7759_v44 = vunpack.i.l.bf16 %v15964_v37 }
 0x45d   : > { %v8114_v47 = vunpack.i.l.bf16 %v8113_v15  ;;  %7095 = vmatprep.mubr.msk.f32.mxu1 %vm1726_vm7, %v15948_v12  ;;  %v8119_v39 = vunpack.i.l.bf16 %v8118_v22  ;;  %v8115_v31 = vunpack.i.h.bf16 %v8113_v15  ;;  %v8120_v56 = vunpack.i.h.bf16 %v8118_v22  ;;  %v15959_v22 = vld [vmem:[#allocation9_spill] sm:$0xff] }
 0x45e   : > { %v3301_v9 = vsel %vm1726_vm7, %v15963_v24, %v7755_v43 }
 0x45f   : > { %v3394_v25 = vsel %vm3375_vm14, %v3361_v59, %v8114_v47  ;;  %v3395_v23 = vsel %vm3375_vm14, %v3362_v29, %v8115_v31  ;;  %v3364_v47 = vsel %vm3342_vm13, %v3331_v35, %v7905_v6  ;;  %v15961_v59 = vld [vmem:[#allocation44_spill] sm:$0xff]  ;;  %v7830_v31 = vunpack.i.h.bf16 %v15958_v46 }
 0x460   : > { %v8123_v32 = vpop.permute.xlu0 %8122  ;;  %v8128_v42 = vpop.permute.xlu1 %8127  ;;  %3741 = vmatmul.mubr.f32.gmra.mrb[64].mxu1 %v3491_v4  ;;  %v3427_v7 = vsel %vm3408_vm15, %v3394_v25, %v8119_v39  ;;  %v3428_v27 = vsel %vm3408_vm15, %v3395_v23, %v8120_v56  ;;  %v3300_v36 = vsel %vm1726_vm7, %v15961_v59, %v7754_v50  ;;  %v15965_v23 = vld [vmem:[#allocation16_spill] sm:$0xff] }
 0x461   : > { %v8124_v18 = vunpack.i.l.bf16 %v8123_v32  ;;  %7096 = vmatprep.mubr.msk.f32.mxu1 %vm1726_vm7, %v15952_v21  ;;  %v8129_v34 = vunpack.i.l.bf16 %v8128_v42  ;;  %v8125_v8 = vunpack.i.h.bf16 %v8123_v32  ;;  %v8130_v33 = vunpack.i.h.bf16 %v8128_v42  ;;  %v15962_v42 = vld [vmem:[#allocation11_spill] sm:$0xff] }
 0x462   : > { %v3332_v25 = vsel %vm1858_vm11, %v3300_v36, %v7829_v55  ;;  %v3333_v63 = vsel %vm1858_vm11, %v3301_v9, %v7830_v31  ;;  %v7915_v55 = vunpack.i.h.bf16 %v15967_v60  ;;  %v15972_v36 = vld [vmem:[#allocation77_spill] sm:$0xff]  ;;  %v15974_v31 = vld [vmem:[#allocation20_spill] sm:$0xff] }
 0x463   : > { %v3460_v17 = vsel %vm3441_vm3, %v3427_v7, %v8124_v18  ;;  %v3461_v38 = vsel %vm3441_vm3, %v3428_v27, %v8125_v8  ;;  %v3365_v28 = vsel %vm3342_vm13, %v3332_v25, %v7909_v53  ;;  %v7834_v8 = vunpack.i.l.bf16 %v15965_v23  ;;  %v15971_v53 = vld [vmem:[#allocation76_spill] sm:$0xff] }
 0x464   : > { %v8133_v0 = vpop.permute.xlu0 %8132  ;;  %v8138_v16 = vpop.permute.xlu1 %8137  ;;  %3746 = vmatmul.mubr.f32.gmra.mrb[66].mxu1 %v3492_v62  ;;  %v3493_v52 = vsel %vm3474_vm4, %v3460_v17, %v8129_v34  ;;  %v3494_v54 = vsel %vm3474_vm4, %v3461_v38, %v8130_v33  ;;  %v7760_v17 = vunpack.i.h.bf16 %v15964_v37  ;;  %v3366_v10 = vsel %vm3342_vm13, %v3333_v63, %v7910_v57  ;;  %v15970_v38 = vld [vmem:[#allocation103_spill] sm:$0xff] }
 0x465   : > { %v8134_v48 = vunpack.i.l.bf16 %v8133_v0  ;;  %7097 = vmatprep.mubr.msk.f32.mxu1 %vm1726_vm7, %v15955_v11  ;;  %v8139_v13 = vunpack.i.l.bf16 %v8138_v16  ;;  %v8135_v2 = vunpack.i.h.bf16 %v8133_v0  ;;  %v8140_v12 = vunpack.i.h.bf16 %v8138_v16  ;;  %v15966_v16 = vld [vmem:[#allocation92_spill] sm:$0xff] }
 0x466   : > { %v3303_v46 = vsel %vm1726_vm7, %v15970_v38, %v7760_v17  ;;  %v7919_v25 = vunpack.i.l.bf16 %v15974_v31 }
 0x467   : > { %v3396_v49 = vsel %vm3375_vm14, %v3363_v61, %v8134_v48  ;;  %v3397_v39 = vsel %vm3375_vm14, %v3364_v47, %v8135_v2  ;;  %v7914_v48 = vunpack.i.l.bf16 %v15967_v60  ;;  %v15968_v61 = vld [vmem:[#allocation64_spill] sm:$0xff]  ;;  %v7835_v2 = vunpack.i.h.bf16 %v15965_v23  ;;  %v15978_v60 = vld [vmem:[#allocation5_spill] sm:$0xff] }
 0x468   : > { %v8143_v40 = vpop.permute.xlu0 %8142  ;;  %v8148_v3 = vpop.permute.xlu1 %8147  ;;  %3751 = vmatmul.mubr.f32.gmra.mrb[68].mxu1 %v3493_v52  ;;  %v3429_v5 = vsel %vm3408_vm15, %v3396_v49, %v8139_v13  ;;  %v3430_v29 = vsel %vm3408_vm15, %v3397_v39, %v8140_v12  ;;  %v3302_v33 = vsel %vm1726_vm7, %v15968_v61, %v7759_v44  ;;  %v7764_v47 = vunpack.i.l.bf16 %v15971_v53 }
 0x469   : > { %v8144_v15 = vunpack.i.l.bf16 %v8143_v40  ;;  %7098 = vmatprep.mubr.msk.f32.mxu1 %vm1726_vm7, %v15959_v22  ;;  %v8149_v14 = vunpack.i.l.bf16 %v8148_v3  ;;  %v8145_v4 = vunpack.i.h.bf16 %v8143_v40  ;;  %v8150_v18 = vunpack.i.h.bf16 %v8148_v3  ;;  %v15969_v3 = vld [vmem:[#allocation74_spill] sm:$0xff] }
 0x46a   : > { %v3334_v49 = vsel %vm1858_vm11, %v3302_v33, %v7834_v8  ;;  %v7839_v39 = vunpack.i.l.bf16 %v15972_v36  ;;  %v7920_v23 = vunpack.i.h.bf16 %v15974_v31 }
 0x46b   : > { %v3462_v1 = vsel %vm3441_vm3, %v3429_v5, %v8144_v15  ;;  %v3463_v20 = vsel %vm3441_vm3, %v3430_v29, %v8145_v4  ;;  %v3367_v35 = vsel %vm3342_vm13, %v3334_v49, %v7914_v48  ;;  %v3335_v4 = vsel %vm1858_vm11, %v3303_v46, %v7835_v2  ;;  %v15981_v49 = vld [vmem:[#allocation96_spill] sm:$0xff] }
 0x46c   : > { %v8153_v51 = vpop.permute.xlu0 %8152  ;;  %v8158_v41 = vpop.permute.xlu1 %8157  ;;  %3756 = vmatmul.mubr.f32.gmra.mrb[70].mxu1 %v3494_v54  ;;  %v3495_v58 = vsel %vm3474_vm4, %v3462_v1, %v8149_v14  ;;  %v3496_v45 = vsel %vm3474_vm4, %v3463_v20, %v8150_v18  ;;  %v7765_v1 = vunpack.i.h.bf16 %v15971_v53  ;;  %v15977_v20 = vld [vmem:[#allocation17_spill] sm:$0xff] }
 0x46d   : > { %v8154_v32 = vunpack.i.l.bf16 %v8153_v51  ;;  %7099 = vmatprep.mubr.msk.f32.mxu1 %vm1726_vm7, %v15962_v42  ;;  %v8159_v21 = vunpack.i.l.bf16 %v8158_v41  ;;  %v8155_v56 = vunpack.i.h.bf16 %v8153_v51  ;;  %v8160_v11 = vunpack.i.h.bf16 %v8158_v41  ;;  %v15973_v41 = vld [vmem:[#allocation14_spill] sm:$0xff] }
 0x46e   : > { %v7769_v63 = vunpack.i.l.bf16 %v15977_v20  ;;  %v3305_v48 = vsel %vm1726_vm7, %v15978_v60, %v7765_v1 }
 0x46f   : > { %v3398_v34 = vsel %vm3375_vm14, %v3365_v28, %v8154_v32  ;;  %v3399_v13 = vsel %vm3375_vm14, %v3366_v10, %v8155_v56  ;;  %v3368_v32 = vsel %vm3342_vm13, %v3335_v4, %v7915_v55  ;;  %v15975_v28 = vld [vmem:[#allocation105_spill] sm:$0xff]  ;;  %v7840_v56 = vunpack.i.h.bf16 %v15972_v36 }
 0x470   : > { %v8163_v62 = vpop.permute.xlu0 %8162  ;;  %v8168_v7 = vpop.permute.xlu1 %8167  ;;  %3761 = vmatmul.mubr.f32.gmra.mrb[72].mxu1 %v3495_v58  ;;  %v3431_v6 = vsel %vm3408_vm15, %v3398_v34, %v8159_v21  ;;  %v3432_v30 = vsel %vm3408_vm15, %v3399_v13, %v8160_v11  ;;  %v3304_v18 = vsel %vm1726_vm7, %v15975_v28, %v7764_v47  ;;  %v15979_v13 = vld [vmem:[#allocation95_spill] sm:$0xff] }
 0x471   : > { %v8164_v0 = vunpack.i.l.bf16 %v8163_v62  ;;  %7100 = vmatprep.mubr.msk.f32.mxu1 %vm1726_vm7, %v15966_v16  ;;  %v8169_v26 = vunpack.i.l.bf16 %v8168_v7  ;;  %v8165_v52 = vunpack.i.h.bf16 %v8163_v62  ;;  %v8170_v15 = vunpack.i.h.bf16 %v8168_v7  ;;  %v15976_v7 = vld [vmem:[#allocation75_spill] sm:$0xff] }
 0x472   : > { %v3336_v34 = vsel %vm1858_vm11, %v3304_v18, %v7839_v39  ;;  %v3337_v33 = vsel %vm1858_vm11, %v3305_v48, %v7840_v56  ;;  %v7925_v39 = vunpack.i.h.bf16 %v15981_v49  ;;  %v15986_v18 = vld [vmem:[#allocation15_spill] sm:$0xff] }
 0x473   : > { %v3464_v50 = vsel %vm3441_vm3, %v3431_v6, %v8164_v0  ;;  %v3465_v59 = vsel %vm3441_vm3, %v3432_v30, %v8165_v52  ;;  %v3369_v8 = vsel %vm3342_vm13, %v3336_v34, %v7919_v25  ;;  %v7844_v52 = vunpack.i.l.bf16 %v15979_v13  ;;  %v15985_v25 = vld [vmem:[#allocation12_spill] sm:$0xff]  ;;  %v15988_v34 = vld [vmem:[#allocation113_spill] sm:$0xff] }
 0x474   : > { %v8173_v27 = vpop.permute.xlu0 %8172  ;;  %v8178_v19 = vpop.permute.xlu1 %8177  ;;  %3766 = vmatmul.mubr.f32.gmra.mrb[74].mxu1 %v3496_v45  ;;  %v3497_v43 = vsel %vm3474_vm4, %v3464_v50, %v8169_v26  ;;  %v3498_v9 = vsel %vm3474_vm4, %v3465_v59, %v8170_v15  ;;  %v7770_v50 = vunpack.i.h.bf16 %v15977_v20  ;;  %v3370_v2 = vsel %vm3342_vm13, %v3337_v33, %v7920_v23  ;;  %v15984_v59 = vld [vmem:[#allocation70_spill] sm:$0xff] }
 0x475   : > { %v8174_v40 = vunpack.i.l.bf16 %v8173_v27  ;;  %7101 = vmatprep.mubr.msk.f32.mxu1 %vm1726_vm7, %v15969_v3  ;;  %v8179_v22 = vunpack.i.l.bf16 %v8178_v19  ;;  %v8175_v12 = vunpack.i.h.bf16 %v8173_v27  ;;  %v8180_v42 = vunpack.i.h.bf16 %v8178_v19  ;;  %v15980_v19 = vld [vmem:[#allocation13_spill] sm:$0xff] }
 0x476   : > { %v3307_v36 = vsel %vm1726_vm7, %v15984_v59, %v7770_v50  ;;  %v15991_v50 = vld [vmem:[#allocation135_spill] sm:$0xff] }
 0x477   : > { %v3400_v14 = vsel %vm3375_vm14, %v3367_v35, %v8174_v40  ;;  %v3401_v21 = vsel %vm3375_vm14, %v3368_v32, %v8175_v12  ;;  %v7924_v40 = vunpack.i.l.bf16 %v15981_v49  ;;  %v15982_v35 = vld [vmem:[#allocation7_spill] sm:$0xff]  ;;  %v7845_v12 = vunpack.i.h.bf16 %v15979_v13 }
 0x478   : > { %v8183_v54 = vpop.permute.xlu0 %8182  ;;  %v8188_v5 = vpop.permute.xlu1 %8187  ;;  %3771 = vmatmul.mubr.f32.gmra.mrb[76].mxu1 %v3497_v43  ;;  %v3433_v57 = vsel %vm3408_vm15, %v3400_v14, %v8179_v22  ;;  %v3434_v10 = vsel %vm3408_vm15, %v3401_v21, %v8180_v42  ;;  %v3306_v15 = vsel %vm1726_vm7, %v15982_v35, %v7769_v63  ;;  %v7774_v32 = vunpack.i.l.bf16 %v15985_v25 }
 0x479   : > { %v8184_v51 = vunpack.i.l.bf16 %v8183_v54  ;;  %7102 = vmatprep.mubr.msk.f32.mxu1 %vm1726_vm7, %v15973_v41  ;;  %v8189_v24 = vunpack.i.l.bf16 %v8188_v5  ;;  %v8185_v58 = vunpack.i.h.bf16 %v8183_v54  ;;  %v8190_v0 = vunpack.i.h.bf16 %v8188_v5  ;;  %v15983_v5 = vld [vmem:[#allocation111_spill] sm:$0xff] }
 0x47a   : > { %v3338_v14 = vsel %vm1858_vm11, %v3306_v15, %v7844_v52  ;;  %v7849_v21 = vunpack.i.l.bf16 %v15986_v18  ;;  %v15993_v15 = vld [vmem:[#allocation122_spill] sm:$0xff] }
 0x47b   : > { %v3466_v44 = vsel %vm3441_vm3, %v3433_v57, %v8184_v51  ;;  %v3467_v61 = vsel %vm3441_vm3, %v3434_v10, %v8185_v58  ;;  %v3371_v4 = vsel %vm3342_vm13, %v3338_v14, %v7924_v40  ;;  %v3339_v58 = vsel %vm1858_vm11, %v3307_v36, %v7845_v12 }
 0x47c   : > { %v8193_v29 = vpop.permute.xlu0 %8192  ;;  %v8198_v37 = vpop.permute.xlu1 %8197  ;;  %3776 = vmatmul.mubr.f32.gmra.mrb[78].mxu1 %v3498_v9  ;;  %v3499_v17 = vsel %vm3474_vm4, %v3466_v44, %v8189_v24  ;;  %v3500_v46 = vsel %vm3474_vm4, %v3467_v61, %v8190_v0  ;;  %v7775_v44 = vunpack.i.h.bf16 %v15985_v25  ;;  %v3372_v56 = vsel %vm3342_vm13, %v3339_v58, %v7925_v39 }
 0x47d   : > { %v8194_v62 = vunpack.i.l.bf16 %v8193_v29  ;;  %7103 = vmatprep.mubr.msk.f32.mxu1 %vm1726_vm7, %v15976_v7  ;;  %v8199_v16 = vunpack.i.l.bf16 %v8198_v37  ;;  %v8195_v11 = vunpack.i.h.bf16 %v8193_v29  ;;  %v8200_v3 = vunpack.i.h.bf16 %v8198_v37  ;;  %v15987_v37 = vld [vmem:[#allocation123_spill] sm:$0xff] }
 0x47e   : > { %v7930_v61 = vunpack.i.h.bf16 %v15988_v34 }
 0x47f   : > { %v3402_v26 = vsel %vm3375_vm14, %v3369_v8, %v8194_v62  ;;  %v3403_v22 = vsel %vm3375_vm14, %v3370_v2, %v8195_v11  ;;  %v7929_v62 = vunpack.i.l.bf16 %v15988_v34  ;;  %v15989_v8 = vld [vmem:[#allocation88_spill] sm:$0xff]  ;;  %v7850_v11 = vunpack.i.h.bf16 %v15986_v18 }
 0x480   : > { %v8203_v45 = vpop.permute.xlu0 %8202  ;;  %v8208_v6 = vpop.permute.xlu1 %8207  ;;  %3781 = vmatmul.mubr.f32.gmra.mrb[80].mxu1 %v3499_v17  ;;  %v3435_v55 = vsel %vm3408_vm15, %v3402_v26, %v8199_v16  ;;  %v3436_v31 = vsel %vm3408_vm15, %v3403_v22, %v8200_v3  ;;  %v3308_v0 = vsel %vm1726_vm7, %v15989_v8, %v7774_v32  ;;  %v3309_v2 = vsel %vm1726_vm7, %v15991_v50, %v7775_v44 }
 0x481   : > { %v8204_v27 = vunpack.i.l.bf16 %v8203_v45  ;;  %7104 = vmatprep.mubr.msk.f32.mxu1 %vm1726_vm7, %v15980_v19  ;;  %v8209_v38 = vunpack.i.l.bf16 %v8208_v6  ;;  %v8205_v43 = vunpack.i.h.bf16 %v8203_v45  ;;  %v8210_v51 = vunpack.i.h.bf16 %v8208_v6  ;;  %v15990_v6 = vld [vmem:[#allocation110_spill] sm:$0xff] }
 0x482   : > { %v3340_v26 = vsel %vm1858_vm11, %v3308_v0, %v7849_v21 }
 0x483   : > { %v3468_v47 = vsel %vm3441_vm3, %v3435_v55, %v8204_v27  ;;  %v3469_v28 = vsel %vm3441_vm3, %v3436_v31, %v8205_v43  ;;  %v3373_v33 = vsel %vm3342_vm13, %v3340_v26, %v7929_v62  ;;  %v3341_v55 = vsel %vm1858_vm11, %v3309_v2, %v7850_v11 }
 0x484   : > { %v8213_v30 = vpop.permute.xlu0 %8212  ;;  %v8218_v53 = vpop.permute.xlu1 %8217  ;;  %3786 = vmatmul.mubr.f32.gmra.mrb[82].mxu1 %v3500_v46  ;;  %v3501_v1 = vsel %vm3474_vm4, %v3468_v47, %v8209_v38  ;;  %v3502_v63 = vsel %vm3474_vm4, %v3469_v28, %v8210_v51  ;;  %v3374_v22 = vsel %vm3342_vm13, %v3341_v55, %v7930_v61  ;;  %v15998_v51 = vld [vmem:[#allocation47_spill] sm:$0xff]  ;;  %v15999_v55 = vmov 0.0|0.0  }
 0x485   : > { %v8214_v54 = vunpack.i.l.bf16 %v8213_v30  ;;  %7105 = vmatprep.mubr.msk.f32.mxu1 %vm1726_vm7, %v15983_v5  ;;  %v8219_v41 = vunpack.i.l.bf16 %v8218_v53  ;;  %v8215_v42 = vunpack.i.h.bf16 %v8213_v30  ;;  %v8220_v7 = vunpack.i.h.bf16 %v8218_v53  ;;  %v15996_v5 = vld [vmem:[#allocation46_spill] sm:$0xff] }
 0x487   : > { %v3404_v24 = vsel %vm3375_vm14, %v3371_v4, %v8214_v54  ;;  %v3405_v16 = vsel %vm3375_vm14, %v3372_v56, %v8215_v42 }
 0x488   : > { %v8223_v9 = vpop.permute.xlu0 %8222  ;;  %3791 = vmatmul.mubr.f32.gmra.mrb[84].mxu1 %v3501_v1  ;;  %v8228_v57 = vpop.permute.xlu1 %8227  ;;  %v3437_v23 = vsel %vm3408_vm15, %v3404_v24, %v8219_v41  ;;  %v3438_v19 = vsel %vm3408_vm15, %v3405_v16, %v8220_v7  ;;  %v12807_v1 = vld [vmem:[%s15089_s4] ss:$0 sm:$0xff] }
 0x489   : > { %v8224_v29 = vunpack.i.l.bf16 %v8223_v9  ;;  %7106 = vmatprep.mubr.msk.f32.mxu1 %vm1726_vm7, %v15987_v37  ;;  %v8229_v20 = vunpack.i.l.bf16 %v8228_v57  ;;  %v8225_v17 = vunpack.i.h.bf16 %v8223_v9  ;;  %v8230_v13 = vunpack.i.h.bf16 %v8228_v57 }
 0x48b   : > { %v3470_v48 = vsel %vm3441_vm3, %v3437_v23, %v8224_v29  ;;  %v3471_v46 = vsel %vm3441_vm3, %v3438_v19, %v8225_v17 }
 0x48c   : > { %3796 = vmatmul.mubr.f32.gmra.mrb[86].mxu1 %v3502_v63  ;;  %v8233_v10 = vpop.permute.xlu0 %8232  ;;  %v8238_v60 = vpop.permute.xlu1 %8237  ;;  %v3503_v27 = vsel %vm3474_vm4, %v3470_v48, %v8229_v20  ;;  %v3504_v53 = vsel %vm3474_vm4, %v3471_v46, %v8230_v13  ;;  %v5073_v48 = vld [vmem:[%s15090_s5 + $0x8] sm:$0xff] }
 0x48d   : > { %v8234_v45 = vunpack.i.l.bf16 %v8233_v10  ;;  %7107 = vmatprep.mubr.msk.f32.mxu1 %vm1726_vm7, %v15990_v6  ;;  %v8239_v52 = vunpack.i.l.bf16 %v8238_v60  ;;  %v8235_v49 = vunpack.i.h.bf16 %v8233_v10  ;;  %v8240_v43 = vunpack.i.h.bf16 %v8238_v60  ;;  %v5072_v60 = vld [vmem:[%s15090_s5] sm:$0xff] }
 0x48f   : > { %v3406_v40 = vsel %vm3375_vm14, %v3373_v33, %v8234_v45  ;;  %v3407_v12 = vsel %vm3375_vm14, %v3374_v22, %v8235_v49 }
 0x490   : > { %v8243_v3 = vpop.permute.xlu0 %8242  ;;  %3801 = vmatmul.mubr.f32.gmra.mrb[88].mxu1 %v3503_v27  ;;  %v8248_v38 = vpop.permute.xlu1 %8247  ;;  %v3439_v47 = vsel %vm3408_vm15, %v3406_v40, %v8239_v52  ;;  %v3440_v39 = vsel %vm3408_vm15, %v3407_v12, %v8240_v43  ;;  %v7379_v52 = vpack.c.bf16 %v5073_v48, %v5072_v60 }
 0x491   : > { %v12777_v35 = vunpack.i.l.bf16 %v8243_v3  ;;  %7108 = vmatprep.mubr.msk.f32.mxu1 %vm1726_vm7, %v15993_v15  ;;  %v12782_v30 = vunpack.i.l.bf16 %v8248_v38  ;;  %v12787_v14 = vunpack.i.h.bf16 %v8243_v3  ;;  %v12793_v59 = vunpack.i.h.bf16 %v8248_v38 }
 0x492   : > { %7380 = vmatpush1.bf16.msra.mxu0 %v7379_v52  ;;  %v5080_v52 = vld [vmem:[%s15090_s5 + $0x40] sm:$0xff] }
 0x493   : > { %15992 = vst [vmem:[#allocation21_spill] sm:$0xff] %v12777_v35  ;;  %15994 = vst [vmem:[#allocation19_spill] sm:$0xff] %v12782_v30  ;;  %v3472_v54 = vsel %vm3441_vm3, %v3439_v47, %v12777_v35  ;;  %v3473_v4 = vsel %vm3441_vm3, %v3440_v39, %v12787_v14  ;;  %7381 = vmatprep.subr.bf16.mxu0 %v15999_v55 }
 0x494   : > { %15995 = vst [vmem:[#allocation97_spill] sm:$0xff] %v12787_v14  ;;  %3806 = vmatmul.mubr.f32.gmra.mrb[90].mxu1 %v3504_v53  ;;  %15997 = vst [vmem:[#allocation53_spill] sm:$0xff] %v12793_v59  ;;  %v3505_v36 = vsel %vm3474_vm4, %v3472_v54, %v12782_v30  ;;  %v3506_v41 = vsel %vm3474_vm4, %v3473_v4, %v12793_v59  ;;  %v5074_v54 = vld [vmem:[%s15090_s5 + $0x10] sm:$0xff] }
 0x495   : > { %7109 = vmatprep.mubr.msk.f32.mxu1 %vm1726_vm7, %v15996_v5 }
 0x498   : > { %3811 = vmatmul.mubr.f32.gmra.mrb[92].mxu1 %v3505_v36  ;;  %v5075_v36 = vld [vmem:[%s15090_s5 + $0x18] sm:$0xff] }
 0x499   : > { %7110 = vmatprep.mubr.msk.f32.mxu1 %vm1726_vm7, %v15998_v51 }
 0x49c   : > { %3816 = vmatmul.mubr.f32.gmra.mrb[94].mxu1 %v3506_v41 }
 0x4f3   : > { %v3662_v31 = vpop.f32.mrb[32].mxu1 }
 0x4f4   : > { %v3663_v25 = vadd.f32 %v12807_v1, %v3662_v31  ;;  %v3664_v32 = vpop.f32.mrb[33].mxu1  ;;  %v5076_v31 = vld [vmem:[%s15090_s5 + $0x20] sm:$0xff] }
 0x4f6   : > { %v3821_v42 = vmax.f32 %v3663_v25, 0.0  ;;  %v5077_v25 = vld [vmem:[%s15090_s5 + $0x28] sm:$0xff] }
 0x4f7   : > { %v3667_v24 = vpop.f32.mrb[34].mxu1 }
 0x4f8   : > { %v3885_v9 = vrot.slane %v3821_v42, 7  ;;  %v3668_v57 = vadd.f32 %v12807_v1, %v3667_v24  ;;  %v3669_v28 = vpop.f32.mrb[35].mxu1 }
 0x4fa   : > { %v3822_v18 = vmax.f32 %v3668_v57, 0.0  ;;  %v12812_v58 = vsel %vm519_vm0, 0.0, %v3885_v9  ;;  %v7382_v57 = vpack.c.bf16 %v5075_v36, %v5074_v54 }
 0x4fb   : > { %v3672_v21 = vpop.f32.mrb[36].mxu1  ;;  %v4042_v7 = vrot.slane %v12812_v58, 1 }
 0x4fc   : > { %v3886_v29 = vrot.slane %v3822_v18, 7  ;;  %v3673_v37 = vadd.f32 %v12807_v1, %v3672_v21  ;;  %v3674_v44 = vpop.f32.mrb[37].mxu1  ;;  %7383 = vmatpush1.bf16.msra.mxu0 %v7382_v57 }
 0x4fd   : > { %7384 = vmatprep.subr.bf16.mxu0 %v15999_v55 }
 0x4fe   : > { %v12816_v56 = vsel %vm519_vm0, %v3885_v9, %v3886_v29  ;;  %v12819_v34 = vsel %vm519_vm0, %v3886_v29, 0.0  ;;  %v3823_v62 = vmax.f32 %v3673_v37, 0.0  ;;  %v7385_v29 = vpack.c.bf16 %v5077_v25, %v5076_v31  ;;  %v5082_v31 = vld [vmem:[%s15090_s5 + $0x50] sm:$0xff]  ;;  %v5083_v25 = vld [vmem:[%s15090_s5 + $0x58] sm:$0xff] }
 0x4ff   : > { %v4043_v20 = vrot.slane %v12816_v56, 1  ;;  %v4045_v63 = vrot.slane %v12819_v34, 1  ;;  %v3677_v23 = vpop.f32.mrb[38].mxu1  ;;  %v4208_v36 = vrot.slane %v12816_v56, 2  ;;  %v4210_v57 = vrot.slane %v12819_v34, 2  ;;  %v5084_v34 = vld [vmem:[%s15090_s5 + $0x60] sm:$0xff] }
 0x500   : > { %v3888_v8 = vrot.slane %v3823_v62, 7  ;;  %v3678_v0 = vadd.f32 %v12807_v1, %v3677_v23  ;;  %v3679_v16 = vpop.f32.mrb[39].mxu1  ;;  %7386 = vmatpush1.bf16.msra.mxu0 %v7385_v29 }
 0x501   : > { %v4044_v17 = vsel %vm685_vm1, %v4042_v7, %v4043_v20  ;;  %v4046_v10 = vsel %vm685_vm1, %v4043_v20, %v4045_v63  ;;  %v5078_v16 = vld [vmem:[%s15090_s5 + $0x30] sm:$0xff]  ;;  %7387 = vmatprep.subr.bf16.mxu0 %v15999_v55 }
 0x502   : > { %v3824_v11 = vmax.f32 %v3678_v0, 0.0  ;;  %v12833_v26 = vpack.i.bf16 %v4046_v10, %v4044_v17  ;;  %v12836_v45 = vsel %vm519_vm0, 0.0, %v3888_v8  ;;  %v5079_v17 = vld [vmem:[%s15090_s5 + $0x38] sm:$0xff] }
 0x503   : > { %v3682_v6 = vpop.f32.mrb[40].mxu1  ;;  %v4047_v27 = vrot.slane %v12836_v45, 1  ;;  %v4212_v38 = vrot.slane %v12836_v45, 2 }
 0x504   : > { %v3889_v61 = vrot.slane %v3824_v11, 7  ;;  %v3683_v33 = vadd.f32 %v12807_v1, %v3682_v6  ;;  %v3684_v13 = vpop.f32.mrb[41].mxu1  ;;  %8252 = vrot.lane.b32.xlu0 %v12833_v26, %s9349_s17 }
 0x505   : > { %v7388_v13 = vpack.c.bf16 %v5079_v17, %v5078_v16 }
 0x506   : > { %v12843_v19 = vsel %vm519_vm0, %v3888_v8, %v3889_v61  ;;  %v12846_v50 = vsel %vm519_vm0, %v3889_v61, 0.0  ;;  %v3825_v2 = vmax.f32 %v3683_v33, 0.0 }
 0x507   : > { %v4048_v49 = vrot.slane %v12843_v19, 1  ;;  %v4050_v40 = vrot.slane %v12846_v50, 1  ;;  %v3687_v3 = vpop.f32.mrb[42].mxu1  ;;  %v4213_v46 = vrot.slane %v12843_v19, 2  ;;  %7389 = vmatpush1.bf16.msra.mxu0 %v7388_v13 }
 0x508   : > { %v3891_v15 = vrot.slane %v3825_v2, 7  ;;  %v3688_v22 = vadd.f32 %v12807_v1, %v3687_v3  ;;  %v3689_v43 = vpop.f32.mrb[43].mxu1  ;;  %7390 = vmatprep.subr.bf16.mxu0 %v15999_v55 }
 0x509   : > { %v4051_v53 = vsel %vm685_vm1, %v4048_v49, %v4050_v40  ;;  %v12858_v47 = vsel %vm862_vm2, %v4212_v38, %v4213_v46  ;;  %v4049_v12 = vsel %vm685_vm1, %v4047_v27, %v4048_v49  ;;  %v5081_v27 = vld [vmem:[%s15090_s5 + $0x48] sm:$0xff] }
 0x50a   : > { %16000 = vst [vmem:[#allocation128_spill] sm:$0xff] %v12858_v47  ;;  %v3826_v39 = vmax.f32 %v3688_v22, 0.0  ;;  %7112 = vmatprep.mubr.msk.f32.mxu0 %vm1726_vm7, %v12858_v47  ;;  %v12869_v4 = vpack.i.bf16 %v4051_v53, %v4049_v12  ;;  %v12878_v32 = vsel %vm519_vm0, 0.0, %v3891_v15  ;;  %v7391_v3 = vpack.c.bf16 %v5081_v27, %v5080_v52 }
 0x50b   : > { %v3692_v41 = vpop.f32.mrb[44].mxu1  ;;  %v4052_v37 = vrot.slane %v12878_v32, 1 }
 0x50c   : > { %v3892_v42 = vrot.slane %v3826_v39, 7  ;;  %v3693_v24 = vadd.f32 %v12807_v1, %v3692_v41  ;;  %v3694_v9 = vpop.f32.mrb[45].mxu1  ;;  %8257 = vrot.lane.b32.xlu1 %v12869_v4, %s9349_s17  ;;  %7392 = vmatpush1.bf16.msra.mxu0 %v7391_v3 }
 0x50d   : > { %v4207_v9 = vrot.slane %v12812_v58, 2  ;;  %7393 = vmatprep.subr.bf16.mxu0 %v15999_v55 }
 0x50e   : > { %v12884_v28 = vsel %vm519_vm0, %v3891_v15, %v3892_v42  ;;  %v12887_v18 = vsel %vm519_vm0, %v3892_v42, 0.0  ;;  %v3827_v21 = vmax.f32 %v3693_v24, 0.0 }
 0x50f   : > { %v4053_v44 = vrot.slane %v12884_v28, 1  ;;  %v4055_v62 = vrot.slane %v12887_v18, 1  ;;  %v3697_v7 = vpop.f32.mrb[46].mxu1 }
 0x510   : > { %v3894_v20 = vrot.slane %v3827_v21, 7  ;;  %v3698_v63 = vadd.f32 %v12807_v1, %v3697_v7  ;;  %v3699_v23 = vpop.f32.mrb[47].mxu1  ;;  %v7394_v7 = vpack.c.bf16 %v5083_v25, %v5082_v31  ;;  %v5088_v25 = vld [vmem:[%s15090_s5 + $0x80] sm:$0xff] }
 0x511   : > { %v4056_v8 = vsel %vm685_vm1, %v4053_v44, %v4055_v62  ;;  %v4054_v0 = vsel %vm685_vm1, %v4052_v37, %v4053_v44  ;;  %v5085_v23 = vld [vmem:[%s15090_s5 + $0x68] sm:$0xff] }
 0x512   : > { %v3828_v10 = vmax.f32 %v3698_v63, 0.0  ;;  %v12902_v60 = vpack.i.bf16 %v4056_v8, %v4054_v0  ;;  %v12906_v11 = vsel %vm519_vm0, 0.0, %v3894_v20  ;;  %v4209_v63 = vsel %vm862_vm2, %v4207_v9, %v4208_v36  ;;  %7395 = vmatpush1.bf16.msra.mxu0 %v7394_v7 }
 0x513   : > { %v3702_v48 = vpop.f32.mrb[48].mxu1  ;;  %v4057_v38 = vrot.slane %v12906_v11, 1  ;;  %v7397_v17 = vpack.c.bf16 %v5085_v23, %v5084_v34  ;;  %7396 = vmatprep.subr.bf16.mxu0 %v15999_v55 }
 0x514   : > { %v3895_v6 = vrot.slane %v3828_v10, 7  ;;  %v3703_v61 = vadd.f32 %v12807_v1, %v3702_v48  ;;  %v3704_v33 = vpop.f32.mrb[49].mxu1  ;;  %8262 = vrot.lane.b32.xlu0 %v12902_v60, %s9349_s17 }
 0x515   : > { %v4211_v33 = vsel %vm862_vm2, %v4208_v36, %v4210_v57 }
 0x516   : > { %v12918_v2 = vsel %vm519_vm0, %v3894_v20, %v3895_v6  ;;  %v12921_v49 = vsel %vm519_vm0, %v3895_v6, 0.0  ;;  %v3829_v40 = vmax.f32 %v3703_v61, 0.0  ;;  %v8271_v20 = vpack.i.bf16 %v12816_v56, %v12812_v58  ;;  %7398 = vmatpush1.bf16.msra.mxu0 %v7397_v17 }
 0x517   : > { %v4058_v15 = vrot.slane %v12918_v2, 1  ;;  %v4060_v22 = vrot.slane %v12921_v49, 1  ;;  %v3707_v43 = vpop.f32.mrb[50].mxu1  ;;  %7399 = vmatprep.subr.bf16.mxu0 %v15999_v55 }
 0x518   : > { %v3897_v53 = vrot.slane %v3829_v40, 7  ;;  %v3708_v12 = vadd.f32 %v12807_v1, %v3707_v43  ;;  %v3709_v54 = vpop.f32.mrb[51].mxu1 }
 0x519   : > { %v4061_v39 = vsel %vm685_vm1, %v4058_v15, %v4060_v22  ;;  %v4059_v41 = vsel %vm685_vm1, %v4057_v38, %v4058_v15  ;;  %v5086_v38 = vld [vmem:[%s15090_s5 + $0x70] sm:$0xff]  ;;  %v5087_v15 = vld [vmem:[%s15090_s5 + $0x78] sm:$0xff] }
 0x51a   : > { %v3830_v42 = vmax.f32 %v3708_v12, 0.0  ;;  %v12937_v24 = vpack.i.bf16 %v4061_v39, %v4059_v41  ;;  %v12943_v29 = vsel %vm519_vm0, 0.0, %v3897_v53  ;;  %v7400_v31 = vpack.c.bf16 %v5087_v15, %v5086_v38 }
 0x51b   : > { %v3712_v21 = vpop.f32.mrb[52].mxu1  ;;  %16001 = vst [vmem:[#allocation80_spill] sm:$0xff] %v12943_v29  ;;  %v4062_v10 = vrot.slane %v12943_v29, 1 }
 0x51c   : > { %v3898_v37 = vrot.slane %v3830_v42, 7  ;;  %v3713_v44 = vadd.f32 %v12807_v1, %v3712_v21  ;;  %v3714_v62 = vpop.f32.mrb[53].mxu1  ;;  %8267 = vrot.lane.b32.xlu1 %v12937_v24, %s9349_s17  ;;  %v5089_v42 = vld [vmem:[%s15090_s5 + $0x88] sm:$0xff]  ;;  %7401 = vmatpush1.bf16.msra.mxu0 %v7400_v31 }
 0x51d   : > { %7402 = vmatprep.subr.bf16.mxu0 %v15999_v55 }
 0x51e   : > { %v12958_v8 = vsel %vm519_vm0, %v3897_v53, %v3898_v37  ;;  %v12961_v0 = vsel %vm519_vm0, %v3898_v37, 0.0  ;;  %v3831_v16 = vmax.f32 %v3713_v44, 0.0  ;;  %v8286_v53 = vpack.i.bf16 %v4211_v33, %v4209_v63 }
 0x51f   : > { %16002 = vst [vmem:[#allocation24_spill] sm:$0xff] %v12958_v8  ;;  %v4063_v48 = vrot.slane %v12958_v8, 1  ;;  %v4065_v6 = vrot.slane %v12961_v0, 1  ;;  %v3717_v61 = vpop.f32.mrb[54].mxu1  ;;  %v7403_v37 = vpack.c.bf16 %v5089_v42, %v5088_v25 }
 0x520   : > { %v3900_v13 = vrot.slane %v3831_v16, 7  ;;  %v3718_v52 = vadd.f32 %v12807_v1, %v3717_v61  ;;  %v3719_v27 = vpop.f32.mrb[55].mxu1  ;;  %8272 = vrot.lane.b32.xlu1 %v8271_v20, %s9355_s29 }
 0x521   : > { %v4066_v40 = vsel %vm685_vm1, %v4063_v48, %v4065_v6  ;;  %v4064_v3 = vsel %vm685_vm1, %v4062_v10, %v4063_v48  ;;  %v8291_v48 = vpack.i.bf16 %v12843_v19, %v12836_v45  ;;  %7404 = vmatpush1.bf16.msra.mxu0 %v7403_v37 }
 0x522   : > { %v3832_v22 = vmax.f32 %v3718_v52, 0.0  ;;  %v12978_v43 = vpack.i.bf16 %v4066_v40, %v4064_v3  ;;  %v12982_v54 = vsel %vm519_vm0, 0.0, %v3900_v13  ;;  %v4215_v3 = vrot.slane %v12846_v50, 2 }
 0x523   : > { %v3722_v12 = vpop.f32.mrb[56].mxu1  ;;  %16003 = vst [vmem:[#allocation22_spill] sm:$0xff] %v12982_v54  ;;  %v4067_v44 = vrot.slane %v12982_v54, 1 }
 0x524   : > { %v3901_v36 = vrot.slane %v3832_v22, 7  ;;  %v3723_v39 = vadd.f32 %v12807_v1, %v3722_v12  ;;  %v3724_v41 = vpop.f32.mrb[57].mxu1  ;;  %8277 = vrot.lane.b32.xlu0 %v12978_v43, %s9349_s17  ;;  %8287 = vrot.lane.b32.xlu1 %v8286_v53, %s9357_s20  ;;  %v13041_v37 = vsel %vm862_vm2, %v4213_v46, %v4215_v3  ;;  %v8331_v3 = vpack.i.bf16 %v12884_v28, %v12878_v32 }
 0x525   : > { %16007 = vst [vmem:[#allocation81_spill] sm:$0xff] %v13041_v37 }
 0x526   : > { %v12995_v9 = vsel %vm519_vm0, %v3900_v13, %v3901_v36  ;;  %v12998_v57 = vsel %vm519_vm0, %v3901_v36, 0.0  ;;  %v3833_v21 = vmax.f32 %v3723_v39, 0.0 }
 0x527   : > { %16004 = vst [vmem:[#allocation98_spill] sm:$0xff] %v12995_v9  ;;  %v4068_v62 = vrot.slane %v12995_v9, 1  ;;  %v4070_v7 = vrot.slane %v12998_v57, 1  ;;  %v3727_v20 = vpop.f32.mrb[58].mxu1 }
 0x528   : > { %v3903_v63 = vrot.slane %v3833_v21, 7  ;;  %v3728_v34 = vadd.f32 %v12807_v1, %v3727_v20  ;;  %v3729_v23 = vpop.f32.mrb[59].mxu1  ;;  %8282 = vrot.lane.b32.xlu0 %v12833_v26, %s9356_s19 }
 0x529   : > { %v4071_v16 = vsel %vm685_vm1, %v4068_v62, %v4070_v7  ;;  %v4069_v17 = vsel %vm685_vm1, %v4067_v44, %v4068_v62 }
 0x52a   : > { %v3834_v10 = vmax.f32 %v3728_v34, 0.0  ;;  %v13011_v6 = vpack.i.bf16 %v4071_v16, %v4069_v17  ;;  %v13014_v55 = vsel %vm519_vm0, 0.0, %v3903_v63  ;;  %v8326_v34 = vpack.i.bf16 %v13041_v37, %v12858_v47 }
 0x52b   : > { %v3732_v61 = vpop.f32.mrb[60].mxu1  ;;  %16005 = vst [vmem:[#allocation114_spill] sm:$0xff] %v13014_v55  ;;  %v4072_v38 = vrot.slane %v13014_v55, 1 }
 0x52c   : > { %v3904_v33 = vrot.slane %v3834_v10, 7  ;;  %v3733_v13 = vadd.f32 %v12807_v1, %v3732_v61  ;;  %v3734_v52 = vpop.f32.mrb[61].mxu1  ;;  %8292 = vrot.lane.b32.xlu0 %v8291_v48, %s9358_s21  ;;  %8297 = vrot.lane.b32.xlu1 %v13011_v6, %s9349_s17 }
 0x52e   : > { %v13021_v26 = vsel %vm519_vm0, %v3903_v63, %v3904_v33  ;;  %v13024_v27 = vsel %vm519_vm0, %v3904_v33, 0.0  ;;  %v3835_v40 = vmax.f32 %v3733_v13, 0.0 }
 0x52f   : > { %16006 = vst [vmem:[#allocation129_spill] sm:$0xff] %v13021_v26  ;;  %v4073_v15 = vrot.slane %v13021_v26, 1  ;;  %v4075_v22 = vrot.slane %v13024_v27, 1  ;;  %v3737_v12 = vpop.f32.mrb[62].mxu1 }
 0x530   : > { %v3906_v36 = vrot.slane %v3835_v40, 7  ;;  %v3738_v39 = vadd.f32 %v12807_v1, %v3737_v12  ;;  %v3739_v41 = vpop.f32.mrb[63].mxu1  ;;  %8307 = vrot.lane.b32.xlu0 %v8286_v53, %s9353_s16  ;;  %8302 = vrot.lane.b32.xlu1 %v12869_v4, %s9359_s22 }
 0x531   : > { %v4076_v31 = vsel %vm685_vm1, %v4073_v15, %v4075_v22  ;;  %v4074_v50 = vsel %vm685_vm1, %v4072_v38, %v4073_v15 }
 0x532   : > { %v3836_v25 = vmax.f32 %v3738_v39, 0.0  ;;  %v13036_v42 = vpack.i.bf16 %v4076_v31, %v4074_v50  ;;  %v13044_v44 = vsel %vm519_vm0, 0.0, %v3906_v36  ;;  %v4218_v39 = vrot.slane %v12884_v28, 2 }
 0x533   : > { %v3742_v21 = vpop.f32.mrb[64].mxu1  ;;  %16008 = vst [vmem:[#allocation25_spill] sm:$0xff] %v13044_v44  ;;  %v4077_v23 = vrot.slane %v13044_v44, 1 }
 0x534   : > { %v3907_v53 = vrot.slane %v3836_v25, 7  ;;  %v3743_v62 = vadd.f32 %v12807_v1, %v3742_v21  ;;  %v3744_v7 = vpop.f32.mrb[65].mxu1  ;;  %8317 = vrot.lane.b32.xlu0 %v13036_v42, %s9349_s17  ;;  %8312 = vrot.lane.b32.xlu1 %v8291_v48, %s9355_s29  ;;  %v4220_v25 = vrot.slane %v12887_v18, 2 }
 0x536   : > { %v13051_v20 = vsel %vm519_vm0, %v3906_v36, %v3907_v53  ;;  %v13054_v63 = vsel %vm519_vm0, %v3907_v53, 0.0  ;;  %v3837_v46 = vmax.f32 %v3743_v62, 0.0 }
 0x537   : > { %16009 = vst [vmem:[#allocation82_spill] sm:$0xff] %v13051_v20  ;;  %v4078_v16 = vrot.slane %v13051_v20, 1  ;;  %v4080_v17 = vrot.slane %v13054_v63, 1  ;;  %v3747_v10 = vpop.f32.mrb[66].mxu1 }
 0x538   : > { %v3909_v61 = vrot.slane %v3837_v46, 7  ;;  %v3748_v48 = vadd.f32 %v12807_v1, %v3747_v10  ;;  %v3749_v33 = vpop.f32.mrb[67].mxu1  ;;  %8322 = vrot.lane.b32.xlu0 %v12869_v4, %s9356_s19  ;;  %8327 = vrot.lane.b32.xlu1 %v8326_v34, %s9357_s20 }
 0x539   : > { %v4081_v13 = vsel %vm685_vm1, %v4078_v16, %v4080_v17  ;;  %v4079_v52 = vsel %vm685_vm1, %v4077_v23, %v4078_v16  ;;  %v4217_v17 = vrot.slane %v12878_v32, 2  ;;  %v13099_v33 = vsel %vm862_vm2, %v4218_v39, %v4220_v25 }
 0x53a   : > { %v3838_v40 = vmax.f32 %v3748_v48, 0.0  ;;  %v13069_v38 = vpack.i.bf16 %v4081_v13, %v4079_v52  ;;  %v13072_v22 = vsel %vm519_vm0, 0.0, %v3909_v61  ;;  %16012 = vst [vmem:[#allocation99_spill] sm:$0xff] %v13099_v33 }
 0x53b   : > { %v3752_v15 = vpop.f32.mrb[68].mxu1  ;;  %16010 = vst [vmem:[#allocation26_spill] sm:$0xff] %v13072_v22  ;;  %v4082_v21 = vrot.slane %v13072_v22, 1  ;;  %v13102_v52 = vsel %vm862_vm2, %v4217_v17, %v4218_v39 }
 0x53c   : > { %v3910_v12 = vrot.slane %v3838_v40, 7  ;;  %v3753_v36 = vadd.f32 %v12807_v1, %v3752_v15  ;;  %v3754_v4 = vpop.f32.mrb[69].mxu1  ;;  %8332 = vrot.lane.b32.xlu0 %v8331_v3, %s9358_s21  ;;  %8337 = vrot.lane.b32.xlu1 %v13069_v38, %s9349_s17  ;;  %16013 = vst [vmem:[#allocation100_spill] sm:$0xff] %v13102_v52 }
 0x53e   : > { %v13080_v41 = vsel %vm519_vm0, %v3909_v61, %v3910_v12  ;;  %v13083_v31 = vsel %vm519_vm0, %v3910_v12, 0.0  ;;  %v3839_v50 = vmax.f32 %v3753_v36, 0.0 }
 0x53f   : > { %16011 = vst [vmem:[#allocation23_spill] sm:$0xff] %v13080_v41  ;;  %v4083_v53 = vrot.slane %v13080_v41, 1  ;;  %v4085_v62 = vrot.slane %v13083_v31, 1  ;;  %v3757_v7 = vpop.f32.mrb[70].mxu1 }
 0x540   : > { %v3912_v46 = vrot.slane %v3839_v50, 7  ;;  %v3758_v23 = vadd.f32 %v12807_v1, %v3757_v7  ;;  %v3759_v16 = vpop.f32.mrb[71].mxu1  ;;  %8347 = vrot.lane.b32.xlu0 %v8326_v34, %s9353_s16  ;;  %8342 = vrot.lane.b32.xlu1 %v12902_v60, %s9359_s22  ;;  %v8366_v50 = vpack.i.bf16 %v13099_v33, %v13102_v52 }
 0x541   : > { %v4086_v18 = vsel %vm685_vm1, %v4083_v53, %v4085_v62  ;;  %v4084_v10 = vsel %vm685_vm1, %v4082_v21, %v4083_v53 }
 0x542   : > { %v3840_v61 = vmax.f32 %v3758_v23, 0.0  ;;  %v13096_v48 = vpack.i.bf16 %v4086_v18, %v4084_v10  ;;  %v13105_v34 = vsel %vm519_vm0, 0.0, %v3912_v46  ;;  %v8371_v18 = vpack.i.bf16 %v12918_v2, %v12906_v11 }
 0x543   : > { %v3762_v13 = vpop.f32.mrb[72].mxu1  ;;  %16014 = vst [vmem:[#allocation54_spill] sm:$0xff] %v13105_v34  ;;  %v4087_v25 = vrot.slane %v13105_v34, 1 }
 0x544   : > { %v3913_v40 = vrot.slane %v3840_v61, 7  ;;  %v3763_v15 = vadd.f32 %v12807_v1, %v3762_v13  ;;  %v3764_v12 = vpop.f32.mrb[73].mxu1  ;;  %8357 = vrot.lane.b32.xlu0 %v13096_v48, %s9349_s17  ;;  %8352 = vrot.lane.b32.xlu1 %v8331_v3, %s9355_s29 }
 0x545   : > { %v4223_v12 = vrot.slane %v12918_v2, 2 }
 0x546   : > { %v13112_v36 = vsel %vm519_vm0, %v3912_v46, %v3913_v40  ;;  %v13115_v4 = vsel %vm519_vm0, %v3913_v40, 0.0  ;;  %v3841_v39 = vmax.f32 %v3763_v15, 0.0 }
 0x547   : > { %16015 = vst [vmem:[#allocation115_spill] sm:$0xff] %v13112_v36  ;;  %v4088_v21 = vrot.slane %v13112_v36, 1  ;;  %v4090_v53 = vrot.slane %v13115_v4, 1  ;;  %v3767_v62 = vpop.f32.mrb[74].mxu1 }
 0x548   : > { %v3915_v7 = vrot.slane %v3841_v39, 7  ;;  %v3768_v3 = vadd.f32 %v12807_v1, %v3767_v62  ;;  %v3769_v23 = vpop.f32.mrb[75].mxu1  ;;  %8362 = vrot.lane.b32.xlu0 %v12902_v60, %s9356_s19  ;;  %8367 = vrot.lane.b32.xlu1 %v8366_v50, %s9357_s20 }
 0x549   : > { %v4091_v46 = vsel %vm685_vm1, %v4088_v21, %v4090_v53  ;;  %v4089_v16 = vsel %vm685_vm1, %v4087_v25, %v4088_v21  ;;  %v4225_v21 = vrot.slane %v12921_v49, 2 }
 0x54a   : > { %v3842_v17 = vmax.f32 %v3768_v3, 0.0  ;;  %v13130_v10 = vpack.i.bf16 %v4091_v46, %v4089_v16  ;;  %v13133_v13 = vsel %vm519_vm0, 0.0, %v3915_v7 }
 0x54b   : > { %v3772_v61 = vpop.f32.mrb[76].mxu1  ;;  %16016 = vst [vmem:[#allocation130_spill] sm:$0xff] %v13133_v13  ;;  %v4092_v53 = vrot.slane %v13133_v13, 1  ;;  %v13160_v47 = vsel %vm862_vm2, %v4223_v12, %v4225_v21 }
 0x54c   : > { %v3916_v40 = vrot.slane %v3842_v17, 7  ;;  %v3773_v15 = vadd.f32 %v12807_v1, %v3772_v61  ;;  %v3774_v60 = vpop.f32.mrb[77].mxu1  ;;  %8372 = vrot.lane.b32.xlu0 %v8371_v18, %s9358_s21  ;;  %8377 = vrot.lane.b32.xlu1 %v13130_v10, %s9349_s17  ;;  %16018 = vst [vmem:[#allocation83_spill] sm:$0xff] %v13160_v47 }
 0x54e   : > { %v13141_v39 = vsel %vm519_vm0, %v3915_v7, %v3916_v40  ;;  %v13144_v25 = vsel %vm519_vm0, %v3916_v40, 0.0  ;;  %v3843_v46 = vmax.f32 %v3773_v15, 0.0  ;;  %v4222_v7 = vrot.slane %v12906_v11, 2 }
 0x54f   : > { %16017 = vst [vmem:[#allocation131_spill] sm:$0xff] %v13141_v39  ;;  %v4093_v62 = vrot.slane %v13141_v39, 1  ;;  %v4095_v3 = vrot.slane %v13144_v25, 1  ;;  %v3777_v23 = vpop.f32.mrb[78].mxu1 }
 0x550   : > { %v3778_v16 = vadd.f32 %v12807_v1, %v3777_v23  ;;  %v3779_v17 = vpop.f32.mrb[79].mxu1  ;;  %8387 = vrot.lane.b32.xlu0 %v8366_v50, %s9353_s16  ;;  %8382 = vrot.lane.b32.xlu1 %v12937_v24, %s9359_s22  ;;  %v13163_v23 = vsel %vm862_vm2, %v4222_v7, %v4223_v12  ;;  %v13165_v50 = vrot.slane %v3843_v46, 7  ;;  %v4230_v7 = vrot.slane %v12961_v0, 2 }
 0x551   : > { %v4096_v49 = vsel %vm685_vm1, %v4093_v62, %v4095_v3  ;;  %v4094_v61 = vsel %vm685_vm1, %v4092_v53, %v4093_v62  ;;  %16019 = vst [vmem:[#allocation27_spill] sm:$0xff] %v13163_v23  ;;  %v8406_v12 = vpack.i.bf16 %v13160_v47, %v13163_v23 }
 0x552   : > { %v3844_v40 = vmax.f32 %v3778_v16, 0.0  ;;  %v13157_v60 = vpack.i.bf16 %v4096_v49, %v4094_v61  ;;  %v4228_v16 = vrot.slane %v12958_v8, 2 }
 0x553   : > { %v3782_v15 = vpop.f32.mrb[80].mxu1 }
 0x554   : > { %v13167_v17 = vrot.slane %v3844_v40, 7  ;;  %v3783_v51 = vadd.f32 %v12807_v1, %v3782_v15  ;;  %v3784_v59 = vpop.f32.mrb[81].mxu1  ;;  %8397 = vrot.lane.b32.xlu0 %v13157_v60, %s9349_s17  ;;  %8392 = vrot.lane.b32.xlu1 %v8371_v18, %s9355_s29  ;;  %v8411_v18 = vpack.i.bf16 %v12958_v8, %v12943_v29  ;;  %v13203_v0 = vsel %vm862_vm2, %v4228_v16, %v4230_v7 }
 0x555   : > { %16021 = vst [vmem:[#allocation32_spill] sm:$0xff] %v13203_v0 }
 0x556   : > { %v13176_v21 = vsel %vm519_vm0, %v13165_v50, %v13167_v17  ;;  %v3845_v62 = vmax.f32 %v3783_v51, 0.0 }
 0x557   : > { %16020 = vst [vmem:[#allocation84_spill] sm:$0xff] %v13176_v21  ;;  %v3787_v53 = vpop.f32.mrb[82].mxu1 }
 0x558   : > { %v3788_v3 = vadd.f32 %v12807_v1, %v3787_v53  ;;  %v3789_v46 = vpop.f32.mrb[83].mxu1  ;;  %8402 = vrot.lane.b32.xlu0 %v12937_v24, %s9356_s19  ;;  %8407 = vrot.lane.b32.xlu1 %v8406_v12, %s9357_s20  ;;  %v13188_v61 = vrot.slane %v3845_v62, 7  ;;  %v4227_v24 = vrot.slane %v12943_v29, 2 }
 0x55a   : > { %v3846_v59 = vmax.f32 %v3788_v3, 0.0  ;;  %v13206_v3 = vsel %vm862_vm2, %v4227_v24, %v4228_v16  ;;  %v4233_v24 = vrot.slane %v12995_v9, 2 }
 0x55b   : > { %v3792_v49 = vpop.f32.mrb[84].mxu1  ;;  %16022 = vst [vmem:[#allocation28_spill] sm:$0xff] %v13206_v3  ;;  %v8436_v30 = vpack.i.bf16 %v13203_v0, %v13206_v3 }
 0x55c   : > { %v13190_v51 = vrot.slane %v3846_v59, 7  ;;  %v3793_v40 = vadd.f32 %v12807_v1, %v3792_v49  ;;  %v3794_v15 = vpop.f32.mrb[85].mxu1  ;;  %8412 = vrot.lane.b32.xlu0 %v8411_v18, %s9358_s21  ;;  %8417 = vrot.lane.b32.xlu1 %v12978_v43, %s9359_s22 }
 0x55e   : > { %v13200_v53 = vsel %vm519_vm0, %v13188_v61, %v13190_v51  ;;  %v3847_v46 = vmax.f32 %v3793_v40, 0.0 }
 0x55f   : > { %v3797_v62 = vpop.f32.mrb[86].mxu1 }
 0x560   : > { %v3798_v59 = vadd.f32 %v12807_v1, %v3797_v62  ;;  %v3799_v49 = vpop.f32.mrb[87].mxu1  ;;  %8422 = vrot.lane.b32.xlu0 %v8406_v12, %s9353_s16  ;;  %8427 = vrot.lane.b32.xlu1 %v8411_v18, %s9355_s29  ;;  %v13213_v35 = vrot.slane %v3847_v46, 7  ;;  %v8441_v18 = vpack.i.bf16 %v12995_v9, %v12982_v54  ;;  %v4235_v62 = vrot.slane %v12998_v57, 2 }
 0x561   : > { %v4232_v49 = vrot.slane %v12982_v54, 2  ;;  %v4237_v54 = vrot.slane %v13014_v55, 2 }
 0x562   : > { %v3848_v15 = vmax.f32 %v3798_v59, 0.0 }
 0x563   : > { %v3802_v14 = vpop.f32.mrb[88].mxu1  ;;  %v13239_v9 = vsel %vm862_vm2, %v4232_v49, %v4233_v24 }
 0x564   : > { %v13215_v7 = vrot.slane %v3848_v15, 7  ;;  %v3803_v16 = vadd.f32 %v12807_v1, %v3802_v14  ;;  %8432 = vrot.lane.b32.xlu0 %v12978_v43, %s9356_s19  ;;  %8437 = vrot.lane.b32.xlu1 %v8436_v30, %s9357_s20  ;;  %v3804_v40 = vpop.f32.mrb[89].mxu1  ;;  %16024 = vst [vmem:[#allocation101_spill] sm:$0xff] %v13239_v9 }
 0x565   : > { %v13236_v40 = vsel %vm862_vm2, %v4233_v24, %v4235_v62 }
 0x566   : > { %v13224_v12 = vsel %vm519_vm0, %v13213_v35, %v13215_v7  ;;  %v3849_v14 = vmax.f32 %v3803_v16, 0.0  ;;  %16023 = vst [vmem:[#allocation29_spill] sm:$0xff] %v13236_v40  ;;  %v8466_v24 = vpack.i.bf16 %v13236_v40, %v13239_v9 }
 0x567   : > { %v3807_v46 = vpop.f32.mrb[90].mxu1 }
 0x568   : > { %v3808_v59 = vadd.f32 %v12807_v1, %v3807_v46  ;;  %8442 = vrot.lane.b32.xlu0 %v8441_v18, %s9358_s21  ;;  %8447 = vrot.lane.b32.xlu1 %v13011_v6, %s9359_s22  ;;  %v3809_v43 = vpop.f32.mrb[91].mxu1  ;;  %v13241_v57 = vrot.slane %v3849_v14, 7 }
 0x56a   : > { %v3850_v15 = vmax.f32 %v3808_v59, 0.0 }
 0x56b   : > { %v3812_v5 = vpop.f32.mrb[92].mxu1 }
 0x56c   : > { %v13243_v16 = vrot.slane %v3850_v15, 7  ;;  %v3813_v46 = vadd.f32 %v12807_v1, %v3812_v5  ;;  %8452 = vrot.lane.b32.xlu0 %v8436_v30, %s9353_s16  ;;  %8457 = vrot.lane.b32.xlu1 %v8441_v18, %s9355_s29  ;;  %v3814_v43 = vpop.f32.mrb[93].mxu1  ;;  %v4238_v5 = vrot.slane %v13021_v26, 2  ;;  %v4240_v18 = vrot.slane %v13024_v27, 2 }
 0x56e   : > { %v13251_v62 = vsel %vm519_vm0, %v13241_v57, %v13243_v16  ;;  %v3851_v59 = vmax.f32 %v3813_v46, 0.0  ;;  %v8471_v46 = vpack.i.bf16 %v13021_v26, %v13014_v55 }
 0x56f   : > { %v3817_v14 = vpop.f32.mrb[94].mxu1 }
 0x570   : > { %v3930_v49 = vrot.slane %v3851_v59, 7  ;;  %v3818_v15 = vadd.f32 %v12807_v1, %v3817_v14  ;;  %8462 = vrot.lane.b32.xlu0 %v13011_v6, %s9356_s19  ;;  %8467 = vrot.lane.b32.xlu1 %v8466_v24, %s9357_s20  ;;  %v3819_v30 = vpop.f32.mrb[95].mxu1  ;;  %v13269_v1 = vsel %vm862_vm2, %v4238_v5, %v4240_v18  ;;  %v13272_v6 = vsel %vm862_vm2, %v4237_v54, %v4238_v5 }
 0x571   : > { %16025 = vst [vmem:[#allocation102_spill] sm:$0xff] %v13269_v1  ;;  %16026 = vst [vmem:[#allocation55_spill] sm:$0xff] %v13272_v6 }
 0x572   : > { %v3852_v43 = vmax.f32 %v3818_v15, 0.0  ;;  %v3995_v59 = vsel %vm519_vm0, 0.0, %v3930_v49 }
 0x573   : > { %v4470_v27 = vrot.slane %v3995_v59, 1  ;;  %v4571_v14 = vrot.slane %v3995_v59, 2 }
 0x574   : > { %v3931_v40 = vrot.slane %v3852_v43, 7  ;;  %8472 = vrot.lane.b32.xlu0 %v8471_v46, %s9358_s21  ;;  %8477 = vrot.lane.b32.xlu1 %v13036_v42, %s9359_s22 }
 0x576   : > { %v3932_v15 = vsel %vm519_vm0, %v3930_v49, %v3931_v40  ;;  %v4011_v30 = vsel %vm519_vm0, %v3931_v40, 0.0  ;;  %v8496_v40 = vpack.i.bf16 %v13269_v1, %v13272_v6 }
 0x577   : > { %v4471_v55 = vrot.slane %v3932_v15, 1  ;;  %v4473_v26 = vrot.slane %v4011_v30, 1  ;;  %v4572_v43 = vrot.slane %v3932_v15, 2  ;;  %v4574_v29 = vrot.slane %v4011_v30, 2 }
 0x578   : > { %8482 = vrot.lane.b32.xlu0 %v8466_v24, %s9353_s16  ;;  %8487 = vrot.lane.b32.xlu1 %v8471_v46, %s9355_s29  ;;  %v13278_v8 = vpack.i.bf16 %v3932_v15, %v3995_v59  ;;  %v4243_v24 = vrot.slane %v13051_v20, 2  ;;  %v4250_v15 = vrot.slane %v13083_v31, 2 }
 0x579   : > { %v13281_v18 = vsel %vm862_vm2, %v4572_v43, %v4574_v29  ;;  %v4472_v54 = vsel %vm685_vm1, %v4470_v27, %v4471_v55  ;;  %v4474_v5 = vsel %vm685_vm1, %v4471_v55, %v4473_v26  ;;  %v13286_v49 = vsel %vm862_vm2, %v4571_v14, %v4572_v43 }
 0x57a   : > { %16027 = vst [vmem:[#allocation116_spill] sm:$0xff] %v13281_v18  ;;  %16028 = vst [vmem:[#allocation132_spill] sm:$0xff] %v13286_v49  ;;  %v13290_v30 = vpack.i.bf16 %v4474_v5, %v4472_v54  ;;  %v8501_v29 = vpack.i.bf16 %v13051_v20, %v13044_v44  ;;  %v4245_v55 = vrot.slane %v13054_v63, 2  ;;  %v4242_v26 = vrot.slane %v13044_v44, 2  ;;  %v13326_v54 = vpop.permute.xlu0 %8252 }
 0x57b   : > { %v8531_v27 = vpack.i.bf16 %v13080_v41, %v13072_v22  ;;  %v4248_v14 = vrot.slane %v13080_v41, 2  ;;  %v4247_v43 = vrot.slane %v13072_v22, 2 }
 0x57c   : > { %8492 = vrot.lane.b32.xlu0 %v13036_v42, %s9356_s19  ;;  %8497 = vrot.lane.b32.xlu1 %v8496_v40, %s9357_s20  ;;  %v13304_v46 = vsel %vm862_vm2, %v4243_v24, %v4245_v55  ;;  %v13307_v42 = vsel %vm862_vm2, %v4242_v26, %v4243_v24  ;;  %v8561_v26 = vpack.i.bf16 %v13112_v36, %v13105_v34 }
 0x57d   : > { %16029 = vst [vmem:[#allocation133_spill] sm:$0xff] %v13304_v46  ;;  %16030 = vst [vmem:[#allocation30_spill] sm:$0xff] %v13307_v42  ;;  %v8526_v63 = vpack.i.bf16 %v13304_v46, %v13307_v42  ;;  %v13331_v5 = vsel %vm862_vm2, %v4248_v14, %v4250_v15  ;;  %v16036_v46 = vld [vmem:[#allocation127_spill] sm:$0xff] }
 0x57e   : > { %v13316_v59 = vpop.permute.xlu1 %8257  ;;  %16031 = vst [vmem:[#allocation31_spill] sm:$0xff] %v13331_v5 }
 0x580   : > { %8502 = vrot.lane.b32.xlu0 %v8501_v29, %s9358_s21  ;;  %8507 = vrot.lane.b32.xlu1 %v13069_v38, %s9359_s22 }
 0x584   : > { %8512 = vrot.lane.b32.xlu0 %v8496_v40, %s9353_s16  ;;  %8517 = vrot.lane.b32.xlu1 %v8501_v29, %s9355_s29  ;;  %v13334_v40 = vsel %vm862_vm2, %v4247_v43, %v4248_v14  ;;  %v4252_v14 = vrot.slane %v13105_v34, 2 }
 0x585   : > { %16032 = vst [vmem:[#allocation33_spill] sm:$0xff] %v13334_v40  ;;  %v8556_v29 = vpack.i.bf16 %v13331_v5, %v13334_v40  ;;  %v16035_v40 = vld [vmem:[#allocation79_spill] sm:$0xff] }
 0x586   : > { %v13338_v31 = vpop.permute.xlu0 %8262 }
 0x588   : > { %8522 = vrot.lane.b32.xlu0 %v13069_v38, %s9356_s19  ;;  %8527 = vrot.lane.b32.xlu1 %v8526_v63, %s9357_s20 }
 0x58c   : > { %8532 = vrot.lane.b32.xlu0 %v8531_v27, %s9358_s21  ;;  %8537 = vrot.lane.b32.xlu1 %v13096_v48, %s9359_s22 }
 0x58e   : > { %v13328_v38 = vpop.permute.xlu1 %8267 }
 0x590   : > { %8542 = vrot.lane.b32.xlu0 %v8526_v63, %s9353_s16  ;;  %8547 = vrot.lane.b32.xlu1 %v8531_v27, %s9355_s29  ;;  %v4253_v63 = vrot.slane %v13112_v36, 2  ;;  %v4255_v27 = vrot.slane %v13115_v4, 2 }
 0x592   : > { %v8273_v24 = vpop.permute.xlu1 %8272  ;;  %v13356_v43 = vsel %vm862_vm2, %v4253_v63, %v4255_v27  ;;  %v13359_v5 = vsel %vm862_vm2, %v4252_v14, %v4253_v63 }
 0x593   : > { %16033 = vst [vmem:[#allocation34_spill] sm:$0xff] %v13356_v43  ;;  %v8275_v22 = vunpack.i.h.bf16 %v8273_v24  ;;  %v8274_v41 = vunpack.i.l.bf16 %v8273_v24  ;;  %16034 = vst [vmem:[#allocation35_spill] sm:$0xff] %v13359_v5  ;;  %v8586_v34 = vpack.i.bf16 %v13356_v43, %v13359_v5  ;;  %v4258_v43 = vrot.slane %v13141_v39, 2 }
 0x594   : > { %8552 = vrot.lane.b32.xlu0 %v13096_v48, %s9356_s19  ;;  %8557 = vrot.lane.b32.xlu1 %v8556_v29, %s9357_s20 }
 0x595   : > { %v4913_v27 = vsel %vm3342_vm13, %v16035_v40, %v8275_v22  ;;  %v4912_v24 = vsel %vm3342_vm13, %v16036_v46, %v8274_v41  ;;  %v4260_v22 = vrot.slane %v13144_v25, 2 }
 0x596   : > { %v13345_v55 = vpop.permute.xlu0 %8277  ;;  %v8288_v15 = vpop.permute.xlu1 %8287 }
 0x597   : > { %v8289_v42 = vunpack.i.l.bf16 %v8288_v15 }
 0x598   : > { %8562 = vrot.lane.b32.xlu0 %v8561_v26, %s9358_s21  ;;  %8567 = vrot.lane.b32.xlu1 %v13130_v10, %s9359_s22 }
 0x59a   : > { %v8283_v48 = vpop.permute.xlu0 %8282 }
 0x59b   : > { %v8285_v36 = vunpack.i.h.bf16 %v8283_v48  ;;  %v8284_v44 = vunpack.i.l.bf16 %v8283_v48 }
 0x59c   : > { %8572 = vrot.lane.b32.xlu0 %v8556_v29, %s9353_s16  ;;  %8577 = vrot.lane.b32.xlu1 %v8561_v26, %s9355_s29  ;;  %v8290_v26 = vunpack.i.h.bf16 %v8288_v15 }
 0x59d   : > { %v4944_v63 = vsel %vm3375_vm14, %v4912_v24, %v8284_v44  ;;  %v4945_v14 = vsel %vm3375_vm14, %v4913_v27, %v8285_v36  ;;  %v8591_v44 = vpack.i.bf16 %v13141_v39, %v13133_v13  ;;  %v4257_v24 = vrot.slane %v13133_v13, 2 }
 0x59e   : > { %v8293_v4 = vpop.permute.xlu0 %8292  ;;  %v13363_v20 = vpop.permute.xlu1 %8297  ;;  %v4977_v27 = vsel %vm3408_vm15, %v4945_v14, %v8290_v26  ;;  %v4098_v26 = vrot.slane %v13176_v21, 1 }
 0x59f   : > { %v8295_v48 = vunpack.i.h.bf16 %v8293_v4  ;;  %v8294_v29 = vunpack.i.l.bf16 %v8293_v4  ;;  %v4976_v4 = vsel %vm3408_vm15, %v4944_v63, %v8289_v42 }
 0x5a0   : > { %8582 = vrot.lane.b32.xlu0 %v13130_v10, %s9356_s19  ;;  %8587 = vrot.lane.b32.xlu1 %v8586_v34, %s9357_s20  ;;  %v4007_v10 = vsel %vm519_vm0, %v13167_v17, 0.0  ;;  %v13398_v17 = vsel %vm519_vm0, 0.0, %v13165_v50  ;;  %v13412_v50 = vsel %vm862_vm2, %v4257_v24, %v4258_v43 }
 0x5a1   : > { %v5008_v25 = vsel %vm3441_vm3, %v4976_v4, %v8294_v29  ;;  %v5009_v15 = vsel %vm3441_vm3, %v4977_v27, %v8295_v48  ;;  %16039 = vst [vmem:[#allocation40_spill] sm:$0xff] %v13398_v17  ;;  %v13406_v29 = vsel %vm862_vm2, %v4258_v43, %v4260_v22  ;;  %16041 = vst [vmem:[#allocation104_spill] sm:$0xff] %v13412_v50  ;;  %v8255_v4 = vunpack.i.h.bf16 %v13326_v54 }
 0x5a2   : > { %v8308_v40 = vpop.permute.xlu0 %8307  ;;  %v8303_v5 = vpop.permute.xlu1 %8302  ;;  %16040 = vst [vmem:[#allocation39_spill] sm:$0xff] %v13406_v29  ;;  %v8254_v22 = vunpack.i.l.bf16 %v13326_v54  ;;  %v8616_v43 = vpack.i.bf16 %v13406_v29, %v13412_v50  ;;  %v4262_v54 = vrot.slane %v13398_v17, 2 }
 0x5a3   : > { %v8305_v41 = vunpack.i.h.bf16 %v8303_v5  ;;  %v8304_v36 = vunpack.i.l.bf16 %v8303_v5  ;;  %v8310_v27 = vunpack.i.h.bf16 %v8308_v40 }
 0x5a4   : > { %8592 = vrot.lane.b32.xlu0 %v8591_v44, %s9358_s21  ;;  %8597 = vrot.lane.b32.xlu1 %v13157_v60, %s9359_s22 }
 0x5a5   : > { %v13391_v5 = vsel %vm3474_vm4, %v5008_v25, %v8304_v36  ;;  %v13394_v42 = vsel %vm3474_vm4, %v5009_v15, %v8305_v41  ;;  %v4100_v36 = vrot.slane %v4007_v10, 1  ;;  %v4097_v41 = vrot.slane %v13398_v17, 1 }
 0x5a6   : > { %16037 = vst [vmem:[#allocation36_spill] sm:$0xff] %v13391_v5  ;;  %16038 = vst [vmem:[#allocation37_spill] sm:$0xff] %v13394_v42  ;;  %v13400_v63 = vpop.permute.xlu0 %8317  ;;  %v8313_v14 = vpop.permute.xlu1 %8312  ;;  %5222 = vmatmul.mubr.f32.vlgmr.msra.gmra.mrb[0].mxu0 %v13391_v5  ;;  %v8309_v25 = vunpack.i.l.bf16 %v8308_v40  ;;  %v4263_v40 = vrot.slane %v13176_v21, 2 }
 0x5a7   : > { %7113 = vmatprep.mubr.msk.f32.mxu0 %vm1726_vm7, %v13041_v37  ;;  %v4101_v24 = vsel %vm685_vm1, %v4098_v26, %v4100_v36  ;;  %v8314_v5 = vunpack.i.l.bf16 %v8313_v14  ;;  %v4852_v36 = vsel %vm1726_vm7, %v12812_v58, %v8254_v22 }
 0x5a8   : > { %8602 = vrot.lane.b32.xlu0 %v8586_v34, %s9353_s16  ;;  %8607 = vrot.lane.b32.xlu1 %v8591_v44, %s9355_s29  ;;  %v8315_v34 = vunpack.i.h.bf16 %v8313_v14  ;;  %v4099_v44 = vsel %vm685_vm1, %v4097_v41, %v4098_v26  ;;  %v4853_v14 = vsel %vm1726_vm7, %v12816_v56, %v8255_v4  ;;  %v8621_v26 = vpack.i.bf16 %v13176_v21, %v13398_v17 }
 0x5a9   : > { %v13439_v41 = vsel %vm519_vm0, %v13190_v51, 0.0 }
 0x5aa   : > { %v8323_v15 = vpop.permute.xlu0 %8322  ;;  %v8328_v48 = vpop.permute.xlu1 %8327  ;;  %5227 = vmatmul.mubr.f32.gmra.mrb[2].mxu0 %v13394_v42  ;;  %v4265_v42 = vrot.slane %v4007_v10, 2  ;;  %v13445_v10 = vpack.i.bf16 %v4101_v24, %v4099_v44 }
 0x5ab   : > { %7114 = vmatprep.mubr.msk.f32.mxu0 %vm1726_vm7, %v13102_v52  ;;  %v8325_v37 = vunpack.i.h.bf16 %v8323_v15  ;;  %v8324_v46 = vunpack.i.l.bf16 %v8323_v15  ;;  %v4882_v15 = vsel %vm1858_vm11, %v4852_v36, %v8309_v25  ;;  %v8330_v4 = vunpack.i.h.bf16 %v8328_v48 }
 0x5ac   : > { %8612 = vrot.lane.b32.xlu0 %v13157_v60, %s9356_s19  ;;  %8617 = vrot.lane.b32.xlu1 %v8616_v43, %s9357_s20  ;;  %v4883_v60 = vsel %vm1858_vm11, %v4853_v14, %v8310_v27  ;;  %v4914_v58 = vsel %vm3342_vm13, %v4882_v15, %v8314_v5  ;;  %v8329_v22 = vunpack.i.l.bf16 %v8328_v48  ;;  %v13455_v27 = vsel %vm862_vm2, %v4263_v40, %v4265_v42 }
 0x5ad   : > { %v4915_v56 = vsel %vm3342_vm13, %v4883_v60, %v8315_v34  ;;  %v4946_v17 = vsel %vm3375_vm14, %v4914_v58, %v8324_v46  ;;  %16042 = vst [vmem:[#allocation49_spill] sm:$0xff] %v13455_v27  ;;  %v13459_v25 = vsel %vm519_vm0, 0.0, %v13188_v61  ;;  %v4103_v5 = vrot.slane %v13200_v53, 1 }
 0x5ae   : > { %v8333_v52 = vpop.permute.xlu0 %8332  ;;  %v13443_v13 = vpop.permute.xlu1 %8337  ;;  %v4947_v51 = vsel %vm3375_vm14, %v4915_v56, %v8325_v37  ;;  %v4105_v46 = vrot.slane %v13439_v41, 1  ;;  %v4978_v44 = vsel %vm3408_vm15, %v4946_v17, %v8329_v22  ;;  %v4102_v36 = vrot.slane %v13459_v25, 1 }
 0x5af   : > { %v8335_v21 = vunpack.i.h.bf16 %v8333_v52  ;;  %v8334_v39 = vunpack.i.l.bf16 %v8333_v52  ;;  %v13464_v52 = vsel %vm862_vm2, %v4262_v54, %v4263_v40  ;;  %v4979_v42 = vsel %vm3408_vm15, %v4947_v51, %v8330_v4 }
 0x5b0   : > { %8622 = vrot.lane.b32.xlu0 %v8621_v26, %s9358_s21  ;;  %8627 = vrot.lane.b32.xlu1 %v13445_v10, %s9359_s22  ;;  %16043 = vst [vmem:[#allocation48_spill] sm:$0xff] %v13464_v52  ;;  %v8260_v60 = vunpack.i.h.bf16 %v13316_v59  ;;  %v8259_v56 = vunpack.i.l.bf16 %v13316_v59 }
 0x5b1   : > { %v5010_v61 = vsel %vm3441_vm3, %v4978_v44, %v8334_v39  ;;  %v5011_v14 = vsel %vm3441_vm3, %v4979_v42, %v8335_v21  ;;  %v4106_v21 = vsel %vm685_vm1, %v4103_v5, %v4105_v46  ;;  %v8651_v46 = vpack.i.bf16 %v13200_v53, %v13459_v25 }
 0x5b2   : > { %v8348_v48 = vpop.permute.xlu0 %8347  ;;  %v8343_v37 = vpop.permute.xlu1 %8342  ;;  %v4270_v42 = vrot.slane %v13439_v41, 2 }
 0x5b3   : > { %v8345_v24 = vunpack.i.h.bf16 %v8343_v37  ;;  %v8344_v34 = vunpack.i.l.bf16 %v8343_v37  ;;  %v8350_v58 = vunpack.i.h.bf16 %v8348_v48  ;;  %v8349_v4 = vunpack.i.l.bf16 %v8348_v48 }
 0x5b4   : > { %8632 = vrot.lane.b32.xlu0 %v8616_v43, %s9353_s16  ;;  %8637 = vrot.lane.b32.xlu1 %v8621_v26, %s9355_s29  ;;  %v8646_v43 = vpack.i.bf16 %v13455_v27, %v13464_v52  ;;  %v4104_v26 = vsel %vm685_vm1, %v4102_v36, %v4103_v5  ;;  %v4268_v48 = vrot.slane %v13200_v53, 2  ;;  %v13514_v36 = vsel %vm519_vm0, %v13215_v7, 0.0 }
 0x5b5   : > { %v13474_v15 = vsel %vm3474_vm4, %v5010_v61, %v8344_v34  ;;  %v13477_v54 = vsel %vm3474_vm4, %v5011_v14, %v8345_v24  ;;  %v13498_v37 = vpack.i.bf16 %v4106_v21, %v4104_v26  ;;  %v4267_v34 = vrot.slane %v13459_v25, 2 }
 0x5b6   : > { %16044 = vst [vmem:[#allocation61_spill] sm:$0xff] %v13474_v15  ;;  %16045 = vst [vmem:[#allocation60_spill] sm:$0xff] %v13477_v54  ;;  %v13479_v40 = vpop.permute.xlu0 %8357  ;;  %v8353_v17 = vpop.permute.xlu1 %8352  ;;  %5232 = vmatmul.mubr.f32.gmra.mrb[4].mxu0 %v13474_v15  ;;  %v4855_v61 = vsel %vm1726_vm7, %v12843_v19, %v8260_v60  ;;  %v4854_v14 = vsel %vm1726_vm7, %v12836_v45, %v8259_v56 }
 0x5b7   : > { %7115 = vmatprep.mubr.msk.f32.mxu0 %vm1726_vm7, %v13099_v33  ;;  %v8355_v5 = vunpack.i.h.bf16 %v8353_v17  ;;  %v8354_v24 = vunpack.i.l.bf16 %v8353_v17  ;;  %v4884_v17 = vsel %vm1858_vm11, %v4854_v14, %v8349_v4  ;;  %v4885_v21 = vsel %vm1858_vm11, %v4855_v61, %v8350_v58 }
 0x5b8   : > { %8642 = vrot.lane.b32.xlu0 %v13445_v10, %s9356_s19  ;;  %8647 = vrot.lane.b32.xlu1 %v8646_v43, %s9357_s20  ;;  %v13528_v58 = vsel %vm862_vm2, %v4268_v48, %v4270_v42  ;;  %v13531_v4 = vsel %vm862_vm2, %v4267_v34, %v4268_v48 }
 0x5b9   : > { %v4916_v39 = vsel %vm3342_vm13, %v4884_v17, %v8354_v24  ;;  %v4917_v41 = vsel %vm3342_vm13, %v4885_v21, %v8355_v5  ;;  %16046 = vst [vmem:[#allocation58_spill] sm:$0xff] %v13528_v58  ;;  %16047 = vst [vmem:[#allocation107_spill] sm:$0xff] %v13531_v4  ;;  %v4110_v5 = vrot.slane %v13514_v36, 1  ;;  %v8681_v14 = vpack.i.bf16 %v13528_v58, %v13531_v4 }
 0x5ba   : > { %v8363_v22 = vpop.permute.xlu0 %8362  ;;  %v8368_v51 = vpop.permute.xlu1 %8367  ;;  %5237 = vmatmul.mubr.f32.gmra.mrb[6].mxu0 %v13477_v54  ;;  %v16111_v54 = vld [vmem:[#allocation79_spill] sm:$0xff] }
 0x5bb   : > { %7116 = vmatprep.mubr.msk.f32.mxu0 %vm1726_vm7, %v13163_v23  ;;  %v8365_v44 = vunpack.i.h.bf16 %v8363_v22  ;;  %v8364_v59 = vunpack.i.l.bf16 %v8363_v22  ;;  %v8370_v15 = vunpack.i.h.bf16 %v8368_v51  ;;  %v8369_v19 = vunpack.i.l.bf16 %v8368_v51 }
 0x5bc   : > { %8652 = vrot.lane.b32.xlu0 %v8651_v46, %s9358_s21  ;;  %8657 = vrot.lane.b32.xlu1 %v13498_v37, %s9359_s22  ;;  %v13535_v51 = vsel %vm519_vm0, 0.0, %v13213_v35 }
 0x5bd   : > { %v4948_v60 = vsel %vm3375_vm14, %v4916_v39, %v8364_v59  ;;  %v4949_v45 = vsel %vm3375_vm14, %v4917_v41, %v8365_v44  ;;  %v4108_v39 = vrot.slane %v13224_v12, 1  ;;  %v4107_v48 = vrot.slane %v13535_v51, 1 }
 0x5be   : > { %v8373_v26 = vpop.permute.xlu0 %8372  ;;  %v13518_v22 = vpop.permute.xlu1 %8377  ;;  %v4981_v42 = vsel %vm3408_vm15, %v4949_v45, %v8370_v15  ;;  %v8265_v15 = vunpack.i.h.bf16 %v13338_v31  ;;  %v8686_v41 = vpack.i.bf16 %v13224_v12, %v13535_v51 }
 0x5bf   : > { %v8375_v56 = vunpack.i.h.bf16 %v8373_v26  ;;  %v8374_v7 = vunpack.i.l.bf16 %v8373_v26 }
 0x5c0   : > { %8662 = vrot.lane.b32.xlu0 %v13445_v10, %s9349_s17  ;;  %8667 = vrot.lane.b32.xlu1 %v8646_v43, %s9353_s16  ;;  %v4980_v43 = vsel %vm3408_vm15, %v4948_v60, %v8369_v19  ;;  %v4111_v60 = vsel %vm685_vm1, %v4108_v39, %v4110_v5  ;;  %v13575_v5 = vsel %vm519_vm0, %v13243_v16, 0.0 }
 0x5c1   : > { %v5012_v35 = vsel %vm3441_vm3, %v4980_v43, %v8374_v7  ;;  %v5013_v34 = vsel %vm3441_vm3, %v4981_v42, %v8375_v56  ;;  %v4272_v7 = vrot.slane %v13535_v51, 2  ;;  %v4275_v43 = vrot.slane %v13514_v36, 2 }
 0x5c2   : > { %v8388_v24 = vpop.permute.xlu0 %8387  ;;  %v8383_v44 = vpop.permute.xlu1 %8382 }
 0x5c3   : > { %v8385_v59 = vunpack.i.h.bf16 %v8383_v44  ;;  %v8384_v10 = vunpack.i.l.bf16 %v8383_v44  ;;  %v8390_v45 = vunpack.i.h.bf16 %v8388_v24  ;;  %v8389_v56 = vunpack.i.l.bf16 %v8388_v24 }
 0x5c4   : > { %8672 = vrot.lane.b32.xlu0 %v8651_v46, %s9355_s29  ;;  %8677 = vrot.lane.b32.xlu1 %v13498_v37, %s9356_s19  ;;  %v8264_v46 = vunpack.i.l.bf16 %v13338_v31  ;;  %v4109_v31 = vsel %vm685_vm1, %v4107_v48, %v4108_v39  ;;  %v4857_v24 = vsel %vm1726_vm7, %v12884_v28, %v8265_v15 }
 0x5c5   : > { %v13548_v61 = vsel %vm3474_vm4, %v5012_v35, %v8384_v10  ;;  %v13553_v17 = vsel %vm3474_vm4, %v5013_v34, %v8385_v59  ;;  %v4273_v10 = vrot.slane %v13224_v12, 2  ;;  %v13582_v34 = vpack.i.bf16 %v4111_v60, %v4109_v31 }
 0x5c6   : > { %16048 = vst [vmem:[#allocation41_spill] sm:$0xff] %v13548_v61  ;;  %16049 = vst [vmem:[#allocation45_spill] sm:$0xff] %v13553_v17  ;;  %v13557_v21 = vpop.permute.xlu0 %8397  ;;  %v8393_v26 = vpop.permute.xlu1 %8392  ;;  %5242 = vmatmul.mubr.f32.gmra.mrb[8].mxu0 %v13548_v61  ;;  %v4856_v39 = vsel %vm1726_vm7, %v12878_v32, %v8264_v46  ;;  %v4887_v36 = vsel %vm1858_vm11, %v4857_v24, %v8390_v45  ;;  %v13604_v31 = vsel %vm519_vm0, 0.0, %v13241_v57 }
 0x5c7   : > { %7117 = vmatprep.mubr.msk.f32.mxu0 %vm1726_vm7, %v13160_v47  ;;  %v8395_v44 = vunpack.i.h.bf16 %v8393_v26  ;;  %v8394_v59 = vunpack.i.l.bf16 %v8393_v26  ;;  %v4886_v48 = vsel %vm1858_vm11, %v4856_v39, %v8389_v56  ;;  %v13595_v46 = vsel %vm862_vm2, %v4273_v10, %v4275_v43  ;;  %v16112_v47 = vld [vmem:[#allocation127_spill] sm:$0xff] }
 0x5c8   : > { %8682 = vrot.lane.b32.xlu0 %v8681_v14, %s9357_s20  ;;  %8687 = vrot.lane.b32.xlu1 %v8686_v41, %s9358_s21  ;;  %16050 = vst [vmem:[#allocation56_spill] sm:$0xff] %v13595_v46  ;;  %v13600_v56 = vsel %vm862_vm2, %v4272_v7, %v4273_v10  ;;  %v4112_v10 = vrot.slane %v13604_v31, 1 }
 0x5c9   : > { %v4919_v28 = vsel %vm3342_vm13, %v4887_v36, %v8395_v44  ;;  %v4918_v16 = vsel %vm3342_vm13, %v4886_v48, %v8394_v59  ;;  %16051 = vst [vmem:[#allocation57_spill] sm:$0xff] %v13600_v56  ;;  %v4113_v44 = vrot.slane %v13251_v62, 1  ;;  %v4115_v59 = vrot.slane %v13575_v5, 1 }
 0x5ca   : > { %v8403_v42 = vpop.permute.xlu0 %8402  ;;  %v8408_v35 = vpop.permute.xlu1 %8407  ;;  %5247 = vmatmul.mubr.f32.gmra.mrb[10].mxu0 %v13553_v17  ;;  %v8269_v48 = vunpack.i.l.bf16 %v13328_v38 }
 0x5cb   : > { %v8405_v26 = vunpack.i.h.bf16 %v8403_v42  ;;  %v8404_v19 = vunpack.i.l.bf16 %v8403_v42  ;;  %7118 = vmatprep.mubr.msk.f32.mxu0 %vm1726_vm7, %v13206_v3  ;;  %v8410_v32 = vunpack.i.h.bf16 %v8408_v35  ;;  %v8409_v15 = vunpack.i.l.bf16 %v8408_v35 }
 0x5cc   : > { %8692 = vrot.lane.b32.xlu0 %v13582_v34, %s9359_s22  ;;  %8697 = vrot.lane.b32.xlu1 %v13498_v37, %s9349_s17  ;;  %v8270_v37 = vunpack.i.h.bf16 %v13328_v38 }
 0x5cd   : > { %v4950_v60 = vsel %vm3375_vm14, %v4918_v16, %v8404_v19  ;;  %v4951_v45 = vsel %vm3375_vm14, %v4919_v28, %v8405_v26  ;;  %v4116_v28 = vsel %vm685_vm1, %v4113_v44, %v4115_v59  ;;  %v4858_v59 = vsel %vm1726_vm7, %v12906_v11, %v8269_v48 }
 0x5ce   : > { %v8413_v24 = vpop.permute.xlu0 %8412  ;;  %v8418_v43 = vpop.permute.xlu1 %8417  ;;  %v4982_v57 = vsel %vm3408_vm15, %v4950_v60, %v8409_v15  ;;  %v4983_v7 = vsel %vm3408_vm15, %v4951_v45, %v8410_v32  ;;  %v4859_v32 = vsel %vm1726_vm7, %v12918_v2, %v8270_v37  ;;  %v4114_v45 = vsel %vm685_vm1, %v4112_v10, %v4113_v44 }
 0x5cf   : > { %v8415_v39 = vunpack.i.h.bf16 %v8413_v24  ;;  %v8414_v42 = vunpack.i.l.bf16 %v8413_v24  ;;  %v8420_v19 = vunpack.i.h.bf16 %v8418_v43  ;;  %v8419_v35 = vunpack.i.l.bf16 %v8418_v43 }
 0x5d0   : > { %8702 = vrot.lane.b32.xlu0 %v8681_v14, %s9353_s16  ;;  %8707 = vrot.lane.b32.xlu1 %v8686_v41, %s9355_s29  ;;  %v8716_v14 = vpack.i.bf16 %v13595_v46, %v13600_v56  ;;  %v8721_v11 = vpack.i.bf16 %v13251_v62, %v13604_v31 }
 0x5d1   : > { %v5014_v36 = vsel %vm3441_vm3, %v4982_v57, %v8414_v42  ;;  %v5015_v26 = vsel %vm3441_vm3, %v4983_v7, %v8415_v39  ;;  %v13644_v57 = vpack.i.bf16 %v4116_v28, %v4114_v45  ;;  %v4278_v28 = vrot.slane %v13251_v62, 2 }
 0x5d2   : > { %v8423_v16 = vpop.permute.xlu0 %8422  ;;  %v8428_v24 = vpop.permute.xlu1 %8427  ;;  %v13619_v38 = vsel %vm3474_vm4, %v5014_v36, %v8419_v35  ;;  %v13624_v41 = vsel %vm3474_vm4, %v5015_v26, %v8420_v19 }
 0x5d3   : > { %16052 = vst [vmem:[#allocation59_spill] sm:$0xff] %v13619_v38  ;;  %16053 = vst [vmem:[#allocation63_spill] sm:$0xff] %v13624_v41  ;;  %v8425_v15 = vunpack.i.h.bf16 %v8423_v16  ;;  %v8424_v60 = vunpack.i.l.bf16 %v8423_v16  ;;  %5252 = vmatmul.mubr.f32.gmra.mrb[12].mxu0 %v13619_v38  ;;  %v8430_v43 = vunpack.i.h.bf16 %v8428_v24  ;;  %v8429_v39 = vunpack.i.l.bf16 %v8428_v24 }
 0x5d4   : > { %8712 = vrot.lane.b32.xlu0 %v13582_v34, %s9356_s19  ;;  %8717 = vrot.lane.b32.xlu1 %v8716_v14, %s9357_s20 }
 0x5d5   : > { %v4888_v2 = vsel %vm1858_vm11, %v4858_v59, %v8424_v60  ;;  %v4889_v37 = vsel %vm1858_vm11, %v4859_v32, %v8425_v15  ;;  %7119 = vmatprep.mubr.msk.f32.mxu0 %vm1726_vm7, %v13203_v0  ;;  %v4280_v32 = vrot.slane %v13575_v5, 2  ;;  %v8280_v15 = vunpack.i.h.bf16 %v13345_v55 }
 0x5d6   : > { %v8433_v44 = vpop.permute.xlu0 %8432  ;;  %v8438_v19 = vpop.permute.xlu1 %8437  ;;  %v4920_v7 = vsel %vm3342_vm13, %v4888_v2, %v8429_v39  ;;  %v4921_v10 = vsel %vm3342_vm13, %v4889_v37, %v8430_v43  ;;  %v4277_v37 = vrot.slane %v13604_v31, 2 }
 0x5d7   : > { %v8435_v35 = vunpack.i.h.bf16 %v8433_v44  ;;  %v8434_v48 = vunpack.i.l.bf16 %v8433_v44  ;;  %5257 = vmatmul.mubr.f32.gmra.mrb[14].mxu0 %v13624_v41  ;;  %v8440_v36 = vunpack.i.h.bf16 %v8438_v19  ;;  %v8439_v26 = vunpack.i.l.bf16 %v8438_v19 }
 0x5d8   : > { %7120 = vmatprep.mubr.msk.f32.mxu0 %vm1726_vm7, %v13239_v9  ;;  %8722 = vrot.lane.b32.xlu0 %v8721_v11, %s9358_s21  ;;  %v8279_v44 = vunpack.i.l.bf16 %v13345_v55 }
 0x5d9   : > { %v4952_v16 = vsel %vm3375_vm14, %v4920_v7, %v8434_v48  ;;  %v4953_v24 = vsel %vm3375_vm14, %v4921_v10, %v8435_v35  ;;  %8727 = vrot.lane.b32.xlu1 %v13644_v57, %s9359_s22  ;;  %v13668_v7 = vsel %vm862_vm2, %v4278_v28, %v4280_v32  ;;  %v16059_v32 = vld [vmem:[#allocation80_spill] sm:$0xff] }
 0x5da   : > { %v8443_v60 = vpop.permute.xlu0 %8442  ;;  %v8448_v45 = vpop.permute.xlu1 %8447  ;;  %v4984_v19 = vsel %vm3408_vm15, %v4952_v16, %v8439_v26  ;;  %v4985_v35 = vsel %vm3408_vm15, %v4953_v24, %v8440_v36  ;;  %16054 = vst [vmem:[#allocation65_spill] sm:$0xff] %v13668_v7  ;;  %v13677_v26 = vsel %vm862_vm2, %v4277_v37, %v4278_v28  ;;  %v16058_v36 = vld [vmem:[#allocation24_spill] sm:$0xff] }
 0x5db   : > { %v8445_v59 = vunpack.i.h.bf16 %v8443_v60  ;;  %v8444_v43 = vunpack.i.l.bf16 %v8443_v60  ;;  %v8450_v39 = vunpack.i.h.bf16 %v8448_v45  ;;  %v8449_v2 = vunpack.i.l.bf16 %v8448_v45  ;;  %16057 = vst [vmem:[#allocation117_spill] sm:$0xff] %v13677_v26 }
 0x5dc   : > { %8732 = vrot.lane.b32.xlu0 %v13582_v34, %s9349_s17  ;;  %v4860_v45 = vsel %vm1726_vm7, %v16059_v32, %v8279_v44  ;;  %v8751_v44 = vpack.i.bf16 %v13668_v7, %v13677_v26 }
 0x5dd   : > { %8737 = vrot.lane.b32.xlu1 %v8716_v14, %s9353_s16  ;;  %v5016_v5 = vsel %vm3441_vm3, %v4984_v19, %v8444_v43  ;;  %v5017_v48 = vsel %vm3441_vm3, %v4985_v35, %v8445_v59  ;;  %v4861_v14 = vsel %vm1726_vm7, %v16058_v36, %v8280_v15 }
 0x5de   : > { %v8453_v10 = vpop.permute.xlu0 %8452  ;;  %v8458_v60 = vpop.permute.xlu1 %8457  ;;  %v13671_v55 = vsel %vm3474_vm4, %v5016_v5, %v8449_v2  ;;  %v13674_v34 = vsel %vm3474_vm4, %v5017_v48, %v8450_v39  ;;  %v16060_v2 = vld [vmem:[#allocation29_spill] sm:$0xff] }
 0x5df   : > { %16055 = vst [vmem:[#allocation42_spill] sm:$0xff] %v13671_v55  ;;  %16056 = vst [vmem:[#allocation62_spill] sm:$0xff] %v13674_v34  ;;  %v8455_v16 = vunpack.i.h.bf16 %v8453_v10  ;;  %v8454_v24 = vunpack.i.l.bf16 %v8453_v10  ;;  %5262 = vmatmul.mubr.f32.gmra.mrb[16].mxu0 %v13671_v55  ;;  %v8460_v59 = vunpack.i.h.bf16 %v8458_v60  ;;  %v8459_v43 = vunpack.i.l.bf16 %v8458_v60 }
 0x5e0   : > { %7121 = vmatprep.mubr.msk.f32.mxu0 %vm1726_vm7, %v16060_v2  ;;  %8742 = vrot.lane.b32.xlu0 %v8721_v11, %s9355_s29 }
 0x5e1   : > { %v4890_v39 = vsel %vm1858_vm11, %v4860_v45, %v8454_v24  ;;  %v4891_v15 = vsel %vm1858_vm11, %v4861_v14, %v8455_v16  ;;  %8747 = vrot.lane.b32.xlu1 %v13644_v57, %s9356_s19  ;;  %v8300_v16 = vunpack.i.h.bf16 %v13363_v20 }
 0x5e2   : > { %v8463_v37 = vpop.permute.xlu0 %8462  ;;  %v8468_v19 = vpop.permute.xlu1 %8467  ;;  %v4923_v11 = vsel %vm3342_vm13, %v4891_v15, %v8460_v59  ;;  %v4922_v48 = vsel %vm3342_vm13, %v4890_v39, %v8459_v43  ;;  %v8299_v15 = vunpack.i.l.bf16 %v13363_v20 }
 0x5e3   : > { %v8465_v35 = vunpack.i.h.bf16 %v8463_v37  ;;  %v8464_v5 = vunpack.i.l.bf16 %v8463_v37  ;;  %5267 = vmatmul.mubr.f32.gmra.mrb[18].mxu0 %v13674_v34  ;;  %v8470_v10 = vunpack.i.h.bf16 %v8468_v19  ;;  %v8469_v60 = vunpack.i.l.bf16 %v8468_v19 }
 0x5e4   : > { %7122 = vmatprep.mubr.msk.f32.mxu0 %vm1726_vm7, %v13272_v6  ;;  %8752 = vrot.lane.b32.xlu0 %v8751_v44, %s9357_s20 }
 0x5e5   : > { %v4954_v36 = vsel %vm3375_vm14, %v4922_v48, %v8464_v5  ;;  %v4955_v14 = vsel %vm3375_vm14, %v4923_v11, %v8465_v35  ;;  %8757 = vrot.lane.b32.xlu1 %v13278_v8, %s9358_s21 }
 0x5e6   : > { %v8473_v24 = vpop.permute.xlu0 %8472  ;;  %v8478_v32 = vpop.permute.xlu1 %8477  ;;  %v4986_v37 = vsel %vm3408_vm15, %v4954_v36, %v8469_v60  ;;  %v4987_v19 = vsel %vm3408_vm15, %v4955_v14, %v8470_v10 }
 0x5e7   : > { %v8475_v45 = vunpack.i.h.bf16 %v8473_v24  ;;  %v8474_v59 = vunpack.i.l.bf16 %v8473_v24  ;;  %v8480_v43 = vunpack.i.h.bf16 %v8478_v32  ;;  %v8479_v39 = vunpack.i.l.bf16 %v8478_v32  ;;  %v16063_v32 = vld [vmem:[#allocation98_spill] sm:$0xff] }
 0x5e8   : > { %8762 = vrot.lane.b32.xlu0 %v13290_v30, %s9359_s22  ;;  %v4863_v60 = vsel %vm1726_vm7, %v16063_v32, %v8300_v16 }
 0x5e9   : > { %8767 = vrot.lane.b32.xlu1 %v13644_v57, %s9349_s17  ;;  %v5018_v35 = vsel %vm3441_vm3, %v4986_v37, %v8474_v59  ;;  %v5019_v5 = vsel %vm3441_vm3, %v4987_v19, %v8475_v45  ;;  %v16064_v57 = vld [vmem:[#allocation22_spill] sm:$0xff] }
 0x5ea   : > { %v8483_v11 = vpop.permute.xlu0 %8482  ;;  %v8488_v48 = vpop.permute.xlu1 %8487  ;;  %v13716_v24 = vsel %vm3474_vm4, %v5018_v35, %v8479_v39  ;;  %v13719_v20 = vsel %vm3474_vm4, %v5019_v5, %v8480_v43  ;;  %v4862_v14 = vsel %vm1726_vm7, %v16064_v57, %v8299_v15  ;;  %v8786_v5 = vpack.i.bf16 %v13281_v18, %v13286_v49 }
 0x5eb   : > { %16061 = vst [vmem:[#allocation87_spill] sm:$0xff] %v13716_v24  ;;  %16062 = vst [vmem:[#allocation118_spill] sm:$0xff] %v13719_v20  ;;  %v8485_v36 = vunpack.i.h.bf16 %v8483_v11  ;;  %v8484_v10 = vunpack.i.l.bf16 %v8483_v11  ;;  %5272 = vmatmul.mubr.f32.gmra.mrb[20].mxu0 %v13716_v24  ;;  %v8490_v59 = vunpack.i.h.bf16 %v8488_v48  ;;  %v8489_v45 = vunpack.i.l.bf16 %v8488_v48 }
 0x5ec   : > { %7123 = vmatprep.mubr.msk.f32.mxu0 %vm1726_vm7, %v13269_v1  ;;  %8772 = vrot.lane.b32.xlu0 %v8751_v44, %s9353_s16 }
 0x5ed   : > { %v4892_v39 = vsel %vm1858_vm11, %v4862_v14, %v8484_v10  ;;  %v4893_v16 = vsel %vm1858_vm11, %v4863_v60, %v8485_v36  ;;  %8777 = vrot.lane.b32.xlu1 %v13278_v8, %s9355_s29  ;;  %v16065_v10 = vld [vmem:[#allocation30_spill] sm:$0xff]  ;;  %v8320_v36 = vunpack.i.h.bf16 %v13400_v63 }
 0x5ee   : > { %v8493_v37 = vpop.permute.xlu0 %8492  ;;  %v8498_v19 = vpop.permute.xlu1 %8497  ;;  %v4924_v44 = vsel %vm3342_vm13, %v4892_v39, %v8489_v45  ;;  %v4925_v11 = vsel %vm3342_vm13, %v4893_v16, %v8490_v59 }
 0x5ef   : > { %v8495_v15 = vunpack.i.h.bf16 %v8493_v37  ;;  %v8494_v35 = vunpack.i.l.bf16 %v8493_v37  ;;  %5277 = vmatmul.mubr.f32.gmra.mrb[22].mxu0 %v13719_v20  ;;  %v8500_v48 = vunpack.i.h.bf16 %v8498_v19  ;;  %v8499_v32 = vunpack.i.l.bf16 %v8498_v19 }
 0x5f0   : > { %7124 = vmatprep.mubr.msk.f32.mxu0 %vm1726_vm7, %v16065_v10  ;;  %8782 = vrot.lane.b32.xlu0 %v13290_v30, %s9356_s19  ;;  %v8319_v37 = vunpack.i.l.bf16 %v13400_v63 }
 0x5f1   : > { %v4956_v8 = vsel %vm3375_vm14, %v4924_v44, %v8494_v35  ;;  %v4957_v60 = vsel %vm3375_vm14, %v4925_v11, %v8495_v15  ;;  %8787 = vrot.lane.b32.xlu1 %v8786_v5, %s9357_s20 }
 0x5f2   : > { %v8503_v57 = vpop.permute.xlu0 %8502  ;;  %v8508_v14 = vpop.permute.xlu1 %8507  ;;  %v4988_v19 = vsel %vm3408_vm15, %v4956_v8, %v8499_v32  ;;  %v4989_v30 = vsel %vm3408_vm15, %v4957_v60, %v8500_v48  ;;  %v16069_v48 = vld [vmem:[#allocation114_spill] sm:$0xff] }
 0x5f3   : > { %v8505_v45 = vunpack.i.h.bf16 %v8503_v57  ;;  %v8504_v59 = vunpack.i.l.bf16 %v8503_v57  ;;  %v8510_v39 = vunpack.i.h.bf16 %v8508_v14  ;;  %v8509_v16 = vunpack.i.l.bf16 %v8508_v14  ;;  %v16068_v57 = vld [vmem:[#allocation129_spill] sm:$0xff] }
 0x5f4   : > { %v4865_v14 = vsel %vm1726_vm7, %v16068_v57, %v8320_v36  ;;  %v4864_v32 = vsel %vm1726_vm7, %v16069_v48, %v8319_v37  ;;  %v16071_v57 = vld [vmem:[#allocation33_spill] sm:$0xff] }
 0x5f5   : > { %v5020_v35 = vsel %vm3441_vm3, %v4988_v19, %v8504_v59  ;;  %v5021_v15 = vsel %vm3441_vm3, %v4989_v30, %v8505_v45  ;;  %v16070_v45 = vld [vmem:[#allocation133_spill] sm:$0xff] }
 0x5f6   : > { %v8513_v44 = vpop.permute.xlu0 %8512  ;;  %v8518_v5 = vpop.permute.xlu1 %8517  ;;  %v13754_v11 = vsel %vm3474_vm4, %v5020_v35, %v8509_v16  ;;  %v13757_v43 = vsel %vm3474_vm4, %v5021_v15, %v8510_v39 }
 0x5f7   : > { %16066 = vst [vmem:[#allocation106_spill] sm:$0xff] %v13754_v11  ;;  %16067 = vst [vmem:[#allocation119_spill] sm:$0xff] %v13757_v43  ;;  %v8515_v63 = vunpack.i.h.bf16 %v8513_v44  ;;  %v8514_v28 = vunpack.i.l.bf16 %v8513_v44  ;;  %5282 = vmatmul.mubr.f32.gmra.mrb[24].mxu0 %v13754_v11  ;;  %v8520_v8 = vunpack.i.h.bf16 %v8518_v5  ;;  %v8519_v60 = vunpack.i.l.bf16 %v8518_v5 }
 0x5f8   : > { %7125 = vmatprep.mubr.msk.f32.mxu0 %vm1726_vm7, %v16070_v45 }
 0x5f9   : > { %v4894_v39 = vsel %vm1858_vm11, %v4864_v32, %v8514_v28  ;;  %v4895_v16 = vsel %vm1858_vm11, %v4865_v14, %v8515_v63  ;;  %v8340_v14 = vunpack.i.h.bf16 %v13443_v13 }
 0x5fa   : > { %v8523_v36 = vpop.permute.xlu0 %8522  ;;  %v8528_v19 = vpop.permute.xlu1 %8527  ;;  %v4927_v37 = vsel %vm3342_vm13, %v4895_v16, %v8520_v8  ;;  %v4926_v15 = vsel %vm3342_vm13, %v4894_v39, %v8519_v60  ;;  %v8339_v8 = vunpack.i.l.bf16 %v13443_v13 }
 0x5fb   : > { %v8525_v30 = vunpack.i.h.bf16 %v8523_v36  ;;  %v8524_v35 = vunpack.i.l.bf16 %v8523_v36  ;;  %5287 = vmatmul.mubr.f32.gmra.mrb[26].mxu0 %v13757_v43  ;;  %v8530_v44 = vunpack.i.h.bf16 %v8528_v19  ;;  %v8529_v5 = vunpack.i.l.bf16 %v8528_v19 }
 0x5fc   : > { %7126 = vmatprep.mubr.msk.f32.mxu0 %vm1726_vm7, %v16071_v57 }
 0x5fd   : > { %v4958_v48 = vsel %vm3375_vm14, %v4926_v15, %v8524_v35  ;;  %v4959_v28 = vsel %vm3375_vm14, %v4927_v37, %v8525_v30 }
 0x5fe   : > { %v8533_v63 = vpop.permute.xlu0 %8532  ;;  %v8538_v32 = vpop.permute.xlu1 %8537  ;;  %v4990_v60 = vsel %vm3408_vm15, %v4958_v48, %v8529_v5  ;;  %v4991_v39 = vsel %vm3408_vm15, %v4959_v28, %v8530_v44  ;;  %v16075_v44 = vld [vmem:[#allocation25_spill] sm:$0xff]  ;;  %v16076_v28 = vld [vmem:[#allocation31_spill] sm:$0xff] }
 0x5ff   : > { %v8535_v36 = vunpack.i.h.bf16 %v8533_v63  ;;  %v8534_v59 = vunpack.i.l.bf16 %v8533_v63  ;;  %v8540_v42 = vunpack.i.h.bf16 %v8538_v32  ;;  %v8539_v11 = vunpack.i.l.bf16 %v8538_v32  ;;  %v16074_v63 = vld [vmem:[#allocation82_spill] sm:$0xff] }
 0x600   : > { %v4867_v32 = vsel %vm1726_vm7, %v16074_v63, %v8340_v14  ;;  %v16077_v63 = vld [vmem:[#allocation35_spill] sm:$0xff] }
 0x601   : > { %v5022_v16 = vsel %vm3441_vm3, %v4990_v60, %v8534_v59  ;;  %v5023_v19 = vsel %vm3441_vm3, %v4991_v39, %v8535_v36  ;;  %v4866_v59 = vsel %vm1726_vm7, %v16075_v44, %v8339_v8 }
 0x602   : > { %v8543_v35 = vpop.permute.xlu0 %8542  ;;  %v8548_v30 = vpop.permute.xlu1 %8547  ;;  %v13784_v37 = vsel %vm3474_vm4, %v5022_v16, %v8539_v11  ;;  %v13787_v15 = vsel %vm3474_vm4, %v5023_v19, %v8540_v42 }
 0x603   : > { %16072 = vst [vmem:[#allocation89_spill] sm:$0xff] %v13784_v37  ;;  %16073 = vst [vmem:[#allocation3_spill] sm:$0xff] %v13787_v15  ;;  %v8545_v13 = vunpack.i.h.bf16 %v8543_v35  ;;  %v8544_v43 = vunpack.i.l.bf16 %v8543_v35  ;;  %5292 = vmatmul.mubr.f32.gmra.mrb[28].mxu0 %v13784_v37  ;;  %v8550_v5 = vunpack.i.h.bf16 %v8548_v30  ;;  %v8549_v48 = vunpack.i.l.bf16 %v8548_v30 }
 0x604   : > { %7127 = vmatprep.mubr.msk.f32.mxu0 %vm1726_vm7, %v16076_v28 }
 0x605   : > { %v4896_v42 = vsel %vm1858_vm11, %v4866_v59, %v8544_v43  ;;  %v4897_v36 = vsel %vm1858_vm11, %v4867_v32, %v8545_v13  ;;  %v8360_v32 = vunpack.i.h.bf16 %v13479_v40 }
 0x606   : > { %v8553_v14 = vpop.permute.xlu0 %8552  ;;  %v8558_v60 = vpop.permute.xlu1 %8557  ;;  %v4928_v8 = vsel %vm3342_vm13, %v4896_v42, %v8549_v48  ;;  %v4929_v19 = vsel %vm3342_vm13, %v4897_v36, %v8550_v5  ;;  %v8359_v48 = vunpack.i.l.bf16 %v13479_v40 }
 0x607   : > { %v8555_v39 = vunpack.i.h.bf16 %v8553_v14  ;;  %v8554_v16 = vunpack.i.l.bf16 %v8553_v14  ;;  %5297 = vmatmul.mubr.f32.gmra.mrb[30].mxu0 %v13787_v15  ;;  %v8560_v35 = vunpack.i.h.bf16 %v8558_v60  ;;  %v8559_v30 = vunpack.i.l.bf16 %v8558_v60 }
 0x608   : > { %7128 = vmatprep.mubr.msk.f32.mxu0 %vm1726_vm7, %v16077_v63 }
 0x609   : > { %v4960_v44 = vsel %vm3375_vm14, %v4928_v8, %v8554_v16  ;;  %v4961_v43 = vsel %vm3375_vm14, %v4929_v19, %v8555_v39 }
 0x60a   : > { %v8563_v13 = vpop.permute.xlu0 %8562  ;;  %v8568_v59 = vpop.permute.xlu1 %8567  ;;  %v4992_v5 = vsel %vm3408_vm15, %v4960_v44, %v8559_v30  ;;  %v4993_v42 = vsel %vm3408_vm15, %v4961_v43, %v8560_v35  ;;  %v16081_v35 = vld [vmem:[#allocation26_spill] sm:$0xff] }
 0x60b   : > { %v8565_v14 = vunpack.i.h.bf16 %v8563_v13  ;;  %v8564_v11 = vunpack.i.l.bf16 %v8563_v13  ;;  %v8570_v37 = vunpack.i.h.bf16 %v8568_v59  ;;  %v8569_v15 = vunpack.i.l.bf16 %v8568_v59  ;;  %v16080_v13 = vld [vmem:[#allocation23_spill] sm:$0xff]  ;;  %v16082_v43 = vld [vmem:[#allocation34_spill] sm:$0xff] }
 0x60c   : > { %v4869_v59 = vsel %vm1726_vm7, %v16080_v13, %v8360_v32 }
 0x60d   : > { %v5024_v36 = vsel %vm3441_vm3, %v4992_v5, %v8564_v11  ;;  %v5025_v60 = vsel %vm3441_vm3, %v4993_v42, %v8565_v14  ;;  %v4868_v11 = vsel %vm1726_vm7, %v16081_v35, %v8359_v48 }
 0x60e   : > { %v8573_v16 = vpop.permute.xlu0 %8572  ;;  %v8578_v39 = vpop.permute.xlu1 %8577  ;;  %v13814_v8 = vsel %vm3474_vm4, %v5024_v36, %v8569_v15  ;;  %v13817_v19 = vsel %vm3474_vm4, %v5025_v60, %v8570_v37 }
 0x60f   : > { %16078 = vst [vmem:[#allocation2_spill] sm:$0xff] %v13814_v8  ;;  %16079 = vst [vmem:[#allocation38_spill] sm:$0xff] %v13817_v19  ;;  %v8575_v40 = vunpack.i.h.bf16 %v8573_v16  ;;  %v8574_v63 = vunpack.i.l.bf16 %v8573_v16  ;;  %5302 = vmatmul.mubr.f32.gmra.mrb[32].mxu0 %v13814_v8  ;;  %v8580_v30 = vunpack.i.h.bf16 %v8578_v39  ;;  %v8579_v44 = vunpack.i.l.bf16 %v8578_v39 }
 0x610   : > { %7129 = vmatprep.mubr.msk.f32.mxu0 %vm1726_vm7, %v16082_v43 }
 0x611   : > { %v4898_v37 = vsel %vm1858_vm11, %v4868_v11, %v8574_v63  ;;  %v4899_v14 = vsel %vm1858_vm11, %v4869_v59, %v8575_v40  ;;  %v8380_v59 = vunpack.i.h.bf16 %v13518_v22 }
 0x612   : > { %v8583_v32 = vpop.permute.xlu0 %8582  ;;  %v8588_v5 = vpop.permute.xlu1 %8587  ;;  %v4931_v48 = vsel %vm3342_vm13, %v4899_v14, %v8580_v30  ;;  %v4930_v60 = vsel %vm3342_vm13, %v4898_v37, %v8579_v44  ;;  %v8379_v30 = vunpack.i.l.bf16 %v13518_v22 }
 0x613   : > { %v8585_v42 = vunpack.i.h.bf16 %v8583_v32  ;;  %v8584_v36 = vunpack.i.l.bf16 %v8583_v32  ;;  %5307 = vmatmul.mubr.f32.gmra.mrb[34].mxu0 %v13817_v19  ;;  %v8590_v16 = vunpack.i.h.bf16 %v8588_v5  ;;  %v8589_v39 = vunpack.i.l.bf16 %v8588_v5 }
 0x614   : > { %7130 = vmatprep.mubr.msk.f32.mxu0 %vm1726_vm7, %v13412_v50 }
 0x615   : > { %v4962_v13 = vsel %vm3375_vm14, %v4930_v60, %v8584_v36  ;;  %v4963_v63 = vsel %vm3375_vm14, %v4931_v48, %v8585_v42 }
 0x616   : > { %v8593_v40 = vpop.permute.xlu0 %8592  ;;  %v8598_v35 = vpop.permute.xlu1 %8597  ;;  %v4994_v44 = vsel %vm3408_vm15, %v4962_v13, %v8589_v39  ;;  %v4995_v37 = vsel %vm3408_vm15, %v4963_v63, %v8590_v16  ;;  %v16086_v16 = vld [vmem:[#allocation54_spill] sm:$0xff] }
 0x617   : > { %v8595_v11 = vunpack.i.h.bf16 %v8593_v40  ;;  %v8594_v32 = vunpack.i.l.bf16 %v8593_v40  ;;  %v8600_v15 = vunpack.i.h.bf16 %v8598_v35  ;;  %v8599_v8 = vunpack.i.l.bf16 %v8598_v35  ;;  %v16085_v40 = vld [vmem:[#allocation115_spill] sm:$0xff] }
 0x618   : > { %v4871_v35 = vsel %vm1726_vm7, %v16085_v40, %v8380_v59  ;;  %v4870_v39 = vsel %vm1726_vm7, %v16086_v16, %v8379_v30  ;;  %v8400_v40 = vunpack.i.h.bf16 %v13557_v21 }
 0x619   : > { %v5026_v14 = vsel %vm3441_vm3, %v4994_v44, %v8594_v32  ;;  %v5027_v5 = vsel %vm3441_vm3, %v4995_v37, %v8595_v11 }
 0x61a   : > { %v8603_v36 = vpop.permute.xlu0 %8602  ;;  %v8608_v42 = vpop.permute.xlu1 %8607  ;;  %v13844_v48 = vsel %vm3474_vm4, %v5026_v14, %v8599_v8  ;;  %v13847_v60 = vsel %vm3474_vm4, %v5027_v5, %v8600_v15 }
 0x61b   : > { %16083 = vst [vmem:[#allocation134_spill] sm:$0xff] %v13844_v48  ;;  %16084 = vst [vmem:[#allocation4_spill] sm:$0xff] %v13847_v60  ;;  %v8605_v22 = vunpack.i.h.bf16 %v8603_v36  ;;  %v8604_v19 = vunpack.i.l.bf16 %v8603_v36  ;;  %5312 = vmatmul.mubr.f32.gmra.mrb[36].mxu0 %v13844_v48  ;;  %v8610_v13 = vunpack.i.h.bf16 %v8608_v42  ;;  %v8609_v63 = vunpack.i.l.bf16 %v8608_v42 }
 0x61c   : > { %7131 = vmatprep.mubr.msk.f32.mxu0 %vm1726_vm7, %v13406_v29 }
 0x61d   : > { %v4900_v15 = vsel %vm1858_vm11, %v4870_v39, %v8604_v19  ;;  %v4901_v11 = vsel %vm1858_vm11, %v4871_v35, %v8605_v22 }
 0x61e   : > { %v8613_v59 = vpop.permute.xlu0 %8612  ;;  %v8618_v32 = vpop.permute.xlu1 %8617  ;;  %v4932_v30 = vsel %vm3342_vm13, %v4900_v15, %v8609_v63  ;;  %v4933_v14 = vsel %vm3342_vm13, %v4901_v11, %v8610_v13  ;;  %v8399_v63 = vunpack.i.l.bf16 %v13557_v21 }
 0x61f   : > { %v8615_v44 = vunpack.i.h.bf16 %v8613_v59  ;;  %v8614_v37 = vunpack.i.l.bf16 %v8613_v59  ;;  %5317 = vmatmul.mubr.f32.gmra.mrb[38].mxu0 %v13847_v60  ;;  %v8620_v5 = vunpack.i.h.bf16 %v8618_v32  ;;  %v8619_v36 = vunpack.i.l.bf16 %v8618_v32 }
 0x620   : > { %7132 = vmatprep.mubr.msk.f32.mxu0 %vm1726_vm7, %v13464_v52 }
 0x621   : > { %v4964_v42 = vsel %vm3375_vm14, %v4932_v30, %v8614_v37  ;;  %v4965_v19 = vsel %vm3375_vm14, %v4933_v14, %v8615_v44 }
 0x622   : > { %v8623_v35 = vpop.permute.xlu0 %8622  ;;  %v8628_v22 = vpop.permute.xlu1 %8627  ;;  %v4996_v13 = vsel %vm3408_vm15, %v4964_v42, %v8619_v36  ;;  %v4997_v15 = vsel %vm3408_vm15, %v4965_v19, %v8620_v5  ;;  %v16090_v5 = vld [vmem:[#allocation130_spill] sm:$0xff] }
 0x623   : > { %v8625_v16 = vunpack.i.h.bf16 %v8623_v35  ;;  %v8624_v39 = vunpack.i.l.bf16 %v8623_v35  ;;  %v8630_v59 = vunpack.i.h.bf16 %v8628_v22  ;;  %v8629_v8 = vunpack.i.l.bf16 %v8628_v22  ;;  %v16089_v35 = vld [vmem:[#allocation131_spill] sm:$0xff] }
 0x624   : > { %v4873_v22 = vsel %vm1726_vm7, %v16089_v35, %v8400_v40  ;;  %v4872_v36 = vsel %vm1726_vm7, %v16090_v5, %v8399_v63 }
 0x625   : > { %v5028_v11 = vsel %vm3441_vm3, %v4996_v13, %v8624_v39  ;;  %v5029_v32 = vsel %vm3441_vm3, %v4997_v15, %v8625_v16 }
 0x626   : > { %v8633_v37 = vpop.permute.xlu0 %8632  ;;  %v8638_v44 = vpop.permute.xlu1 %8637  ;;  %v13874_v30 = vsel %vm3474_vm4, %v5028_v11, %v8629_v8  ;;  %v13877_v14 = vsel %vm3474_vm4, %v5029_v32, %v8630_v59 }
 0x627   : > { %16087 = vst [vmem:[#allocation43_spill] sm:$0xff] %v13874_v30  ;;  %16088 = vst [vmem:[#allocation68_spill] sm:$0xff] %v13877_v14  ;;  %v8635_v21 = vunpack.i.h.bf16 %v8633_v37  ;;  %v8634_v48 = vunpack.i.l.bf16 %v8633_v37  ;;  %5322 = vmatmul.mubr.f32.gmra.mrb[40].mxu0 %v13874_v30  ;;  %v8640_v42 = vunpack.i.h.bf16 %v8638_v44  ;;  %v8639_v19 = vunpack.i.l.bf16 %v8638_v44 }
 0x628   : > { %7133 = vmatprep.mubr.msk.f32.mxu0 %vm1726_vm7, %v13455_v27 }
 0x629   : > { %v4902_v16 = vsel %vm1858_vm11, %v4872_v36, %v8634_v48  ;;  %v4903_v39 = vsel %vm1858_vm11, %v4873_v22, %v8635_v21 }
 0x62a   : > { %v8643_v40 = vpop.permute.xlu0 %8642  ;;  %v8648_v59 = vpop.permute.xlu1 %8647  ;;  %v4935_v63 = vsel %vm3342_vm13, %v4903_v39, %v8640_v42  ;;  %v4934_v11 = vsel %vm3342_vm13, %v4902_v16, %v8639_v19 }
 0x62b   : > { %v8645_v13 = vunpack.i.h.bf16 %v8643_v40  ;;  %v8644_v15 = vunpack.i.l.bf16 %v8643_v40  ;;  %5327 = vmatmul.mubr.f32.gmra.mrb[42].mxu0 %v13877_v14  ;;  %v8650_v32 = vunpack.i.h.bf16 %v8648_v59  ;;  %v8649_v37 = vunpack.i.l.bf16 %v8648_v59 }
 0x62c   : > { %7134 = vmatprep.mubr.msk.f32.mxu0 %vm1726_vm7, %v13531_v4 }
 0x62d   : > { %v4966_v44 = vsel %vm3375_vm14, %v4934_v11, %v8644_v15  ;;  %v4967_v48 = vsel %vm3375_vm14, %v4935_v63, %v8645_v13 }
 0x62e   : > { %v8653_v35 = vpop.permute.xlu0 %8652  ;;  %v8658_v22 = vpop.permute.xlu1 %8657  ;;  %v4998_v8 = vsel %vm3408_vm15, %v4966_v44, %v8649_v37  ;;  %v4999_v42 = vsel %vm3408_vm15, %v4967_v48, %v8650_v32  ;;  %v16093_v32 = vld [vmem:[#allocation84_spill] sm:$0xff] }
 0x62f   : > { %v8655_v21 = vunpack.i.h.bf16 %v8653_v35  ;;  %v8654_v5 = vunpack.i.l.bf16 %v8653_v35  ;;  %v8660_v36 = vunpack.i.h.bf16 %v8658_v22  ;;  %v8659_v40 = vunpack.i.l.bf16 %v8658_v22  ;;  %v16094_v48 = vld [vmem:[#allocation40_spill] sm:$0xff] }
 0x631   : > { %v5030_v19 = vsel %vm3441_vm3, %v4998_v8, %v8654_v5  ;;  %v5031_v16 = vsel %vm3441_vm3, %v4999_v42, %v8655_v21 }
 0x632   : > { %v8663_v39 = vpop.permute.xlu0 %8662  ;;  %v8668_v59 = vpop.permute.xlu1 %8667  ;;  %v13902_v15 = vsel %vm3474_vm4, %v5030_v19, %v8659_v40  ;;  %v13905_v13 = vsel %vm3474_vm4, %v5031_v16, %v8660_v36 }
 0x633   : > { %16091 = vst [vmem:[#allocation71_spill] sm:$0xff] %v13902_v15  ;;  %16092 = vst [vmem:[#allocation8_spill] sm:$0xff] %v13905_v13  ;;  %v8665_v63 = vunpack.i.h.bf16 %v8663_v39  ;;  %v8664_v11 = vunpack.i.l.bf16 %v8663_v39  ;;  %5332 = vmatmul.mubr.f32.gmra.mrb[44].mxu0 %v13902_v15  ;;  %v8670_v35 = vunpack.i.h.bf16 %v8668_v59  ;;  %v8669_v37 = vunpack.i.l.bf16 %v8668_v59 }
 0x634   : > { %7135 = vmatprep.mubr.msk.f32.mxu0 %vm1726_vm7, %v13528_v58 }
 0x635   : > { %v4875_v44 = vsel %vm1726_vm7, %v16093_v32, %v8665_v63  ;;  %v4874_v22 = vsel %vm1726_vm7, %v16094_v48, %v8664_v11 }
 0x636   : > { %v8673_v21 = vpop.permute.xlu0 %8672  ;;  %v8678_v5 = vpop.permute.xlu1 %8677  ;;  %v4905_v42 = vsel %vm1858_vm11, %v4875_v44, %v8670_v35  ;;  %v4904_v19 = vsel %vm1858_vm11, %v4874_v22, %v8669_v37 }
 0x637   : > { %v8675_v36 = vunpack.i.h.bf16 %v8673_v21  ;;  %v8674_v40 = vunpack.i.l.bf16 %v8673_v21  ;;  %5337 = vmatmul.mubr.f32.gmra.mrb[46].mxu0 %v13905_v13  ;;  %v8680_v16 = vunpack.i.h.bf16 %v8678_v5  ;;  %v8679_v39 = vunpack.i.l.bf16 %v8678_v5 }
 0x638   : > { %7136 = vmatprep.mubr.msk.f32.mxu0 %vm1726_vm7, %v13600_v56 }
 0x639   : > { %v4936_v59 = vsel %vm3342_vm13, %v4904_v19, %v8674_v40  ;;  %v4937_v63 = vsel %vm3342_vm13, %v4905_v42, %v8675_v36 }
 0x63a   : > { %v8683_v11 = vpop.permute.xlu0 %8682  ;;  %v8688_v32 = vpop.permute.xlu1 %8687  ;;  %v4968_v21 = vsel %vm3375_vm14, %v4936_v59, %v8679_v39  ;;  %v4969_v15 = vsel %vm3375_vm14, %v4937_v63, %v8680_v16 }
 0x63b   : > { %v8685_v48 = vunpack.i.h.bf16 %v8683_v11  ;;  %v8684_v8 = vunpack.i.l.bf16 %v8683_v11  ;;  %v8690_v35 = vunpack.i.h.bf16 %v8688_v32  ;;  %v8689_v44 = vunpack.i.l.bf16 %v8688_v32 }
 0x63d   : > { %v5000_v37 = vsel %vm3408_vm15, %v4968_v21, %v8684_v8  ;;  %v5001_v22 = vsel %vm3408_vm15, %v4969_v15, %v8685_v48 }
 0x63e   : > { %v8693_v5 = vpop.permute.xlu0 %8692  ;;  %v8698_v13 = vpop.permute.xlu1 %8697  ;;  %v5032_v42 = vsel %vm3441_vm3, %v5000_v37, %v8689_v44  ;;  %v5033_v11 = vsel %vm3441_vm3, %v5001_v22, %v8690_v35 }
 0x63f   : > { %v8695_v56 = vunpack.i.h.bf16 %v8693_v5  ;;  %v8694_v40 = vunpack.i.l.bf16 %v8693_v5  ;;  %v8700_v19 = vunpack.i.h.bf16 %v8698_v13  ;;  %v8699_v36 = vunpack.i.l.bf16 %v8698_v13 }
 0x641   : > { %v13930_v39 = vsel %vm3474_vm4, %v5032_v42, %v8694_v40  ;;  %v13933_v16 = vsel %vm3474_vm4, %v5033_v11, %v8695_v56  ;;  %v4877_v13 = vsel %vm1726_vm7, %v13200_v53, %v8700_v19  ;;  %v4876_v48 = vsel %vm1726_vm7, %v13459_v25, %v8699_v36 }
 0x642   : > { %16095 = vst [vmem:[#allocation136_spill] sm:$0xff] %v13930_v39  ;;  %16096 = vst [vmem:[#allocation108_spill] sm:$0xff] %v13933_v16  ;;  %v8703_v59 = vpop.permute.xlu0 %8702  ;;  %v8708_v8 = vpop.permute.xlu1 %8707  ;;  %5342 = vmatmul.mubr.f32.gmra.mrb[48].mxu0 %v13930_v39 }
 0x643   : > { %v8705_v63 = vunpack.i.h.bf16 %v8703_v59  ;;  %v8704_v32 = vunpack.i.l.bf16 %v8703_v59  ;;  %7137 = vmatprep.mubr.msk.f32.mxu0 %vm1726_vm7, %v13595_v46  ;;  %v8710_v56 = vunpack.i.h.bf16 %v8708_v8  ;;  %v8709_v21 = vunpack.i.l.bf16 %v8708_v8 }
 0x645   : > { %v4906_v35 = vsel %vm1858_vm11, %v4876_v48, %v8704_v32  ;;  %v4907_v44 = vsel %vm1858_vm11, %v4877_v13, %v8705_v63 }
 0x646   : > { %v8713_v37 = vpop.permute.xlu0 %8712  ;;  %v8718_v22 = vpop.permute.xlu1 %8717  ;;  %5347 = vmatmul.mubr.f32.gmra.mrb[50].mxu0 %v13933_v16  ;;  %v4938_v53 = vsel %vm3342_vm13, %v4906_v35, %v8709_v21  ;;  %v4939_v19 = vsel %vm3342_vm13, %v4907_v44, %v8710_v56 }
 0x647   : > { %v8715_v5 = vunpack.i.h.bf16 %v8713_v37  ;;  %v8714_v40 = vunpack.i.l.bf16 %v8713_v37  ;;  %7138 = vmatprep.mubr.msk.f32.mxu0 %vm1726_vm7, %v13677_v26  ;;  %v8720_v25 = vunpack.i.h.bf16 %v8718_v22  ;;  %v8719_v36 = vunpack.i.l.bf16 %v8718_v22 }
 0x649   : > { %v4970_v42 = vsel %vm3375_vm14, %v4938_v53, %v8714_v40  ;;  %v4971_v11 = vsel %vm3375_vm14, %v4939_v19, %v8715_v5 }
 0x64a   : > { %v8723_v59 = vpop.permute.xlu0 %8722  ;;  %v5002_v37 = vsel %vm3408_vm15, %v4970_v42, %v8719_v36  ;;  %v5003_v15 = vsel %vm3408_vm15, %v4971_v11, %v8720_v25 }
 0x64b   : > { %v8725_v8 = vunpack.i.h.bf16 %v8723_v59  ;;  %v8724_v63 = vunpack.i.l.bf16 %v8723_v59  ;;  %v8728_v32 = vpop.permute.xlu1 %8727 }
 0x64c   : > { %v8730_v13 = vunpack.i.h.bf16 %v8728_v32  ;;  %v8729_v48 = vunpack.i.l.bf16 %v8728_v32 }
 0x64d   : > { %v5034_v21 = vsel %vm3441_vm3, %v5002_v37, %v8724_v63  ;;  %v5035_v56 = vsel %vm3441_vm3, %v5003_v15, %v8725_v8 }
 0x64e   : > { %v8733_v35 = vpop.permute.xlu0 %8732  ;;  %v13958_v44 = vsel %vm3474_vm4, %v5034_v21, %v8729_v48  ;;  %v13961_v22 = vsel %vm3474_vm4, %v5035_v56, %v8730_v13 }
 0x64f   : > { %16097 = vst [vmem:[#allocation120_spill] sm:$0xff] %v13958_v44  ;;  %16098 = vst [vmem:[#allocation10_spill] sm:$0xff] %v13961_v22  ;;  %v8735_v5 = vunpack.i.h.bf16 %v8733_v35  ;;  %v8734_v40 = vunpack.i.l.bf16 %v8733_v35  ;;  %v8738_v53 = vpop.permute.xlu1 %8737  ;;  %5352 = vmatmul.mubr.f32.gmra.mrb[52].mxu0 %v13958_v44 }
 0x650   : > { %v8740_v25 = vunpack.i.h.bf16 %v8738_v53  ;;  %v8739_v36 = vunpack.i.l.bf16 %v8738_v53  ;;  %7139 = vmatprep.mubr.msk.f32.mxu0 %vm1726_vm7, %v13668_v7 }
 0x651   : > { %v4879_v15 = vsel %vm1726_vm7, %v13224_v12, %v8735_v5  ;;  %v4878_v42 = vsel %vm1726_vm7, %v13535_v51, %v8734_v40 }
 0x652   : > { %v8743_v11 = vpop.permute.xlu0 %8742  ;;  %v4909_v32 = vsel %vm1858_vm11, %v4879_v15, %v8740_v25  ;;  %v4908_v13 = vsel %vm1858_vm11, %v4878_v42, %v8739_v36 }
 0x653   : > { %v8745_v59 = vunpack.i.h.bf16 %v8743_v11  ;;  %v8744_v8 = vunpack.i.l.bf16 %v8743_v11  ;;  %v8748_v63 = vpop.permute.xlu1 %8747  ;;  %5357 = vmatmul.mubr.f32.gmra.mrb[54].mxu0 %v13961_v22 }
 0x654   : > { %v8750_v48 = vunpack.i.h.bf16 %v8748_v63  ;;  %v8749_v37 = vunpack.i.l.bf16 %v8748_v63  ;;  %7140 = vmatprep.mubr.msk.f32.mxu0 %vm1726_vm7, %v13286_v49 }
 0x655   : > { %v4940_v12 = vsel %vm3342_vm13, %v4908_v13, %v8744_v8  ;;  %v4941_v21 = vsel %vm3342_vm13, %v4909_v32, %v8745_v59 }
 0x656   : > { %v8753_v51 = vpop.permute.xlu0 %8752  ;;  %v4972_v40 = vsel %vm3375_vm14, %v4940_v12, %v8749_v37  ;;  %v4973_v53 = vsel %vm3375_vm14, %v4941_v21, %v8750_v48  ;;  %v16104_v21 = vld [vmem:[#allocation19_spill] sm:$0xff] }
 0x657   : > { %v8755_v56 = vunpack.i.h.bf16 %v8753_v51  ;;  %v8754_v35 = vunpack.i.l.bf16 %v8753_v51  ;;  %v8758_v5 = vpop.permute.xlu1 %8757 }
 0x658   : > { %v8760_v25 = vunpack.i.h.bf16 %v8758_v5  ;;  %v8759_v15 = vunpack.i.l.bf16 %v8758_v5 }
 0x659   : > { %v5004_v36 = vsel %vm3408_vm15, %v4972_v40, %v8754_v35  ;;  %v5005_v42 = vsel %vm3408_vm15, %v4973_v53, %v8755_v56 }
 0x65a   : > { %v8763_v11 = vpop.permute.xlu0 %8762  ;;  %v5036_v32 = vsel %vm3441_vm3, %v5004_v36, %v8759_v15  ;;  %v5037_v51 = vsel %vm3441_vm3, %v5005_v42, %v8760_v25 }
 0x65b   : > { %v8765_v63 = vunpack.i.h.bf16 %v8763_v11  ;;  %v8764_v19 = vunpack.i.l.bf16 %v8763_v11  ;;  %v8768_v8 = vpop.permute.xlu1 %8767 }
 0x65c   : > { %v8770_v13 = vunpack.i.h.bf16 %v8768_v8  ;;  %v8769_v59 = vunpack.i.l.bf16 %v8768_v8 }
 0x65d   : > { %v13986_v37 = vsel %vm3474_vm4, %v5036_v32, %v8764_v19  ;;  %v13989_v48 = vsel %vm3474_vm4, %v5037_v51, %v8765_v63  ;;  %v16101_v32 = vld [vmem:[#allocation46_spill] sm:$0xff] }
 0x65e   : > { %16099 = vst [vmem:[#allocation137_spill] sm:$0xff] %v13986_v37  ;;  %16100 = vst [vmem:[#allocation72_spill] sm:$0xff] %v13989_v48  ;;  %v8773_v12 = vpop.permute.xlu0 %8772  ;;  %5362 = vmatmul.mubr.f32.gmra.mrb[56].mxu0 %v13986_v37  ;;  %v4881_v40 = vsel %vm1726_vm7, %v13251_v62, %v8770_v13  ;;  %v4880_v19 = vsel %vm1726_vm7, %v13604_v31, %v8769_v59 }
 0x65f   : > { %v8775_v56 = vunpack.i.h.bf16 %v8773_v12  ;;  %v8774_v35 = vunpack.i.l.bf16 %v8773_v12  ;;  %v8778_v5 = vpop.permute.xlu1 %8777  ;;  %7141 = vmatprep.mubr.msk.f32.mxu0 %vm1726_vm7, %v13281_v18 }
 0x660   : > { %v8780_v53 = vunpack.i.h.bf16 %v8778_v5  ;;  %v8779_v25 = vunpack.i.l.bf16 %v8778_v5  ;;  %v16102_v5 = vld [vmem:[#allocation21_spill] sm:$0xff] }
 0x661   : > { %v4910_v15 = vsel %vm1858_vm11, %v4880_v19, %v8774_v35  ;;  %v4911_v36 = vsel %vm1858_vm11, %v4881_v40, %v8775_v56  ;;  %v16103_v19 = vld [vmem:[#allocation97_spill] sm:$0xff] }
 0x662   : > { %v8783_v42 = vpop.permute.xlu0 %8782  ;;  %5367 = vmatmul.mubr.f32.gmra.mrb[58].mxu0 %v13989_v48  ;;  %v4942_v62 = vsel %vm3342_vm13, %v4910_v15, %v8779_v25  ;;  %v4943_v13 = vsel %vm3342_vm13, %v4911_v36, %v8780_v53  ;;  %v16106_v53 = vld [vmem:[#allocation53_spill] sm:$0xff] }
 0x663   : > { %v8785_v11 = vunpack.i.h.bf16 %v8783_v42  ;;  %v8784_v63 = vunpack.i.l.bf16 %v8783_v42  ;;  %v8788_v8 = vpop.permute.xlu1 %8787  ;;  %7142 = vmatprep.mubr.msk.f32.mxu0 %vm1726_vm7, %v16101_v32 }
 0x664   : > { %v8790_v31 = vunpack.i.h.bf16 %v8788_v8  ;;  %v8789_v59 = vunpack.i.l.bf16 %v8788_v8 }
 0x665   : > { %v4974_v51 = vsel %vm3375_vm14, %v4942_v62, %v8784_v63  ;;  %v4975_v12 = vsel %vm3375_vm14, %v4943_v13, %v8785_v11  ;;  %v16108_v11 = vld [vmem:[#allocation47_spill] sm:$0xff]  ;;  %v14032_v63 = vld [vmem:[%s15091_s6] ss:$0 sm:$0xff] }
 0x666   : > { %v5006_v56 = vsel %vm3408_vm15, %v4974_v51, %v8789_v59  ;;  %v5007_v35 = vsel %vm3408_vm15, %v4975_v12, %v8790_v31 }
 0x667   : > { %v5038_v40 = vsel %vm3441_vm3, %v5006_v56, %v16102_v5  ;;  %v5039_v42 = vsel %vm3441_vm3, %v5007_v35, %v16103_v19 }
 0x668   : > { %v14017_v25 = vsel %vm3474_vm4, %v5038_v40, %v16104_v21  ;;  %v14021_v15 = vsel %vm3474_vm4, %v5039_v42, %v16106_v53 }
 0x669   : > { %16105 = vst [vmem:[#allocation90_spill] sm:$0xff] %v14017_v25  ;;  %16107 = vst [vmem:[#allocation50_spill] sm:$0xff] %v14021_v15  ;;  %5372 = vmatmul.mubr.f32.gmra.mrb[60].mxu0 %v14017_v25 }
 0x66a   : > { %7143 = vmatprep.mubr.msk.f32.mxu0 %vm1726_vm7, %v16108_v11 }
 0x66d   : > { %5377 = vmatmul.mubr.f32.gmra.mrb[62].mxu0 %v14021_v15 }
 0x679   : > { %v5223_v8 = vpop.f32.mrb[0].mxu0 }
 0x67a   : > { %v5224_v62 = vadd.f32 %v14032_v63, %v5223_v8  ;;  %v5225_v13 = vpop.f32.mrb[1].mxu0 }
 0x67c   : > { %v5382_v31 = vmax.f32 %v5224_v62, 0.0 }
 0x67d   : > { %v5228_v59 = vpop.f32.mrb[2].mxu0 }
 0x67e   : > { %v5447_v51 = vrot.slane %v5382_v31, 7  ;;  %v5229_v12 = vadd.f32 %v14032_v63, %v5228_v59  ;;  %v5230_v56 = vpop.f32.mrb[3].mxu0 }
 0x680   : > { %v5383_v35 = vmax.f32 %v5229_v12, 0.0  ;;  %v14037_v40 = vsel %vm519_vm0, 0.0, %v5447_v51 }
 0x681   : > { %v5604_v36 = vrot.slane %v14037_v40, 1  ;;  %v5769_v25 = vrot.slane %v14037_v40, 2 }
 0x682   : > { %v5448_v42 = vrot.slane %v5383_v35, 7 }
 0x684   : > { %v14042_v15 = vsel %vm519_vm0, %v5447_v51, %v5448_v42  ;;  %v5558_v8 = vsel %vm519_vm0, %v5448_v42, 0.0 }
 0x685   : > { %v5605_v62 = vrot.slane %v14042_v15, 1  ;;  %v5607_v13 = vrot.slane %v5558_v8, 1  ;;  %v5770_v31 = vrot.slane %v14042_v15, 2  ;;  %v5772_v59 = vrot.slane %v5558_v8, 2 }
 0x686   : > { %v8791_v12 = vpack.i.bf16 %v14042_v15, %v14037_v40 }
 0x687   : > { %v5606_v56 = vsel %vm685_vm1, %v5604_v36, %v5605_v62  ;;  %v5608_v35 = vsel %vm685_vm1, %v5605_v62, %v5607_v13  ;;  %v5771_v37 = vsel %vm862_vm2, %v5769_v25, %v5770_v31  ;;  %v5773_v51 = vsel %vm862_vm2, %v5770_v31, %v5772_v59 }
 0x688   : > { %8792 = vrot.lane.b32.xlu0 %v8791_v12, %s9355_s29  ;;  %v8796_v42 = vpack.i.bf16 %v5608_v35, %v5606_v56  ;;  %v8801_v48 = vpack.i.bf16 %v5773_v51, %v5771_v37 }
 0x689   : > { %v5233_v44 = vpop.f32.mrb[4].mxu0 }
 0x68a   : > { %v5234_v22 = vadd.f32 %v14032_v63, %v5233_v44  ;;  %v5235_v18 = vpop.f32.mrb[5].mxu0  ;;  %8797 = vrot.lane.b32.xlu1 %v8796_v42, %s9356_s19 }
 0x68c   : > { %v5384_v8 = vmax.f32 %v5234_v22, 0.0  ;;  %8802 = vrot.lane.b32.xlu0 %v8801_v48, %s9357_s20 }
 0x68d   : > { %v5238_v36 = vpop.f32.mrb[6].mxu0 }
 0x68e   : > { %v5450_v49 = vrot.slane %v5384_v8, 7  ;;  %v5239_v62 = vadd.f32 %v14032_v63, %v5238_v36  ;;  %v5240_v25 = vpop.f32.mrb[7].mxu0  ;;  %8807 = vrot.lane.b32.xlu1 %v8796_v42, %s9349_s17 }
 0x690   : > { %v5385_v13 = vmax.f32 %v5239_v62, 0.0  ;;  %8812 = vrot.lane.b32.xlu0 %v8801_v48, %s9353_s16  ;;  %v14061_v37 = vsel %vm519_vm0, 0.0, %v5450_v49 }
 0x691   : > { %v5609_v18 = vrot.slane %v14061_v37, 1  ;;  %v5774_v22 = vrot.slane %v14061_v37, 2 }
 0x692   : > { %v5451_v44 = vrot.slane %v5385_v13, 7 }
 0x694   : > { %v14066_v31 = vsel %vm519_vm0, %v5450_v49, %v5451_v44  ;;  %v5559_v59 = vsel %vm519_vm0, %v5451_v44, 0.0 }
 0x695   : > { %v5610_v12 = vrot.slane %v14066_v31, 1  ;;  %v5612_v56 = vrot.slane %v5559_v59, 1  ;;  %v5775_v35 = vrot.slane %v14066_v31, 2  ;;  %v5777_v51 = vrot.slane %v5559_v59, 2 }
 0x696   : > { %v8816_v48 = vpack.i.bf16 %v14066_v31, %v14061_v37 }
 0x697   : > { %v5613_v42 = vsel %vm685_vm1, %v5610_v12, %v5612_v56  ;;  %v5778_v8 = vsel %vm862_vm2, %v5775_v35, %v5777_v51  ;;  %v5776_v36 = vsel %vm862_vm2, %v5774_v22, %v5775_v35  ;;  %v5611_v62 = vsel %vm685_vm1, %v5609_v18, %v5610_v12 }
 0x698   : > { %8817 = vrot.lane.b32.xlu1 %v8816_v48, %s9358_s21  ;;  %v7405_v25 = vpack.c.bf16 %v5778_v8, %v5776_v36  ;;  %v8826_v13 = vpack.i.bf16 %v5613_v42, %v5611_v62  ;;  %v8836_v42 = vpack.i.bf16 %v5778_v8, %v5776_v36 }
 0x699   : > { %v5243_v44 = vpop.f32.mrb[8].mxu0 }
 0x69a   : > { %v5244_v59 = vadd.f32 %v14032_v63, %v5243_v44  ;;  %v5245_v56 = vpop.f32.mrb[9].mxu0  ;;  %7407 = vmatprep.subr.msk.bf16.mxu1 %vm14078_vm5, %v7405_v25  ;;  %7487 = vmatprep.subr.msk.bf16.mxu0 %vm14078_vm5, %v7405_v25 }
 0x69b   : > { %8827 = vrot.lane.b32.xlu0 %v8826_v13, %s9359_s22 }
 0x69c   : > { %v5386_v22 = vmax.f32 %v5244_v59, 0.0  ;;  %8822 = vrot.lane.b32.xlu1 %v8816_v48, %s9355_s29 }
 0x69d   : > { %v5248_v18 = vpop.f32.mrb[10].mxu0 }
 0x69e   : > { %v5453_v12 = vrot.slane %v5386_v22, 7  ;;  %v5249_v35 = vadd.f32 %v14032_v63, %v5248_v18  ;;  %v5250_v51 = vpop.f32.mrb[11].mxu0 }
 0x69f   : > { %8832 = vrot.lane.b32.xlu0 %v8826_v13, %s9356_s19 }
 0x6a0   : > { %v5387_v62 = vmax.f32 %v5249_v35, 0.0  ;;  %8837 = vrot.lane.b32.xlu1 %v8836_v42, %s9357_s20  ;;  %v14095_v44 = vsel %vm519_vm0, 0.0, %v5453_v12 }
 0x6a1   : > { %v5614_v59 = vrot.slane %v14095_v44, 1  ;;  %v5779_v35 = vrot.slane %v14095_v44, 2 }
 0x6a2   : > { %v5454_v25 = vrot.slane %v5387_v62, 7 }
 0x6a3   : > { %8842 = vrot.lane.b32.xlu0 %v8826_v13, %s9349_s17 }
 0x6a4   : > { %v14100_v48 = vsel %vm519_vm0, %v5453_v12, %v5454_v25  ;;  %v5560_v56 = vsel %vm519_vm0, %v5454_v25, 0.0  ;;  %8847 = vrot.lane.b32.xlu1 %v8836_v42, %s9353_s16 }
 0x6a5   : > { %v5615_v8 = vrot.slane %v14100_v48, 1  ;;  %v5617_v36 = vrot.slane %v5560_v56, 1  ;;  %v5780_v22 = vrot.slane %v14100_v48, 2  ;;  %v5782_v18 = vrot.slane %v5560_v56, 2 }
 0x6a6   : > { %v5253_v51 = vpop.f32.mrb[12].mxu0  ;;  %v8851_v13 = vpack.i.bf16 %v14100_v48, %v14095_v44 }
 0x6a7   : > { %v5618_v62 = vsel %vm685_vm1, %v5615_v8, %v5617_v36  ;;  %v5783_v12 = vsel %vm862_vm2, %v5780_v22, %v5782_v18  ;;  %v5254_v25 = vadd.f32 %v14032_v63, %v5253_v51  ;;  %v5255_v39 = vpop.f32.mrb[13].mxu0  ;;  %v5616_v42 = vsel %vm685_vm1, %v5614_v59, %v5615_v8 }
 0x6a8   : > { %8852 = vrot.lane.b32.xlu0 %v8851_v13, %s9358_s21  ;;  %v8861_v16 = vpack.i.bf16 %v5618_v62, %v5616_v42  ;;  %v5781_v56 = vsel %vm862_vm2, %v5779_v35, %v5780_v22 }
 0x6a9   : > { %v5388_v7 = vmax.f32 %v5254_v25, 0.0  ;;  %v14115_v26 = vpack.c.bf16 %v5783_v12, %v5781_v56  ;;  %v8871_v8 = vpack.i.bf16 %v5783_v12, %v5781_v56 }
 0x6aa   : > { %v5258_v46 = vpop.f32.mrb[14].mxu0  ;;  %8862 = vrot.lane.b32.xlu1 %v8861_v16, %s9359_s22 }
 0x6ab   : > { %v5456_v30 = vrot.slane %v5388_v7, 7  ;;  %v5259_v36 = vadd.f32 %v14032_v63, %v5258_v46  ;;  %v5260_v18 = vpop.f32.mrb[15].mxu0 }
 0x6ac   : > { %8857 = vrot.lane.b32.xlu0 %v8851_v13, %s9355_s29 }
 0x6ad   : > { %v5389_v39 = vmax.f32 %v5259_v36, 0.0  ;;  %v14121_v59 = vsel %vm519_vm0, 0.0, %v5456_v30 }
 0x6ae   : > { %8867 = vrot.lane.b32.xlu1 %v8861_v16, %s9356_s19  ;;  %v5619_v35 = vrot.slane %v14121_v59, 1  ;;  %v5784_v51 = vrot.slane %v14121_v59, 2 }
 0x6af   : > { %v5457_v22 = vrot.slane %v5389_v39, 7 }
 0x6b0   : > { %8872 = vrot.lane.b32.xlu0 %v8871_v8, %s9357_s20 }
 0x6b1   : > { %v14128_v7 = vsel %vm519_vm0, %v5456_v30, %v5457_v22  ;;  %v5561_v46 = vsel %vm519_vm0, %v5457_v22, 0.0 }
 0x6b2   : > { %v5620_v13 = vrot.slane %v14128_v7, 1  ;;  %v5622_v62 = vrot.slane %v5561_v46, 1  ;;  %v5785_v25 = vrot.slane %v14128_v7, 2  ;;  %v5787_v42 = vrot.slane %v5561_v46, 2  ;;  %v5263_v36 = vpop.f32.mrb[16].mxu0  ;;  %8877 = vrot.lane.b32.xlu1 %v8861_v16, %s9349_s17 }
 0x6b3   : > { %v5264_v12 = vadd.f32 %v14032_v63, %v5263_v36  ;;  %v5265_v56 = vpop.f32.mrb[17].mxu0  ;;  %v8886_v18 = vpack.i.bf16 %v14128_v7, %v14121_v59 }
 0x6b4   : > { %v5623_v30 = vsel %vm685_vm1, %v5620_v13, %v5622_v62  ;;  %v5788_v39 = vsel %vm862_vm2, %v5785_v25, %v5787_v42  ;;  %8882 = vrot.lane.b32.xlu0 %v8871_v8, %s9353_s16  ;;  %v5621_v22 = vsel %vm685_vm1, %v5619_v35, %v5620_v13  ;;  %v5786_v14 = vsel %vm862_vm2, %v5784_v51, %v5785_v25 }
 0x6b5   : > { %v5390_v46 = vmax.f32 %v5264_v12, 0.0  ;;  %v8896_v58 = vpack.i.bf16 %v5623_v30, %v5621_v22  ;;  %v14143_v16 = vpack.c.bf16 %v5788_v39, %v5786_v14  ;;  %v8906_v51 = vpack.i.bf16 %v5788_v39, %v5786_v14 }
 0x6b6   : > { %v5268_v4 = vpop.f32.mrb[18].mxu0  ;;  %8887 = vrot.lane.b32.xlu1 %v8886_v18, %s9358_s21 }
 0x6b7   : > { %v5459_v36 = vrot.slane %v5390_v46, 7  ;;  %v5269_v56 = vadd.f32 %v14032_v63, %v5268_v4  ;;  %v5270_v60 = vpop.f32.mrb[19].mxu0 }
 0x6b8   : > { %8897 = vrot.lane.b32.xlu0 %v8896_v58, %s9359_s22 }
 0x6b9   : > { %v5391_v62 = vmax.f32 %v5269_v56, 0.0  ;;  %v14148_v8 = vsel %vm519_vm0, 0.0, %v5459_v36 }
 0x6ba   : > { %8892 = vrot.lane.b32.xlu1 %v8886_v18, %s9355_s29  ;;  %v5789_v13 = vrot.slane %v14148_v8, 2  ;;  %v5624_v18 = vrot.slane %v14148_v8, 1 }
 0x6bb   : > { %v5460_v35 = vrot.slane %v5391_v62, 7 }
 0x6bc   : > { %8902 = vrot.lane.b32.xlu0 %v8896_v58, %s9356_s19 }
 0x6bd   : > { %v14154_v25 = vsel %vm519_vm0, %v5459_v36, %v5460_v35  ;;  %v5562_v4 = vsel %vm519_vm0, %v5460_v35, 0.0 }
 0x6be   : > { %v5625_v60 = vrot.slane %v14154_v25, 1  ;;  %v5627_v42 = vrot.slane %v5562_v4, 1  ;;  %v5790_v12 = vrot.slane %v14154_v25, 2  ;;  %v5792_v30 = vrot.slane %v5562_v4, 2  ;;  %v5273_v22 = vpop.f32.mrb[20].mxu0  ;;  %8907 = vrot.lane.b32.xlu1 %v8906_v51, %s9357_s20 }
 0x6bf   : > { %v5274_v14 = vadd.f32 %v14032_v63, %v5273_v22  ;;  %v5275_v39 = vpop.f32.mrb[21].mxu0  ;;  %v8921_v27 = vpack.i.bf16 %v14154_v25, %v14148_v8 }
 0x6c0   : > { %v5793_v46 = vsel %vm862_vm2, %v5790_v12, %v5792_v30  ;;  %8912 = vrot.lane.b32.xlu0 %v8896_v58, %s9349_s17  ;;  %v5791_v36 = vsel %vm862_vm2, %v5789_v13, %v5790_v12  ;;  %v5628_v56 = vsel %vm685_vm1, %v5625_v60, %v5627_v42  ;;  %v5626_v35 = vsel %vm685_vm1, %v5624_v18, %v5625_v60 }
 0x6c1   : > { %v5392_v62 = vmax.f32 %v5274_v14, 0.0  ;;  %v14170_v52 = vpack.c.bf16 %v5793_v46, %v5791_v36  ;;  %v8931_v58 = vpack.i.bf16 %v5628_v56, %v5626_v35  ;;  %v8941_v35 = vpack.i.bf16 %v5793_v46, %v5791_v36 }
 0x6c2   : > { %v5278_v4 = vpop.f32.mrb[22].mxu0  ;;  %8917 = vrot.lane.b32.xlu1 %v8906_v51, %s9353_s16 }
 0x6c3   : > { %v5462_v22 = vrot.slane %v5392_v62, 7  ;;  %v5279_v30 = vadd.f32 %v14032_v63, %v5278_v4  ;;  %v5280_v39 = vpop.f32.mrb[23].mxu0 }
 0x6c4   : > { %8922 = vrot.lane.b32.xlu0 %v8921_v27, %s9358_s21 }
 0x6c5   : > { %v5393_v13 = vmax.f32 %v5279_v30, 0.0  ;;  %v14176_v60 = vsel %vm519_vm0, 0.0, %v5462_v22 }
 0x6c6   : > { %8932 = vrot.lane.b32.xlu1 %v8931_v58, %s9359_s22  ;;  %v5794_v18 = vrot.slane %v14176_v60, 2 }
 0x6c7   : > { %v5463_v42 = vrot.slane %v5393_v13, 7 }
 0x6c8   : > { %8927 = vrot.lane.b32.xlu0 %v8921_v27, %s9355_s29 }
 0x6c9   : > { %v14180_v51 = vsel %vm519_vm0, %v5462_v22, %v5463_v42  ;;  %v5563_v12 = vsel %vm519_vm0, %v5463_v42, 0.0  ;;  %v5629_v42 = vrot.slane %v14176_v60, 1 }
 0x6ca   : > { %v5795_v14 = vrot.slane %v14180_v51, 2  ;;  %v5797_v62 = vrot.slane %v5563_v12, 2  ;;  %v5283_v56 = vpop.f32.mrb[24].mxu0  ;;  %8937 = vrot.lane.b32.xlu1 %v8931_v58, %s9356_s19  ;;  %v5630_v4 = vrot.slane %v14180_v51, 1  ;;  %v5632_v30 = vrot.slane %v5563_v12, 1 }
 0x6cb   : > { %v5284_v39 = vadd.f32 %v14032_v63, %v5283_v56  ;;  %v5285_v27 = vpop.f32.mrb[25].mxu0 }
 0x6cc   : > { %v5798_v22 = vsel %vm862_vm2, %v5795_v14, %v5797_v62  ;;  %8942 = vrot.lane.b32.xlu0 %v8941_v35, %s9357_s20  ;;  %v5796_v13 = vsel %vm862_vm2, %v5794_v18, %v5795_v14  ;;  %v5633_v46 = vsel %vm685_vm1, %v5630_v4, %v5632_v30  ;;  %v5631_v62 = vsel %vm685_vm1, %v5629_v42, %v5630_v4 }
 0x6cd   : > { %v5394_v29 = vmax.f32 %v5284_v39, 0.0  ;;  %v14193_v43 = vpack.c.bf16 %v5798_v22, %v5796_v13  ;;  %v8956_v18 = vpack.i.bf16 %v14180_v51, %v14176_v60  ;;  %v8966_v39 = vpack.i.bf16 %v5633_v46, %v5631_v62 }
 0x6ce   : > { %v5288_v50 = vpop.f32.mrb[26].mxu0  ;;  %8947 = vrot.lane.b32.xlu1 %v8931_v58, %s9349_s17  ;;  %v8976_v62 = vpack.i.bf16 %v5798_v22, %v5796_v13 }
 0x6cf   : > { %v5465_v36 = vrot.slane %v5394_v29, 7  ;;  %v5289_v12 = vadd.f32 %v14032_v63, %v5288_v50  ;;  %v5290_v56 = vpop.f32.mrb[27].mxu0 }
 0x6d0   : > { %8952 = vrot.lane.b32.xlu0 %v8941_v35, %s9353_s16 }
 0x6d1   : > { %v5395_v14 = vmax.f32 %v5289_v12, 0.0  ;;  %v14203_v58 = vsel %vm519_vm0, 0.0, %v5465_v36 }
 0x6d2   : > { %8957 = vrot.lane.b32.xlu1 %v8956_v18, %s9358_s21  ;;  %v5799_v35 = vrot.slane %v14203_v58, 2 }
 0x6d3   : > { %v5466_v27 = vrot.slane %v5395_v14, 7 }
 0x6d4   : > { %8967 = vrot.lane.b32.xlu0 %v8966_v39, %s9359_s22 }
 0x6d5   : > { %v14207_v29 = vsel %vm519_vm0, %v5465_v36, %v5466_v27  ;;  %v5564_v50 = vsel %vm519_vm0, %v5466_v27, 0.0 }
 0x6d6   : > { %v5800_v4 = vrot.slane %v14207_v29, 2  ;;  %v5802_v30 = vrot.slane %v5564_v50, 2  ;;  %v5293_v42 = vpop.f32.mrb[28].mxu0  ;;  %8962 = vrot.lane.b32.xlu1 %v8956_v18, %s9355_s29  ;;  %v5635_v14 = vrot.slane %v14207_v29, 1  ;;  %v5637_v27 = vrot.slane %v5564_v50, 1 }
 0x6d7   : > { %v5294_v46 = vadd.f32 %v14032_v63, %v5293_v42  ;;  %v5295_v12 = vpop.f32.mrb[29].mxu0  ;;  %v5634_v18 = vrot.slane %v14203_v58, 1  ;;  %v8991_v50 = vpack.i.bf16 %v14207_v29, %v14203_v58 }
 0x6d8   : > { %v5803_v56 = vsel %vm862_vm2, %v5800_v4, %v5802_v30  ;;  %8972 = vrot.lane.b32.xlu0 %v8966_v39, %s9356_s19  ;;  %v5801_v36 = vsel %vm862_vm2, %v5799_v35, %v5800_v4  ;;  %v5638_v22 = vsel %vm685_vm1, %v5635_v14, %v5637_v27 }
 0x6d9   : > { %v5396_v28 = vmax.f32 %v5294_v46, 0.0  ;;  %v14219_v24 = vpack.c.bf16 %v5803_v56, %v5801_v36  ;;  %v5636_v35 = vsel %vm685_vm1, %v5634_v18, %v5635_v14 }
 0x6da   : > { %v5298_v57 = vpop.f32.mrb[30].mxu0  ;;  %8977 = vrot.lane.b32.xlu1 %v8976_v62, %s9357_s20 }
 0x6db   : > { %v5468_v42 = vrot.slane %v5396_v28, 7  ;;  %v5299_v12 = vadd.f32 %v14032_v63, %v5298_v57  ;;  %v5300_v30 = vpop.f32.mrb[31].mxu0  ;;  %v9001_v57 = vpack.i.bf16 %v5638_v22, %v5636_v35 }
 0x6dc   : > { %8982 = vrot.lane.b32.xlu0 %v8966_v39, %s9349_s17 }
 0x6dd   : > { %v5397_v13 = vmax.f32 %v5299_v12, 0.0  ;;  %v14230_v4 = vsel %vm519_vm0, 0.0, %v5468_v42 }
 0x6de   : > { %8987 = vrot.lane.b32.xlu1 %v8976_v62, %s9353_s16  ;;  %v5804_v27 = vrot.slane %v14230_v4, 2 }
 0x6df   : > { %v5469_v46 = vrot.slane %v5397_v13, 7 }
 0x6e0   : > { %8992 = vrot.lane.b32.xlu0 %v8991_v50, %s9358_s21 }
 0x6e1   : > { %v14234_v28 = vsel %vm519_vm0, %v5468_v42, %v5469_v46  ;;  %v5565_v39 = vsel %vm519_vm0, %v5469_v46, 0.0  ;;  %v9011_v46 = vpack.i.bf16 %v5803_v56, %v5801_v36 }
 0x6e2   : > { %v5805_v14 = vrot.slane %v14234_v28, 2  ;;  %v5807_v62 = vrot.slane %v5565_v39, 2  ;;  %v5303_v18 = vpop.f32.mrb[32].mxu0  ;;  %9002 = vrot.lane.b32.xlu1 %v9001_v57, %s9359_s22  ;;  %v5640_v45 = vrot.slane %v14234_v28, 1  ;;  %v5642_v10 = vrot.slane %v5565_v39, 1 }
 0x6e3   : > { %v5304_v12 = vadd.f32 %v14032_v63, %v5303_v18  ;;  %v5305_v30 = vpop.f32.mrb[33].mxu0  ;;  %v9026_v39 = vpack.i.bf16 %v14234_v28, %v14230_v4 }
 0x6e4   : > { %v5808_v13 = vsel %vm862_vm2, %v5805_v14, %v5807_v62  ;;  %8997 = vrot.lane.b32.xlu0 %v8991_v50, %s9355_s29  ;;  %v5806_v42 = vsel %vm862_vm2, %v5804_v27, %v5805_v14  ;;  %v5639_v50 = vrot.slane %v14230_v4, 1  ;;  %v5643_v27 = vsel %vm685_vm1, %v5640_v45, %v5642_v10 }
 0x6e5   : > { %v5398_v22 = vmax.f32 %v5304_v12, 0.0  ;;  %v14245_v20 = vpack.c.bf16 %v5808_v13, %v5806_v42 }
 0x6e6   : > { %v5308_v35 = vpop.f32.mrb[34].mxu0  ;;  %9007 = vrot.lane.b32.xlu1 %v9001_v57, %s9356_s19  ;;  %v5641_v14 = vsel %vm685_vm1, %v5639_v50, %v5640_v45 }
 0x6e7   : > { %v5471_v55 = vrot.slane %v5398_v22, 7  ;;  %v5309_v18 = vadd.f32 %v14032_v63, %v5308_v35  ;;  %v5310_v30 = vpop.f32.mrb[35].mxu0 }
 0x6e8   : > { %9012 = vrot.lane.b32.xlu0 %v9011_v46, %s9357_s20  ;;  %v9036_v30 = vpack.i.bf16 %v5643_v27, %v5641_v14  ;;  %v9046_v27 = vpack.i.bf16 %v5808_v13, %v5806_v42 }
 0x6e9   : > { %v5399_v62 = vmax.f32 %v5309_v18, 0.0  ;;  %v14254_v56 = vsel %vm519_vm0, 0.0, %v5471_v55 }
 0x6ea   : > { %9017 = vrot.lane.b32.xlu1 %v9001_v57, %s9349_s17  ;;  %v5809_v57 = vrot.slane %v14254_v56, 2 }
 0x6eb   : > { %v5472_v36 = vrot.slane %v5399_v62, 7 }
 0x6ec   : > { %9022 = vrot.lane.b32.xlu0 %v9011_v46, %s9353_s16 }
 0x6ed   : > { %v14261_v12 = vsel %vm519_vm0, %v5471_v55, %v5472_v36  ;;  %v5566_v22 = vsel %vm519_vm0, %v5472_v36, 0.0 }
 0x6ee   : > { %v5810_v10 = vrot.slane %v14261_v12, 2  ;;  %v5812_v35 = vrot.slane %v5566_v22, 2  ;;  %v5313_v18 = vpop.f32.mrb[36].mxu0  ;;  %9027 = vrot.lane.b32.xlu1 %v9026_v39, %s9358_s21  ;;  %v5645_v14 = vrot.slane %v14261_v12, 1 }
 0x6ef   : > { %v5314_v45 = vadd.f32 %v14032_v63, %v5313_v18  ;;  %v5315_v46 = vpop.f32.mrb[37].mxu0  ;;  %v5647_v18 = vrot.slane %v5566_v22, 1 }
 0x6f0   : > { %v5813_v50 = vsel %vm862_vm2, %v5810_v10, %v5812_v35  ;;  %9037 = vrot.lane.b32.xlu0 %v9036_v30, %s9359_s22  ;;  %v5811_v55 = vsel %vm862_vm2, %v5809_v57, %v5810_v10  ;;  %v5644_v57 = vrot.slane %v14254_v56, 1 }
 0x6f1   : > { %v14272_v36 = vpack.c.bf16 %v5813_v50, %v5811_v55  ;;  %v5400_v34 = vmax.f32 %v5314_v45, 0.0  ;;  %v9081_v9 = vpack.i.bf16 %v5813_v50, %v5811_v55 }
 0x6f2   : > { %v5318_v62 = vpop.f32.mrb[38].mxu0  ;;  %9032 = vrot.lane.b32.xlu1 %v9026_v39, %s9355_s29  ;;  %v5648_v39 = vsel %vm685_vm1, %v5645_v14, %v5647_v18 }
 0x6f3   : > { %v5319_v1 = vadd.f32 %v14032_v63, %v5318_v62  ;;  %v5320_v6 = vpop.f32.mrb[39].mxu0  ;;  %v5474_v10 = vrot.slane %v5400_v34, 7 }
 0x6f4   : > { %9042 = vrot.lane.b32.xlu0 %v9036_v30, %s9356_s19  ;;  %v5646_v6 = vsel %vm685_vm1, %v5644_v57, %v5645_v14 }
 0x6f5   : > { %v5401_v35 = vmax.f32 %v5319_v1, 0.0  ;;  %v9061_v1 = vpack.i.bf16 %v14261_v12, %v14254_v56  ;;  %v9071_v62 = vpack.i.bf16 %v5648_v39, %v5646_v6 }
 0x6f6   : > { %9047 = vrot.lane.b32.xlu1 %v9046_v27, %s9357_s20 }
 0x6f7   : > { %v5475_v46 = vrot.slane %v5401_v35, 7 }
 0x6f8   : > { %9052 = vrot.lane.b32.xlu0 %v9036_v30, %s9349_s17  ;;  %v14291_v30 = vsel %vm519_vm0, 0.0, %v5474_v10 }
 0x6f9   : > { %v14282_v45 = vsel %vm519_vm0, %v5474_v10, %v5475_v46  ;;  %v5567_v13 = vsel %vm519_vm0, %v5475_v46, 0.0 }
 0x6fa   : > { %v5323_v42 = vpop.f32.mrb[40].mxu0  ;;  %9057 = vrot.lane.b32.xlu1 %v9046_v27, %s9353_s16  ;;  %v5815_v18 = vrot.slane %v14282_v45, 2  ;;  %v5817_v14 = vrot.slane %v5567_v13, 2  ;;  %v8793_v35 = vpop.permute.xlu0 %8792  ;;  %v5814_v27 = vrot.slane %v14291_v30, 2  ;;  %v5650_v10 = vrot.slane %v14282_v45, 1 }
 0x6fb   : > { %v5324_v34 = vadd.f32 %v14032_v63, %v5323_v42  ;;  %v5325_v22 = vpop.f32.mrb[41].mxu0  ;;  %v5652_v39 = vrot.slane %v5567_v13, 1  ;;  %v8795_v61 = vunpack.i.h.bf16 %v8793_v35  ;;  %v5649_v13 = vrot.slane %v14291_v30, 1 }
 0x6fc   : > { %9062 = vrot.lane.b32.xlu0 %v9061_v1, %s9358_s21  ;;  %v8798_v42 = vpop.permute.xlu1 %8797  ;;  %v5818_v6 = vsel %vm862_vm2, %v5815_v18, %v5817_v14  ;;  %v5816_v2 = vsel %vm862_vm2, %v5814_v27, %v5815_v18 }
 0x6fd   : > { %v5402_v57 = vmax.f32 %v5324_v34, 0.0  ;;  %v5653_v14 = vsel %vm685_vm1, %v5650_v10, %v5652_v39  ;;  %v8800_v18 = vunpack.i.h.bf16 %v8798_v42  ;;  %v8799_v27 = vunpack.i.l.bf16 %v8798_v42 }
 0x6fe   : > { %v5328_v46 = vpop.f32.mrb[42].mxu0  ;;  %9072 = vrot.lane.b32.xlu1 %v9071_v62, %s9359_s22  ;;  %v8803_v17 = vpop.permute.xlu0 %8802  ;;  %v5651_v42 = vsel %vm685_vm1, %v5649_v13, %v5650_v10 }
 0x6ff   : > { %v5330_v38 = vpop.f32.mrb[43].mxu0  ;;  %v5477_v41 = vrot.slane %v5402_v57, 7  ;;  %v5329_v22 = vadd.f32 %v14032_v63, %v5328_v46  ;;  %v8805_v33 = vunpack.i.h.bf16 %v8803_v17  ;;  %v8804_v53 = vunpack.i.l.bf16 %v8803_v17 }
 0x700   : > { %9067 = vrot.lane.b32.xlu0 %v9061_v1, %s9355_s29  ;;  %v8794_v38 = vunpack.i.l.bf16 %v8793_v35  ;;  %v14307_v1 = vpack.c.bf16 %v5818_v6, %v5816_v2  ;;  %v14317_v55 = vpop.permute.xlu1 %8807 }
 0x701   : > { %v5403_v34 = vmax.f32 %v5329_v22, 0.0  ;;  %v14304_v57 = vsel %vm519_vm0, 0.0, %v5477_v41 }
 0x702   : > { %9077 = vrot.lane.b32.xlu1 %v9071_v62, %s9356_s19 }
 0x703   : > { %v5478_v46 = vrot.slane %v5403_v34, 7  ;;  %v5819_v34 = vrot.slane %v14304_v57, 2 }
 0x704   : > { %9082 = vrot.lane.b32.xlu0 %v9081_v9, %s9357_s20 }
 0x705   : > { %v14312_v22 = vsel %vm519_vm0, %v5477_v41, %v5478_v46  ;;  %v14315_v50 = vsel %vm519_vm0, %v5478_v46, 0.0  ;;  %v6475_v41 = vsel %vm3342_vm13, %v16111_v54, %v8795_v61  ;;  %v6474_v46 = vsel %vm3342_vm13, %v16112_v47, %v8794_v38 }
 0x706   : > { %v5333_v35 = vpop.f32.mrb[44].mxu0  ;;  %9087 = vrot.lane.b32.xlu1 %v9071_v62, %s9349_s17  ;;  %v5820_v0 = vrot.slane %v14312_v22, 2  ;;  %v5822_v3 = vrot.slane %v14315_v50, 2  ;;  %v9096_v62 = vpack.i.bf16 %v14282_v45, %v14291_v30  ;;  %v6507_v54 = vsel %vm3375_vm14, %v6475_v41, %v8800_v18 }
 0x707   : > { %v5335_v39 = vpop.f32.mrb[45].mxu0  ;;  %v5334_v23 = vadd.f32 %v14032_v63, %v5333_v35  ;;  %v6506_v47 = vsel %vm3375_vm14, %v6474_v46, %v8799_v27  ;;  %v6539_v27 = vsel %vm3408_vm15, %v6507_v54, %v8805_v33  ;;  %v9116_v46 = vpack.i.bf16 %v5818_v6, %v5816_v2 }
 0x708   : > { %9092 = vrot.lane.b32.xlu0 %v9081_v9, %s9353_s16  ;;  %v14333_v21 = vsel %vm862_vm2, %v5820_v0, %v5822_v3  ;;  %v14335_v39 = vpop.permute.xlu0 %8812  ;;  %v14338_v10 = vsel %vm862_vm2, %v5819_v34, %v5820_v0  ;;  %v9106_v9 = vpack.i.bf16 %v5653_v14, %v5651_v42  ;;  %v6538_v18 = vsel %vm3408_vm15, %v6506_v47, %v8804_v53 }
 0x709   : > { %v5404_v13 = vmax.f32 %v5334_v23, 0.0  ;;  %v14347_v0 = vpack.c.bf16 %v14333_v21, %v14338_v10  ;;  %v8810_v23 = vunpack.i.h.bf16 %v14317_v55  ;;  %v8809_v14 = vunpack.i.l.bf16 %v14317_v55 }
 0x70a   : > { %v8818_v61 = vpop.permute.xlu1 %8817  ;;  %v5338_v38 = vpop.f32.mrb[46].mxu0  ;;  %9097 = vrot.lane.b32.xlu1 %v9096_v62, %s9358_s21  ;;  %v5655_v33 = vrot.slane %v14312_v22, 1  ;;  %v5657_v54 = vrot.slane %v14315_v50, 1  ;;  %v8814_v55 = vunpack.i.l.bf16 %v14335_v39 }
 0x70b   : > { %v8820_v35 = vunpack.i.h.bf16 %v8818_v61  ;;  %v8819_v17 = vunpack.i.l.bf16 %v8818_v61  ;;  %v5339_v3 = vadd.f32 %v14032_v63, %v5338_v38  ;;  %v5340_v19 = vpop.f32.mrb[47].mxu0  ;;  %v5480_v38 = vrot.slane %v5404_v13, 7 }
 0x70c   : > { %9107 = vrot.lane.b32.xlu0 %v9106_v9, %s9359_s22  ;;  %v6414_v50 = vsel %vm1726_vm7, %v14037_v40, %v8809_v14 }
 0x70d   : > { %v5405_v34 = vmax.f32 %v5339_v3, 0.0  ;;  %v8828_v41 = vpop.permute.xlu0 %8827  ;;  %v6570_v5 = vsel %vm3441_vm3, %v6538_v18, %v8819_v17  ;;  %v6571_v11 = vsel %vm3441_vm3, %v6539_v27, %v8820_v35  ;;  %v5654_v17 = vrot.slane %v14304_v57, 1 }
 0x70e   : > { %v8830_v42 = vunpack.i.h.bf16 %v8828_v41  ;;  %v8829_v61 = vunpack.i.l.bf16 %v8828_v41  ;;  %v8823_v19 = vpop.permute.xlu1 %8822  ;;  %9102 = vrot.lane.b32.xlu1 %v9096_v62, %s9355_s29  ;;  %v6415_v3 = vsel %vm1726_vm7, %v14042_v15, %v8810_v23  ;;  %v14376_v18 = vsel %vm519_vm0, 0.0, %v5480_v38 }
 0x70f   : > { %v5481_v53 = vrot.slane %v5405_v34, 7  ;;  %v5658_v41 = vsel %vm685_vm1, %v5655_v33, %v5657_v54  ;;  %v8824_v40 = vunpack.i.l.bf16 %v8823_v19  ;;  %v5656_v15 = vsel %vm685_vm1, %v5654_v17, %v5655_v33 }
 0x710   : > { %v6602_v2 = vsel %vm3474_vm4, %v6570_v5, %v8829_v61  ;;  %v6603_v6 = vsel %vm3474_vm4, %v6571_v11, %v8830_v42  ;;  %9112 = vrot.lane.b32.xlu0 %v9106_v9, %s9356_s19  ;;  %v8815_v5 = vunpack.i.h.bf16 %v14335_v39  ;;  %v6444_v39 = vsel %vm1858_vm11, %v6414_v50, %v8814_v55 }
 0x711   : > { %v14363_v62 = vsel %vm519_vm0, %v5480_v38, %v5481_v53  ;;  %v14366_v47 = vsel %vm519_vm0, %v5481_v53, 0.0  ;;  %v8833_v13 = vpop.permute.xlu0 %8832  ;;  %v7408_v35 = vpack.c.bf16 %v6603_v6, %v6602_v2  ;;  %v8825_v23 = vunpack.i.h.bf16 %v8823_v19 }
 0x712   : > { %v8838_v11 = vpop.permute.xlu1 %8837  ;;  %9117 = vrot.lane.b32.xlu1 %v9116_v46, %s9357_s20  ;;  %v5825_v27 = vrot.slane %v14363_v62, 2  ;;  %v5827_v34 = vrot.slane %v14366_v47, 2  ;;  %v8834_v14 = vunpack.i.l.bf16 %v8833_v13  ;;  %v6445_v38 = vsel %vm1858_vm11, %v6415_v3, %v8815_v5 }
 0x713   : > { %7409 = vmatpush1.bf16.xpose.msra.mxu1 %v7408_v35  ;;  %7489 = vmatpush1.bf16.xpose.msra.mxu0 %v7408_v35  ;;  %v8835_v53 = vunpack.i.h.bf16 %v8833_v13  ;;  %v9131_v33 = vpack.i.bf16 %v14312_v22, %v14304_v57  ;;  %v9141_v6 = vpack.i.bf16 %v5658_v41, %v5656_v15  ;;  %v8839_v55 = vunpack.i.l.bf16 %v8838_v11 }
 0x714   : > { %9122 = vrot.lane.b32.xlu0 %v9106_v9, %s9349_s17  ;;  %7412 = vmatprep.subr.msk.bf16.mxu1 %vm14078_vm5, %v14115_v26  ;;  %v5824_v9 = vrot.slane %v14376_v18, 2  ;;  %v14396_v19 = vsel %vm862_vm2, %v5825_v27, %v5827_v34  ;;  %v8840_v50 = vunpack.i.h.bf16 %v8838_v11  ;;  %v14408_v3 = vpack.i.bf16 %v14333_v21, %v14338_v10 }
 0x715   : > { %7492 = vmatprep.subr.msk.bf16.mxu0 %vm14078_vm5, %v14115_v26  ;;  %v8843_v42 = vpop.permute.xlu0 %8842  ;;  %v5343_v61 = vpop.f32.mrb[48].mxu0  ;;  %v6476_v26 = vsel %vm3342_vm13, %v6444_v39, %v8824_v40  ;;  %v5660_v11 = vrot.slane %v14363_v62, 1  ;;  %v5659_v10 = vrot.slane %v14376_v18, 1 }
 0x716   : > { %v5345_v54 = vpop.f32.mrb[49].mxu0  ;;  %9127 = vrot.lane.b32.xlu1 %v9116_v46, %s9353_s16  ;;  %v5344_v2 = vadd.f32 %v14032_v63, %v5343_v61  ;;  %v8848_v35 = vpop.permute.xlu1 %8847  ;;  %v14402_v13 = vsel %vm862_vm2, %v5824_v9, %v5825_v27  ;;  %v6477_v46 = vsel %vm3342_vm13, %v6445_v38, %v8825_v23  ;;  %v6508_v17 = vsel %vm3375_vm14, %v6476_v26, %v8834_v14 }
 0x717   : > { %v6509_v34 = vsel %vm3375_vm14, %v6477_v46, %v8835_v53  ;;  %v14415_v27 = vpack.c.bf16 %v14396_v19, %v14402_v13  ;;  %v5662_v23 = vrot.slane %v14366_v47, 1  ;;  %v6540_v61 = vsel %vm3408_vm15, %v6508_v17, %v8839_v55 }
 0x718   : > { %9132 = vrot.lane.b32.xlu0 %v9131_v33, %s9358_s21  ;;  %v5406_v41 = vmax.f32 %v5344_v2, 0.0  ;;  %v6541_v9 = vsel %vm3408_vm15, %v6509_v34, %v8840_v50  ;;  %v8845_v53 = vunpack.i.h.bf16 %v8843_v42  ;;  %v8844_v54 = vunpack.i.l.bf16 %v8843_v42 }
 0x719   : > { %v5348_v5 = vpop.f32.mrb[50].mxu0  ;;  %v5661_v17 = vsel %vm685_vm1, %v5659_v10, %v5660_v11  ;;  %v8850_v50 = vunpack.i.h.bf16 %v8848_v35  ;;  %v8849_v34 = vunpack.i.l.bf16 %v8848_v35 }
 0x71a   : > { %v5349_v40 = vadd.f32 %v14032_v63, %v5348_v5  ;;  %v8853_v15 = vpop.permute.xlu0 %8852  ;;  %v5350_v39 = vpop.f32.mrb[51].mxu0  ;;  %9142 = vrot.lane.b32.xlu1 %v9141_v6, %s9359_s22  ;;  %v5483_v26 = vrot.slane %v5406_v41, 7 }
 0x71b   : > { %v8855_v14 = vunpack.i.h.bf16 %v8853_v15  ;;  %v8854_v21 = vunpack.i.l.bf16 %v8853_v15  ;;  %v5663_v15 = vsel %vm685_vm1, %v5660_v11, %v5662_v23  ;;  %v6417_v23 = vsel %vm1726_vm7, %v14066_v31, %v8845_v53 }
 0x71c   : > { %v5407_v38 = vmax.f32 %v5349_v40, 0.0  ;;  %9137 = vrot.lane.b32.xlu0 %v9131_v33, %s9355_s29  ;;  %v8863_v63 = vpop.permute.xlu1 %8862  ;;  %v14445_v31 = vpack.i.bf16 %v5663_v15, %v5661_v17  ;;  %v6447_v53 = vsel %vm1858_vm11, %v6417_v23, %v8850_v50 }
 0x71d   : > { %v8865_v2 = vunpack.i.h.bf16 %v8863_v63  ;;  %v6573_v5 = vsel %vm3441_vm3, %v6541_v9, %v8855_v14  ;;  %v8864_v47 = vunpack.i.l.bf16 %v8863_v63  ;;  %v6572_v55 = vsel %vm3441_vm3, %v6540_v61, %v8854_v21 }
 0x71e   : > { %v5484_v46 = vrot.slane %v5407_v38, 7  ;;  %v8858_v39 = vpop.permute.xlu0 %8857  ;;  %9147 = vrot.lane.b32.xlu1 %v9141_v6, %s9356_s19  ;;  %v6416_v14 = vsel %vm1726_vm7, %v14061_v37, %v8844_v54  ;;  %v14448_v37 = vsel %vm519_vm0, 0.0, %v5483_v26 }
 0x71f   : > { %v6605_v33 = vsel %vm3474_vm4, %v6573_v5, %v8865_v2  ;;  %v6604_v41 = vsel %vm3474_vm4, %v6572_v55, %v8864_v47  ;;  %v8860_v21 = vunpack.i.h.bf16 %v8858_v39  ;;  %v8859_v10 = vunpack.i.l.bf16 %v8858_v39 }
 0x720   : > { %v14430_v42 = vsel %vm519_vm0, %v5483_v26, %v5484_v46  ;;  %9152 = vrot.lane.b32.xlu0 %v14408_v3, %s9357_s20  ;;  %v8868_v40 = vpop.permute.xlu1 %8867  ;;  %v14440_v11 = vsel %vm519_vm0, %v5484_v46, 0.0  ;;  %v7413_v35 = vpack.c.bf16 %v6605_v33, %v6604_v41  ;;  %v9166_v5 = vpack.i.bf16 %v14363_v62, %v14376_v18  ;;  %v14455_v46 = vld [vmem:[%s15091_s6] ss:$0 sm:$0xff] }
 0x721   : > { %v8870_v61 = vunpack.i.h.bf16 %v8868_v40  ;;  %v8869_v9 = vunpack.i.l.bf16 %v8868_v40  ;;  %v6446_v54 = vsel %vm1858_vm11, %v6416_v14, %v8849_v34  ;;  %v5830_v39 = vrot.slane %v14430_v42, 2 }
 0x722   : > { %v8873_v38 = vpop.permute.xlu0 %8872  ;;  %9157 = vrot.lane.b32.xlu1 %v9141_v6, %s9349_s17  ;;  %v5353_v63 = vpop.f32.mrb[52].mxu0  ;;  %7414 = vmatpush1.bf16.xpose.msra.mxu1 %v7413_v35  ;;  %v5832_v15 = vrot.slane %v14440_v11, 2  ;;  %v6479_v26 = vsel %vm3342_vm13, %v6447_v53, %v8860_v21  ;;  %v6478_v33 = vsel %vm3342_vm13, %v6446_v54, %v8859_v10  ;;  %v14478_v14 = vpack.i.bf16 %v14396_v19, %v14402_v13 }
 0x723   : > { %v5355_v2 = vpop.f32.mrb[53].mxu0  ;;  %v5354_v6 = vadd.f32 %v14455_v46, %v5353_v63  ;;  %7494 = vmatpush1.bf16.xpose.msra.mxu0 %v7413_v35  ;;  %v8875_v55 = vunpack.i.h.bf16 %v8873_v38  ;;  %7417 = vmatprep.subr.msk.bf16.mxu1 %vm14078_vm5, %v14143_v16  ;;  %v6511_v17 = vsel %vm3375_vm14, %v6479_v26, %v8870_v61  ;;  %v8874_v50 = vunpack.i.l.bf16 %v8873_v38 }
 0x724   : > { %v8878_v47 = vpop.permute.xlu1 %8877  ;;  %9162 = vrot.lane.b32.xlu0 %v14408_v3, %s9353_s16  ;;  %7497 = vmatprep.subr.msk.bf16.mxu0 %vm14078_vm5, %v14143_v16  ;;  %v5829_v3 = vrot.slane %v14448_v37, 2  ;;  %v6510_v40 = vsel %vm3375_vm14, %v6478_v33, %v8869_v9  ;;  %v5665_v21 = vrot.slane %v14430_v42, 1  ;;  %v5667_v35 = vrot.slane %v14440_v11, 1 }
 0x725   : > { %v5408_v10 = vmax.f32 %v5354_v6, 0.0  ;;  %v14484_v38 = vsel %vm862_vm2, %v5830_v39, %v5832_v15  ;;  %v6543_v63 = vsel %vm3408_vm15, %v6511_v17, %v8875_v55  ;;  %v6542_v19 = vsel %vm3408_vm15, %v6510_v40, %v8874_v50 }
 0x726   : > { %v14471_v34 = vpop.permute.xlu0 %8882  ;;  %9167 = vrot.lane.b32.xlu1 %v9166_v5, %s9358_s21  ;;  %v5358_v41 = vpop.f32.mrb[54].mxu0  ;;  %v8879_v13 = vunpack.i.l.bf16 %v8878_v47  ;;  %v14492_v11 = vsel %vm862_vm2, %v5829_v3, %v5830_v39  ;;  %v5664_v6 = vrot.slane %v14448_v37, 1  ;;  %v8880_v15 = vunpack.i.h.bf16 %v8878_v47 }
 0x727   : > { %v5360_v23 = vpop.f32.mrb[55].mxu0  ;;  %v5359_v16 = vadd.f32 %v14455_v46, %v5358_v41  ;;  %v5486_v33 = vrot.slane %v5408_v10, 7  ;;  %v5668_v40 = vsel %vm685_vm1, %v5665_v21, %v5667_v35  ;;  %v14504_v47 = vpack.c.bf16 %v14484_v38, %v14492_v11 }
 0x728   : > { %v8888_v61 = vpop.permute.xlu1 %8887  ;;  %9177 = vrot.lane.b32.xlu0 %v14445_v31, %s9359_s22  ;;  %v6418_v39 = vsel %vm1726_vm7, %v14095_v44, %v8879_v13  ;;  %v6419_v44 = vsel %vm1726_vm7, %v14100_v48, %v8880_v15 }
 0x729   : > { %v8890_v9 = vunpack.i.h.bf16 %v8888_v61  ;;  %v8889_v2 = vunpack.i.l.bf16 %v8888_v61  ;;  %v5409_v53 = vmax.f32 %v5359_v16, 0.0  ;;  %v8884_v16 = vunpack.i.l.bf16 %v14471_v34 }
 0x72a   : > { %v8898_v54 = vpop.permute.xlu0 %8897  ;;  %9172 = vrot.lane.b32.xlu1 %v9166_v5, %s9355_s29  ;;  %v5666_v5 = vsel %vm685_vm1, %v5664_v6, %v5665_v21  ;;  %v8885_v21 = vunpack.i.h.bf16 %v14471_v34  ;;  %v14527_v34 = vsel %vm519_vm0, 0.0, %v5486_v33 }
 0x72b   : > { %v6574_v26 = vsel %vm3441_vm3, %v6542_v19, %v8889_v2  ;;  %v6575_v55 = vsel %vm3441_vm3, %v6543_v63, %v8890_v9  ;;  %v5487_v17 = vrot.slane %v5409_v53, 7  ;;  %v8900_v41 = vunpack.i.h.bf16 %v8898_v54  ;;  %16113 = vst [vmem:[#allocation109_spill] sm:$0xff] %v14527_v34 }
 0x72c   : > { %v8899_v23 = vunpack.i.l.bf16 %v8898_v54  ;;  %v8893_v50 = vpop.permute.xlu1 %8892  ;;  %9182 = vrot.lane.b32.xlu0 %v14445_v31, %s9356_s19  ;;  %v9201_v9 = vpack.i.bf16 %v14430_v42, %v14448_v37  ;;  %v6448_v53 = vsel %vm1858_vm11, %v6418_v39, %v8884_v16 }
 0x72d   : > { %v14509_v3 = vsel %vm519_vm0, %v5486_v33, %v5487_v17  ;;  %v6607_v35 = vsel %vm3474_vm4, %v6575_v55, %v8900_v41  ;;  %v5571_v63 = vsel %vm519_vm0, %v5487_v17, 0.0  ;;  %v8895_v19 = vunpack.i.h.bf16 %v8893_v50 }
 0x72e   : > { %v6606_v10 = vsel %vm3474_vm4, %v6574_v26, %v8899_v23  ;;  %v8903_v61 = vpop.permute.xlu0 %8902  ;;  %9187 = vrot.lane.b32.xlu1 %v14478_v14, %s9357_s20  ;;  %v8894_v54 = vunpack.i.l.bf16 %v8893_v50  ;;  %v14524_v26 = vpack.i.bf16 %v5668_v40, %v5666_v5  ;;  %v5670_v55 = vrot.slane %v14509_v3, 1 }
 0x72f   : > { %v7418_v2 = vpack.c.bf16 %v6607_v35, %v6606_v10  ;;  %v5672_v17 = vrot.slane %v5571_v63, 1  ;;  %v6449_v23 = vsel %vm1858_vm11, %v6419_v44, %v8885_v21  ;;  %v5837_v50 = vrot.slane %v5571_v63, 2 }
 0x730   : > { %v8908_v13 = vpop.permute.xlu1 %8907  ;;  %9192 = vrot.lane.b32.xlu0 %v14445_v31, %s9349_s17  ;;  %v5835_v31 = vrot.slane %v14509_v3, 2  ;;  %v8905_v40 = vunpack.i.h.bf16 %v8903_v61  ;;  %v6481_v33 = vsel %vm3342_vm13, %v6449_v23, %v8895_v19  ;;  %v8904_v16 = vunpack.i.l.bf16 %v8903_v61 }
 0x731   : > { %v5363_v6 = vpop.f32.mrb[56].mxu0  ;;  %7419 = vmatpush1.bf16.xpose.msra.mxu1 %v7418_v2  ;;  %7499 = vmatpush1.bf16.xpose.msra.mxu0 %v7418_v2  ;;  %v8910_v5 = vunpack.i.h.bf16 %v8908_v13  ;;  %v5669_v10 = vrot.slane %v14527_v34, 1  ;;  %v5834_v35 = vrot.slane %v14527_v34, 2  ;;  %v6480_v21 = vsel %vm3342_vm13, %v6448_v53, %v8894_v54 }
 0x732   : > { %v14530_v48 = vpop.permute.xlu0 %8912  ;;  %v5364_v15 = vadd.f32 %v14455_v46, %v5363_v6  ;;  %v5365_v41 = vpop.f32.mrb[57].mxu0  ;;  %7422 = vmatprep.subr.msk.bf16.mxu1 %vm14078_vm5, %v14170_v52  ;;  %7502 = vmatprep.subr.msk.bf16.mxu0 %vm14078_vm5, %v14170_v52  ;;  %v8909_v63 = vunpack.i.l.bf16 %v8908_v13  ;;  %v5673_v52 = vsel %vm685_vm1, %v5670_v55, %v5672_v17  ;;  %v6513_v23 = vsel %vm3375_vm14, %v6481_v33, %v8905_v40 }
 0x733   : > { %9197 = vrot.lane.b32.xlu1 %v14478_v14, %s9353_s16  ;;  %v9221_v14 = vpack.i.bf16 %v14484_v38, %v14492_v11  ;;  %v14553_v41 = vsel %vm862_vm2, %v5835_v31, %v5837_v50  ;;  %v6512_v54 = vsel %vm3375_vm14, %v6480_v21, %v8904_v16  ;;  %v6545_v32 = vsel %vm3408_vm15, %v6513_v23, %v8910_v5 }
 0x734   : > { %v8918_v39 = vpop.permute.xlu1 %8917  ;;  %9202 = vrot.lane.b32.xlu0 %v9201_v9, %s9358_s21  ;;  %v5410_v2 = vmax.f32 %v5364_v15, 0.0  ;;  %v6544_v38 = vsel %vm3408_vm15, %v6512_v54, %v8909_v63  ;;  %v8915_v11 = vunpack.i.h.bf16 %v14530_v48  ;;  %v8914_v50 = vunpack.i.l.bf16 %v14530_v48 }
 0x735   : > { %v5368_v44 = vpop.f32.mrb[58].mxu0  ;;  %v5671_v40 = vsel %vm685_vm1, %v5669_v10, %v5670_v55  ;;  %v8919_v63 = vunpack.i.l.bf16 %v8918_v39 }
 0x736   : > { %v8923_v19 = vpop.permute.xlu0 %8922  ;;  %v5369_v61 = vadd.f32 %v14455_v46, %v5368_v44  ;;  %v5370_v6 = vpop.f32.mrb[59].mxu0  ;;  %v14561_v44 = vsel %vm862_vm2, %v5834_v35, %v5835_v31  ;;  %v5489_v33 = vrot.slane %v5410_v2, 7 }
 0x737   : > { %v8925_v53 = vunpack.i.h.bf16 %v8923_v19  ;;  %v8924_v13 = vunpack.i.l.bf16 %v8923_v19  ;;  %9212 = vrot.lane.b32.xlu1 %v14524_v26, %s9359_s22  ;;  %v14572_v35 = vpack.c.bf16 %v14553_v41, %v14561_v44 }
 0x738   : > { %v5411_v17 = vmax.f32 %v5369_v61, 0.0  ;;  %v8933_v15 = vpop.permute.xlu1 %8932  ;;  %9207 = vrot.lane.b32.xlu0 %v9201_v9, %s9355_s29  ;;  %v8920_v61 = vunpack.i.h.bf16 %v8918_v39  ;;  %v6421_v39 = vsel %vm1726_vm7, %v14128_v7, %v8915_v11 }
 0x739   : > { %v8935_v5 = vunpack.i.h.bf16 %v8933_v15  ;;  %v8934_v21 = vunpack.i.l.bf16 %v8933_v15  ;;  %v6576_v6 = vsel %vm3441_vm3, %v6544_v38, %v8924_v13  ;;  %v6577_v31 = vsel %vm3441_vm3, %v6545_v32, %v8925_v53 }
 0x73a   : > { %v5490_v16 = vrot.slane %v5411_v17, 7  ;;  %v8928_v19 = vpop.permute.xlu0 %8927  ;;  %v9236_v53 = vpack.i.bf16 %v14509_v3, %v14527_v34  ;;  %v6420_v13 = vsel %vm1726_vm7, %v14121_v59, %v8914_v50 }
 0x73b   : > { %v6608_v9 = vsel %vm3474_vm4, %v6576_v6, %v8934_v21  ;;  %v6609_v55 = vsel %vm3474_vm4, %v6577_v31, %v8935_v5  ;;  %9217 = vrot.lane.b32.xlu1 %v14524_v26, %s9356_s19  ;;  %v8929_v23 = vunpack.i.l.bf16 %v8928_v19  ;;  %v8930_v17 = vunpack.i.h.bf16 %v8928_v19 }
 0x73c   : > { %v14575_v48 = vsel %vm519_vm0, %v5489_v33, %v5490_v16  ;;  %v8938_v10 = vpop.permute.xlu1 %8937  ;;  %v5373_v2 = vpop.f32.mrb[60].mxu0  ;;  %9222 = vrot.lane.b32.xlu0 %v9221_v14, %s9357_s20  ;;  %v7423_v54 = vpack.c.bf16 %v6609_v55, %v6608_v9  ;;  %v14589_v6 = vpack.i.bf16 %v5673_v52, %v5671_v40  ;;  %v14592_v31 = vsel %vm519_vm0, 0.0, %v5489_v33 }
 0x73d   : > { %v5375_v32 = vpop.f32.mrb[61].mxu0  ;;  %v8940_v38 = vunpack.i.h.bf16 %v8938_v10  ;;  %v8939_v5 = vunpack.i.l.bf16 %v8938_v10  ;;  %v5374_v21 = vadd.f32 %v14455_v46, %v5373_v2  ;;  %v6450_v34 = vsel %vm1858_vm11, %v6420_v13, %v8919_v63 }
 0x73e   : > { %v8943_v15 = vpop.permute.xlu0 %8942  ;;  %v6451_v32 = vsel %vm1858_vm11, %v6421_v39, %v8920_v61  ;;  %7424 = vmatpush1.bf16.xpose.msra.mxu1 %v7423_v54  ;;  %v5572_v11 = vsel %vm519_vm0, %v5490_v16, 0.0  ;;  %v6482_v50 = vsel %vm3342_vm13, %v6450_v34, %v8929_v23  ;;  %7504 = vmatpush1.bf16.xpose.msra.mxu0 %v7423_v54  ;;  %v5674_v16 = vrot.slane %v14592_v31, 1 }
 0x73f   : > { %9227 = vrot.lane.b32.xlu1 %v14524_v26, %s9349_s17  ;;  %v5412_v19 = vmax.f32 %v5374_v21, 0.0  ;;  %v6483_v40 = vsel %vm3342_vm13, %v6451_v32, %v8930_v17  ;;  %v8945_v33 = vunpack.i.h.bf16 %v8943_v15  ;;  %v8944_v61 = vunpack.i.l.bf16 %v8943_v15  ;;  %7427 = vmatprep.subr.msk.bf16.mxu1 %vm14078_vm5, %v14193_v43 }
 0x740   : > { %v8948_v59 = vpop.permute.xlu1 %8947  ;;  %v5378_v7 = vpop.f32.mrb[62].mxu0  ;;  %9232 = vrot.lane.b32.xlu0 %v9221_v14, %s9353_s16  ;;  %7507 = vmatprep.subr.msk.bf16.mxu0 %vm14078_vm5, %v14193_v43  ;;  %v5839_v14 = vrot.slane %v14592_v31, 2  ;;  %v6514_v63 = vsel %vm3375_vm14, %v6482_v50, %v8939_v5  ;;  %v6515_v9 = vsel %vm3375_vm14, %v6483_v40, %v8940_v38  ;;  %v5675_v55 = vrot.slane %v14575_v48, 1 }
 0x741   : > { %v5380_v52 = vpop.f32.mrb[63].mxu0  ;;  %v5379_v26 = vadd.f32 %v14455_v46, %v5378_v7  ;;  %v5677_v10 = vrot.slane %v5572_v11, 1  ;;  %v5840_v2 = vrot.slane %v14575_v48, 2  ;;  %v5492_v46 = vrot.slane %v5412_v19, 7 }
 0x742   : > { %v14609_v34 = vpop.permute.xlu0 %8952  ;;  %v8950_v39 = vunpack.i.h.bf16 %v8948_v59  ;;  %v5842_v17 = vrot.slane %v5572_v11, 2  ;;  %v6546_v15 = vsel %vm3408_vm15, %v6514_v63, %v8944_v61  ;;  %v6547_v38 = vsel %vm3408_vm15, %v6515_v9, %v8945_v33 }
 0x743   : > { %v5413_v23 = vmax.f32 %v5379_v26, 0.0  ;;  %9237 = vrot.lane.b32.xlu1 %v9236_v53, %s9358_s21  ;;  %v8949_v19 = vunpack.i.l.bf16 %v8948_v59  ;;  %v9256_v61 = vpack.i.bf16 %v14553_v41, %v14561_v44  ;;  %v5557_v33 = vsel %vm519_vm0, 0.0, %v5492_v46 }
 0x744   : > { %v8958_v43 = vpop.permute.xlu1 %8957  ;;  %9247 = vrot.lane.b32.xlu0 %v14589_v6, %s9359_s22  ;;  %v6423_v63 = vsel %vm1726_vm7, %v14154_v25, %v8950_v39  ;;  %v8955_v9 = vunpack.i.h.bf16 %v14609_v34  ;;  %v14639_v41 = vsel %vm862_vm2, %v5840_v2, %v5842_v17  ;;  %v8954_v44 = vunpack.i.l.bf16 %v14609_v34 }
 0x745   : > { %v8960_v13 = vunpack.i.h.bf16 %v8958_v43  ;;  %v8959_v54 = vunpack.i.l.bf16 %v8958_v43  ;;  %v5493_v5 = vrot.slane %v5413_v23, 7  ;;  %v6422_v39 = vsel %vm1726_vm7, %v14148_v8, %v8949_v19 }
 0x746   : > { %v8968_v21 = vpop.permute.xlu0 %8967 }
 0x747   : > { %v6578_v32 = vsel %vm3441_vm3, %v6546_v15, %v8959_v54  ;;  %v6579_v7 = vsel %vm3441_vm3, %v6547_v38, %v8960_v13  ;;  %v8970_v50 = vunpack.i.h.bf16 %v8968_v21  ;;  %v8969_v52 = vunpack.i.l.bf16 %v8968_v21  ;;  %9242 = vrot.lane.b32.xlu1 %v9236_v53, %s9355_s29 }
 0x748   : > { %v5494_v40 = vsel %vm519_vm0, %v5492_v46, %v5493_v5  ;;  %v5573_v26 = vsel %vm519_vm0, %v5493_v5, 0.0  ;;  %v8963_v11 = vpop.permute.xlu1 %8962  ;;  %9252 = vrot.lane.b32.xlu0 %v14589_v6, %s9356_s19  ;;  %v5678_v54 = vsel %vm685_vm1, %v5675_v55, %v5677_v10  ;;  %v6032_v46 = vrot.slane %v5557_v33, 1 }
 0x749   : > { %v6033_v59 = vrot.slane %v5494_v40, 1  ;;  %v6035_v23 = vrot.slane %v5573_v26, 1  ;;  %v6610_v43 = vsel %vm3474_vm4, %v6578_v32, %v8969_v52  ;;  %v6611_v53 = vsel %vm3474_vm4, %v6579_v7, %v8970_v50 }
 0x74a   : > { %v8973_v13 = vpop.permute.xlu0 %8972  ;;  %v7428_v25 = vpack.c.bf16 %v6611_v53, %v6610_v43  ;;  %v9271_v38 = vpack.i.bf16 %v14575_v48, %v14592_v31  ;;  %v5676_v5 = vsel %vm685_vm1, %v5674_v16, %v5675_v55  ;;  %v6134_v21 = vrot.slane %v5494_v40, 2 }
 0x74b   : > { %9257 = vrot.lane.b32.xlu1 %v9256_v61, %s9357_s20  ;;  %v6453_v10 = vsel %vm1858_vm11, %v6423_v63, %v8955_v9  ;;  %v8965_v17 = vunpack.i.h.bf16 %v8963_v11  ;;  %v8964_v32 = vunpack.i.l.bf16 %v8963_v11  ;;  %v6136_v34 = vrot.slane %v5573_v26, 2 }
 0x74c   : > { %v8978_v15 = vpop.permute.xlu1 %8977  ;;  %7429 = vmatpush1.bf16.xpose.msra.mxu1 %v7428_v25  ;;  %7509 = vmatpush1.bf16.xpose.msra.mxu0 %v7428_v25  ;;  %v6034_v7 = vsel %vm685_vm1, %v6032_v46, %v6033_v59  ;;  %v6036_v16 = vsel %vm685_vm1, %v6033_v59, %v6035_v23  ;;  %v14656_v55 = vpack.i.bf16 %v5494_v40, %v5557_v33  ;;  %v6133_v50 = vrot.slane %v5557_v33, 2 }
 0x74d   : > { %9262 = vrot.lane.b32.xlu0 %v14589_v6, %s9349_s17  ;;  %7432 = vmatprep.subr.msk.bf16.mxu1 %vm14078_vm5, %v14219_v24  ;;  %v6452_v52 = vsel %vm1858_vm11, %v6422_v39, %v8954_v44  ;;  %v8975_v19 = vunpack.i.h.bf16 %v8973_v13  ;;  %v5841_v6 = vsel %vm862_vm2, %v5839_v14, %v5840_v2  ;;  %v8974_v26 = vunpack.i.l.bf16 %v8973_v13 }
 0x74e   : > { %v8983_v8 = vpop.permute.xlu0 %8982  ;;  %7512 = vmatprep.subr.msk.bf16.mxu0 %vm14078_vm5, %v14219_v24  ;;  %v14666_v63 = vpack.i.bf16 %v6036_v16, %v6034_v7  ;;  %v6484_v40 = vsel %vm3342_vm13, %v6452_v52, %v8964_v32  ;;  %v6485_v33 = vsel %vm3342_vm13, %v6453_v10, %v8965_v17  ;;  %v8980_v9 = vunpack.i.h.bf16 %v8978_v15 }
 0x74f   : > { %9267 = vrot.lane.b32.xlu1 %v9256_v61, %s9353_s16  ;;  %v8979_v59 = vunpack.i.l.bf16 %v8978_v15  ;;  %v9281_v24 = vpack.i.bf16 %v5678_v54, %v5676_v5  ;;  %v14672_v43 = vsel %vm862_vm2, %v6133_v50, %v6134_v21  ;;  %v14675_v14 = vsel %vm862_vm2, %v6134_v21, %v6136_v34 }
 0x750   : > { %v8988_v11 = vpop.permute.xlu1 %8987  ;;  %v14678_v2 = vpack.c.bf16 %v14639_v41, %v5841_v6  ;;  %v6516_v13 = vsel %vm3375_vm14, %v6484_v40, %v8974_v26  ;;  %v6517_v44 = vsel %vm3375_vm14, %v6485_v33, %v8975_v19  ;;  %v9326_v54 = vpack.i.bf16 %v14675_v14, %v14672_v43 }
 0x751   : > { %9272 = vrot.lane.b32.xlu0 %v9271_v38, %s9358_s21  ;;  %v14687_v46 = vpack.c.bf16 %v14675_v14, %v14672_v43  ;;  %v6548_v39 = vsel %vm3408_vm15, %v6516_v13, %v8979_v59  ;;  %v6549_v15 = vsel %vm3408_vm15, %v6517_v44, %v8980_v9  ;;  %v8985_v16 = vunpack.i.h.bf16 %v8983_v8 }
 0x752   : > { %v8993_v23 = vpop.permute.xlu0 %8992  ;;  %v8984_v50 = vunpack.i.l.bf16 %v8983_v8  ;;  %v9291_v19 = vpack.i.bf16 %v14639_v41, %v5841_v6  ;;  %v8990_v40 = vunpack.i.h.bf16 %v8988_v11  ;;  %v8989_v33 = vunpack.i.l.bf16 %v8988_v11 }
 0x753   : > { %v8995_v61 = vunpack.i.h.bf16 %v8993_v23  ;;  %v8994_v53 = vunpack.i.l.bf16 %v8993_v23  ;;  %9282 = vrot.lane.b32.xlu1 %v9281_v24, %s9359_s22  ;;  %v6425_v8 = vsel %vm1726_vm7, %v14180_v51, %v8985_v16 }
 0x754   : > { %v9003_v25 = vpop.permute.xlu1 %9002  ;;  %v6424_v41 = vsel %vm1726_vm7, %v14176_v60, %v8984_v50  ;;  %v6455_v11 = vsel %vm1858_vm11, %v6425_v8, %v8990_v40  ;;  %v14728_v50 = vld [vmem:[%s15095_s10] sm:$0x77] }
 0x755   : > { %v9005_v5 = vunpack.i.h.bf16 %v9003_v25  ;;  %v9004_v21 = vunpack.i.l.bf16 %v9003_v25  ;;  %v6580_v10 = vsel %vm3441_vm3, %v6548_v39, %v8994_v53  ;;  %v6581_v17 = vsel %vm3441_vm3, %v6549_v15, %v8995_v61  ;;  %9277 = vrot.lane.b32.xlu0 %v9271_v38, %s9355_s29 }
 0x756   : > { %v8998_v32 = vpop.permute.xlu0 %8997  ;;  %v6454_v53 = vsel %vm1858_vm11, %v6424_v41, %v8989_v33 }
 0x757   : > { %v6612_v34 = vsel %vm3474_vm4, %v6580_v10, %v9004_v21  ;;  %v6613_v7 = vsel %vm3474_vm4, %v6581_v17, %v9005_v5  ;;  %9287 = vrot.lane.b32.xlu1 %v9281_v24, %s9356_s19  ;;  %v9000_v9 = vunpack.i.h.bf16 %v8998_v32  ;;  %v8999_v59 = vunpack.i.l.bf16 %v8998_v32 }
 0x758   : > { %v7433_v52 = vpack.c.bf16 %v6613_v7, %v6612_v34  ;;  %v9008_v26 = vpop.permute.xlu1 %9007 }
 0x759   : > { %9292 = vrot.lane.b32.xlu0 %v9291_v19, %s9357_s20  ;;  %v9010_v23 = vunpack.i.h.bf16 %v9008_v26  ;;  %v9009_v61 = vunpack.i.l.bf16 %v9008_v26  ;;  %v6486_v13 = vsel %vm3342_vm13, %v6454_v53, %v8999_v59  ;;  %v6487_v44 = vsel %vm3342_vm13, %v6455_v11, %v9000_v9 }
 0x75a   : > { %v9013_v38 = vpop.permute.xlu0 %9012  ;;  %7434 = vmatpush1.bf16.xpose.msra.mxu1 %v7433_v52  ;;  %7514 = vmatpush1.bf16.xpose.msra.mxu0 %v7433_v52  ;;  %v6778_v26 = vcombine.high %v14728_v50, %v14728_v50 }
 0x75b   : > { %7437 = vmatprep.subr.msk.bf16.mxu1 %vm14078_vm5, %v14245_v20  ;;  %9297 = vrot.lane.b32.xlu1 %v9281_v24, %s9349_s17  ;;  %v9015_v25 = vunpack.i.h.bf16 %v9013_v38  ;;  %v9014_v51 = vunpack.i.l.bf16 %v9013_v38  ;;  %v6518_v24 = vsel %vm3375_vm14, %v6486_v13, %v9009_v61  ;;  %v6519_v39 = vsel %vm3375_vm14, %v6487_v44, %v9010_v23 }
 0x75c   : > { %7517 = vmatprep.subr.msk.bf16.mxu0 %vm14078_vm5, %v14245_v20  ;;  %v9018_v6 = vpop.permute.xlu1 %9017  ;;  %7209 = vmatprep.mubr.msk.f32.mxu0 %vm1726_vm7, %v6778_v26 }
 0x75d   : > { %9307 = vrot.lane.b32.xlu0 %v14666_v63, %s9359_s22  ;;  %v6550_v21 = vsel %vm3408_vm15, %v6518_v24, %v9014_v51  ;;  %v6551_v10 = vsel %vm3408_vm15, %v6519_v39, %v9015_v25  ;;  %v9019_v40 = vunpack.i.l.bf16 %v9018_v6  ;;  %s453_s22 = scalar_lea.vmem %s15098_s13, %s7246_s14 }
 0x75e   : > { %v9023_v60 = vpop.permute.xlu0 %9022 }
 0x75f   : > { %9302 = vrot.lane.b32.xlu1 %v14656_v55, %s9358_s21  ;;  %v9025_v23 = vunpack.i.h.bf16 %v9023_v60  ;;  %v9024_v61 = vunpack.i.l.bf16 %v9023_v60  ;;  %v6426_v41 = vsel %vm1726_vm7, %v14203_v58, %v9019_v40 }
 0x760   : > { %v9028_v20 = vpop.permute.xlu1 %9027 }
 0x761   : > { %v9030_v15 = vunpack.i.h.bf16 %v9028_v20  ;;  %v9029_v5 = vunpack.i.l.bf16 %v9028_v20  ;;  %9312 = vrot.lane.b32.xlu0 %v9291_v19, %s9353_s16  ;;  %v9020_v19 = vunpack.i.h.bf16 %v9018_v6  ;;  %v6456_v14 = vsel %vm1858_vm11, %v6426_v41, %v9024_v61 }
 0x762   : > { %v9038_v17 = vpop.permute.xlu0 %9037 }
 0x763   : > { %v6582_v32 = vsel %vm3441_vm3, %v6550_v21, %v9029_v5  ;;  %v6583_v34 = vsel %vm3441_vm3, %v6551_v10, %v9030_v15  ;;  %v9040_v7 = vunpack.i.h.bf16 %v9038_v17  ;;  %v9039_v16 = vunpack.i.l.bf16 %v9038_v17  ;;  %9317 = vrot.lane.b32.xlu1 %v14656_v55, %s9355_s29 }
 0x764   : > { %v9033_v52 = vpop.permute.xlu1 %9032  ;;  %v6427_v8 = vsel %vm1726_vm7, %v14207_v29, %v9020_v19 }
 0x765   : > { %v6614_v33 = vsel %vm3474_vm4, %v6582_v32, %v9039_v16  ;;  %v6615_v9 = vsel %vm3474_vm4, %v6583_v34, %v9040_v7  ;;  %9322 = vrot.lane.b32.xlu0 %v14666_v63, %s9356_s19  ;;  %v9035_v6 = vunpack.i.h.bf16 %v9033_v52  ;;  %v9034_v63 = vunpack.i.l.bf16 %v9033_v52 }
 0x766   : > { %v7438_v59 = vpack.c.bf16 %v6615_v9, %v6614_v33  ;;  %v9043_v38 = vpop.permute.xlu0 %9042 }
 0x767   : > { %9327 = vrot.lane.b32.xlu1 %v9326_v54, %s9357_s20  ;;  %v6457_v54 = vsel %vm1858_vm11, %v6427_v8, %v9025_v23  ;;  %v9045_v29 = vunpack.i.h.bf16 %v9043_v38  ;;  %v9044_v11 = vunpack.i.l.bf16 %v9043_v38  ;;  %v6488_v58 = vsel %vm3342_vm13, %v6456_v14, %v9034_v63 }
 0x768   : > { %7439 = vmatpush1.bf16.xpose.msra.mxu1 %v7438_v59  ;;  %v9048_v55 = vpop.permute.xlu1 %9047  ;;  %7519 = vmatpush1.bf16.xpose.msra.mxu0 %v7438_v59  ;;  %v6489_v13 = vsel %vm3342_vm13, %v6457_v54, %v9035_v6 }
 0x769   : > { %7442 = vmatprep.subr.msk.bf16.mxu1 %vm14078_vm5, %v14272_v36  ;;  %7522 = vmatprep.subr.msk.bf16.mxu0 %vm14078_vm5, %v14272_v36  ;;  %v9050_v44 = vunpack.i.h.bf16 %v9048_v55  ;;  %v9049_v25 = vunpack.i.l.bf16 %v9048_v55  ;;  %v6520_v39 = vsel %vm3375_vm14, %v6488_v58, %v9044_v11  ;;  %v6521_v36 = vsel %vm3375_vm14, %v6489_v13, %v9045_v29 }
 0x76a   : > { %v9053_v43 = vpop.permute.xlu0 %9052 }
 0x76b   : > { %v6552_v15 = vsel %vm3408_vm15, %v6520_v39, %v9049_v25  ;;  %v6553_v5 = vsel %vm3408_vm15, %v6521_v36, %v9050_v44  ;;  %v9055_v52 = vunpack.i.h.bf16 %v9053_v43  ;;  %v9054_v26 = vunpack.i.l.bf16 %v9053_v43 }
 0x76c   : > { %v9058_v53 = vpop.permute.xlu1 %9057 }
 0x76d   : > { %v9060_v33 = vunpack.i.h.bf16 %v9058_v53  ;;  %v9059_v9 = vunpack.i.l.bf16 %v9058_v53  ;;  %v6429_v8 = vsel %vm1726_vm7, %v14234_v28, %v9055_v52  ;;  %v6428_v41 = vsel %vm1726_vm7, %v14230_v4, %v9054_v26 }
 0x76e   : > { %v9063_v51 = vpop.permute.xlu0 %9062 }
 0x76f   : > { %v9065_v60 = vunpack.i.h.bf16 %v9063_v51  ;;  %v9064_v24 = vunpack.i.l.bf16 %v9063_v51  ;;  %v6459_v63 = vsel %vm1858_vm11, %v6429_v8, %v9060_v33  ;;  %v6458_v43 = vsel %vm1858_vm11, %v6428_v41, %v9059_v9 }
 0x770   : > { %v9073_v20 = vpop.permute.xlu1 %9072 }
 0x771   : > { %v9075_v21 = vunpack.i.h.bf16 %v9073_v20  ;;  %v9074_v10 = vunpack.i.l.bf16 %v9073_v20  ;;  %v6584_v17 = vsel %vm3441_vm3, %v6552_v15, %v9064_v24  ;;  %v6585_v32 = vsel %vm3441_vm3, %v6553_v5, %v9065_v60 }
 0x772   : > { %v9068_v34 = vpop.permute.xlu0 %9067 }
 0x773   : > { %v6616_v7 = vsel %vm3474_vm4, %v6584_v17, %v9074_v10  ;;  %v6617_v16 = vsel %vm3474_vm4, %v6585_v32, %v9075_v21  ;;  %v9070_v59 = vunpack.i.h.bf16 %v9068_v34  ;;  %v9069_v38 = vunpack.i.l.bf16 %v9068_v34 }
 0x774   : > { %v7443_v19 = vpack.c.bf16 %v6617_v16, %v6616_v7  ;;  %v9078_v40 = vpop.permute.xlu1 %9077 }
 0x775   : > { %v9080_v61 = vunpack.i.h.bf16 %v9078_v40  ;;  %v9079_v55 = vunpack.i.l.bf16 %v9078_v40  ;;  %v6490_v14 = vsel %vm3342_vm13, %v6458_v43, %v9069_v38  ;;  %v6491_v54 = vsel %vm3342_vm13, %v6459_v63, %v9070_v59 }
 0x776   : > { %v9083_v23 = vpop.permute.xlu0 %9082  ;;  %7444 = vmatpush1.bf16.xpose.msra.mxu1 %v7443_v19  ;;  %7524 = vmatpush1.bf16.xpose.msra.mxu0 %v7443_v19 }
 0x777   : > { %7447 = vmatprep.subr.msk.bf16.mxu1 %vm14078_vm5, %v14307_v1  ;;  %7527 = vmatprep.subr.msk.bf16.mxu0 %vm14078_vm5, %v14307_v1  ;;  %v9085_v29 = vunpack.i.h.bf16 %v9083_v23  ;;  %v9084_v11 = vunpack.i.l.bf16 %v9083_v23  ;;  %v6522_v1 = vsel %vm3375_vm14, %v6490_v14, %v9079_v55  ;;  %v6523_v58 = vsel %vm3375_vm14, %v6491_v54, %v9080_v61 }
 0x778   : > { %v9088_v6 = vpop.permute.xlu1 %9087 }
 0x779   : > { %v6554_v4 = vsel %vm3408_vm15, %v6522_v1, %v9084_v11  ;;  %v6555_v25 = vsel %vm3408_vm15, %v6523_v58, %v9085_v29  ;;  %v9090_v15 = vunpack.i.h.bf16 %v9088_v6  ;;  %v9089_v5 = vunpack.i.l.bf16 %v9088_v6 }
 0x77a   : > { %v9093_v53 = vpop.permute.xlu0 %9092 }
 0x77b   : > { %v9095_v34 = vunpack.i.h.bf16 %v9093_v53  ;;  %v9094_v7 = vunpack.i.l.bf16 %v9093_v53  ;;  %v6431_v52 = vsel %vm1726_vm7, %v14261_v12, %v9090_v15  ;;  %v6430_v26 = vsel %vm1726_vm7, %v14254_v56, %v9089_v5 }
 0x77c   : > { %v9098_v28 = vpop.permute.xlu1 %9097 }
 0x77d   : > { %v9100_v13 = vunpack.i.h.bf16 %v9098_v28  ;;  %v9099_v44 = vunpack.i.l.bf16 %v9098_v28  ;;  %v6460_v9 = vsel %vm1858_vm11, %v6430_v26, %v9094_v7  ;;  %v6461_v59 = vsel %vm1858_vm11, %v6431_v52, %v9095_v34 }
 0x77e   : > { %v9108_v51 = vpop.permute.xlu0 %9107 }
 0x77f   : > { %v6586_v60 = vsel %vm3441_vm3, %v6554_v4, %v9099_v44  ;;  %v6587_v24 = vsel %vm3441_vm3, %v6555_v25, %v9100_v13  ;;  %v9110_v39 = vunpack.i.h.bf16 %v9108_v51  ;;  %v9109_v36 = vunpack.i.l.bf16 %v9108_v51 }
 0x780   : > { %v9103_v20 = vpop.permute.xlu1 %9102 }
 0x781   : > { %v6618_v21 = vsel %vm3474_vm4, %v6586_v60, %v9109_v36  ;;  %v6619_v10 = vsel %vm3474_vm4, %v6587_v24, %v9110_v39  ;;  %v9105_v19 = vunpack.i.h.bf16 %v9103_v20  ;;  %v9104_v40 = vunpack.i.l.bf16 %v9103_v20 }
 0x782   : > { %v7448_v17 = vpack.c.bf16 %v6619_v10, %v6618_v21  ;;  %v9113_v32 = vpop.permute.xlu0 %9112 }
 0x783   : > { %v9115_v38 = vunpack.i.h.bf16 %v9113_v32  ;;  %v9114_v12 = vunpack.i.l.bf16 %v9113_v32  ;;  %v6492_v56 = vsel %vm3342_vm13, %v6460_v9, %v9104_v40  ;;  %v6493_v61 = vsel %vm3342_vm13, %v6461_v59, %v9105_v19 }
 0x784   : > { %7449 = vmatpush1.bf16.xpose.msra.mxu1 %v7448_v17  ;;  %7529 = vmatpush1.bf16.xpose.msra.mxu0 %v7448_v17  ;;  %v9118_v16 = vpop.permute.xlu1 %9117 }
 0x785   : > { %7452 = vmatprep.subr.msk.bf16.mxu1 %vm14078_vm5, %v14347_v0  ;;  %7532 = vmatprep.subr.msk.bf16.mxu0 %vm14078_vm5, %v14347_v0  ;;  %v9120_v55 = vunpack.i.h.bf16 %v9118_v16  ;;  %v9119_v8 = vunpack.i.l.bf16 %v9118_v16  ;;  %v6524_v43 = vsel %vm3375_vm14, %v6492_v56, %v9114_v12  ;;  %v6525_v0 = vsel %vm3375_vm14, %v6493_v61, %v9115_v38 }
 0x786   : > { %v9123_v33 = vpop.permute.xlu0 %9122 }
 0x787   : > { %v6556_v54 = vsel %vm3408_vm15, %v6524_v43, %v9119_v8  ;;  %v6557_v29 = vsel %vm3408_vm15, %v6525_v0, %v9120_v55  ;;  %v9125_v4 = vunpack.i.h.bf16 %v9123_v33  ;;  %v9124_v25 = vunpack.i.l.bf16 %v9123_v33 }
 0x788   : > { %v9128_v23 = vpop.permute.xlu1 %9127 }
 0x789   : > { %v9130_v24 = vunpack.i.h.bf16 %v9128_v23  ;;  %v9129_v39 = vunpack.i.l.bf16 %v9128_v23  ;;  %v6433_v10 = vsel %vm1726_vm7, %v14282_v45, %v9125_v4  ;;  %v6432_v17 = vsel %vm1726_vm7, %v14291_v30, %v9124_v25 }
 0x78a   : > { %v9133_v41 = vpop.permute.xlu0 %9132 }
 0x78b   : > { %v9135_v6 = vunpack.i.h.bf16 %v9133_v41  ;;  %v9134_v63 = vunpack.i.l.bf16 %v9133_v41  ;;  %v6463_v34 = vsel %vm1858_vm11, %v6433_v10, %v9130_v24  ;;  %v6462_v7 = vsel %vm1858_vm11, %v6432_v17, %v9129_v39 }
 0x78c   : > { %v9143_v14 = vpop.permute.xlu1 %9142 }
 0x78d   : > { %v9145_v11 = vunpack.i.h.bf16 %v9143_v14  ;;  %v9144_v53 = vunpack.i.l.bf16 %v9143_v14  ;;  %v6588_v1 = vsel %vm3441_vm3, %v6556_v54, %v9134_v63  ;;  %v6589_v58 = vsel %vm3441_vm3, %v6557_v29, %v9135_v6 }
 0x78e   : > { %v9138_v28 = vpop.permute.xlu0 %9137 }
 0x78f   : > { %v6620_v13 = vsel %vm3474_vm4, %v6588_v1, %v9144_v53  ;;  %v6621_v44 = vsel %vm3474_vm4, %v6589_v58, %v9145_v11  ;;  %v9140_v36 = vunpack.i.h.bf16 %v9138_v28  ;;  %v9139_v20 = vunpack.i.l.bf16 %v9138_v28 }
 0x790   : > { %v7453_v51 = vpack.c.bf16 %v6621_v44, %v6620_v13  ;;  %v9148_v60 = vpop.permute.xlu1 %9147 }
 0x791   : > { %v9150_v5 = vunpack.i.h.bf16 %v9148_v60  ;;  %v9149_v21 = vunpack.i.l.bf16 %v9148_v60  ;;  %v6494_v16 = vsel %vm3342_vm13, %v6462_v7, %v9139_v20  ;;  %v6495_v52 = vsel %vm3342_vm13, %v6463_v34, %v9140_v36 }
 0x792   : > { %v9153_v15 = vpop.permute.xlu0 %9152  ;;  %7454 = vmatpush1.bf16.xpose.msra.mxu1 %v7453_v51  ;;  %7534 = vmatpush1.bf16.xpose.msra.mxu0 %v7453_v51 }
 0x793   : > { %7457 = vmatprep.subr.msk.bf16.mxu1 %vm14078_vm5, %v14415_v27  ;;  %7537 = vmatprep.subr.msk.bf16.mxu0 %vm14078_vm5, %v14415_v27  ;;  %v9155_v26 = vunpack.i.h.bf16 %v9153_v15  ;;  %v9154_v19 = vunpack.i.l.bf16 %v9153_v15  ;;  %v6526_v40 = vsel %vm3375_vm14, %v6494_v16, %v9149_v21  ;;  %v6527_v27 = vsel %vm3375_vm14, %v6495_v52, %v9150_v5 }
 0x794   : > { %v9158_v32 = vpop.permute.xlu1 %9157 }
 0x795   : > { %v6558_v30 = vsel %vm3408_vm15, %v6526_v40, %v9154_v19  ;;  %v6559_v38 = vsel %vm3408_vm15, %v6527_v27, %v9155_v26  ;;  %v9160_v63 = vunpack.i.h.bf16 %v9158_v32  ;;  %v9159_v43 = vunpack.i.l.bf16 %v9158_v32 }
 0x796   : > { %v9163_v33 = vpop.permute.xlu0 %9162 }
 0x797   : > { %v9165_v29 = vunpack.i.h.bf16 %v9163_v33  ;;  %v9164_v11 = vunpack.i.l.bf16 %v9163_v33  ;;  %v6435_v53 = vsel %vm1726_vm7, %v14312_v22, %v9160_v63  ;;  %v6434_v1 = vsel %vm1726_vm7, %v14304_v57, %v9159_v43 }
 0x798   : > { %v9168_v45 = vpop.permute.xlu1 %9167 }
 0x799   : > { %v9170_v9 = vunpack.i.h.bf16 %v9168_v45  ;;  %v9169_v59 = vunpack.i.l.bf16 %v9168_v45  ;;  %v6464_v44 = vsel %vm1858_vm11, %v6434_v1, %v9164_v11  ;;  %v6465_v4 = vsel %vm1858_vm11, %v6435_v53, %v9165_v29 }
 0x79a   : > { %v9178_v56 = vpop.permute.xlu0 %9177 }
 0x79b   : > { %v6590_v12 = vsel %vm3441_vm3, %v6558_v30, %v9169_v59  ;;  %v6591_v23 = vsel %vm3441_vm3, %v6559_v38, %v9170_v9  ;;  %v9180_v61 = vunpack.i.h.bf16 %v9178_v56  ;;  %v9179_v55 = vunpack.i.l.bf16 %v9178_v56 }
 0x79c   : > { %v9173_v8 = vpop.permute.xlu1 %9172 }
 0x79d   : > { %v6622_v41 = vsel %vm3474_vm4, %v6590_v12, %v9179_v55  ;;  %v6623_v6 = vsel %vm3474_vm4, %v6591_v23, %v9180_v61  ;;  %v9175_v58 = vunpack.i.h.bf16 %v9173_v8  ;;  %v9174_v28 = vunpack.i.l.bf16 %v9173_v8 }
 0x79e   : > { %v7458_v0 = vpack.c.bf16 %v6623_v6, %v6622_v41  ;;  %v9183_v14 = vpop.permute.xlu0 %9182 }
 0x79f   : > { %v9185_v25 = vunpack.i.h.bf16 %v9183_v14  ;;  %v9184_v51 = vunpack.i.l.bf16 %v9183_v14  ;;  %v6496_v24 = vsel %vm3342_vm13, %v6464_v44, %v9174_v28 }
 0x7a0   : > { %v9188_v54 = vpop.permute.xlu1 %9187  ;;  %7459 = vmatpush1.bf16.xpose.msra.mxu1 %v7458_v0  ;;  %7539 = vmatpush1.bf16.xpose.msra.mxu0 %v7458_v0 }
 0x7a1   : > { %7462 = vmatprep.subr.msk.bf16.mxu1 %vm14078_vm5, %v14504_v47  ;;  %7542 = vmatprep.subr.msk.bf16.mxu0 %vm14078_vm5, %v14504_v47  ;;  %v6497_v47 = vsel %vm3342_vm13, %v6465_v4, %v9175_v58  ;;  %v9190_v39 = vunpack.i.h.bf16 %v9188_v54  ;;  %v9189_v36 = vunpack.i.l.bf16 %v9188_v54  ;;  %v6528_v57 = vsel %vm3375_vm14, %v6496_v24, %v9184_v51 }
 0x7a2   : > { %v9193_v13 = vpop.permute.xlu0 %9192  ;;  %v6529_v5 = vsel %vm3375_vm14, %v6497_v47, %v9185_v25 }
 0x7a3   : > { %v6560_v10 = vsel %vm3408_vm15, %v6528_v57, %v9189_v36  ;;  %v6561_v17 = vsel %vm3408_vm15, %v6529_v5, %v9190_v39  ;;  %v9195_v40 = vunpack.i.h.bf16 %v9193_v13  ;;  %v9194_v27 = vunpack.i.l.bf16 %v9193_v13 }
 0x7a5   : > { %v9198_v60 = vpop.permute.xlu1 %9197  ;;  %v6437_v61 = vsel %vm1726_vm7, %v14363_v62, %v9195_v40  ;;  %v6436_v55 = vsel %vm1726_vm7, %v14376_v18, %v9194_v27 }
 0x7a6   : > { %v9203_v22 = vpop.permute.xlu0 %9202  ;;  %v9200_v9 = vunpack.i.h.bf16 %v9198_v60  ;;  %v9199_v59 = vunpack.i.l.bf16 %v9198_v60 }
 0x7a7   : > { %v9205_v20 = vunpack.i.h.bf16 %v9203_v22  ;;  %v9204_v15 = vunpack.i.l.bf16 %v9203_v22 }
 0x7a8   : > { %v6467_v41 = vsel %vm1858_vm11, %v6437_v61, %v9200_v9  ;;  %v6466_v6 = vsel %vm1858_vm11, %v6436_v55, %v9199_v59 }
 0x7a9   : > { %v9213_v21 = vpop.permute.xlu1 %9212  ;;  %v6592_v16 = vsel %vm3441_vm3, %v6560_v10, %v9204_v15  ;;  %v6593_v52 = vsel %vm3441_vm3, %v6561_v17, %v9205_v20 }
 0x7aa   : > { %v9215_v32 = vunpack.i.h.bf16 %v9213_v21  ;;  %v9214_v34 = vunpack.i.l.bf16 %v9213_v21  ;;  %v9208_v7 = vpop.permute.xlu0 %9207 }
 0x7ab   : > { %v9210_v38 = vunpack.i.h.bf16 %v9208_v7  ;;  %v9209_v12 = vunpack.i.l.bf16 %v9208_v7 }
 0x7ac   : > { %v6624_v26 = vsel %vm3474_vm4, %v6592_v16, %v9214_v34  ;;  %v6625_v19 = vsel %vm3474_vm4, %v6593_v52, %v9215_v32 }
 0x7ad   : > { %v7463_v33 = vpack.c.bf16 %v6625_v19, %v6624_v26  ;;  %v9218_v45 = vpop.permute.xlu1 %9217  ;;  %v6498_v43 = vsel %vm3342_vm13, %v6466_v6, %v9209_v12  ;;  %v6499_v0 = vsel %vm3342_vm13, %v6467_v41, %v9210_v38 }
 0x7ae   : > { %v9223_v30 = vpop.permute.xlu0 %9222  ;;  %v9220_v23 = vunpack.i.h.bf16 %v9218_v45  ;;  %v9219_v56 = vunpack.i.l.bf16 %v9218_v45 }
 0x7af   : > { %7464 = vmatpush1.bf16.xpose.msra.mxu1 %v7463_v33  ;;  %7544 = vmatpush1.bf16.xpose.msra.mxu0 %v7463_v33  ;;  %v9225_v14 = vunpack.i.h.bf16 %v9223_v30  ;;  %v9224_v54 = vunpack.i.l.bf16 %v9223_v30 }
 0x7b0   : > { %7467 = vmatprep.subr.msk.bf16.mxu1 %vm14078_vm5, %v14572_v35  ;;  %7547 = vmatprep.subr.msk.bf16.mxu0 %vm14078_vm5, %v14572_v35  ;;  %v6530_v35 = vsel %vm3375_vm14, %v6498_v43, %v9219_v56  ;;  %v6531_v29 = vsel %vm3375_vm14, %v6499_v0, %v9220_v23 }
 0x7b1   : > { %v9228_v8 = vpop.permute.xlu1 %9227  ;;  %v6562_v1 = vsel %vm3408_vm15, %v6530_v35, %v9224_v54  ;;  %v6563_v58 = vsel %vm3408_vm15, %v6531_v29, %v9225_v14 }
 0x7b2   : > { %v9233_v63 = vpop.permute.xlu0 %9232  ;;  %v9230_v24 = vunpack.i.h.bf16 %v9228_v8  ;;  %v9229_v47 = vunpack.i.l.bf16 %v9228_v8 }
 0x7b3   : > { %v9235_v22 = vunpack.i.h.bf16 %v9233_v63  ;;  %v9234_v20 = vunpack.i.l.bf16 %v9233_v63 }
 0x7b4   : > { %v6439_v57 = vsel %vm1726_vm7, %v14430_v42, %v9230_v24  ;;  %v6438_v5 = vsel %vm1726_vm7, %v14448_v37, %v9229_v47 }
 0x7b5   : > { %v9238_v62 = vpop.permute.xlu1 %9237  ;;  %v6468_v32 = vsel %vm1858_vm11, %v6438_v5, %v9234_v20  ;;  %v6469_v34 = vsel %vm1858_vm11, %v6439_v57, %v9235_v22 }
 0x7b6   : > { %v9240_v11 = vunpack.i.h.bf16 %v9238_v62  ;;  %v9239_v53 = vunpack.i.l.bf16 %v9238_v62  ;;  %v9248_v18 = vpop.permute.xlu0 %9247 }
 0x7b7   : > { %v9250_v28 = vunpack.i.h.bf16 %v9248_v18  ;;  %v9249_v13 = vunpack.i.l.bf16 %v9248_v18  ;;  %v16114_v18 = vld [vmem:[#allocation109_spill] sm:$0xff] }
 0x7b8   : > { %v6595_v44 = vsel %vm3441_vm3, %v6563_v58, %v9240_v11  ;;  %v6594_v4 = vsel %vm3441_vm3, %v6562_v1, %v9239_v53 }
 0x7b9   : > { %v6627_v25 = vsel %vm3474_vm4, %v6595_v44, %v9250_v28  ;;  %v6626_v51 = vsel %vm3474_vm4, %v6594_v4, %v9249_v13  ;;  %v9243_v60 = vpop.permute.xlu1 %9242 }
 0x7ba   : > { %v7468_v39 = vpack.c.bf16 %v6627_v25, %v6626_v51  ;;  %v9253_v36 = vpop.permute.xlu0 %9252  ;;  %v9245_v21 = vunpack.i.h.bf16 %v9243_v60  ;;  %v9244_v10 = vunpack.i.l.bf16 %v9243_v60 }
 0x7bb   : > { %v9255_v7 = vunpack.i.h.bf16 %v9253_v36  ;;  %v9254_v16 = vunpack.i.l.bf16 %v9253_v36 }
 0x7bc   : > { %7469 = vmatpush1.bf16.xpose.msra.mxu1 %v7468_v39  ;;  %7549 = vmatpush1.bf16.xpose.msra.mxu0 %v7468_v39  ;;  %v6501_v26 = vsel %vm3342_vm13, %v6469_v34, %v9245_v21 }
 0x7bd   : > { %v9258_v15 = vpop.permute.xlu1 %9257  ;;  %7472 = vmatprep.subr.msk.bf16.mxu1 %vm14078_vm5, %v14678_v2  ;;  %7552 = vmatprep.subr.msk.bf16.mxu0 %vm14078_vm5, %v14678_v2  ;;  %v6500_v2 = vsel %vm3342_vm13, %v6468_v32, %v9244_v10  ;;  %v6533_v37 = vsel %vm3375_vm14, %v6501_v26, %v9255_v7  ;;  %v16115_v26 = vld [vmem:[#allocation46_spill] sm:$0xff] }
 0x7be   : > { %v9260_v19 = vunpack.i.h.bf16 %v9258_v15  ;;  %v9259_v40 = vunpack.i.l.bf16 %v9258_v15  ;;  %v6532_v45 = vsel %vm3375_vm14, %v6500_v2, %v9254_v16  ;;  %v16116_v2 = vld [vmem:[#allocation47_spill] sm:$0xff] }
 0x7bf   : > { %v9263_v17 = vpop.permute.xlu0 %9262 }
 0x7c0   : > { %v6564_v59 = vsel %vm3408_vm15, %v6532_v45, %v9259_v40  ;;  %v6565_v30 = vsel %vm3408_vm15, %v6533_v37, %v9260_v19  ;;  %v9265_v41 = vunpack.i.h.bf16 %v9263_v17  ;;  %v9264_v6 = vunpack.i.l.bf16 %v9263_v17 }
 0x7c1   : > { %v9268_v52 = vpop.permute.xlu1 %9267  ;;  %v14921_v19 = vpack.c.bf16 %v16116_v2, %v16115_v26  ;;  %v16141_v26 = vld [vmem:[#allocation59_spill] sm:$0xff] }
 0x7c2   : > { %v9270_v0 = vunpack.i.h.bf16 %v9268_v52  ;;  %v9269_v14 = vunpack.i.l.bf16 %v9268_v52  ;;  %v6441_v53 = vsel %vm1726_vm7, %v14509_v3, %v9265_v41  ;;  %v6440_v1 = vsel %vm1726_vm7, %v16114_v18, %v9264_v6  ;;  %v16117_v6 = vld [vmem:[#allocation21_spill] sm:$0xff] }
 0x7c3   : > { %v9273_v42 = vpop.permute.xlu0 %9272 }
 0x7c4   : > { %v9275_v27 = vunpack.i.h.bf16 %v9273_v42  ;;  %v9274_v33 = vunpack.i.l.bf16 %v9273_v42  ;;  %v6470_v28 = vsel %vm1858_vm11, %v6440_v1, %v9269_v14  ;;  %v6471_v13 = vsel %vm1858_vm11, %v6441_v53, %v9270_v0  ;;  %v16119_v14 = vld [vmem:[#allocation19_spill] sm:$0xff]  ;;  %v16122_v53 = vld [vmem:[#allocation81_spill] sm:$0xff]  ;;  %v6634_v1 = vld [vmem:[%s15092_s7] sm:$0xff] }
 0x7c5   : > { %v9283_v9 = vpop.permute.xlu1 %9282 }
 0x7c6   : > { %v9285_v38 = vunpack.i.h.bf16 %v9283_v9  ;;  %v9284_v12 = vunpack.i.l.bf16 %v9283_v9  ;;  %v6596_v23 = vsel %vm3441_vm3, %v6564_v59, %v9274_v33  ;;  %v6597_v56 = vsel %vm3441_vm3, %v6565_v30, %v9275_v27 }
 0x7c7   : > { %v9278_v61 = vpop.permute.xlu0 %9277 }
 0x7c8   : > { %v6628_v55 = vsel %vm3474_vm4, %v6596_v23, %v9284_v12  ;;  %v6629_v8 = vsel %vm3474_vm4, %v6597_v56, %v9285_v38  ;;  %v9280_v54 = vunpack.i.h.bf16 %v9278_v61  ;;  %v9279_v35 = vunpack.i.l.bf16 %v9278_v61 }
 0x7c9   : > { %v7473_v63 = vpack.c.bf16 %v6629_v8, %v6628_v55  ;;  %v9288_v43 = vpop.permute.xlu1 %9287 }
 0x7ca   : > { %v9290_v62 = vunpack.i.h.bf16 %v9288_v43  ;;  %v9289_v11 = vunpack.i.l.bf16 %v9288_v43  ;;  %v6502_v44 = vsel %vm3342_vm13, %v6470_v28, %v9279_v35  ;;  %v6503_v4 = vsel %vm3342_vm13, %v6471_v13, %v9280_v54  ;;  %v16118_v43 = vld [vmem:[#allocation97_spill] sm:$0xff]  ;;  %v5414_v28 = vld [vmem:[%s15094_s9] sm:$0x77] }
 0x7cb   : > { %v9293_v29 = vpop.permute.xlu0 %9292  ;;  %7474 = vmatpush1.bf16.xpose.msra.mxu1 %v7473_v63  ;;  %7554 = vmatpush1.bf16.xpose.msra.mxu0 %v7473_v63  ;;  %v16120_v35 = vld [vmem:[#allocation53_spill] sm:$0xff]  ;;  %v6853_v13 = vcombine.high %v5414_v28, %v5414_v28 }
 0x7cc   : > { %7477 = vmatprep.subr.msk.bf16.mxu1 %vm14078_vm5, %v14687_v46  ;;  %7557 = vmatprep.subr.msk.bf16.mxu0 %vm14078_vm5, %v14687_v46  ;;  %v9295_v25 = vunpack.i.h.bf16 %v9293_v29  ;;  %v9294_v51 = vunpack.i.l.bf16 %v9293_v29  ;;  %v6534_v46 = vsel %vm3375_vm14, %v6502_v44, %v9289_v11  ;;  %v6535_v24 = vsel %vm3375_vm14, %v6503_v4, %v9290_v62  ;;  %v16121_v11 = vld [vmem:[#allocation128_spill] sm:$0xff]  ;;  %v16124_v4 = vld [vmem:[#allocation99_spill] sm:$0xff] }
 0x7cd   : > { %v9298_v58 = vpop.permute.xlu1 %9297  ;;  %v7565_v18 = vpack.c.bf16 %v16122_v53, %v16121_v11  ;;  %v16123_v44 = vld [vmem:[#allocation100_spill] sm:$0xff]  ;;  %v16166_v11 = vld [vmem:[#allocation2_spill] sm:$0xff] }
 0x7ce   : > { %v9300_v47 = vunpack.i.h.bf16 %v9298_v58  ;;  %v9299_v39 = vunpack.i.l.bf16 %v9298_v58  ;;  %v6566_v20 = vsel %vm3408_vm15, %v6534_v46, %v9294_v51  ;;  %v6567_v15 = vsel %vm3408_vm15, %v6535_v24, %v9295_v25  ;;  %v6927_v51 = vld [vmem:[%s15096_s11] sm:$0x7]  ;;  %v16126_v46 = vld [vmem:[#allocation36_spill] sm:$0xff] }
 0x7cf   : > { %v9308_v60 = vpop.permute.xlu0 %9307  ;;  %v6642_v58 = vcombine.high %v6634_v1, %v6634_v1  ;;  %v7570_v25 = vpack.c.bf16 %v16124_v4, %v16123_v44  ;;  %v16171_v44 = vld [vmem:[#allocation134_spill] sm:$0xff] }
 0x7d0   : > { %v9310_v57 = vunpack.i.h.bf16 %v9308_v60  ;;  %v9309_v5 = vunpack.i.l.bf16 %v9308_v60  ;;  %v6443_v40 = vsel %vm1726_vm7, %v14575_v48, %v9300_v47  ;;  %v6442_v42 = vsel %vm1726_vm7, %v14592_v31, %v9299_v39  ;;  %v16125_v60 = vld [vmem:[#allocation37_spill] sm:$0xff]  ;;  %v16128_v47 = vld [vmem:[#allocation27_spill] sm:$0xff] }
 0x7d1   : > { %v9303_v3 = vpop.permute.xlu1 %9302  ;;  %7176 = vmatprep.mubr.msk.f32.mxu1 %vm1726_vm7, %v6642_v58  ;;  %v16127_v24 = vpack.c.bf16 %v16125_v60, %v16126_v46  ;;  %v16129_v39 = vld [vmem:[#allocation83_spill] sm:$0xff]  ;;  %v16175_v46 = vld [vmem:[#allocation68_spill] sm:$0xff] }
 0x7d2   : > { %v9305_v36 = vunpack.i.h.bf16 %v9303_v3  ;;  %v9304_v22 = vunpack.i.l.bf16 %v9303_v3  ;;  %v6635_v3 = vld [vmem:[%s15093_s8] sm:$0xf] }
 0x7d3   : > { %v9313_v21 = vpop.permute.xlu0 %9312 }
 0x7d4   : > { %v6598_v10 = vsel %vm3441_vm3, %v6566_v20, %v9304_v22  ;;  %v6599_v17 = vsel %vm3441_vm3, %v6567_v15, %v9305_v36  ;;  %v9315_v32 = vunpack.i.h.bf16 %v9313_v21  ;;  %v9314_v34 = vunpack.i.l.bf16 %v9313_v21  ;;  %v16130_v22 = vld [vmem:[#allocation60_spill] sm:$0xff]  ;;  %v16131_v20 = vld [vmem:[#allocation61_spill] sm:$0xff] }
 0x7d5   : > { %v9318_v7 = vpop.permute.xlu1 %9317  ;;  %v6630_v16 = vsel %vm3474_vm4, %v6598_v10, %v9309_v5  ;;  %v6631_v52 = vsel %vm3474_vm4, %v6599_v17, %v9310_v57  ;;  %v7575_v36 = vpack.c.bf16 %v16129_v39, %v16128_v47  ;;  %v16132_v15 = vpack.c.bf16 %v16130_v22, %v16131_v20  ;;  %v16133_v57 = vld [vmem:[#allocation28_spill] sm:$0xff]  ;;  %v16135_v10 = vld [vmem:[#allocation45_spill] sm:$0xff]  ;;  %v16181_v22 = vld [vmem:[#allocation71_spill] sm:$0xff] }
 0x7d6   : > { %v9320_v27 = vunpack.i.h.bf16 %v9318_v7  ;;  %v9319_v33 = vunpack.i.l.bf16 %v9318_v7  ;;  %v6473_v37 = vsel %vm1858_vm11, %v6443_v40, %v9315_v32  ;;  %v6472_v45 = vsel %vm1858_vm11, %v6442_v42, %v9314_v34  ;;  %v16134_v5 = vld [vmem:[#allocation32_spill] sm:$0xff]  ;;  %v16136_v17 = vld [vmem:[#allocation41_spill] sm:$0xff]  ;;  %v16143_v40 = vld [vmem:[#allocation55_spill] sm:$0xff] }
 0x7d7   : > { %v9323_v9 = vpop.permute.xlu0 %9322  ;;  %v7478_v59 = vpack.c.bf16 %v6631_v52, %v6630_v16  ;;  %v7580_v21 = vpack.c.bf16 %v16134_v5, %v16133_v57  ;;  %v16137_v32 = vpack.c.bf16 %v16135_v10, %v16136_v17  ;;  %v16138_v34 = vld [vmem:[#allocation101_spill] sm:$0xff]  ;;  %v16140_v52 = vld [vmem:[#allocation63_spill] sm:$0xff]  ;;  %v16144_v42 = vld [vmem:[#allocation102_spill] sm:$0xff] }
 0x7d8   : > { %v6504_v30 = vsel %vm3342_vm13, %v6472_v45, %v9319_v33  ;;  %v6505_v38 = vsel %vm3342_vm13, %v6473_v37, %v9320_v27  ;;  %v9325_v12 = vunpack.i.h.bf16 %v9323_v9  ;;  %v9324_v23 = vunpack.i.l.bf16 %v9323_v9  ;;  %v16139_v7 = vld [vmem:[#allocation29_spill] sm:$0xff]  ;;  %v16145_v33 = vld [vmem:[#allocation62_spill] sm:$0xff]  ;;  %v16179_v47 = vld [vmem:[#allocation56_spill] sm:$0xff] }
 0x7d9   : > { %7479 = vmatpush1.bf16.xpose.msra.mxu1 %v7478_v59  ;;  %7559 = vmatpush1.bf16.xpose.msra.mxu0 %v7478_v59  ;;  %v9328_v48 = vpop.permute.xlu1 %9327  ;;  %v7585_v16 = vpack.c.bf16 %v16139_v7, %v16138_v34  ;;  %v16142_v2 = vpack.c.bf16 %v16140_v52, %v16141_v26  ;;  %v7590_v27 = vpack.c.bf16 %v16144_v42, %v16143_v40  ;;  %v16146_v37 = vld [vmem:[#allocation42_spill] sm:$0xff]  ;;  %v16149_v59 = vld [vmem:[#allocation133_spill] sm:$0xff]  ;;  %v16186_v10 = vld [vmem:[#allocation136_spill] sm:$0xff] }
 0x7da   : > { %v9330_v56 = vunpack.i.h.bf16 %v9328_v48  ;;  %v9329_v61 = vunpack.i.l.bf16 %v9328_v48  ;;  %7482 = vmatprep.subr.msk.bf16.mxu1 %vm14078_vm5, %v14921_v19  ;;  %7562 = vmatprep.subr.msk.bf16.mxu0 %vm14078_vm5, %v14921_v19  ;;  %v6536_v31 = vsel %vm3375_vm14, %v6504_v30, %v9324_v23  ;;  %v6537_v55 = vsel %vm3375_vm14, %v6505_v38, %v9325_v12  ;;  %v16148_v9 = vld [vmem:[#allocation30_spill] sm:$0xff]  ;;  %v16151_v12 = vld [vmem:[#allocation87_spill] sm:$0xff]  ;;  %v16153_v48 = vld [vmem:[#allocation33_spill] sm:$0xff] }
 0x7db   : > { %v16147_v45 = vpack.c.bf16 %v16145_v33, %v16146_v37  ;;  %v7595_v30 = vpack.c.bf16 %v16149_v59, %v16148_v9  ;;  %v16150_v38 = vld [vmem:[#allocation118_spill] sm:$0xff]  ;;  %v16184_v57 = vld [vmem:[#allocation65_spill] sm:$0xff]  ;;  %v16189_v34 = vld [vmem:[#allocation116_spill] sm:$0xff] }
 0x7dc   : > { %v6568_v8 = vsel %vm3408_vm15, %v6536_v31, %v9329_v61  ;;  %v6569_v41 = vsel %vm3408_vm15, %v6537_v55, %v9330_v56  ;;  %v16152_v23 = vpack.c.bf16 %v16150_v38, %v16151_v12  ;;  %v16154_v56 = vld [vmem:[#allocation31_spill] sm:$0xff]  ;;  %v16156_v55 = vld [vmem:[#allocation106_spill] sm:$0xff]  ;;  %v16191_v52 = vld [vmem:[#allocation120_spill] sm:$0xff] }
 0x7dd   : > { %v6600_v63 = vsel %vm3441_vm3, %v6568_v8, %v16117_v6  ;;  %v6601_v0 = vsel %vm3441_vm3, %v6569_v41, %v16118_v43  ;;  %v7600_v61 = vpack.c.bf16 %v16154_v56, %v16153_v48  ;;  %v16155_v31 = vld [vmem:[#allocation119_spill] sm:$0xff]  ;;  %v16159_v6 = vld [vmem:[#allocation34_spill] sm:$0xff]  ;;  %v16194_v40 = vld [vmem:[#allocation137_spill] sm:$0xff] }
 0x7de   : > { %v6632_v54 = vsel %vm3474_vm4, %v6600_v63, %v16119_v14  ;;  %v6633_v29 = vsel %vm3474_vm4, %v6601_v0, %v16120_v35  ;;  %v16157_v8 = vpack.c.bf16 %v16155_v31, %v16156_v55  ;;  %v16158_v41 = vld [vmem:[#allocation35_spill] sm:$0xff]  ;;  %v16161_v0 = vld [vmem:[#allocation89_spill] sm:$0xff]  ;;  %v16197_v33 = vld [vmem:[#allocation90_spill] sm:$0xff] }
 0x7df   : > { %v7483_v62 = vpack.c.bf16 %v6633_v29, %v6632_v54  ;;  %v7605_v63 = vpack.c.bf16 %v16159_v6, %v16158_v41  ;;  %v16160_v43 = vld [vmem:[#allocation3_spill] sm:$0xff]  ;;  %v16163_v54 = vld [vmem:[#allocation104_spill] sm:$0xff] }
 0x7e0   : > { %v16162_v14 = vpack.c.bf16 %v16160_v43, %v16161_v0  ;;  %v16164_v35 = vld [vmem:[#allocation39_spill] sm:$0xff] }
 0x7e1   : > { %7484 = vmatpush1.bf16.xpose.msra.mxu1 %v7483_v62  ;;  %7564 = vmatpush1.bf16.xpose.msra.mxu0 %v7483_v62  ;;  %v7610_v29 = vpack.c.bf16 %v16164_v35, %v16163_v54  ;;  %v16165_v62 = vld [vmem:[#allocation38_spill] sm:$0xff] }
 0x7e2   : > { %7567 = vmatprep.subr.msk.bf16.mxu0 %vm14078_vm5, %v7565_v18  ;;  %v16167_v53 = vpack.c.bf16 %v16165_v62, %v16166_v11  ;;  %v16168_v18 = vld [vmem:[#allocation48_spill] sm:$0xff] }
 0x7e8   : > { %6846 = vmatmul.mubr.f32.vlgmr.msra.gmra.mrb[64].mxu0 %v14728_v50  ;;  %6770 = vmatmul.mubr.f32.vlgmr.msra.gmra.mrb[96].mxu1 %v6634_v1  ;;  %v9360_v50 = vmov 0   ;;  %v16169_v1 = vld [vmem:[#allocation49_spill] sm:$0xff] }
 0x7e9   : > { %7569 = vmatpush1.bf16.xpose.msra.mxu0 %v16127_v24  ;;  %7242 = vmatprep.mubr.msk.f32.mxu0 %vm1726_vm7, %v6853_v13  ;;  %v7615_v58 = vpack.c.bf16 %v16169_v1, %v16168_v18  ;;  %v16170_v13 = vld [vmem:[#allocation4_spill] sm:$0xff]  ;;  %v16176_v24 = vld [vmem:[#allocation43_spill] sm:$0xff] }
 0x7ea   : > { %7572 = vmatprep.subr.msk.bf16.mxu0 %vm14078_vm5, %v7570_v25  ;;  %9332 = vset.pattern.permute.xlu1 %v9360_v50  ;;  %v16172_v4 = vpack.c.bf16 %v16170_v13, %v16171_v44  ;;  %v16173_v25 = vld [vmem:[#allocation107_spill] sm:$0xff] }
 0x7eb   : > { %9331 = vset.pattern.permute.xlu0 %v9360_v50  ;;  %6930 = vperm.xlu1 %9332, %v6927_v51   ;;  %v16174_v51 = vld [vmem:[#allocation58_spill] sm:$0xff]  ;;  %v16178_v50 = vld [vmem:[#allocation57_spill] sm:$0xff] }
 0x7ec   : > { %6638 = vperm.xlu0 %9331, %v6635_v3   ;;  %v7620_v60 = vpack.c.bf16 %v16174_v51, %v16173_v25  ;;  %v16177_v3 = vpack.c.bf16 %v16175_v46, %v16176_v24  ;;  %v7625_v39 = vpack.c.bf16 %v16179_v47, %v16178_v50 }
 0x7f1   : > { %7574 = vmatpush1.bf16.xpose.msra.mxu0 %v16132_v15  ;;  %v16183_v15 = vld [vmem:[#allocation117_spill] sm:$0xff] }
 0x7f2   : > { %7577 = vmatprep.subr.msk.bf16.mxu0 %vm14078_vm5, %v7575_v36  ;;  %v16180_v36 = vld [vmem:[#allocation8_spill] sm:$0xff]  ;;  %v7630_v5 = vpack.c.bf16 %v16184_v57, %v16183_v15 }
 0x7f3   : > { %v16182_v20 = vpack.c.bf16 %v16180_v36, %v16181_v22 }
 0x7f9   : > { %7579 = vmatpush1.bf16.xpose.msra.mxu0 %v16137_v32  ;;  %v16188_v32 = vld [vmem:[#allocation132_spill] sm:$0xff] }
 0x7fa   : > { %7582 = vmatprep.subr.msk.bf16.mxu0 %vm14078_vm5, %v7580_v21  ;;  %v16185_v21 = vld [vmem:[#allocation108_spill] sm:$0xff]  ;;  %v7635_v7 = vpack.c.bf16 %v16189_v34, %v16188_v32 }
 0x7fb   : > { %v16187_v17 = vpack.c.bf16 %v16185_v21, %v16186_v10 }
 0x801   : > { %7584 = vmatpush1.bf16.xpose.msra.mxu0 %v16142_v2  ;;  %v16193_v2 = vld [vmem:[#allocation72_spill] sm:$0xff] }
 0x802   : > { %7587 = vmatprep.subr.msk.bf16.mxu0 %vm14078_vm5, %v7585_v16  ;;  %v16190_v16 = vld [vmem:[#allocation10_spill] sm:$0xff]  ;;  %v16195_v42 = vpack.c.bf16 %v16193_v2, %v16194_v40 }
 0x803   : > { %v16192_v26 = vpack.c.bf16 %v16190_v16, %v16191_v52 }
 0x809   : > { %7589 = vmatpush1.bf16.xpose.msra.mxu0 %v16147_v45 }
 0x80a   : > { %7592 = vmatprep.subr.msk.bf16.mxu0 %vm14078_vm5, %v7590_v27  ;;  %v16196_v27 = vld [vmem:[#allocation50_spill] sm:$0xff] }
 0x80b   : > { %v16198_v37 = vpack.c.bf16 %v16196_v27, %v16197_v33 }
 0x811   : > { %7594 = vmatpush1.bf16.xpose.msra.mxu0 %v16152_v23 }
 0x812   : > { %7597 = vmatprep.subr.msk.bf16.mxu0 %vm14078_vm5, %v7595_v30 }
 0x819   : > { %7599 = vmatpush1.bf16.xpose.msra.mxu0 %v16157_v8 }
 0x81a   : > { %7602 = vmatprep.subr.msk.bf16.mxu0 %vm14078_vm5, %v7600_v61 }
 0x821   : > { %7604 = vmatpush1.bf16.xpose.msra.mxu0 %v16162_v14 }
 0x822   : > { %7607 = vmatprep.subr.msk.bf16.mxu0 %vm14078_vm5, %v7605_v63 }
 0x829   : > { %7609 = vmatpush1.bf16.xpose.msra.mxu0 %v16167_v53 }
 0x82a   : > { %7612 = vmatprep.subr.msk.bf16.mxu0 %vm14078_vm5, %v7610_v29 }
 0x831   : > { %7614 = vmatpush1.bf16.xpose.msra.mxu0 %v16172_v4 }
 0x832   : > { %7617 = vmatprep.subr.msk.bf16.mxu0 %vm14078_vm5, %v7615_v58 }
 0x839   : > { %7619 = vmatpush1.bf16.xpose.msra.mxu0 %v16177_v3 }
 0x83a   : > { %7622 = vmatprep.subr.msk.bf16.mxu0 %vm14078_vm5, %v7620_v60 }
 0x841   : > { %7624 = vmatpush1.bf16.xpose.msra.mxu0 %v16182_v20 }
 0x842   : > { %7627 = vmatprep.subr.msk.bf16.mxu0 %vm14078_vm5, %v7625_v39 }
 0x849   : > { %7629 = vmatpush1.bf16.xpose.msra.mxu0 %v16187_v17 }
 0x84a   : > { %7632 = vmatprep.subr.msk.bf16.mxu0 %vm14078_vm5, %v7630_v5 }
 0x851   : > { %7634 = vmatpush1.bf16.xpose.msra.mxu0 %v16192_v26 }
 0x852   : > { %7637 = vmatprep.subr.msk.bf16.mxu0 %vm14078_vm5, %v7635_v7 }
 0x859   : > { %7639 = vmatpush1.bf16.xpose.msra.mxu0 %v16195_v42 }
 0x85a   : > { %7642 = vmatprep.subr.msk.bf16.mxu0 %vm14078_vm5, %v14921_v19 }
 0x861   : > { %7644 = vmatpush1.bf16.xpose.msra.mxu0 %v16198_v37 }
 0x868   : > { %6921 = vmatmul.mubr.f32.vlgmr.msra.gmra.mrb[64].mxu0 %v5414_v28 }
 0x86a   : > { %v6931_v23 = vpop.permute.xlu1 %6930 }
 0x86b   : > { %v6639_v45 = vpop.permute.xlu0 %6638 }
 0x8bb   : > { %v6771_v9 = vpop.f32.mrb[96].mxu1 }
 0x8bc   : > { %v6772_v59 = vadd.f32 %v6771_v9, %v6639_v45  ;;  %v6773_v30 = vpop.f32.mrb[97].mxu1 }
 0x8bd   : > { %v6774_v38 = vadd.f32 %v6773_v30, %v6639_v45 }
 0x8bf   : > { %v6937_v12 = vcombine.low %v6772_v59, %v6774_v38 }
 0x8c1   : > { %6939 = vst [vmem:[%s448_s23] sm:$0xff] %v6937_v12 }
 0x93b   : > { %v6922_v49 = vpop.f32.mrb[64].mxu0 }
 0x93c   : > { %v6933_v19 = vadd.f32 %v6931_v23, %v6922_v49  ;;  %v6924_v48 = vpop.f32.mrb[65].mxu0 }
 0x93d   : > { %v6934_v56 = vadd.f32 %v6931_v23, %v6924_v48 }
 0x93f   : > { %v6942_v28 = vcombine.low %v6933_v19, %v6934_v56 }
 0x941   : > { %6944 = vst [vmem:[%s453_s22] sm:$0x77] %v6942_v28 }
 0x942 PF: > { %s24_s25 = sadd.s32 1, %s9343_s25  }
 0x943   : > { %p21_p4 = scmp.ge.s32.totalorder %s24_s25, 4  }
 0x945   :  { %23 = sbr.rel (!%p21_p4) target bundleno = 1 (0x1), region = 110 }

</bundles_post_ra>
